<compile_context>
chip_gen: v6e
topology: v6e:2x2x1
jax: 0.10.0
libtpu: 0.0.40
codegen_flags: <defaults>
</compile_context>

<pallas_src>
import functools

import jax
import jax.numpy as jnp
from jax import lax
from jax.experimental import pallas as pl
from jax.experimental.pallas import tpu as pltpu


def _ode_kernel(x_ref, w_ref, b_ref, fc1_ref, fc2_ref, o_ref, pad_ref,
                *, H, W, C):
    # x_ref  : (1, H, W, C)    one input image (NHWC)
    # w_ref  : (4, 9*C, C)     four 3x3 conv weights in im2col layout (tap-major K)
    # b_ref  : (4, 1, C)       four conv biases
    # fc1_ref: (2, C, C)       fc1 (1x1, no bias) split into f1/f2 halves, (Cin,Cout)
    # fc2_ref: (1, C)          fc2 (1x1, no bias) weight row
    # o_ref  : (1, H*W, C)     output, flattened spatial, channel-last
    # pad_ref: (H+2, W+2, C)   VMEM scratch providing the zero halo ('same' pad)
    HW = H * W
    K = 9 * C

    # Zero only the 1-pixel halo (every step; see header for why not pid==0).
    # Border traffic ~2*(H+W+2)*C elems vs (H+2)*(W+2)*C for a full re-zero.
    pad_ref[pl.ds(0, 1), :, :] = jnp.zeros((1, W + 2, C), jnp.float32)
    pad_ref[pl.ds(H + 1, 1), :, :] = jnp.zeros((1, W + 2, C), jnp.float32)
    pad_ref[:, pl.ds(0, 1), :] = jnp.zeros((H + 2, 1, C), jnp.float32)
    pad_ref[:, pl.ds(W + 1, 1), :] = jnp.zeros((H + 2, 1, C), jnp.float32)

    def store_interior(flat):
        pad_ref[pl.ds(1, H), pl.ds(1, W), :] = flat.reshape(H, W, C)

    def conv3x3(layer):
        """3x3 'same' conv of the feature map currently held in pad_ref.

        Builds an (HW, 9C) im2col operand by concatenating the 9 shifted
        windows along the contraction axis and runs a single deep MXU matmul
        (K = 9C) with f32 accumulation, then adds the bias.
        """
        taps = [pad_ref[pl.ds(dh, H), pl.ds(dw, W), :]
                for dh in range(3) for dw in range(3)]
        col = jnp.concatenate(taps, axis=-1).reshape(HW, K)
        y = jnp.dot(col, w_ref[layer], preferred_element_type=jnp.float32)
        return y + b_ref[layer]                             # (1, C) bias broadcasts

    # Load the input into the scratch interior; all 4 convs read from pad_ref.
    x3 = x_ref[0]                                           # (H, W, C)
    pad_ref[pl.ds(1, H), pl.ds(1, W), :] = x3
    x2 = x3.reshape(HW, C)

    # F1 = conv(relu(conv(x)))
    store_interior(jnp.maximum(conv3x3(0), 0.0))
    f1 = conv3x3(1)

    # F2 = conv(relu(conv(f1 + x)))
    store_interior(f1 + x2)
    store_interior(jnp.maximum(conv3x3(2), 0.0))
    f2 = conv3x3(3)

    # getAlpha(cat([f1, f2], channel)): global avg & max pooling, then
    # fc1 (1x1, no bias) -> ReLU -> fc2 (1x1, no bias), summed, sigmoid.
    inv_hw = 1.0 / float(HW)
    avg1 = jnp.sum(f1, axis=0, keepdims=True) * inv_hw       # (1, C)
    avg2 = jnp.sum(f2, axis=0, keepdims=True) * inv_hw
    mx1 = jnp.max(f1, axis=0, keepdims=True)
    mx2 = jnp.max(f2, axis=0, keepdims=True)

    def head(v1, v2):
        h = jnp.dot(v1, fc1_ref[0], preferred_element_type=jnp.float32)
        h = h + jnp.dot(v2, fc1_ref[1], preferred_element_type=jnp.float32)
        return jnp.maximum(h, 0.0)                           # (1, C)

    h_sum = head(avg1, avg2) + head(mx1, mx2)                # fc2 is linear
    logit = jnp.sum(h_sum * fc2_ref[...], axis=1, keepdims=True)  # (1, 1)
    alpha = 1.0 / (1.0 + jnp.exp(-logit))

    o_ref[0] = x2 + f1 * alpha + f2 * (1.0 - alpha)


def ode_forward(x_nchw, w_convs, b_convs, fc1_w, fc2_w):
    """ODE forward.

    x_nchw : (N, C, H, W)
    w_convs: 4 conv weights (PyTorch OIHW, each (C, C, 3, 3)) for
             F1[0], F1[2], F2[0], F2[2].
    b_convs: 4 conv biases, each (C,)
    fc1_w  : (C, 2C)  -- Conv2d(2C, C, 1, bias=False) weight squeezed
    fc2_w  : (1, C)   -- Conv2d(C, 1, 1, bias=False) weight squeezed
    Returns (N, C, H, W).
    """
    N, C, H, W = x_nchw.shape
    assert W % 8 == 0, "W must be a multiple of 8 for in-kernel (H,W,C)<->(HW,C) reshapes"
    # TODO(synk): widths not a multiple of 8 would need spatial padding; and
    # large H*W*C needs tiling over H rows (2-row halo) instead of one whole
    # image per grid step.

    # Layout glue.  TODO(synk): drop both transposes if the surrounding graph
    # can produce/consume NHWC (each one is a full-tensor HBM round trip).
    x_nhwc = jnp.transpose(x_nchw, (0, 2, 3, 1)).astype(jnp.float32)

    # (Cout, Cin, kh, kw) -> im2col weight (9*Cin, Cout), tap-major rows,
    # matching the in-kernel concat order (dh outer, dw inner, then channels).
    w_all = jnp.stack([jnp.transpose(w, (2, 3, 1, 0)).reshape(9 * C, C)
                       for w in w_convs]).astype(jnp.float32)          # (4, 9C, C)
    b_all = jnp.stack([b.reshape(1, C) for b in b_convs]).astype(jnp.float32)
    fc1_stack = jnp.stack([fc1_w[:, :C].T, fc1_w[:, C:].T]).astype(jnp.float32)
    fc2_row = fc2_w.reshape(1, C).astype(jnp.float32)

    HW = H * W
    kernel = functools.partial(_ode_kernel, H=H, W=W, C=C)

    # Explicit VMEM budget: halo scratch + double-buffered in/out blocks +
    # (double-buffered) weights + live f32 values (im2col ~9 maps + f1/f2/t/x).
    f32 = 4
    est = ((H + 2) * (W + 2) * C                       # scratch
           + 2 * 2 * HW * C                            # in + out blocks, 2 buffers
           + 2 * (4 * 9 * C * C + 4 * C + 2 * C * C + C)   # weights, 2 buffers
           + 16 * HW * C) * f32                        # live values + slack
    vmem_limit = int(min(max(2 * est, 32 << 20), 64 << 20))

    out_flat = pl.pallas_call(
        kernel,
        out_shape=jax.ShapeDtypeStruct((N, HW, C), jnp.float32),
        grid=(N,),
        in_specs=[
            pl.BlockSpec((1, H, W, C), lambda n: (n, 0, 0, 0)),
            # Constant-index weight operands (fetched once, reused every step).
            # For very large C on v7x, mark these pipeline_mode=pl.Buffered(1)
            # to drop the second buffer.
            pl.BlockSpec((4, 9 * C, C), lambda n: (0, 0, 0)),
            pl.BlockSpec((4, 1, C), lambda n: (0, 0, 0)),
            pl.BlockSpec((2, C, C), lambda n: (0, 0, 0)),
            pl.BlockSpec((1, C), lambda n: (0, 0)),
        ],
        out_specs=pl.BlockSpec((1, HW, C), lambda n: (n, 0, 0)),
        scratch_shapes=[pltpu.VMEM((H + 2, W + 2, C), jnp.float32)],
        compiler_params=pltpu.CompilerParams(
            dimension_semantics=("parallel",),
            vmem_limit_bytes=vmem_limit),
    )(x_nhwc, w_all, b_all, fc1_stack, fc2_row)

    out = out_flat.reshape(N, H, W, C)
    return jnp.transpose(out, (0, 3, 1, 2))


# ----------------------------------------------------------------------------
# Pure-JAX reference (mirrors the PyTorch module) and self-check.
# ----------------------------------------------------------------------------
def _conv3x3_ref(x, w, b):
    y = lax.conv_general_dilated(x, w, (1, 1), ((1, 1), (1, 1)),
                                 dimension_numbers=('NCHW', 'OIHW', 'NCHW'))
    return y + b.reshape(1, -1, 1, 1)


def _reference(x, w_convs, b_convs, fc1_w, fc2_w):
    f1 = _conv3x3_ref(jnp.maximum(_conv3x3_ref(x, w_convs[0], b_convs[0]), 0.0),
                      w_convs[1], b_convs[1])
    f2 = _conv3x3_ref(jnp.maximum(_conv3x3_ref(f1 + x, w_convs[2], b_convs[2]), 0.0),
                      w_convs[3], b_convs[3])
    cat = jnp.concatenate([f1, f2], axis=1)
    avg = jnp.mean(cat, axis=(2, 3))                    # (N, 2C)
    mx = jnp.max(cat, axis=(2, 3))

    def head(v):
        h = jnp.maximum(v @ fc1_w.T, 0.0)
        return h @ fc2_w.T                              # (N, 1)

    alpha = jax.nn.sigmoid(head(avg) + head(mx)).reshape(-1, 1, 1, 1)
    return x + f1 * alpha + f2 * (1.0 - alpha)


if __name__ == "__main__":
    key = jax.random.PRNGKey(0)
    keys = jax.random.split(key, 11)

    N, C, H, W = 2, 4, 16, 16
    x = jax.random.normal(keys[0], (N, C, H, W), jnp.float32)
    w_convs = [0.2 * jax.random.normal(keys[1 + i], (C, C, 3, 3), jnp.float32)
               for i in range(4)]
    b_convs = [0.1 * jax.random.normal(keys[5 + i], (C,), jnp.float32)
               for i in range(4)]
    fc1_w = 0.2 * jax.random.normal(keys[9], (C, 2 * C), jnp.float32)
    fc2_w = 0.2 * jax.random.normal(keys[10], (1, C), jnp.float32)

    out = ode_forward(x, w_convs, b_convs, fc1_w, fc2_w)
    out = jax.block_until_ready(out)

    assert out.shape == (N, C, H, W), out.shape
    ref = _reference(x, w_convs, b_convs, fc1_w, fc2_w)
    max_err = float(jnp.max(jnp.abs(out - ref)))
    if max_err < 1e-3:
        print("KERNEL_OK")
    else:
        print(f"MISMATCH max_err={max_err}")
</pallas_src>

<mosaic_0001>
module attributes {stable_mosaic.version = 11 : i64} {
  func.func @_ode_kernel(%arg0: i32, %arg1: memref<1x16x16x4xf32, #tpu.memory_space<vmem>>, %arg2: memref<4x36x4xf32, #tpu.memory_space<vmem>>, %arg3: memref<4x1x4xf32, #tpu.memory_space<vmem>>, %arg4: memref<2x4x4xf32, #tpu.memory_space<vmem>>, %arg5: memref<1x4xf32, #tpu.memory_space<vmem>>, %arg6: memref<1x256x4xf32, #tpu.memory_space<vmem>>, %arg7: memref<18x18x4xf32, #tpu.memory_space<vmem>>) attributes {dimension_semantics = [#tpu.dimension_semantics<parallel>], iteration_bounds = array<i64: 2>, scalar_prefetch = 0 : i64, scratch_operands = 1 : i64, tpu.core_type = #tpu.core_type<tc>, window_params = [{transform_indices = @transform_0, window_bounds = array<i64: 1, 16, 16, 4>}, {pipeline_mode = #tpu.pipeline_mode<synchronous>, transform_indices = @transform_1, window_bounds = array<i64: 4, 36, 4>}, {pipeline_mode = #tpu.pipeline_mode<synchronous>, transform_indices = @transform_2, window_bounds = array<i64: 4, 1, 4>}, {pipeline_mode = #tpu.pipeline_mode<synchronous>, transform_indices = @transform_3, window_bounds = array<i64: 2, 4, 4>}, {pipeline_mode = #tpu.pipeline_mode<synchronous>, transform_indices = @transform_4, window_bounds = array<i64: 1, 4>}, {transform_indices = @transform_5, window_bounds = array<i64: 1, 256, 4>}]} {
    %cst = arith.constant 0.000000e+00 : f32
    %0 = vector.broadcast %cst : f32 to vector<1x18x4xf32>
    %c0 = arith.constant 0 : index
    %c0_0 = arith.constant 0 : index
    %c0_1 = arith.constant 0 : index
    %1 = vector.load %arg7[%c0, %c0_0, %c0_1] : memref<18x18x4xf32, #tpu.memory_space<vmem>>, vector<1x18x4xf32>
    tpu.vector_store %arg7[%c0, %c0_0, %c0_1], %0 {strides = array<i32>} : memref<18x18x4xf32, #tpu.memory_space<vmem>>, vector<1x18x4xf32>,
    %cst_2 = arith.constant 0.000000e+00 : f32
    %2 = vector.broadcast %cst_2 : f32 to vector<1x18x4xf32>
    %c17 = arith.constant 17 : index
    %c0_3 = arith.constant 0 : index
    %c0_4 = arith.constant 0 : index
    %3 = vector.load %arg7[%c17, %c0_3, %c0_4] : memref<18x18x4xf32, #tpu.memory_space<vmem>>, vector<1x18x4xf32>
    tpu.vector_store %arg7[%c17, %c0_3, %c0_4], %2 {strides = array<i32>} : memref<18x18x4xf32, #tpu.memory_space<vmem>>, vector<1x18x4xf32>,
    %cst_5 = arith.constant 0.000000e+00 : f32
    %4 = vector.broadcast %cst_5 : f32 to vector<18x1x4xf32>
    %c0_6 = arith.constant 0 : index
    %c0_7 = arith.constant 0 : index
    %c0_8 = arith.constant 0 : index
    %5 = vector.load %arg7[%c0_6, %c0_7, %c0_8] : memref<18x18x4xf32, #tpu.memory_space<vmem>>, vector<18x1x4xf32>
    tpu.vector_store %arg7[%c0_6, %c0_7, %c0_8], %4 {strides = array<i32>} : memref<18x18x4xf32, #tpu.memory_space<vmem>>, vector<18x1x4xf32>,
    %cst_9 = arith.constant 0.000000e+00 : f32
    %6 = vector.broadcast %cst_9 : f32 to vector<18x1x4xf32>
    %c0_10 = arith.constant 0 : index
    %c17_11 = arith.constant 17 : index
    %c0_12 = arith.constant 0 : index
    %7 = vector.load %arg7[%c0_10, %c17_11, %c0_12] : memref<18x18x4xf32, #tpu.memory_space<vmem>>, vector<18x1x4xf32>
    tpu.vector_store %arg7[%c0_10, %c17_11, %c0_12], %6 {strides = array<i32>} : memref<18x18x4xf32, #tpu.memory_space<vmem>>, vector<18x1x4xf32>,
    %c0_13 = arith.constant 0 : index
    %c0_14 = arith.constant 0 : index
    %c0_15 = arith.constant 0 : index
    %c0_16 = arith.constant 0 : index
    %8 = vector.load %arg1[%c0_13, %c0_14, %c0_15, %c0_16] : memref<1x16x16x4xf32, #tpu.memory_space<vmem>>, vector<1x16x16x4xf32>
    %9 = vector.shape_cast %8 : vector<1x16x16x4xf32> to vector<16x16x4xf32>
    %c1 = arith.constant 1 : index
    %c1_17 = arith.constant 1 : index
    %c0_18 = arith.constant 0 : index
    %10 = vector.load %arg7[%c1, %c1_17, %c0_18] : memref<18x18x4xf32, #tpu.memory_space<vmem>>, vector<16x16x4xf32>
    tpu.vector_store %arg7[%c1, %c1_17, %c0_18], %9 {strides = array<i32>} : memref<18x18x4xf32, #tpu.memory_space<vmem>>, vector<16x16x4xf32>,
    %11 = vector.shape_cast %9 : vector<16x16x4xf32> to vector<256x4xf32>
    %c0_19 = arith.constant 0 : index
    %c0_20 = arith.constant 0 : index
    %c0_21 = arith.constant 0 : index
    %12 = vector.load %arg7[%c0_19, %c0_20, %c0_21] : memref<18x18x4xf32, #tpu.memory_space<vmem>>, vector<16x16x4xf32>
    %c0_22 = arith.constant 0 : index
    %c1_23 = arith.constant 1 : index
    %c0_24 = arith.constant 0 : index
    %13 = vector.load %arg7[%c0_22, %c1_23, %c0_24] : memref<18x18x4xf32, #tpu.memory_space<vmem>>, vector<16x16x4xf32>
    %c0_25 = arith.constant 0 : index
    %c2 = arith.constant 2 : index
    %c0_26 = arith.constant 0 : index
    %14 = vector.load %arg7[%c0_25, %c2, %c0_26] : memref<18x18x4xf32, #tpu.memory_space<vmem>>, vector<16x16x4xf32>
    %c1_27 = arith.constant 1 : index
    %c0_28 = arith.constant 0 : index
    %c0_29 = arith.constant 0 : index
    %15 = vector.load %arg7[%c1_27, %c0_28, %c0_29] : memref<18x18x4xf32, #tpu.memory_space<vmem>>, vector<16x16x4xf32>
    %c1_30 = arith.constant 1 : index
    %c1_31 = arith.constant 1 : index
    %c0_32 = arith.constant 0 : index
    %16 = vector.load %arg7[%c1_30, %c1_31, %c0_32] : memref<18x18x4xf32, #tpu.memory_space<vmem>>, vector<16x16x4xf32>
    %c1_33 = arith.constant 1 : index
    %c2_34 = arith.constant 2 : index
    %c0_35 = arith.constant 0 : index
    %17 = vector.load %arg7[%c1_33, %c2_34, %c0_35] : memref<18x18x4xf32, #tpu.memory_space<vmem>>, vector<16x16x4xf32>
    %c2_36 = arith.constant 2 : index
    %c0_37 = arith.constant 0 : index
    %c0_38 = arith.constant 0 : index
    %18 = vector.load %arg7[%c2_36, %c0_37, %c0_38] : memref<18x18x4xf32, #tpu.memory_space<vmem>>, vector<16x16x4xf32>
    %c2_39 = arith.constant 2 : index
    %c1_40 = arith.constant 1 : index
    %c0_41 = arith.constant 0 : index
    %19 = vector.load %arg7[%c2_39, %c1_40, %c0_41] : memref<18x18x4xf32, #tpu.memory_space<vmem>>, vector<16x16x4xf32>
    %c2_42 = arith.constant 2 : index
    %c2_43 = arith.constant 2 : index
    %c0_44 = arith.constant 0 : index
    %20 = vector.load %arg7[%c2_42, %c2_43, %c0_44] : memref<18x18x4xf32, #tpu.memory_space<vmem>>, vector<16x16x4xf32>
    %21 = tpu.concatenate %12, %13, %14, %15, %16, %17, %18, %19, %20 in 2 : vector<16x16x4xf32>, vector<16x16x4xf32>, vector<16x16x4xf32>, vector<16x16x4xf32>, vector<16x16x4xf32>, vector<16x16x4xf32>, vector<16x16x4xf32>, vector<16x16x4xf32>, vector<16x16x4xf32> -> vector<16x16x36xf32>
    %22 = vector.shape_cast %21 : vector<16x16x36xf32> to vector<256x36xf32>
    %c0_45 = arith.constant 0 : index
    %c0_46 = arith.constant 0 : index
    %c0_47 = arith.constant 0 : index
    %23 = vector.load %arg2[%c0_45, %c0_46, %c0_47] : memref<4x36x4xf32, #tpu.memory_space<vmem>>, vector<1x36x4xf32>
    %24 = vector.shape_cast %23 : vector<1x36x4xf32> to vector<36x4xf32>
    %cst_48 = arith.constant dense<0.000000e+00> : vector<256x4xf32>
    %25 = tpu.matmul %22, %24, %cst_48 {dimension_numbers = #tpu.dot_dimension_numbers<[1], [0], [0], [1], [0, 0, 1, 1], [], []>} : vector<256x36xf32>, vector<36x4xf32>, vector<256x4xf32> -> vector<256x4xf32>
    %c0_49 = arith.constant 0 : index
    %c0_50 = arith.constant 0 : index
    %c0_51 = arith.constant 0 : index
    %26 = vector.load %arg3[%c0_49, %c0_50, %c0_51] : memref<4x1x4xf32, #tpu.memory_space<vmem>>, vector<1x1x4xf32>
    %27 = vector.shape_cast %26 : vector<1x1x4xf32> to vector<1x4xf32>
    %28 = vector.broadcast %27 : vector<1x4xf32> to vector<256x4xf32>
    %29 = arith.addf %25, %28 : vector<256x4xf32>
    %cst_52 = arith.constant 0.000000e+00 : f32
    %30 = vector.broadcast %cst_52 : f32 to vector<256x4xf32>
    %31 = arith.maximumf %29, %30 : vector<256x4xf32>
    %32 = vector.shape_cast %31 : vector<256x4xf32> to vector<16x16x4xf32>
    %c1_53 = arith.constant 1 : index
    %c1_54 = arith.constant 1 : index
    %c0_55 = arith.constant 0 : index
    %33 = vector.load %arg7[%c1_53, %c1_54, %c0_55] : memref<18x18x4xf32, #tpu.memory_space<vmem>>, vector<16x16x4xf32>
    tpu.vector_store %arg7[%c1_53, %c1_54, %c0_55], %32 {strides = array<i32>} : memref<18x18x4xf32, #tpu.memory_space<vmem>>, vector<16x16x4xf32>,
    %c0_56 = arith.constant 0 : index
    %c0_57 = arith.constant 0 : index
    %c0_58 = arith.constant 0 : index
    %34 = vector.load %arg7[%c0_56, %c0_57, %c0_58] : memref<18x18x4xf32, #tpu.memory_space<vmem>>, vector<16x16x4xf32>
    %c0_59 = arith.constant 0 : index
    %c1_60 = arith.constant 1 : index
    %c0_61 = arith.constant 0 : index
    %35 = vector.load %arg7[%c0_59, %c1_60, %c0_61] : memref<18x18x4xf32, #tpu.memory_space<vmem>>, vector<16x16x4xf32>
    %c0_62 = arith.constant 0 : index
    %c2_63 = arith.constant 2 : index
    %c0_64 = arith.constant 0 : index
    %36 = vector.load %arg7[%c0_62, %c2_63, %c0_64] : memref<18x18x4xf32, #tpu.memory_space<vmem>>, vector<16x16x4xf32>
    %c1_65 = arith.constant 1 : index
    %c0_66 = arith.constant 0 : index
    %c0_67 = arith.constant 0 : index
    %37 = vector.load %arg7[%c1_65, %c0_66, %c0_67] : memref<18x18x4xf32, #tpu.memory_space<vmem>>, vector<16x16x4xf32>
    %c1_68 = arith.constant 1 : index
    %c1_69 = arith.constant 1 : index
    %c0_70 = arith.constant 0 : index
    %38 = vector.load %arg7[%c1_68, %c1_69, %c0_70] : memref<18x18x4xf32, #tpu.memory_space<vmem>>, vector<16x16x4xf32>
    %c1_71 = arith.constant 1 : index
    %c2_72 = arith.constant 2 : index
    %c0_73 = arith.constant 0 : index
    %39 = vector.load %arg7[%c1_71, %c2_72, %c0_73] : memref<18x18x4xf32, #tpu.memory_space<vmem>>, vector<16x16x4xf32>
    %c2_74 = arith.constant 2 : index
    %c0_75 = arith.constant 0 : index
    %c0_76 = arith.constant 0 : index
    %40 = vector.load %arg7[%c2_74, %c0_75, %c0_76] : memref<18x18x4xf32, #tpu.memory_space<vmem>>, vector<16x16x4xf32>
    %c2_77 = arith.constant 2 : index
    %c1_78 = arith.constant 1 : index
    %c0_79 = arith.constant 0 : index
    %41 = vector.load %arg7[%c2_77, %c1_78, %c0_79] : memref<18x18x4xf32, #tpu.memory_space<vmem>>, vector<16x16x4xf32>
    %c2_80 = arith.constant 2 : index
    %c2_81 = arith.constant 2 : index
    %c0_82 = arith.constant 0 : index
    %42 = vector.load %arg7[%c2_80, %c2_81, %c0_82] : memref<18x18x4xf32, #tpu.memory_space<vmem>>, vector<16x16x4xf32>
    %43 = tpu.concatenate %34, %35, %36, %37, %38, %39, %40, %41, %42 in 2 : vector<16x16x4xf32>, vector<16x16x4xf32>, vector<16x16x4xf32>, vector<16x16x4xf32>, vector<16x16x4xf32>, vector<16x16x4xf32>, vector<16x16x4xf32>, vector<16x16x4xf32>, vector<16x16x4xf32> -> vector<16x16x36xf32>
    %44 = vector.shape_cast %43 : vector<16x16x36xf32> to vector<256x36xf32>
    %c1_83 = arith.constant 1 : index
    %c0_84 = arith.constant 0 : index
    %c0_85 = arith.constant 0 : index
    %45 = vector.load %arg2[%c1_83, %c0_84, %c0_85] : memref<4x36x4xf32, #tpu.memory_space<vmem>>, vector<1x36x4xf32>
    %46 = vector.shape_cast %45 : vector<1x36x4xf32> to vector<36x4xf32>
    %cst_86 = arith.constant dense<0.000000e+00> : vector<256x4xf32>
    %47 = tpu.matmul %44, %46, %cst_86 {dimension_numbers = #tpu.dot_dimension_numbers<[1], [0], [0], [1], [0, 0, 1, 1], [], []>} : vector<256x36xf32>, vector<36x4xf32>, vector<256x4xf32> -> vector<256x4xf32>
    %c1_87 = arith.constant 1 : index
    %c0_88 = arith.constant 0 : index
    %c0_89 = arith.constant 0 : index
    %48 = vector.load %arg3[%c1_87, %c0_88, %c0_89] : memref<4x1x4xf32, #tpu.memory_space<vmem>>, vector<1x1x4xf32>
    %49 = vector.shape_cast %48 : vector<1x1x4xf32> to vector<1x4xf32>
    %50 = vector.broadcast %49 : vector<1x4xf32> to vector<256x4xf32>
    %51 = arith.addf %47, %50 : vector<256x4xf32>
    %52 = arith.addf %51, %11 : vector<256x4xf32>
    %53 = vector.shape_cast %52 : vector<256x4xf32> to vector<16x16x4xf32>
    %c1_90 = arith.constant 1 : index
    %c1_91 = arith.constant 1 : index
    %c0_92 = arith.constant 0 : index
    %54 = vector.load %arg7[%c1_90, %c1_91, %c0_92] : memref<18x18x4xf32, #tpu.memory_space<vmem>>, vector<16x16x4xf32>
    tpu.vector_store %arg7[%c1_90, %c1_91, %c0_92], %53 {strides = array<i32>} : memref<18x18x4xf32, #tpu.memory_space<vmem>>, vector<16x16x4xf32>,
    %c0_93 = arith.constant 0 : index
    %c0_94 = arith.constant 0 : index
    %c0_95 = arith.constant 0 : index
    %55 = vector.load %arg7[%c0_93, %c0_94, %c0_95] : memref<18x18x4xf32, #tpu.memory_space<vmem>>, vector<16x16x4xf32>
    %c0_96 = arith.constant 0 : index
    %c1_97 = arith.constant 1 : index
    %c0_98 = arith.constant 0 : index
    %56 = vector.load %arg7[%c0_96, %c1_97, %c0_98] : memref<18x18x4xf32, #tpu.memory_space<vmem>>, vector<16x16x4xf32>
    %c0_99 = arith.constant 0 : index
    %c2_100 = arith.constant 2 : index
    %c0_101 = arith.constant 0 : index
    %57 = vector.load %arg7[%c0_99, %c2_100, %c0_101] : memref<18x18x4xf32, #tpu.memory_space<vmem>>, vector<16x16x4xf32>
    %c1_102 = arith.constant 1 : index
    %c0_103 = arith.constant 0 : index
    %c0_104 = arith.constant 0 : index
    %58 = vector.load %arg7[%c1_102, %c0_103, %c0_104] : memref<18x18x4xf32, #tpu.memory_space<vmem>>, vector<16x16x4xf32>
    %c1_105 = arith.constant 1 : index
    %c1_106 = arith.constant 1 : index
    %c0_107 = arith.constant 0 : index
    %59 = vector.load %arg7[%c1_105, %c1_106, %c0_107] : memref<18x18x4xf32, #tpu.memory_space<vmem>>, vector<16x16x4xf32>
    %c1_108 = arith.constant 1 : index
    %c2_109 = arith.constant 2 : index
    %c0_110 = arith.constant 0 : index
    %60 = vector.load %arg7[%c1_108, %c2_109, %c0_110] : memref<18x18x4xf32, #tpu.memory_space<vmem>>, vector<16x16x4xf32>
    %c2_111 = arith.constant 2 : index
    %c0_112 = arith.constant 0 : index
    %c0_113 = arith.constant 0 : index
    %61 = vector.load %arg7[%c2_111, %c0_112, %c0_113] : memref<18x18x4xf32, #tpu.memory_space<vmem>>, vector<16x16x4xf32>
    %c2_114 = arith.constant 2 : index
    %c1_115 = arith.constant 1 : index
    %c0_116 = arith.constant 0 : index
    %62 = vector.load %arg7[%c2_114, %c1_115, %c0_116] : memref<18x18x4xf32, #tpu.memory_space<vmem>>, vector<16x16x4xf32>
    %c2_117 = arith.constant 2 : index
    %c2_118 = arith.constant 2 : index
    %c0_119 = arith.constant 0 : index
    %63 = vector.load %arg7[%c2_117, %c2_118, %c0_119] : memref<18x18x4xf32, #tpu.memory_space<vmem>>, vector<16x16x4xf32>
    %64 = tpu.concatenate %55, %56, %57, %58, %59, %60, %61, %62, %63 in 2 : vector<16x16x4xf32>, vector<16x16x4xf32>, vector<16x16x4xf32>, vector<16x16x4xf32>, vector<16x16x4xf32>, vector<16x16x4xf32>, vector<16x16x4xf32>, vector<16x16x4xf32>, vector<16x16x4xf32> -> vector<16x16x36xf32>
    %65 = vector.shape_cast %64 : vector<16x16x36xf32> to vector<256x36xf32>
    %c2_120 = arith.constant 2 : index
    %c0_121 = arith.constant 0 : index
    %c0_122 = arith.constant 0 : index
    %66 = vector.load %arg2[%c2_120, %c0_121, %c0_122] : memref<4x36x4xf32, #tpu.memory_space<vmem>>, vector<1x36x4xf32>
    %67 = vector.shape_cast %66 : vector<1x36x4xf32> to vector<36x4xf32>
    %cst_123 = arith.constant dense<0.000000e+00> : vector<256x4xf32>
    %68 = tpu.matmul %65, %67, %cst_123 {dimension_numbers = #tpu.dot_dimension_numbers<[1], [0], [0], [1], [0, 0, 1, 1], [], []>} : vector<256x36xf32>, vector<36x4xf32>, vector<256x4xf32> -> vector<256x4xf32>
    %c2_124 = arith.constant 2 : index
    %c0_125 = arith.constant 0 : index
    %c0_126 = arith.constant 0 : index
    %69 = vector.load %arg3[%c2_124, %c0_125, %c0_126] : memref<4x1x4xf32, #tpu.memory_space<vmem>>, vector<1x1x4xf32>
    %70 = vector.shape_cast %69 : vector<1x1x4xf32> to vector<1x4xf32>
    %71 = vector.broadcast %70 : vector<1x4xf32> to vector<256x4xf32>
    %72 = arith.addf %68, %71 : vector<256x4xf32>
    %cst_127 = arith.constant 0.000000e+00 : f32
    %73 = vector.broadcast %cst_127 : f32 to vector<256x4xf32>
    %74 = arith.maximumf %72, %73 : vector<256x4xf32>
    %75 = vector.shape_cast %74 : vector<256x4xf32> to vector<16x16x4xf32>
    %c1_128 = arith.constant 1 : index
    %c1_129 = arith.constant 1 : index
    %c0_130 = arith.constant 0 : index
    %76 = vector.load %arg7[%c1_128, %c1_129, %c0_130] : memref<18x18x4xf32, #tpu.memory_space<vmem>>, vector<16x16x4xf32>
    tpu.vector_store %arg7[%c1_128, %c1_129, %c0_130], %75 {strides = array<i32>} : memref<18x18x4xf32, #tpu.memory_space<vmem>>, vector<16x16x4xf32>,
    %c0_131 = arith.constant 0 : index
    %c0_132 = arith.constant 0 : index
    %c0_133 = arith.constant 0 : index
    %77 = vector.load %arg7[%c0_131, %c0_132, %c0_133] : memref<18x18x4xf32, #tpu.memory_space<vmem>>, vector<16x16x4xf32>
    %c0_134 = arith.constant 0 : index
    %c1_135 = arith.constant 1 : index
    %c0_136 = arith.constant 0 : index
    %78 = vector.load %arg7[%c0_134, %c1_135, %c0_136] : memref<18x18x4xf32, #tpu.memory_space<vmem>>, vector<16x16x4xf32>
    %c0_137 = arith.constant 0 : index
    %c2_138 = arith.constant 2 : index
    %c0_139 = arith.constant 0 : index
    %79 = vector.load %arg7[%c0_137, %c2_138, %c0_139] : memref<18x18x4xf32, #tpu.memory_space<vmem>>, vector<16x16x4xf32>
    %c1_140 = arith.constant 1 : index
    %c0_141 = arith.constant 0 : index
    %c0_142 = arith.constant 0 : index
    %80 = vector.load %arg7[%c1_140, %c0_141, %c0_142] : memref<18x18x4xf32, #tpu.memory_space<vmem>>, vector<16x16x4xf32>
    %c1_143 = arith.constant 1 : index
    %c1_144 = arith.constant 1 : index
    %c0_145 = arith.constant 0 : index
    %81 = vector.load %arg7[%c1_143, %c1_144, %c0_145] : memref<18x18x4xf32, #tpu.memory_space<vmem>>, vector<16x16x4xf32>
    %c1_146 = arith.constant 1 : index
    %c2_147 = arith.constant 2 : index
    %c0_148 = arith.constant 0 : index
    %82 = vector.load %arg7[%c1_146, %c2_147, %c0_148] : memref<18x18x4xf32, #tpu.memory_space<vmem>>, vector<16x16x4xf32>
    %c2_149 = arith.constant 2 : index
    %c0_150 = arith.constant 0 : index
    %c0_151 = arith.constant 0 : index
    %83 = vector.load %arg7[%c2_149, %c0_150, %c0_151] : memref<18x18x4xf32, #tpu.memory_space<vmem>>, vector<16x16x4xf32>
    %c2_152 = arith.constant 2 : index
    %c1_153 = arith.constant 1 : index
    %c0_154 = arith.constant 0 : index
    %84 = vector.load %arg7[%c2_152, %c1_153, %c0_154] : memref<18x18x4xf32, #tpu.memory_space<vmem>>, vector<16x16x4xf32>
    %c2_155 = arith.constant 2 : index
    %c2_156 = arith.constant 2 : index
    %c0_157 = arith.constant 0 : index
    %85 = vector.load %arg7[%c2_155, %c2_156, %c0_157] : memref<18x18x4xf32, #tpu.memory_space<vmem>>, vector<16x16x4xf32>
    %86 = tpu.concatenate %77, %78, %79, %80, %81, %82, %83, %84, %85 in 2 : vector<16x16x4xf32>, vector<16x16x4xf32>, vector<16x16x4xf32>, vector<16x16x4xf32>, vector<16x16x4xf32>, vector<16x16x4xf32>, vector<16x16x4xf32>, vector<16x16x4xf32>, vector<16x16x4xf32> -> vector<16x16x36xf32>
    %87 = vector.shape_cast %86 : vector<16x16x36xf32> to vector<256x36xf32>
    %c3 = arith.constant 3 : index
    %c0_158 = arith.constant 0 : index
    %c0_159 = arith.constant 0 : index
    %88 = vector.load %arg2[%c3, %c0_158, %c0_159] : memref<4x36x4xf32, #tpu.memory_space<vmem>>, vector<1x36x4xf32>
    %89 = vector.shape_cast %88 : vector<1x36x4xf32> to vector<36x4xf32>
    %cst_160 = arith.constant dense<0.000000e+00> : vector<256x4xf32>
    %90 = tpu.matmul %87, %89, %cst_160 {dimension_numbers = #tpu.dot_dimension_numbers<[1], [0], [0], [1], [0, 0, 1, 1], [], []>} : vector<256x36xf32>, vector<36x4xf32>, vector<256x4xf32> -> vector<256x4xf32>
    %c3_161 = arith.constant 3 : index
    %c0_162 = arith.constant 0 : index
    %c0_163 = arith.constant 0 : index
    %91 = vector.load %arg3[%c3_161, %c0_162, %c0_163] : memref<4x1x4xf32, #tpu.memory_space<vmem>>, vector<1x1x4xf32>
    %92 = vector.shape_cast %91 : vector<1x1x4xf32> to vector<1x4xf32>
    %93 = vector.broadcast %92 : vector<1x4xf32> to vector<256x4xf32>
    %94 = arith.addf %90, %93 : vector<256x4xf32>
    %cst_164 = arith.constant dense<0.000000e+00> : vector<4xf32>
    %95 = vector.multi_reduction <add>, %51, %cst_164 [0] : vector<256x4xf32> to vector<4xf32>
    %96 = vector.shape_cast %95 : vector<4xf32> to vector<1x4xf32>
    %cst_165 = arith.constant 3.906250e-03 : f32
    %97 = vector.broadcast %cst_165 : f32 to vector<1x4xf32>
    %98 = arith.mulf %96, %97 : vector<1x4xf32>
    %cst_166 = arith.constant dense<0.000000e+00> : vector<4xf32>
    %99 = vector.multi_reduction <add>, %94, %cst_166 [0] : vector<256x4xf32> to vector<4xf32>
    %100 = vector.shape_cast %99 : vector<4xf32> to vector<1x4xf32>
    %cst_167 = arith.constant 3.906250e-03 : f32
    %101 = vector.broadcast %cst_167 : f32 to vector<1x4xf32>
    %102 = arith.mulf %100, %101 : vector<1x4xf32>
    %cst_168 = arith.constant dense<0xFF800000> : vector<4xf32>
    %103 = vector.multi_reduction <maximumf>, %51, %cst_168 [0] : vector<256x4xf32> to vector<4xf32>
    %104 = vector.shape_cast %103 : vector<4xf32> to vector<1x4xf32>
    %cst_169 = arith.constant dense<0xFF800000> : vector<4xf32>
    %105 = vector.multi_reduction <maximumf>, %94, %cst_169 [0] : vector<256x4xf32> to vector<4xf32>
    %106 = vector.shape_cast %105 : vector<4xf32> to vector<1x4xf32>
    %c0_170 = arith.constant 0 : index
    %c0_171 = arith.constant 0 : index
    %c0_172 = arith.constant 0 : index
    %107 = vector.load %arg4[%c0_170, %c0_171, %c0_172] : memref<2x4x4xf32, #tpu.memory_space<vmem>>, vector<1x4x4xf32>
    %108 = vector.shape_cast %107 : vector<1x4x4xf32> to vector<4x4xf32>
    %cst_173 = arith.constant dense<0.000000e+00> : vector<1x4xf32>
    %109 = tpu.matmul %98, %108, %cst_173 {dimension_numbers = #tpu.dot_dimension_numbers<[1], [0], [0], [1], [0, 0, 1, 1], [], []>} : vector<1x4xf32>, vector<4x4xf32>, vector<1x4xf32> -> vector<1x4xf32>
    %c1_174 = arith.constant 1 : index
    %c0_175 = arith.constant 0 : index
    %c0_176 = arith.constant 0 : index
    %110 = vector.load %arg4[%c1_174, %c0_175, %c0_176] : memref<2x4x4xf32, #tpu.memory_space<vmem>>, vector<1x4x4xf32>
    %111 = vector.shape_cast %110 : vector<1x4x4xf32> to vector<4x4xf32>
    %cst_177 = arith.constant dense<0.000000e+00> : vector<1x4xf32>
    %112 = tpu.matmul %102, %111, %cst_177 {dimension_numbers = #tpu.dot_dimension_numbers<[1], [0], [0], [1], [0, 0, 1, 1], [], []>} : vector<1x4xf32>, vector<4x4xf32>, vector<1x4xf32> -> vector<1x4xf32>
    %113 = arith.addf %109, %112 : vector<1x4xf32>
    %cst_178 = arith.constant 0.000000e+00 : f32
    %114 = vector.broadcast %cst_178 : f32 to vector<1x4xf32>
    %115 = arith.maximumf %113, %114 : vector<1x4xf32>
    %c0_179 = arith.constant 0 : index
    %c0_180 = arith.constant 0 : index
    %c0_181 = arith.constant 0 : index
    %116 = vector.load %arg4[%c0_179, %c0_180, %c0_181] : memref<2x4x4xf32, #tpu.memory_space<vmem>>, vector<1x4x4xf32>
    %117 = vector.shape_cast %116 : vector<1x4x4xf32> to vector<4x4xf32>
    %cst_182 = arith.constant dense<0.000000e+00> : vector<1x4xf32>
    %118 = tpu.matmul %104, %117, %cst_182 {dimension_numbers = #tpu.dot_dimension_numbers<[1], [0], [0], [1], [0, 0, 1, 1], [], []>} : vector<1x4xf32>, vector<4x4xf32>, vector<1x4xf32> -> vector<1x4xf32>
    %c1_183 = arith.constant 1 : index
    %c0_184 = arith.constant 0 : index
    %c0_185 = arith.constant 0 : index
    %119 = vector.load %arg4[%c1_183, %c0_184, %c0_185] : memref<2x4x4xf32, #tpu.memory_space<vmem>>, vector<1x4x4xf32>
    %120 = vector.shape_cast %119 : vector<1x4x4xf32> to vector<4x4xf32>
    %cst_186 = arith.constant dense<0.000000e+00> : vector<1x4xf32>
    %121 = tpu.matmul %106, %120, %cst_186 {dimension_numbers = #tpu.dot_dimension_numbers<[1], [0], [0], [1], [0, 0, 1, 1], [], []>} : vector<1x4xf32>, vector<4x4xf32>, vector<1x4xf32> -> vector<1x4xf32>
    %122 = arith.addf %118, %121 : vector<1x4xf32>
    %cst_187 = arith.constant 0.000000e+00 : f32
    %123 = vector.broadcast %cst_187 : f32 to vector<1x4xf32>
    %124 = arith.maximumf %122, %123 : vector<1x4xf32>
    %125 = arith.addf %115, %124 : vector<1x4xf32>
    %c0_188 = arith.constant 0 : index
    %c0_189 = arith.constant 0 : index
    %126 = vector.load %arg5[%c0_188, %c0_189] : memref<1x4xf32, #tpu.memory_space<vmem>>, vector<1x4xf32>
    %127 = arith.mulf %125, %126 : vector<1x4xf32>
    %cst_190 = arith.constant dense<0.000000e+00> : vector<1xf32>
    %128 = vector.multi_reduction <add>, %127, %cst_190 [1] : vector<1x4xf32> to vector<1xf32>
    %129 = vector.shape_cast %128 : vector<1xf32> to vector<1x1xf32>
    %cst_191 = arith.constant 0.000000e+00 : f32
    %130 = vector.broadcast %cst_191 : f32 to vector<1x1xf32>
    %131 = arith.subf %130, %129 : vector<1x1xf32>
    %132 = math.exp %131 : vector<1x1xf32>
    %cst_192 = arith.constant 1.000000e+00 : f32
    %133 = vector.broadcast %cst_192 : f32 to vector<1x1xf32>
    %134 = arith.addf %133, %132 : vector<1x1xf32>
    %cst_193 = arith.constant 1.000000e+00 : f32
    %135 = vector.broadcast %cst_193 : f32 to vector<1x1xf32>
    %136 = arith.divf %135, %134 : vector<1x1xf32>
    %137 = vector.broadcast %136 : vector<1x1xf32> to vector<256x4xf32>
    %138 = arith.mulf %51, %137 : vector<256x4xf32>
    %139 = arith.addf %11, %138 : vector<256x4xf32>
    %cst_194 = arith.constant 1.000000e+00 : f32
    %140 = vector.broadcast %cst_194 : f32 to vector<1x1xf32>
    %141 = arith.subf %140, %136 : vector<1x1xf32>
    %142 = vector.broadcast %141 : vector<1x1xf32> to vector<256x4xf32>
    %143 = arith.mulf %94, %142 : vector<256x4xf32>
    %144 = arith.addf %139, %143 : vector<256x4xf32>
    %c0_195 = arith.constant 0 : index
    %c0_196 = arith.constant 0 : index
    %c0_197 = arith.constant 0 : index
    %145 = vector.load %arg6[%c0_195, %c0_196, %c0_197] : memref<1x256x4xf32, #tpu.memory_space<vmem>>, vector<1x256x4xf32>
    %146 = vector.shape_cast %145 : vector<1x256x4xf32> to vector<256x4xf32>
    %147 = vector.shape_cast %144 : vector<256x4xf32> to vector<1x256x4xf32>
    tpu.vector_store %arg6[%c0_195, %c0_196, %c0_197], %147 {strides = array<i32>} : memref<1x256x4xf32, #tpu.memory_space<vmem>>, vector<1x256x4xf32>,
    return
  }
  func.func @transform_0(%arg0: i32) -> (i32, i32, i32, i32) {
    %c0_i32 = arith.constant 0 : i32
    %c0_i32_0 = arith.constant 0 : i32
    %c0_i32_1 = arith.constant 0 : i32
    %c0_i32_2 = arith.constant 0 : i32
    return %arg0, %c0_i32, %c0_i32_0, %c0_i32_1 : i32, i32, i32, i32
  }
  func.func @transform_1(%arg0: i32) -> (i32, i32, i32) {
    %c0_i32 = arith.constant 0 : i32
    %c0_i32_0 = arith.constant 0 : i32
    %c0_i32_1 = arith.constant 0 : i32
    %c0_i32_2 = arith.constant 0 : i32
    return %c0_i32, %c0_i32_0, %c0_i32_1 : i32, i32, i32
  }
  func.func @transform_2(%arg0: i32) -> (i32, i32, i32) {
    %c0_i32 = arith.constant 0 : i32
    %c0_i32_0 = arith.constant 0 : i32
    %c0_i32_1 = arith.constant 0 : i32
    %c0_i32_2 = arith.constant 0 : i32
    return %c0_i32, %c0_i32_0, %c0_i32_1 : i32, i32, i32
  }
  func.func @transform_3(%arg0: i32) -> (i32, i32, i32) {
    %c0_i32 = arith.constant 0 : i32
    %c0_i32_0 = arith.constant 0 : i32
    %c0_i32_1 = arith.constant 0 : i32
    %c0_i32_2 = arith.constant 0 : i32
    return %c0_i32, %c0_i32_0, %c0_i32_1 : i32, i32, i32
  }
  func.func @transform_4(%arg0: i32) -> (i32, i32) {
    %c0_i32 = arith.constant 0 : i32
    %c0_i32_0 = arith.constant 0 : i32
    %c0_i32_1 = arith.constant 0 : i32
    return %c0_i32, %c0_i32_0 : i32, i32
  }
  func.func @transform_5(%arg0: i32) -> (i32, i32, i32) {
    %c0_i32 = arith.constant 0 : i32
    %c0_i32_0 = arith.constant 0 : i32
    %c0_i32_1 = arith.constant 0 : i32
    return %arg0, %c0_i32, %c0_i32_0 : i32, i32, i32
  }
}

</mosaic_0001>

<bundles_post_ra>
// kernel: tpu_custom_call.1
= control target key start
LH: loop header
LB: loop body
LE: loop exit
PB: predicated region body
PF: predicated region fallthrough
CT: control target
= control target key end

     0   :  { %s9688_s18 = smov 0   ;;  %s16123_s0 = inlined_call_operand.vmem [shape: f32[2,16,16,4], index: 0, kind: input, shape index: {}]   ;;  %s16124_s1 = inlined_call_operand.vmem [shape: f32[4,36,4], index: 1, kind: input, shape index: {}]   ;;  %s16125_s2 = inlined_call_operand.vmem [shape: f32[4,1,4], index: 2, kind: input, shape index: {}]   ;;  %s16126_s3 = inlined_call_operand.vmem [shape: f32[2,4,4], index: 3, kind: input, shape index: {}]   ;;  %s16127_s4 = inlined_call_operand.vmem [shape: f32[1,4], index: 4, kind: input, shape index: {}]   ;;  %s16128_s5 = inlined_call_operand.vmem [shape: f32[2,256,4], index: 5, kind: output, shape index: {}]  }
   0x1 LB: > { %s8977_s19 = sadd.s32 4294967295, %s9646_s18   ;;  %p8981_p0 = scmp.ge.s32.totalorder %s9646_s18, 1  ;;  %s9646_s18 = sphi %s9688_s18, %s15_s18  }
   0x2   : > { %p187_p1 = scmp.lt.s32.totalorder %s9646_s18, 3 }
   0x4   : > { %p188_p2 = pnand %p8981_p0, %p187_p1 }
   0x6   : > { %191 = sbr.rel (%p188_p2) target bundleno = 3352 (0xd18), region = 40 }
   0xb   : > { %vm225_vm0 = vcmask 31744   ;;  %vm228_vm1 = vcmask 25600   ;;  %p9698_p3 = scmp.lt.s32.totalorder %s8977_s19, 1  ;;  %vm234_vm2 = vcmask 24576   ;;  %v16129_v0 = vmov 0.0   ;;  %s9649_s25 = smov 4  }
   0xc   : > { %226 = vst.msk [vmem:[#allocation2] sm:$0xff] %vm225_vm0, %v16129_v0  ;;  %227 = vst.msk [vmem:[#allocation2 + $0x8] sm:$0xff] %vm225_vm0, %v16129_v0  ;;  %s9650_s26 = smov 8   ;;  %s9651_s27 = smov 12   ;;  %vm2021_vm3 = vcmask 1043456   ;;  %vm1681_vm4 = vcmask 64512  }
   0xd   : > { %231 = vst.msk [vmem:[#allocation2 + $0x198] sm:$0xff] %vm225_vm0, %v16129_v0  ;;  %232 = vst.msk [vmem:[#allocation2 + $0x1a0] sm:$0xff] %vm225_vm0, %v16129_v0  ;;  %s17351_s19 = smov (!%p9698_p3, %s8977_s19), 1  ;;  %s9652_s28 = smov 16   ;;  %vm1714_vm5 = vcmask 97280   ;;  %vm1747_vm6 = vcmask 130048  }
   0xe   : > { %229 = vst.msk [vmem:[#allocation2 + $0x10] sm:$0x3] %vm228_vm1, %v16129_v0  ;;  %233 = vst.msk [vmem:[#allocation2 + $0x1a8] sm:$0x3] %vm228_vm1, %v16129_v0  ;;  %s9151_s21 = sshll.u32 %s17351_s19, 8  ;;  %s9653_s29 = smov 20  }
   0xf   : > { %236 = vst.msk [vmem:[#allocation2 + $0x18] sm:$0x1] %vm234_vm2, %v16129_v0  ;;  %237 = vst.msk [vmem:[#allocation2 + $0x30] sm:$0x1] %vm234_vm2, %v16129_v0  ;;  %s9796_s24 = scalar_lea.vmem %s16123_s0, %s9151_s21  ;;  %s9654_s30 = smov 24   ;;  %vm1780_vm7 = vcmask 162816  }
  0x10   : > { %238 = vst.msk [vmem:[#allocation2 + $0x48] sm:$0x1] %vm234_vm2, %v16129_v0  ;;  %239 = vst.msk [vmem:[#allocation2 + $0x60] sm:$0x1] %vm234_vm2, %v16129_v0  ;;  %v9799_v1 = vld [vmem:[%s9796_s24] sm:$0xff]  ;;  %v9802_v2 = vld [vmem:[%s9796_s24 + $0x10] sm:$0xff]  ;;  %s16018_s15 = scalar_lea.vmem %s16128_s5, %s9151_s21 }
  0x11   : > { %240 = vst.msk [vmem:[#allocation2 + $0x78] sm:$0x1] %vm234_vm2, %v16129_v0  ;;  %241 = vst.msk [vmem:[#allocation2 + $0x90] sm:$0x1] %vm234_vm2, %v16129_v0  ;;  %v9805_v3 = vld [vmem:[%s9796_s24 + $0x8] sm:$0xff]  ;;  %v9814_v4 = vld [vmem:[%s9796_s24 + $0x20] sm:$0xff] }
  0x12   : > { %242 = vst.msk [vmem:[#allocation2 + $0xa8] sm:$0x1] %vm234_vm2, %v16129_v0  ;;  %243 = vst.msk [vmem:[#allocation2 + $0xc0] sm:$0x1] %vm234_vm2, %v16129_v0  ;;  %v9817_v5 = vld [vmem:[%s9796_s24 + $0x18] sm:$0xff]  ;;  %v9820_v6 = vld [vmem:[%s9796_s24 + $0x30] sm:$0xff] }
  0x13   : > { %244 = vst.msk [vmem:[#allocation2 + $0xd8] sm:$0x1] %vm234_vm2, %v16129_v0  ;;  %245 = vst.msk [vmem:[#allocation2 + $0xf0] sm:$0x1] %vm234_vm2, %v16129_v0  ;;  %v368_v7 = vld [vmem:[#allocation2 + $0x1] sm:$0xff]  ;;  %v9838_v11 = vld [vmem:[%s9796_s24 + $0x38] sm:$0xff] }
  0x14   : > { %246 = vst.msk [vmem:[#allocation2 + $0x108] sm:$0x1] %vm234_vm2, %v16129_v0  ;;  %247 = vst.msk [vmem:[#allocation2 + $0x120] sm:$0x1] %vm234_vm2, %v16129_v0  ;;  %v9829_v9 = vld [vmem:[%s9796_s24 + $0x28] sm:$0xff]  ;;  %657 = vrot.lane.b32.xlu0 %v368_v7, %s9649_s25  ;;  %v9835_v10 = vld [vmem:[%s9796_s24 + $0x40] sm:$0xff] }
  0x15   : > { %248 = vst.msk [vmem:[#allocation2 + $0x138] sm:$0x1] %vm234_vm2, %v16129_v0  ;;  %249 = vst.msk [vmem:[#allocation2 + $0x150] sm:$0x1] %vm234_vm2, %v16129_v0  ;;  %v369_v8 = vld [vmem:[#allocation2 + $0x9] sm:$0xff]  ;;  %v9853_v14 = vld [vmem:[%s9796_s24 + $0x60] sm:$0xff] }
  0x16   : > { %250 = vst.msk [vmem:[#allocation2 + $0x168] sm:$0x1] %vm234_vm2, %v16129_v0  ;;  %251 = vst.msk [vmem:[#allocation2 + $0x180] sm:$0x1] %vm234_vm2, %v16129_v0  ;;  %v9841_v12 = vld [vmem:[%s9796_s24 + $0x50] sm:$0xff]  ;;  %v9850_v13 = vld [vmem:[%s9796_s24 + $0x48] sm:$0xff] }
  0x17   : > { %254 = vst.msk [vmem:[#allocation2 + $0x29] sm:$0x1] %vm234_vm2, %v16129_v0  ;;  %255 = vst.msk [vmem:[#allocation2 + $0x41] sm:$0x1] %vm234_vm2, %v16129_v0  ;;  %v9856_v15 = vld [vmem:[%s9796_s24 + $0x58] sm:$0xff]  ;;  %v9865_v16 = vld [vmem:[%s9796_s24 + $0x70] sm:$0xff] }
  0x18   : > { %256 = vst.msk [vmem:[#allocation2 + $0x59] sm:$0x1] %vm234_vm2, %v16129_v0  ;;  %257 = vst.msk [vmem:[#allocation2 + $0x71] sm:$0x1] %vm234_vm2, %v16129_v0  ;;  %v9868_v17 = vld [vmem:[%s9796_s24 + $0x68] sm:$0xff]  ;;  %v9871_v18 = vld [vmem:[%s9796_s24 + $0x80] sm:$0xff]  ;;  %659 = vrot.lane.b32.xlu0 %v369_v8, %s9649_s25 }
  0x19   : > { %258 = vst.msk [vmem:[#allocation2 + $0x89] sm:$0x1] %vm234_vm2, %v16129_v0  ;;  %259 = vst.msk [vmem:[#allocation2 + $0xa1] sm:$0x1] %vm234_vm2, %v16129_v0  ;;  %v9880_v19 = vld [vmem:[%s9796_s24 + $0x78] sm:$0xff]  ;;  %v9883_v20 = vld [vmem:[%s9796_s24 + $0x90] sm:$0xff] }
  0x1a   : > { %260 = vst.msk [vmem:[#allocation2 + $0xb9] sm:$0x1] %vm234_vm2, %v16129_v0  ;;  %261 = vst.msk [vmem:[#allocation2 + $0xd1] sm:$0x1] %vm234_vm2, %v16129_v0  ;;  %v9886_v21 = vld [vmem:[%s9796_s24 + $0x88] sm:$0xff]  ;;  %v9896_v22 = vld [vmem:[%s9796_s24 + $0xa0] sm:$0xff] }
  0x1b   : > { %262 = vst.msk [vmem:[#allocation2 + $0xe9] sm:$0x1] %vm234_vm2, %v16129_v0  ;;  %263 = vst.msk [vmem:[#allocation2 + $0x101] sm:$0x1] %vm234_vm2, %v16129_v0  ;;  %v9899_v23 = vld [vmem:[%s9796_s24 + $0x98] sm:$0xff]  ;;  %v9902_v24 = vld [vmem:[%s9796_s24 + $0xb0] sm:$0xff] }
  0x1c   : > { %264 = vst.msk [vmem:[#allocation2 + $0x119] sm:$0x1] %vm234_vm2, %v16129_v0  ;;  %265 = vst.msk [vmem:[#allocation2 + $0x131] sm:$0x1] %vm234_vm2, %v16129_v0  ;;  %v9919_v28 = vld [vmem:[%s9796_s24 + $0xa8] sm:$0xff]  ;;  %v9922_v29 = vld [vmem:[%s9796_s24 + $0xc0] sm:$0xff] }
  0x1d   : > { %266 = vst.msk [vmem:[#allocation2 + $0x149] sm:$0x1] %vm234_vm2, %v16129_v0  ;;  %267 = vst.msk [vmem:[#allocation2 + $0x161] sm:$0x1] %vm234_vm2, %v16129_v0  ;;  %v9941_v33 = vld [vmem:[%s9796_s24 + $0xb8] sm:$0xff]  ;;  %v9944_v34 = vld [vmem:[%s9796_s24 + $0xd0] sm:$0xff] }
  0x1e   : > { %268 = vst.msk [vmem:[#allocation2 + $0x179] sm:$0x1] %vm234_vm2, %v16129_v0  ;;  %269 = vst.msk [vmem:[#allocation2 + $0x191] sm:$0x1] %vm234_vm2, %v16129_v0  ;;  %v9947_v35 = vld [vmem:[%s9796_s24 + $0xc8] sm:$0xff]  ;;  %v9958_v36 = vld [vmem:[%s9796_s24 + $0xe0] sm:$0xff] }
  0x1f   : > { %253 = vst.msk [vmem:[#allocation2 + $0x11] sm:$0x1] %vm234_vm2, %v16129_v0  ;;  %235 = vst.msk [vmem:[#allocation2] sm:$0x1] %vm234_vm2, %v16129_v0  ;;  %v9961_v37 = vld [vmem:[%s9796_s24 + $0xd8] sm:$0xff]  ;;  %v9970_v39 = vld [vmem:[%s9796_s24 + $0xe8] sm:$0xff] }
  0x20   : > { %252 = vst.msk [vmem:[#allocation2 + $0x198] sm:$0x1] %vm234_vm2, %v16129_v0  ;;  %270 = vst.msk [vmem:[#allocation2 + $0x1a9] sm:$0x1] %vm234_vm2, %v16129_v0  ;;  %v10047_v58 = vld [vmem:[%s9796_s24 + $0xf0] sm:$0xff]  ;;  %v10064_v62 = vld [vmem:[%s9796_s24 + $0xf8] sm:$0xff] }
  0x21   : > { %16349 = vst [vmem:[#allocation3_spill] sm:$0xff] %v9799_v1  ;;  %16350 = vst [vmem:[#allocation4_spill] sm:$0xff] %v9802_v2  ;;  %v400_v7 = vld [vmem:[#allocation2 + $0x2] sm:$0xff]  ;;  %s9655_s6 = smov 28   ;;  %s9656_s17 = smov 32   ;;  %vm1813_vm8 = vcmask 195584  }
  0x22   : > { %16351 = vst [vmem:[#allocation5_spill] sm:$0xff] %v9805_v3  ;;  %304 = vst.msk [vmem:[#allocation2 + $0x19] sm:$0xff] %vm225_vm0, %v9799_v1  ;;  %vm1846_vm9 = vcmask 228352   ;;  %vm1879_vm10 = vcmask 261120   ;;  %vm1924_vm11 = vcmask 293888   ;;  %vm9657_vm12 = vmmov 0  }
  0x23   : > { %306 = vst.msk [vmem:[#allocation2 + $0x31] sm:$0xff] %vm225_vm0, %v9802_v2  ;;  %305 = vst.msk [vmem:[#allocation2 + $0x21] sm:$0xff] %vm225_vm0, %v9805_v3 }
  0x24   : > { %16352 = vst [vmem:[#allocation6_spill] sm:$0xff] %v9814_v4  ;;  %16353 = vst [vmem:[#allocation7_spill] sm:$0xff] %v9817_v5 }
  0x25   : > { %16354 = vst [vmem:[#allocation8_spill] sm:$0xff] %v9820_v6  ;;  %308 = vst.msk [vmem:[#allocation2 + $0x49] sm:$0xff] %vm225_vm0, %v9814_v4 }
  0x26   : > { %307 = vst.msk [vmem:[#allocation2 + $0x39] sm:$0xff] %vm225_vm0, %v9817_v5  ;;  %310 = vst.msk [vmem:[#allocation2 + $0x61] sm:$0xff] %vm225_vm0, %v9820_v6 }
  0x27   : > { %16355 = vst [vmem:[#allocation9_spill] sm:$0xff] %v9829_v9  ;;  %309 = vst.msk [vmem:[#allocation2 + $0x51] sm:$0xff] %vm225_vm0, %v9829_v9 }
  0x28   : > { %16356 = vst [vmem:[#allocation10_spill] sm:$0xff] %v9835_v10  ;;  %16357 = vst [vmem:[#allocation11_spill] sm:$0xff] %v9838_v11 }
  0x29   : > { %16358 = vst [vmem:[#allocation12_spill] sm:$0xff] %v9841_v12  ;;  %312 = vst.msk [vmem:[#allocation2 + $0x79] sm:$0xff] %vm225_vm0, %v9835_v10  ;;  %v9904_v25 = vld [vmem:[#allocation2 + $0x19] sm:$0xff] }
  0x2a   : > { %311 = vst.msk [vmem:[#allocation2 + $0x69] sm:$0xff] %vm225_vm0, %v9838_v11  ;;  %314 = vst.msk [vmem:[#allocation2 + $0x91] sm:$0xff] %vm225_vm0, %v9841_v12  ;;  %v9906_v26 = vld [vmem:[#allocation2 + $0x31] sm:$0xff]  ;;  %661 = vrot.lane.b32.xlu1 %v9904_v25, %s9649_s25  ;;  %v9916_v27 = vld [vmem:[#allocation2 + $0x21] sm:$0xff] }
  0x2b   : > { %16359 = vst [vmem:[#allocation13_spill] sm:$0xff] %v9850_v13  ;;  %16360 = vst [vmem:[#allocation14_spill] sm:$0xff] %v9853_v14  ;;  %665 = vrot.lane.b32.xlu0 %v9906_v26, %s9649_s25  ;;  %v10079_v0 = vld [vmem:[#allocation2 + $0x1a] sm:$0xff] }
  0x2c   : > { %16361 = vst [vmem:[#allocation15_spill] sm:$0xff] %v9856_v15  ;;  %313 = vst.msk [vmem:[#allocation2 + $0x81] sm:$0xff] %vm225_vm0, %v9850_v13  ;;  %v9930_v30 = vld [vmem:[#allocation2 + $0x49] sm:$0xff] }
  0x2d   : > { %316 = vst.msk [vmem:[#allocation2 + $0xa9] sm:$0xff] %vm225_vm0, %v9853_v14  ;;  %315 = vst.msk [vmem:[#allocation2 + $0x99] sm:$0xff] %vm225_vm0, %v9856_v15  ;;  %v9934_v31 = vld [vmem:[#allocation2 + $0x39] sm:$0xff]  ;;  %v9938_v32 = vld [vmem:[#allocation2 + $0x61] sm:$0xff] }
  0x2e   : > { %16362 = vst [vmem:[#allocation16_spill] sm:$0xff] %v9865_v16  ;;  %16363 = vst [vmem:[#allocation17_spill] sm:$0xff] %v9868_v17  ;;  %663 = vrot.lane.b32.xlu1 %v9916_v27, %s9649_s25  ;;  %v9963_v38 = vld [vmem:[#allocation2 + $0x51] sm:$0xff] }
  0x2f   : > { %16364 = vst [vmem:[#allocation18_spill] sm:$0xff] %v9871_v18  ;;  %318 = vst.msk [vmem:[#allocation2 + $0xc1] sm:$0xff] %vm225_vm0, %v9865_v16  ;;  %669 = vrot.lane.b32.xlu0 %v9930_v30, %s9649_s25 }
  0x30   : > { %317 = vst.msk [vmem:[#allocation2 + $0xb1] sm:$0xff] %vm225_vm0, %v9868_v17  ;;  %320 = vst.msk [vmem:[#allocation2 + $0xd9] sm:$0xff] %vm225_vm0, %v9871_v18  ;;  %v9976_v40 = vld [vmem:[#allocation2 + $0x79] sm:$0xff] }
  0x31   : > { %16365 = vst [vmem:[#allocation19_spill] sm:$0xff] %v9880_v19  ;;  %16366 = vst [vmem:[#allocation20_spill] sm:$0xff] %v9883_v20  ;;  %v9980_v41 = vld [vmem:[#allocation2 + $0x69] sm:$0xff]  ;;  %v9984_v42 = vld [vmem:[#allocation2 + $0x91] sm:$0xff] }
  0x32   : > { %16367 = vst [vmem:[#allocation21_spill] sm:$0xff] %v9886_v21  ;;  %319 = vst.msk [vmem:[#allocation2 + $0xc9] sm:$0xff] %vm225_vm0, %v9880_v19  ;;  %667 = vrot.lane.b32.xlu1 %v9934_v31, %s9649_s25 }
  0x33   : > { %322 = vst.msk [vmem:[#allocation2 + $0xf1] sm:$0xff] %vm225_vm0, %v9883_v20  ;;  %321 = vst.msk [vmem:[#allocation2 + $0xe1] sm:$0xff] %vm225_vm0, %v9886_v21  ;;  %673 = vrot.lane.b32.xlu0 %v9938_v32, %s9649_s25  ;;  %v9988_v43 = vld [vmem:[#allocation2 + $0x81] sm:$0xff] }
  0x34   : > { %16368 = vst [vmem:[#allocation22_spill] sm:$0xff] %v9896_v22  ;;  %16369 = vst [vmem:[#allocation23_spill] sm:$0xff] %v9899_v23  ;;  %v9992_v44 = vld [vmem:[#allocation2 + $0xa9] sm:$0xff]  ;;  %v9996_v45 = vld [vmem:[#allocation2 + $0x99] sm:$0xff] }
  0x35   : > { %16370 = vst [vmem:[#allocation24_spill] sm:$0xff] %v9902_v24  ;;  %324 = vst.msk [vmem:[#allocation2 + $0x109] sm:$0xff] %vm225_vm0, %v9896_v22  ;;  %v10128_v22 = vld [vmem:[#allocation2 + $0x9a] sm:$0xff] }
  0x36   : > { %323 = vst.msk [vmem:[#allocation2 + $0xf9] sm:$0xff] %vm225_vm0, %v9899_v23  ;;  %326 = vst.msk [vmem:[#allocation2 + $0x121] sm:$0xff] %vm225_vm0, %v9902_v24  ;;  %671 = vrot.lane.b32.xlu1 %v9963_v38, %s9649_s25  ;;  %v10000_v46 = vld [vmem:[#allocation2 + $0xc1] sm:$0xff] }
  0x37   : > { %16371 = vst [vmem:[#allocation25_spill] sm:$0xff] %v9919_v28  ;;  %16372 = vst [vmem:[#allocation26_spill] sm:$0xff] %v9922_v29  ;;  %677 = vrot.lane.b32.xlu0 %v9976_v40, %s9649_s25  ;;  %v10004_v47 = vld [vmem:[#allocation2 + $0xb1] sm:$0xff]  ;;  %v10008_v48 = vld [vmem:[#allocation2 + $0xd9] sm:$0xff] }
  0x38   : > { %325 = vst.msk [vmem:[#allocation2 + $0x111] sm:$0xff] %vm225_vm0, %v9919_v28  ;;  %328 = vst.msk [vmem:[#allocation2 + $0x139] sm:$0xff] %vm225_vm0, %v9922_v29  ;;  %v10112_v29 = vld [vmem:[#allocation2 + $0x6a] sm:$0xff]  ;;  %v10120_v24 = vld [vmem:[#allocation2 + $0x82] sm:$0xff] }
  0x39   : > { %16373 = vst [vmem:[#allocation27_spill] sm:$0xff] %v9941_v33  ;;  %16374 = vst [vmem:[#allocation28_spill] sm:$0xff] %v9944_v34  ;;  %v10012_v49 = vld [vmem:[#allocation2 + $0xc9] sm:$0xff]  ;;  %v10136_v20 = vld [vmem:[#allocation2 + $0xb2] sm:$0xff] }
  0x3a   : > { %16375 = vst [vmem:[#allocation29_spill] sm:$0xff] %v9947_v35  ;;  %327 = vst.msk [vmem:[#allocation2 + $0x129] sm:$0xff] %vm225_vm0, %v9941_v33  ;;  %675 = vrot.lane.b32.xlu1 %v9980_v41, %s9649_s25  ;;  %v10016_v50 = vld [vmem:[#allocation2 + $0xf1] sm:$0xff]  ;;  %v10020_v51 = vld [vmem:[#allocation2 + $0xe1] sm:$0xff] }
  0x3b   : > { %330 = vst.msk [vmem:[#allocation2 + $0x151] sm:$0xff] %vm225_vm0, %v9944_v34  ;;  %329 = vst.msk [vmem:[#allocation2 + $0x141] sm:$0xff] %vm225_vm0, %v9947_v35  ;;  %681 = vrot.lane.b32.xlu0 %v9984_v42, %s9649_s25  ;;  %v10100_v34 = vld [vmem:[#allocation2 + $0x62] sm:$0xff]  ;;  %v10116_v35 = vld [vmem:[#allocation2 + $0x92] sm:$0xff] }
  0x3c   : > { %16376 = vst [vmem:[#allocation30_spill] sm:$0xff] %v9958_v36  ;;  %16377 = vst [vmem:[#allocation31_spill] sm:$0xff] %v9961_v37  ;;  %v10024_v52 = vld [vmem:[#allocation2 + $0x109] sm:$0xff]  ;;  %v10140_v23 = vld [vmem:[#allocation2 + $0xda] sm:$0xff] }
  0x3d   : > { %332 = vst.msk [vmem:[#allocation2 + $0x169] sm:$0xff] %vm225_vm0, %v9958_v36  ;;  %331 = vst.msk [vmem:[#allocation2 + $0x159] sm:$0xff] %vm225_vm0, %v9961_v37  ;;  %v10028_v53 = vld [vmem:[#allocation2 + $0xf9] sm:$0xff]  ;;  %v10032_v54 = vld [vmem:[#allocation2 + $0x121] sm:$0xff] }
  0x3e   : > { %16378 = vst [vmem:[#allocation32_spill] sm:$0xff] %v9970_v39  ;;  %333 = vst.msk [vmem:[#allocation2 + $0x171] sm:$0xff] %vm225_vm0, %v9970_v39  ;;  %679 = vrot.lane.b32.xlu1 %v9988_v43, %s9649_s25  ;;  %v10088_v36 = vld [vmem:[#allocation2 + $0x22] sm:$0xff]  ;;  %v10092_v39 = vld [vmem:[#allocation2 + $0x4a] sm:$0xff] }
  0x3f   : > { %685 = vrot.lane.b32.xlu0 %v9992_v44, %s9649_s25  ;;  %v10036_v55 = vld [vmem:[#allocation2 + $0x111] sm:$0xff]  ;;  %v10040_v56 = vld [vmem:[#allocation2 + $0x139] sm:$0xff]  ;;  %16379 = vst [vmem:[#allocation33_spill] sm:$0xff] %v10047_v58  ;;  %334 = vst.msk [vmem:[#allocation2 + $0x181] sm:$0xff] %vm225_vm0, %v10047_v58 }
  0x40   : > { %16380 = vst [vmem:[#allocation34_spill] sm:$0xff] %v10064_v62  ;;  %335 = vst.msk [vmem:[#allocation2 + $0x189] sm:$0xff] %vm225_vm0, %v10064_v62  ;;  %v401_v58 = vld [vmem:[#allocation2 + $0xa] sm:$0xff]  ;;  %v10085_v62 = vld [vmem:[#allocation2 + $0x32] sm:$0xff] }
  0x41   : > { %v10044_v57 = vld [vmem:[#allocation2 + $0x129] sm:$0xff]  ;;  %v10108_v37 = vld [vmem:[#allocation2 + $0x7a] sm:$0xff]  ;;  %v10148_v21 = vld [vmem:[#allocation2 + $0xf2] sm:$0xff] }
  0x42   : > { %683 = vrot.lane.b32.xlu1 %v9996_v45, %s9649_s25  ;;  %v10053_v59 = vld [vmem:[#allocation2 + $0x151] sm:$0xff]  ;;  %v10057_v60 = vld [vmem:[#allocation2 + $0x141] sm:$0xff] }
  0x43   : > { %689 = vrot.lane.b32.xlu0 %v10000_v46, %s9649_s25  ;;  %v10124_v33 = vld [vmem:[#allocation2 + $0xaa] sm:$0xff]  ;;  %v10132_v28 = vld [vmem:[#allocation2 + $0xc2] sm:$0xff]  ;;  %v10160_v14 = vld [vmem:[#allocation2 + $0xfa] sm:$0xff] }
  0x44   : > { %v10061_v61 = vld [vmem:[#allocation2 + $0x169] sm:$0xff]  ;;  %v10070_v63 = vld [vmem:[#allocation2 + $0x159] sm:$0xff] }
  0x45   : > { %v10076_v8 = vld [vmem:[#allocation2 + $0x171] sm:$0xff]  ;;  %v10152_v16 = vld [vmem:[#allocation2 + $0xe2] sm:$0xff]  ;;  %v10172_v15 = vld [vmem:[#allocation2 + $0x13a] sm:$0xff] }
  0x46   : > { %687 = vrot.lane.b32.xlu1 %v10004_v47, %s9649_s25  ;;  %v10144_v18 = vld [vmem:[#allocation2 + $0xca] sm:$0xff]  ;;  %v10164_v17 = vld [vmem:[#allocation2 + $0x122] sm:$0xff]  ;;  %v10168_v12 = vld [vmem:[#allocation2 + $0x112] sm:$0xff] }
  0x47   : > { %693 = vrot.lane.b32.xlu0 %v10008_v48, %s9649_s25  ;;  %v10156_v19 = vld [vmem:[#allocation2 + $0x10a] sm:$0xff]  ;;  %v10182_v6 = vld [vmem:[#allocation2 + $0x152] sm:$0xff]  ;;  %v10188_v4 = vld [vmem:[#allocation2 + $0x142] sm:$0xff] }
  0x48   : > { %v10178_v13 = vld [vmem:[#allocation2 + $0x12a] sm:$0xff]  ;;  %16383 = vst [vmem:[#allocation37_spill] sm:$0xff] %v10188_v4  ;;  %v10200_v1 = vld [vmem:[#allocation2 + $0x15a] sm:$0xff] }
  0x49   : > { %v10194_v2 = vld [vmem:[#allocation2 + $0x16a] sm:$0xff]  ;;  %16387 = vst [vmem:[#allocation41_spill] sm:$0xff] %v10200_v1 }
  0x4a   : > { %691 = vrot.lane.b32.xlu1 %v10012_v49, %s9649_s25  ;;  %16385 = vst [vmem:[#allocation39_spill] sm:$0xff] %v10194_v2 }
  0x4b   : > { %697 = vrot.lane.b32.xlu0 %v10016_v50, %s9649_s25 }
  0x4e   : > { %695 = vrot.lane.b32.xlu1 %v10020_v51, %s9649_s25 }
  0x4f   : > { %701 = vrot.lane.b32.xlu0 %v10024_v52, %s9649_s25 }
  0x52   : > { %699 = vrot.lane.b32.xlu1 %v10028_v53, %s9649_s25 }
  0x53   : > { %705 = vrot.lane.b32.xlu0 %v10032_v54, %s9649_s25 }
  0x56   : > { %703 = vrot.lane.b32.xlu1 %v10036_v55, %s9649_s25 }
  0x57   : > { %709 = vrot.lane.b32.xlu0 %v10040_v56, %s9649_s25 }
  0x5a   : > { %707 = vrot.lane.b32.xlu1 %v10044_v57, %s9649_s25 }
  0x5b   : > { %713 = vrot.lane.b32.xlu0 %v10053_v59, %s9649_s25 }
  0x5e   : > { %711 = vrot.lane.b32.xlu1 %v10057_v60, %s9649_s25 }
  0x5f   : > { %717 = vrot.lane.b32.xlu0 %v10061_v61, %s9649_s25 }
  0x62   : > { %715 = vrot.lane.b32.xlu1 %v10070_v63, %s9649_s25 }
  0x63   : > { %785 = vrot.lane.b32.xlu0 %v400_v7, %s9650_s26  ;;  %v10096_v7 = vld [vmem:[#allocation2 + $0x3a] sm:$0xff] }
  0x66   : > { %719 = vrot.lane.b32.xlu1 %v10076_v8, %s9649_s25 }
  0x67   : > { %789 = vrot.lane.b32.xlu0 %v10079_v0, %s9650_s26 }
  0x6a   : > { %787 = vrot.lane.b32.xlu1 %v401_v58, %s9650_s26  ;;  %v10104_v58 = vld [vmem:[#allocation2 + $0x52] sm:$0xff] }
  0x6b   : > { %793 = vrot.lane.b32.xlu0 %v10085_v62, %s9650_s26 }
  0x6e   : > { %791 = vrot.lane.b32.xlu1 %v10088_v36, %s9650_s26 }
  0x6f   : > { %797 = vrot.lane.b32.xlu0 %v10092_v39, %s9650_s26 }
  0x72   : > { %795 = vrot.lane.b32.xlu1 %v10096_v7, %s9650_s26 }
  0x73   : > { %801 = vrot.lane.b32.xlu0 %v10100_v34, %s9650_s26 }
  0x76   : > { %799 = vrot.lane.b32.xlu1 %v10104_v58, %s9650_s26 }
  0x77   : > { %805 = vrot.lane.b32.xlu0 %v10108_v37, %s9650_s26 }
  0x7a   : > { %803 = vrot.lane.b32.xlu1 %v10112_v29, %s9650_s26 }
  0x7b   : > { %809 = vrot.lane.b32.xlu0 %v10116_v35, %s9650_s26 }
  0x7e   : > { %807 = vrot.lane.b32.xlu1 %v10120_v24, %s9650_s26 }
  0x7f   : > { %813 = vrot.lane.b32.xlu0 %v10124_v33, %s9650_s26 }
  0x82   : > { %811 = vrot.lane.b32.xlu1 %v10128_v22, %s9650_s26 }
  0x83   : > { %817 = vrot.lane.b32.xlu0 %v10132_v28, %s9650_s26 }
  0x86   : > { %815 = vrot.lane.b32.xlu1 %v10136_v20, %s9650_s26  ;;  %v10174_v10 = vpop.permute.xlu0 %657 }
  0x87   : > { %821 = vrot.lane.b32.xlu0 %v10140_v23, %s9650_s26  ;;  %16381 = vst [vmem:[#allocation35_spill] sm:$0xff] %v10174_v10  ;;  %v10210_v10 = vld [vmem:[#allocation2 + $0x172] sm:$0xff] }
  0x88   : > { %16390 = vst [vmem:[#allocation44_spill] sm:$0xff] %v10210_v10 }
  0x8a   : > { %819 = vrot.lane.b32.xlu1 %v10144_v18, %s9650_s26  ;;  %v10184_v11 = vpop.permute.xlu0 %659 }
  0x8b   : > { %825 = vrot.lane.b32.xlu0 %v10148_v21, %s9650_s26  ;;  %16382 = vst [vmem:[#allocation36_spill] sm:$0xff] %v10184_v11 }
  0x8e   : > { %823 = vrot.lane.b32.xlu1 %v10152_v16, %s9650_s26 }
  0x8f   : > { %829 = vrot.lane.b32.xlu0 %v10156_v19, %s9650_s26 }
  0x92   : > { %827 = vrot.lane.b32.xlu1 %v10160_v14, %s9650_s26 }
  0x93   : > { %833 = vrot.lane.b32.xlu0 %v10164_v17, %s9650_s26 }
  0x96   : > { %831 = vrot.lane.b32.xlu1 %v10168_v12, %s9650_s26 }
  0x97   : > { %837 = vrot.lane.b32.xlu0 %v10172_v15, %s9650_s26 }
  0x9a   : > { %835 = vrot.lane.b32.xlu1 %v10178_v13, %s9650_s26 }
  0x9b   : > { %841 = vrot.lane.b32.xlu0 %v10182_v6, %s9650_s26 }
  0x9c   : > { %v10192_v9 = vpop.permute.xlu1 %661 }
  0x9d   : > { %16384 = vst [vmem:[#allocation38_spill] sm:$0xff] %v10192_v9  ;;  %v10196_v5 = vpop.permute.xlu0 %665  ;;  %v338_v9 = vld [vmem:[#allocation2 + $0x18] sm:$0xff] }
  0x9e   : > { %16386 = vst [vmem:[#allocation40_spill] sm:$0xff] %v10196_v5  ;;  %839 = vrot.lane.b32.xlu1 %v10188_v4, %s9650_s26 }
  0x9f   : > { %845 = vrot.lane.b32.xlu0 %v10194_v2, %s9650_s26  ;;  %v10219_v2 = vld [vmem:[#allocation2 + $0x30] sm:$0xff] }
  0xa0   : > { %v10204_v3 = vpop.permute.xlu1 %663  ;;  %16393 = vst [vmem:[#allocation47_spill] sm:$0xff] %v10219_v2 }
  0xa1   : > { %16388 = vst [vmem:[#allocation42_spill] sm:$0xff] %v10204_v3  ;;  %v10206_v11 = vpop.permute.xlu0 %669  ;;  %v339_v3 = vld [vmem:[#allocation2 + $0x20] sm:$0xff] }
  0xa2   : > { %16389 = vst [vmem:[#allocation43_spill] sm:$0xff] %v10206_v11  ;;  %843 = vrot.lane.b32.xlu1 %v10200_v1, %s9650_s26 }
  0xa3   : > { %913 = vrot.lane.b32.xlu0 %v338_v9, %s9651_s27  ;;  %v10228_v9 = vld [vmem:[#allocation2 + $0x48] sm:$0xff] }
  0xa4   : > { %v10213_v5 = vpop.permute.xlu1 %667  ;;  %16396 = vst [vmem:[#allocation50_spill] sm:$0xff] %v10228_v9 }
  0xa5   : > { %16391 = vst [vmem:[#allocation45_spill] sm:$0xff] %v10213_v5  ;;  %v10215_v4 = vpop.permute.xlu0 %673  ;;  %v10234_v5 = vld [vmem:[#allocation2 + $0x38] sm:$0xff] }
  0xa6   : > { %16392 = vst [vmem:[#allocation46_spill] sm:$0xff] %v10215_v4  ;;  %847 = vrot.lane.b32.xlu1 %v10210_v10, %s9650_s26  ;;  %16398 = vst [vmem:[#allocation52_spill] sm:$0xff] %v10234_v5 }
  0xa7   : > { %917 = vrot.lane.b32.xlu0 %v10219_v2, %s9651_s27 }
  0xa8   : > { %v10223_v11 = vpop.permute.xlu1 %671 }
  0xa9   : > { %16394 = vst [vmem:[#allocation48_spill] sm:$0xff] %v10223_v11  ;;  %v10225_v1 = vpop.permute.xlu0 %677  ;;  %v10240_v11 = vld [vmem:[#allocation2 + $0x60] sm:$0xff] }
  0xaa   : > { %16395 = vst [vmem:[#allocation49_spill] sm:$0xff] %v10225_v1  ;;  %915 = vrot.lane.b32.xlu1 %v339_v3, %s9651_s27  ;;  %16400 = vst [vmem:[#allocation54_spill] sm:$0xff] %v10240_v11  ;;  %v10246_v1 = vld [vmem:[#allocation2 + $0x50] sm:$0xff] }
  0xab   : > { %921 = vrot.lane.b32.xlu0 %v10228_v9, %s9651_s27  ;;  %16402 = vst [vmem:[#allocation56_spill] sm:$0xff] %v10246_v1 }
  0xac   : > { %v10232_v4 = vpop.permute.xlu1 %675 }
  0xad   : > { %16397 = vst [vmem:[#allocation51_spill] sm:$0xff] %v10232_v4  ;;  %v10236_v10 = vpop.permute.xlu0 %681  ;;  %v10252_v4 = vld [vmem:[#allocation2 + $0x78] sm:$0xff] }
  0xae   : > { %16399 = vst [vmem:[#allocation53_spill] sm:$0xff] %v10236_v10  ;;  %919 = vrot.lane.b32.xlu1 %v10234_v5, %s9651_s27  ;;  %16404 = vst [vmem:[#allocation58_spill] sm:$0xff] %v10252_v4  ;;  %v10258_v5 = vld [vmem:[#allocation2 + $0x68] sm:$0xff] }
  0xaf   : > { %925 = vrot.lane.b32.xlu0 %v10240_v11, %s9651_s27  ;;  %16406 = vst [vmem:[#allocation60_spill] sm:$0xff] %v10258_v5 }
  0xb0   : > { %v10244_v3 = vpop.permute.xlu1 %679 }
  0xb1   : > { %16401 = vst [vmem:[#allocation55_spill] sm:$0xff] %v10244_v3  ;;  %v10248_v2 = vpop.permute.xlu0 %685  ;;  %v10264_v3 = vld [vmem:[#allocation2 + $0x90] sm:$0xff] }
  0xb2   : > { %16403 = vst [vmem:[#allocation57_spill] sm:$0xff] %v10248_v2  ;;  %923 = vrot.lane.b32.xlu1 %v10246_v1, %s9651_s27  ;;  %16408 = vst [vmem:[#allocation62_spill] sm:$0xff] %v10264_v3  ;;  %v10270_v1 = vld [vmem:[#allocation2 + $0x80] sm:$0xff] }
  0xb3   : > { %929 = vrot.lane.b32.xlu0 %v10252_v4, %s9651_s27  ;;  %16410 = vst [vmem:[#allocation64_spill] sm:$0xff] %v10270_v1 }
  0xb4   : > { %v10256_v10 = vpop.permute.xlu1 %683 }
  0xb5   : > { %16405 = vst [vmem:[#allocation59_spill] sm:$0xff] %v10256_v10  ;;  %v10260_v9 = vpop.permute.xlu0 %689  ;;  %v10276_v10 = vld [vmem:[#allocation2 + $0xa8] sm:$0xff] }
  0xb6   : > { %16407 = vst [vmem:[#allocation61_spill] sm:$0xff] %v10260_v9  ;;  %927 = vrot.lane.b32.xlu1 %v10258_v5, %s9651_s27  ;;  %16412 = vst [vmem:[#allocation66_spill] sm:$0xff] %v10276_v10  ;;  %v10282_v5 = vld [vmem:[#allocation2 + $0x98] sm:$0xff] }
  0xb7   : > { %933 = vrot.lane.b32.xlu0 %v10264_v3, %s9651_s27  ;;  %16414 = vst [vmem:[#allocation68_spill] sm:$0xff] %v10282_v5 }
  0xb8   : > { %v10268_v2 = vpop.permute.xlu1 %687 }
  0xb9   : > { %16409 = vst [vmem:[#allocation63_spill] sm:$0xff] %v10268_v2  ;;  %v10272_v11 = vpop.permute.xlu0 %693  ;;  %v10288_v2 = vld [vmem:[#allocation2 + $0xc0] sm:$0xff] }
  0xba   : > { %16411 = vst [vmem:[#allocation65_spill] sm:$0xff] %v10272_v11  ;;  %931 = vrot.lane.b32.xlu1 %v10270_v1, %s9651_s27  ;;  %16416 = vst [vmem:[#allocation70_spill] sm:$0xff] %v10288_v2  ;;  %v10294_v1 = vld [vmem:[#allocation2 + $0xb0] sm:$0xff] }
  0xbb   : > { %937 = vrot.lane.b32.xlu0 %v10276_v10, %s9651_s27  ;;  %16418 = vst [vmem:[#allocation72_spill] sm:$0xff] %v10294_v1 }
  0xbc   : > { %v10280_v9 = vpop.permute.xlu1 %691 }
  0xbd   : > { %16413 = vst [vmem:[#allocation67_spill] sm:$0xff] %v10280_v9  ;;  %v10284_v4 = vpop.permute.xlu0 %697  ;;  %v10300_v9 = vld [vmem:[#allocation2 + $0xd8] sm:$0xff] }
  0xbe   : > { %16415 = vst [vmem:[#allocation69_spill] sm:$0xff] %v10284_v4  ;;  %935 = vrot.lane.b32.xlu1 %v10282_v5, %s9651_s27  ;;  %16420 = vst [vmem:[#allocation74_spill] sm:$0xff] %v10300_v9  ;;  %v10306_v5 = vld [vmem:[#allocation2 + $0xc8] sm:$0xff] }
  0xbf   : > { %941 = vrot.lane.b32.xlu0 %v10288_v2, %s9651_s27  ;;  %16422 = vst [vmem:[#allocation76_spill] sm:$0xff] %v10306_v5 }
  0xc0   : > { %v10292_v11 = vpop.permute.xlu1 %695 }
  0xc1   : > { %16417 = vst [vmem:[#allocation71_spill] sm:$0xff] %v10292_v11  ;;  %v10296_v3 = vpop.permute.xlu0 %701  ;;  %v10312_v11 = vld [vmem:[#allocation2 + $0xf0] sm:$0xff] }
  0xc2   : > { %16419 = vst [vmem:[#allocation73_spill] sm:$0xff] %v10296_v3  ;;  %939 = vrot.lane.b32.xlu1 %v10294_v1, %s9651_s27  ;;  %16424 = vst [vmem:[#allocation78_spill] sm:$0xff] %v10312_v11  ;;  %v10318_v1 = vld [vmem:[#allocation2 + $0xe0] sm:$0xff] }
  0xc3   : > { %945 = vrot.lane.b32.xlu0 %v10300_v9, %s9651_s27  ;;  %16426 = vst [vmem:[#allocation80_spill] sm:$0xff] %v10318_v1 }
  0xc4   : > { %v10304_v4 = vpop.permute.xlu1 %699 }
  0xc5   : > { %16421 = vst [vmem:[#allocation75_spill] sm:$0xff] %v10304_v4  ;;  %v10308_v10 = vpop.permute.xlu0 %705  ;;  %v10324_v4 = vld [vmem:[#allocation2 + $0x108] sm:$0xff] }
  0xc6   : > { %16423 = vst [vmem:[#allocation77_spill] sm:$0xff] %v10308_v10  ;;  %943 = vrot.lane.b32.xlu1 %v10306_v5, %s9651_s27  ;;  %16428 = vst [vmem:[#allocation82_spill] sm:$0xff] %v10324_v4  ;;  %v10330_v5 = vld [vmem:[#allocation2 + $0xf8] sm:$0xff] }
  0xc7   : > { %949 = vrot.lane.b32.xlu0 %v10312_v11, %s9651_s27  ;;  %16430 = vst [vmem:[#allocation84_spill] sm:$0xff] %v10330_v5 }
  0xc8   : > { %v10316_v3 = vpop.permute.xlu1 %703 }
  0xc9   : > { %16425 = vst [vmem:[#allocation79_spill] sm:$0xff] %v10316_v3  ;;  %v10320_v2 = vpop.permute.xlu0 %709  ;;  %v10336_v3 = vld [vmem:[#allocation2 + $0x120] sm:$0xff] }
  0xca   : > { %16427 = vst [vmem:[#allocation81_spill] sm:$0xff] %v10320_v2  ;;  %947 = vrot.lane.b32.xlu1 %v10318_v1, %s9651_s27  ;;  %16432 = vst [vmem:[#allocation86_spill] sm:$0xff] %v10336_v3  ;;  %v10342_v1 = vld [vmem:[#allocation2 + $0x110] sm:$0xff] }
  0xcb   : > { %953 = vrot.lane.b32.xlu0 %v10324_v4, %s9651_s27  ;;  %16434 = vst [vmem:[#allocation88_spill] sm:$0xff] %v10342_v1 }
  0xcc   : > { %v10328_v10 = vpop.permute.xlu1 %707 }
  0xcd   : > { %16429 = vst [vmem:[#allocation83_spill] sm:$0xff] %v10328_v10  ;;  %v10332_v9 = vpop.permute.xlu0 %713  ;;  %v10348_v10 = vld [vmem:[#allocation2 + $0x138] sm:$0xff] }
  0xce   : > { %16431 = vst [vmem:[#allocation85_spill] sm:$0xff] %v10332_v9  ;;  %951 = vrot.lane.b32.xlu1 %v10330_v5, %s9651_s27  ;;  %16436 = vst [vmem:[#allocation90_spill] sm:$0xff] %v10348_v10  ;;  %v10354_v5 = vld [vmem:[#allocation2 + $0x128] sm:$0xff] }
  0xcf   : > { %957 = vrot.lane.b32.xlu0 %v10336_v3, %s9651_s27  ;;  %16438 = vst [vmem:[#allocation92_spill] sm:$0xff] %v10354_v5 }
  0xd0   : > { %v10340_v2 = vpop.permute.xlu1 %711 }
  0xd1   : > { %16433 = vst [vmem:[#allocation87_spill] sm:$0xff] %v10340_v2  ;;  %v10344_v11 = vpop.permute.xlu0 %717  ;;  %v10360_v2 = vld [vmem:[#allocation2 + $0x150] sm:$0xff] }
  0xd2   : > { %16435 = vst [vmem:[#allocation89_spill] sm:$0xff] %v10344_v11  ;;  %955 = vrot.lane.b32.xlu1 %v10342_v1, %s9651_s27  ;;  %16440 = vst [vmem:[#allocation94_spill] sm:$0xff] %v10360_v2  ;;  %v10366_v1 = vld [vmem:[#allocation2 + $0x140] sm:$0xff] }
  0xd3   : > { %961 = vrot.lane.b32.xlu0 %v10348_v10, %s9651_s27  ;;  %16442 = vst [vmem:[#allocation96_spill] sm:$0xff] %v10366_v1  ;;  %v10380_v10 = vld [vmem:[#allocation2 + $0x180] sm:$0xff] }
  0xd4   : > { %v10352_v9 = vpop.permute.xlu1 %715 }
  0xd5   : > { %16437 = vst [vmem:[#allocation91_spill] sm:$0xff] %v10352_v9  ;;  %v10356_v4 = vpop.permute.xlu0 %785  ;;  %v10372_v9 = vld [vmem:[#allocation2 + $0x168] sm:$0xff] }
  0xd6   : > { %16439 = vst [vmem:[#allocation93_spill] sm:$0xff] %v10356_v4  ;;  %959 = vrot.lane.b32.xlu1 %v10354_v5, %s9651_s27  ;;  %v10378_v5 = vld [vmem:[#allocation2 + $0x158] sm:$0xff] }
  0xd7   : > { %965 = vrot.lane.b32.xlu0 %v10360_v2, %s9651_s27  ;;  %16445 = vst [vmem:[#allocation99_spill] sm:$0xff] %v10378_v5 }
  0xd8   : > { %v10364_v11 = vpop.permute.xlu1 %719 }
  0xd9   : > { %16441 = vst [vmem:[#allocation95_spill] sm:$0xff] %v10364_v11  ;;  %v10368_v3 = vpop.permute.xlu0 %789 }
  0xda   : > { %16443 = vst [vmem:[#allocation97_spill] sm:$0xff] %v10368_v3  ;;  %963 = vrot.lane.b32.xlu1 %v10366_v1, %s9651_s27  ;;  %v10390_v3 = vld [vmem:[#allocation2 + $0x170] sm:$0xff] }
  0xdb   : > { %969 = vrot.lane.b32.xlu0 %v10372_v9, %s9651_s27 }
  0xdc   : > { %v10376_v4 = vpop.permute.xlu1 %787 }
  0xdd   : > { %16444 = vst [vmem:[#allocation98_spill] sm:$0xff] %v10376_v4  ;;  %v10382_v2 = vpop.permute.xlu0 %793  ;;  %v10396_v4 = vld [vmem:[#allocation2 + $0x188] sm:$0xff] }
  0xde   : > { %16446 = vst [vmem:[#allocation100_spill] sm:$0xff] %v10382_v2  ;;  %967 = vrot.lane.b32.xlu1 %v10378_v5, %s9651_s27 }
  0xdf   : > { %973 = vrot.lane.b32.xlu0 %v10380_v10, %s9651_s27 }
  0xe0   : > { %v10388_v11 = vpop.permute.xlu1 %791 }
  0xe1   : > { %16447 = vst [vmem:[#allocation101_spill] sm:$0xff] %v10388_v11  ;;  %v10392_v1 = vpop.permute.xlu0 %797 }
  0xe2   : > { %16448 = vst [vmem:[#allocation102_spill] sm:$0xff] %v10392_v1  ;;  %971 = vrot.lane.b32.xlu1 %v10390_v3, %s9651_s27 }
  0xe3   : > { %1041 = vrot.lane.b32.xlu0 %v9904_v25, %s9652_s28 }
  0xe4   : > { %v10400_v2 = vpop.permute.xlu1 %795 }
  0xe5   : > { %16449 = vst [vmem:[#allocation103_spill] sm:$0xff] %v10400_v2  ;;  %v10402_v5 = vpop.permute.xlu0 %801 }
  0xe6   : > { %16450 = vst [vmem:[#allocation104_spill] sm:$0xff] %v10402_v5  ;;  %975 = vrot.lane.b32.xlu1 %v10396_v4, %s9651_s27 }
  0xe7   : > { %1045 = vrot.lane.b32.xlu0 %v9906_v26, %s9652_s28 }
  0xe8   : > { %v10408_v1 = vpop.permute.xlu1 %799 }
  0xe9   : > { %v10410_v11 = vpop.permute.xlu0 %805 }
  0xea   : > { %1043 = vrot.lane.b32.xlu1 %v9916_v27, %s9652_s28 }
  0xeb   : > { %1049 = vrot.lane.b32.xlu0 %v9930_v30, %s9652_s28 }
  0xec   : > { %v10416_v25 = vpop.permute.xlu1 %803 }
  0xed   : > { %v10418_v2 = vpop.permute.xlu0 %809 }
  0xee   : > { %16451 = vst [vmem:[#allocation105_spill] sm:$0xff] %v10418_v2  ;;  %1047 = vrot.lane.b32.xlu1 %v9934_v31, %s9652_s28 }
  0xef   : > { %1053 = vrot.lane.b32.xlu0 %v9938_v32, %s9652_s28 }
  0xf0   : > { %v10424_v26 = vpop.permute.xlu1 %807 }
  0xf1   : > { %16452 = vst [vmem:[#allocation106_spill] sm:$0xff] %v10424_v26  ;;  %v10426_v5 = vpop.permute.xlu0 %813 }
  0xf2   : > { %16453 = vst [vmem:[#allocation107_spill] sm:$0xff] %v10426_v5  ;;  %1051 = vrot.lane.b32.xlu1 %v9963_v38, %s9652_s28  ;;  %v599_v5 = vld [vmem:[#allocation2 + $0x7a] sm:$0xff] }
  0xf3   : > { %1057 = vrot.lane.b32.xlu0 %v9976_v40, %s9652_s28 }
  0xf4   : > { %v10432_v27 = vpop.permute.xlu1 %811 }
  0xf5   : > { %16454 = vst [vmem:[#allocation108_spill] sm:$0xff] %v10432_v27  ;;  %v10434_v30 = vpop.permute.xlu0 %817  ;;  %v601_v27 = vld [vmem:[#allocation2 + $0x92] sm:$0xff] }
  0xf6   : > { %16455 = vst [vmem:[#allocation109_spill] sm:$0xff] %v10434_v30  ;;  %1055 = vrot.lane.b32.xlu1 %v9980_v41, %s9652_s28 }
  0xf7   : > { %1061 = vrot.lane.b32.xlu0 %v9984_v42, %s9652_s28 }
  0xf8   : > { %v10440_v31 = vpop.permute.xlu1 %815 }
  0xf9   : > { %16456 = vst [vmem:[#allocation110_spill] sm:$0xff] %v10440_v31  ;;  %v10442_v32 = vpop.permute.xlu0 %821  ;;  %v573_v31 = vld [vmem:[#allocation2 + $0xc1] sm:$0xff] }
  0xfa   : > { %16457 = vst [vmem:[#allocation111_spill] sm:$0xff] %v10442_v32  ;;  %1059 = vrot.lane.b32.xlu1 %v9988_v43, %s9652_s28 }
  0xfb   : > { %1065 = vrot.lane.b32.xlu0 %v9992_v44, %s9652_s28 }
  0xfc   : > { %v10448_v38 = vpop.permute.xlu1 %819 }
  0xfd   : > { %16458 = vst [vmem:[#allocation112_spill] sm:$0xff] %v10448_v38  ;;  %v10450_v40 = vpop.permute.xlu0 %825  ;;  %v567_v38 = vld [vmem:[#allocation2 + $0x79] sm:$0xff] }
  0xfe   : > { %16459 = vst [vmem:[#allocation113_spill] sm:$0xff] %v10450_v40  ;;  %1063 = vrot.lane.b32.xlu1 %v9996_v45, %s9652_s28  ;;  %v16518_v40 = vld [vmem:[#allocation72_spill] sm:$0xff] }
  0xff   : > { %1069 = vrot.lane.b32.xlu0 %v10000_v46, %s9652_s28 }
 0x100   : > { %v10456_v41 = vpop.permute.xlu1 %823 }
 0x101   : > { %16460 = vst [vmem:[#allocation114_spill] sm:$0xff] %v10456_v41  ;;  %v10458_v42 = vpop.permute.xlu0 %829 }
 0x102   : > { %16461 = vst [vmem:[#allocation115_spill] sm:$0xff] %v10458_v42  ;;  %1067 = vrot.lane.b32.xlu1 %v10004_v47, %s9652_s28  ;;  %v16510_v42 = vld [vmem:[#allocation64_spill] sm:$0xff] }
 0x103   : > { %1073 = vrot.lane.b32.xlu0 %v10008_v48, %s9652_s28 }
 0x104   : > { %v10464_v43 = vpop.permute.xlu1 %827 }
 0x105   : > { %16462 = vst [vmem:[#allocation116_spill] sm:$0xff] %v10464_v43  ;;  %v10466_v44 = vpop.permute.xlu0 %833 }
 0x106   : > { %16463 = vst [vmem:[#allocation117_spill] sm:$0xff] %v10466_v44  ;;  %1071 = vrot.lane.b32.xlu1 %v10012_v49, %s9652_s28  ;;  %v16503_v44 = vld [vmem:[#allocation58_spill] sm:$0xff] }
 0x107   : > { %1077 = vrot.lane.b32.xlu0 %v10016_v50, %s9652_s28 }
 0x108   : > { %v10472_v45 = vpop.permute.xlu1 %831 }
 0x109   : > { %16464 = vst [vmem:[#allocation118_spill] sm:$0xff] %v10472_v45  ;;  %v10474_v46 = vpop.permute.xlu0 %837 }
 0x10a   : > { %16465 = vst [vmem:[#allocation119_spill] sm:$0xff] %v10474_v46  ;;  %1075 = vrot.lane.b32.xlu1 %v10020_v51, %s9652_s28 }
 0x10b   : > { %1081 = vrot.lane.b32.xlu0 %v10024_v52, %s9652_s28 }
 0x10c   : > { %v10480_v47 = vpop.permute.xlu1 %835 }
 0x10d   : > { %16466 = vst [vmem:[#allocation120_spill] sm:$0xff] %v10480_v47  ;;  %v10482_v48 = vpop.permute.xlu0 %841  ;;  %v16500_v47 = vld [vmem:[#allocation54_spill] sm:$0xff] }
 0x10e   : > { %16467 = vst [vmem:[#allocation121_spill] sm:$0xff] %v10482_v48  ;;  %1079 = vrot.lane.b32.xlu1 %v10028_v53, %s9652_s28 }
 0x10f   : > { %1085 = vrot.lane.b32.xlu0 %v10032_v54, %s9652_s28 }
 0x110   : > { %v10488_v49 = vpop.permute.xlu1 %839 }
 0x111   : > { %16468 = vst [vmem:[#allocation122_spill] sm:$0xff] %v10488_v49  ;;  %v10490_v50 = vpop.permute.xlu0 %845 }
 0x112   : > { %16469 = vst [vmem:[#allocation123_spill] sm:$0xff] %v10490_v50  ;;  %1083 = vrot.lane.b32.xlu1 %v10036_v55, %s9652_s28 }
 0x113   : > { %1089 = vrot.lane.b32.xlu0 %v10040_v56, %s9652_s28  ;;  %v10514_v56 = vld [vmem:[#allocation2 + $0x181] sm:$0xff] }
 0x114   : > { %v10496_v51 = vpop.permute.xlu1 %843 }
 0x115   : > { %16470 = vst [vmem:[#allocation124_spill] sm:$0xff] %v10496_v51  ;;  %v10498_v52 = vpop.permute.xlu0 %913 }
 0x116   : > { %1087 = vrot.lane.b32.xlu1 %v10044_v57, %s9652_s28 }
 0x117   : > { %1093 = vrot.lane.b32.xlu0 %v10053_v59, %s9652_s28 }
 0x118   : > { %v10504_v53 = vpop.permute.xlu1 %847 }
 0x119   : > { %16471 = vst [vmem:[#allocation125_spill] sm:$0xff] %v10504_v53  ;;  %v10506_v54 = vpop.permute.xlu0 %917 }
 0x11a   : > { %1091 = vrot.lane.b32.xlu1 %v10057_v60, %s9652_s28  ;;  %v10528_v60 = vld [vmem:[#allocation2 + $0x189] sm:$0xff] }
 0x11b   : > { %1097 = vrot.lane.b32.xlu0 %v10061_v61, %s9652_s28 }
 0x11c   : > { %v10512_v55 = vpop.permute.xlu1 %915 }
 0x11d   : > { %v10516_v50 = vpop.permute.xlu0 %921 }
 0x11e   : > { %1095 = vrot.lane.b32.xlu1 %v10070_v63, %s9652_s28 }
 0x11f   : > { %1101 = vrot.lane.b32.xlu0 %v10514_v56, %s9652_s28 }
 0x120   : > { %v10522_v57 = vpop.permute.xlu1 %919 }
 0x121   : > { %v10524_v59 = vpop.permute.xlu0 %925 }
 0x122   : > { %1099 = vrot.lane.b32.xlu1 %v10076_v8, %s9652_s28 }
 0x123   : > { %1169 = vrot.lane.b32.xlu0 %v10079_v0, %s9653_s29 }
 0x124   : > { %v10532_v61 = vpop.permute.xlu1 %923 }
 0x125   : > { %v10534_v53 = vpop.permute.xlu0 %929 }
 0x126   : > { %1103 = vrot.lane.b32.xlu1 %v10528_v60, %s9652_s28 }
 0x127   : > { %1173 = vrot.lane.b32.xlu0 %v10085_v62, %s9653_s29 }
 0x128   : > { %v10540_v63 = vpop.permute.xlu1 %927 }
 0x129   : > { %v10542_v51 = vpop.permute.xlu0 %933 }
 0x12a   : > { %1171 = vrot.lane.b32.xlu1 %v10088_v36, %s9653_s29 }
 0x12b   : > { %1177 = vrot.lane.b32.xlu0 %v10092_v39, %s9653_s29 }
 0x12c   : > { %v10548_v0 = vpop.permute.xlu1 %931 }
 0x12d   : > { %v10550_v8 = vpop.permute.xlu0 %937 }
 0x12e   : > { %16472 = vst [vmem:[#allocation126_spill] sm:$0xff] %v10550_v8  ;;  %1175 = vrot.lane.b32.xlu1 %v10096_v7, %s9653_s29 }
 0x12f   : > { %1181 = vrot.lane.b32.xlu0 %v10100_v34, %s9653_s29 }
 0x130   : > { %v10556_v62 = vpop.permute.xlu1 %935 }
 0x131   : > { %16473 = vst [vmem:[#allocation127_spill] sm:$0xff] %v10556_v62  ;;  %v10558_v48 = vpop.permute.xlu0 %941 }
 0x132   : > { %16474 = vst [vmem:[#allocation128_spill] sm:$0xff] %v10558_v48  ;;  %1179 = vrot.lane.b32.xlu1 %v10104_v58, %s9653_s29  ;;  %v597_v48 = vld [vmem:[#allocation2 + $0x62] sm:$0xff] }
 0x133   : > { %1185 = vrot.lane.b32.xlu0 %v10108_v37, %s9653_s29 }
 0x134   : > { %v10564_v36 = vpop.permute.xlu1 %939 }
 0x135   : > { %16475 = vst [vmem:[#allocation129_spill] sm:$0xff] %v10564_v36  ;;  %v10566_v39 = vpop.permute.xlu0 %945 }
 0x136   : > { %16476 = vst [vmem:[#allocation130_spill] sm:$0xff] %v10566_v39  ;;  %1183 = vrot.lane.b32.xlu1 %v10112_v29, %s9653_s29 }
 0x137   : > { %1189 = vrot.lane.b32.xlu0 %v10116_v35, %s9653_s29 }
 0x138   : > { %v10572_v34 = vpop.permute.xlu1 %943 }
 0x139   : > { %16477 = vst [vmem:[#allocation131_spill] sm:$0xff] %v10572_v34  ;;  %v10574_v7 = vpop.permute.xlu0 %949  ;;  %v571_v34 = vld [vmem:[#allocation2 + $0xa9] sm:$0xff] }
 0x13a   : > { %16478 = vst [vmem:[#allocation132_spill] sm:$0xff] %v10574_v7  ;;  %1187 = vrot.lane.b32.xlu1 %v10120_v24, %s9653_s29 }
 0x13b   : > { %1193 = vrot.lane.b32.xlu0 %v10124_v33, %s9653_s29 }
 0x13c   : > { %v10580_v37 = vpop.permute.xlu1 %947 }
 0x13d   : > { %16479 = vst [vmem:[#allocation133_spill] sm:$0xff] %v10580_v37  ;;  %v10582_v58 = vpop.permute.xlu0 %953  ;;  %v565_v37 = vld [vmem:[#allocation2 + $0x61] sm:$0xff] }
 0x13e   : > { %16480 = vst [vmem:[#allocation134_spill] sm:$0xff] %v10582_v58  ;;  %1191 = vrot.lane.b32.xlu1 %v10128_v22, %s9653_s29  ;;  %v16514_v58 = vld [vmem:[#allocation68_spill] sm:$0xff] }
 0x13f   : > { %1197 = vrot.lane.b32.xlu0 %v10132_v28, %s9653_s29 }
 0x140   : > { %v10588_v29 = vpop.permute.xlu1 %951 }
 0x141   : > { %16481 = vst [vmem:[#allocation135_spill] sm:$0xff] %v10588_v29  ;;  %v10590_v35 = vpop.permute.xlu0 %957 }
 0x142   : > { %16482 = vst [vmem:[#allocation136_spill] sm:$0xff] %v10590_v35  ;;  %1195 = vrot.lane.b32.xlu1 %v10136_v20, %s9653_s29  ;;  %v16506_v35 = vld [vmem:[#allocation60_spill] sm:$0xff] }
 0x143   : > { %1201 = vrot.lane.b32.xlu0 %v10140_v23, %s9653_s29 }
 0x144   : > { %v10596_v24 = vpop.permute.xlu1 %955 }
 0x145   : > { %16483 = vst [vmem:[#allocation137_spill] sm:$0xff] %v10596_v24  ;;  %v10598_v33 = vpop.permute.xlu0 %961 }
 0x146   : > { %16484 = vst [vmem:[#allocation138_spill] sm:$0xff] %v10598_v33  ;;  %1199 = vrot.lane.b32.xlu1 %v10144_v18, %s9653_s29 }
 0x147   : > { %1205 = vrot.lane.b32.xlu0 %v10148_v21, %s9653_s29 }
 0x148   : > { %v10604_v22 = vpop.permute.xlu1 %959 }
 0x149   : > { %16485 = vst [vmem:[#allocation139_spill] sm:$0xff] %v10604_v22  ;;  %v10606_v28 = vpop.permute.xlu0 %965  ;;  %v16502_v22 = vld [vmem:[#allocation56_spill] sm:$0xff] }
 0x14a   : > { %16486 = vst [vmem:[#allocation140_spill] sm:$0xff] %v10606_v28  ;;  %1203 = vrot.lane.b32.xlu1 %v10152_v16, %s9653_s29 }
 0x14b   : > { %1209 = vrot.lane.b32.xlu0 %v10156_v19, %s9653_s29 }
 0x14c   : > { %v10612_v20 = vpop.permute.xlu1 %963 }
 0x14d   : > { %16487 = vst [vmem:[#allocation141_spill] sm:$0xff] %v10612_v20  ;;  %v10614_v23 = vpop.permute.xlu0 %969 }
 0x14e   : > { %16488 = vst [vmem:[#allocation142_spill] sm:$0xff] %v10614_v23  ;;  %1207 = vrot.lane.b32.xlu1 %v10160_v14, %s9653_s29 }
 0x14f   : > { %1213 = vrot.lane.b32.xlu0 %v10164_v17, %s9653_s29 }
 0x150   : > { %v10620_v18 = vpop.permute.xlu1 %967 }
 0x151   : > { %16489 = vst [vmem:[#allocation143_spill] sm:$0xff] %v10620_v18  ;;  %v10622_v21 = vpop.permute.xlu0 %973  ;;  %v16497_v18 = vld [vmem:[#allocation47_spill] sm:$0xff] }
 0x152   : > { %16490 = vst [vmem:[#allocation144_spill] sm:$0xff] %v10622_v21  ;;  %1211 = vrot.lane.b32.xlu1 %v10168_v12, %s9653_s29  ;;  %v16493_v21 = vld [vmem:[#allocation37_spill] sm:$0xff]  ;;  %v16494_v12 = vld [vmem:[#allocation39_spill] sm:$0xff] }
 0x153   : > { %1217 = vrot.lane.b32.xlu0 %v10172_v15, %s9653_s29 }
 0x154   : > { %v10628_v16 = vpop.permute.xlu1 %971 }
 0x155   : > { %16491 = vst [vmem:[#allocation145_spill] sm:$0xff] %v10628_v16  ;;  %v10630_v19 = vpop.permute.xlu0 %1041  ;;  %v10646_v16 = vld [vmem:[#allocation2 + $0x182] sm:$0xff] }
 0x156   : > { %1215 = vrot.lane.b32.xlu1 %v10178_v13, %s9653_s29  ;;  %v16495_v13 = vld [vmem:[#allocation41_spill] sm:$0xff] }
 0x157   : > { %1221 = vrot.lane.b32.xlu0 %v10182_v6, %s9653_s29 }
 0x158   : > { %v10636_v14 = vpop.permute.xlu1 %975 }
 0x159   : > { %16492 = vst [vmem:[#allocation146_spill] sm:$0xff] %v10636_v14  ;;  %v10638_v17 = vpop.permute.xlu0 %1045 }
 0x15a   : > { %1219 = vrot.lane.b32.xlu1 %v16493_v21, %s9653_s29  ;;  %v16496_v21 = vld [vmem:[#allocation44_spill] sm:$0xff] }
 0x15b   : > { %1225 = vrot.lane.b32.xlu0 %v16494_v12, %s9653_s29  ;;  %v10660_v12 = vld [vmem:[#allocation2 + $0x18a] sm:$0xff] }
 0x15c   : > { %v10644_v15 = vpop.permute.xlu1 %1043 }
 0x15d   : > { %v10648_v23 = vpop.permute.xlu0 %1049 }
 0x15e   : > { %1223 = vrot.lane.b32.xlu1 %v16495_v13, %s9653_s29  ;;  %v16498_v13 = vld [vmem:[#allocation50_spill] sm:$0xff] }
 0x15f   : > { %1229 = vrot.lane.b32.xlu0 %v10646_v16, %s9653_s29 }
 0x160   : > { %v10654_v6 = vpop.permute.xlu1 %1047 }
 0x161   : > { %v10656_v14 = vpop.permute.xlu0 %1053 }
 0x162   : > { %1227 = vrot.lane.b32.xlu1 %v16496_v21, %s9653_s29  ;;  %v16499_v21 = vld [vmem:[#allocation52_spill] sm:$0xff] }
 0x163   : > { %1297 = vrot.lane.b32.xlu0 %v16497_v18, %s9654_s30 }
 0x164   : > { %v10664_v49 = vpop.permute.xlu1 %1051 }
 0x165   : > { %v10666_v28 = vpop.permute.xlu0 %1057 }
 0x166   : > { %1231 = vrot.lane.b32.xlu1 %v10660_v12, %s9653_s29 }
 0x167   : > { %1301 = vrot.lane.b32.xlu0 %v16498_v13, %s9654_s30 }
 0x168   : > { %v10672_v20 = vpop.permute.xlu1 %1055 }
 0x169   : > { %v10674_v46 = vpop.permute.xlu0 %1061 }
 0x16a   : > { %1299 = vrot.lane.b32.xlu1 %v16499_v21, %s9654_s30  ;;  %v16507_v21 = vld [vmem:[#allocation62_spill] sm:$0xff] }
 0x16b   : > { %1305 = vrot.lane.b32.xlu0 %v16500_v47, %s9654_s30 }
 0x16c   : > { %v10680_v18 = vpop.permute.xlu1 %1059 }
 0x16d   : > { %v10682_v33 = vpop.permute.xlu0 %1065 }
 0x16e   : > { %16501 = vst [vmem:[#allocation37_spill] sm:$0xff] %v10682_v33  ;;  %1303 = vrot.lane.b32.xlu1 %v16502_v22, %s9654_s30  ;;  %v16511_v22 = vld [vmem:[#allocation66_spill] sm:$0xff] }
 0x16f   : > { %1309 = vrot.lane.b32.xlu0 %v16503_v44, %s9654_s30  ;;  %v603_v33 = vld [vmem:[#allocation2 + $0xaa] sm:$0xff] }
 0x170   : > { %v10688_v13 = vpop.permute.xlu1 %1063 }
 0x171   : > { %16504 = vst [vmem:[#allocation39_spill] sm:$0xff] %v10688_v13  ;;  %v10690_v45 = vpop.permute.xlu0 %1069 }
 0x172   : > { %16505 = vst [vmem:[#allocation41_spill] sm:$0xff] %v10690_v45  ;;  %1307 = vrot.lane.b32.xlu1 %v16506_v35, %s9654_s30  ;;  %v16515_v35 = vld [vmem:[#allocation70_spill] sm:$0xff] }
 0x173   : > { %1313 = vrot.lane.b32.xlu0 %v16507_v21, %s9654_s30 }
 0x174   : > { %v10696_v47 = vpop.permute.xlu1 %1067 }
 0x175   : > { %16508 = vst [vmem:[#allocation44_spill] sm:$0xff] %v10696_v47  ;;  %v10698_v24 = vpop.permute.xlu0 %1073 }
 0x176   : > { %16509 = vst [vmem:[#allocation47_spill] sm:$0xff] %v10698_v24  ;;  %1311 = vrot.lane.b32.xlu1 %v16510_v42, %s9654_s30  ;;  %v16519_v42 = vld [vmem:[#allocation74_spill] sm:$0xff] }
 0x177   : > { %1317 = vrot.lane.b32.xlu0 %v16511_v22, %s9654_s30 }
 0x178   : > { %v10704_v44 = vpop.permute.xlu1 %1071 }
 0x179   : > { %16512 = vst [vmem:[#allocation50_spill] sm:$0xff] %v10704_v44  ;;  %v10706_v43 = vpop.permute.xlu0 %1077  ;;  %v569_v44 = vld [vmem:[#allocation2 + $0x91] sm:$0xff] }
 0x17a   : > { %16513 = vst [vmem:[#allocation52_spill] sm:$0xff] %v10706_v43  ;;  %1315 = vrot.lane.b32.xlu1 %v16514_v58, %s9654_s30  ;;  %v16522_v43 = vld [vmem:[#allocation76_spill] sm:$0xff]  ;;  %v16523_v58 = vld [vmem:[#allocation78_spill] sm:$0xff] }
 0x17b   : > { %1321 = vrot.lane.b32.xlu0 %v16515_v35, %s9654_s30 }
 0x17c   : > { %v10712_v21 = vpop.permute.xlu1 %1075 }
 0x17d   : > { %16516 = vst [vmem:[#allocation54_spill] sm:$0xff] %v10712_v21  ;;  %v10714_v29 = vpop.permute.xlu0 %1081 }
 0x17e   : > { %16517 = vst [vmem:[#allocation56_spill] sm:$0xff] %v10714_v29  ;;  %1319 = vrot.lane.b32.xlu1 %v16518_v40, %s9654_s30  ;;  %v16526_v29 = vld [vmem:[#allocation80_spill] sm:$0xff]  ;;  %v16527_v40 = vld [vmem:[#allocation82_spill] sm:$0xff] }
 0x17f   : > { %1325 = vrot.lane.b32.xlu0 %v16519_v42, %s9654_s30 }
 0x180   : > { %v10720_v22 = vpop.permute.xlu1 %1079 }
 0x181   : > { %16520 = vst [vmem:[#allocation58_spill] sm:$0xff] %v10720_v22  ;;  %v10722_v41 = vpop.permute.xlu0 %1085 }
 0x182   : > { %16521 = vst [vmem:[#allocation60_spill] sm:$0xff] %v10722_v41  ;;  %1323 = vrot.lane.b32.xlu1 %v16522_v43, %s9654_s30  ;;  %v16530_v41 = vld [vmem:[#allocation84_spill] sm:$0xff]  ;;  %v16531_v43 = vld [vmem:[#allocation86_spill] sm:$0xff] }
 0x183   : > { %1329 = vrot.lane.b32.xlu0 %v16523_v58, %s9654_s30 }
 0x184   : > { %v10728_v35 = vpop.permute.xlu1 %1083 }
 0x185   : > { %16524 = vst [vmem:[#allocation62_spill] sm:$0xff] %v10728_v35  ;;  %v10730_v21 = vpop.permute.xlu0 %1089 }
 0x186   : > { %16525 = vst [vmem:[#allocation64_spill] sm:$0xff] %v10730_v21  ;;  %1327 = vrot.lane.b32.xlu1 %v16526_v29, %s9654_s30  ;;  %v16534_v21 = vld [vmem:[#allocation88_spill] sm:$0xff]  ;;  %v16535_v29 = vld [vmem:[#allocation90_spill] sm:$0xff] }
 0x187   : > { %1333 = vrot.lane.b32.xlu0 %v16527_v40, %s9654_s30 }
 0x188   : > { %v10736_v42 = vpop.permute.xlu1 %1087 }
 0x189   : > { %16528 = vst [vmem:[#allocation66_spill] sm:$0xff] %v10736_v42  ;;  %v10738_v22 = vpop.permute.xlu0 %1093 }
 0x18a   : > { %16529 = vst [vmem:[#allocation68_spill] sm:$0xff] %v10738_v22  ;;  %1331 = vrot.lane.b32.xlu1 %v16530_v41, %s9654_s30  ;;  %v16538_v22 = vld [vmem:[#allocation92_spill] sm:$0xff]  ;;  %v16539_v41 = vld [vmem:[#allocation94_spill] sm:$0xff] }
 0x18b   : > { %1337 = vrot.lane.b32.xlu0 %v16531_v43, %s9654_s30 }
 0x18c   : > { %v10744_v58 = vpop.permute.xlu1 %1091 }
 0x18d   : > { %16532 = vst [vmem:[#allocation70_spill] sm:$0xff] %v10744_v58  ;;  %v10746_v35 = vpop.permute.xlu0 %1097 }
 0x18e   : > { %16533 = vst [vmem:[#allocation72_spill] sm:$0xff] %v10746_v35  ;;  %1335 = vrot.lane.b32.xlu1 %v16534_v21, %s9654_s30  ;;  %v16541_v35 = vld [vmem:[#allocation96_spill] sm:$0xff] }
 0x18f   : > { %1341 = vrot.lane.b32.xlu0 %v16535_v29, %s9654_s30 }
 0x190   : > { %v10752_v40 = vpop.permute.xlu1 %1095 }
 0x191   : > { %16536 = vst [vmem:[#allocation74_spill] sm:$0xff] %v10752_v40  ;;  %v10754_v42 = vpop.permute.xlu0 %1101  ;;  %v563_v40 = vld [vmem:[#allocation2 + $0x49] sm:$0xff] }
 0x192   : > { %16537 = vst [vmem:[#allocation76_spill] sm:$0xff] %v10754_v42  ;;  %1339 = vrot.lane.b32.xlu1 %v16538_v22, %s9654_s30  ;;  %v16543_v42 = vld [vmem:[#allocation99_spill] sm:$0xff] }
 0x193   : > { %1345 = vrot.lane.b32.xlu0 %v16539_v41, %s9654_s30  ;;  %v559_v41 = vld [vmem:[#allocation2 + $0x198] sm:$0xff] }
 0x194   : > { %v10760_v43 = vpop.permute.xlu1 %1099 }
 0x195   : > { %16540 = vst [vmem:[#allocation78_spill] sm:$0xff] %v10760_v43  ;;  %v10762_v58 = vpop.permute.xlu0 %1169 }
 0x196   : > { %1343 = vrot.lane.b32.xlu1 %v16541_v35, %s9654_s30  ;;  %v561_v35 = vld [vmem:[#allocation2 + $0x31] sm:$0xff] }
 0x197   : > { %1349 = vrot.lane.b32.xlu0 %v10372_v9, %s9654_s30 }
 0x198   : > { %v10768_v21 = vpop.permute.xlu1 %1103 }
 0x199   : > { %16542 = vst [vmem:[#allocation80_spill] sm:$0xff] %v10768_v21  ;;  %v10770_v29 = vpop.permute.xlu0 %1173 }
 0x19a   : > { %1347 = vrot.lane.b32.xlu1 %v16543_v42, %s9654_s30  ;;  %v560_v42 = vld [vmem:[#allocation2 + $0x1a0] sm:$0xff] }
 0x19b   : > { %1353 = vrot.lane.b32.xlu0 %v10380_v10, %s9654_s30 }
 0x19c   : > { %v10776_v22 = vpop.permute.xlu1 %1171 }
 0x19d   : > { %v10778_v43 = vpop.permute.xlu0 %1177 }
 0x19e   : > { %1351 = vrot.lane.b32.xlu1 %v10390_v3, %s9654_s30  ;;  %v562_v3 = vld [vmem:[#allocation2 + $0x39] sm:$0xff] }
 0x19f   : > { %1357 = vrot.lane.b32.xlu0 %v559_v41, %s9654_s30 }
 0x1a0   : > { %v10783_v9 = vpop.permute.xlu1 %1175 }
 0x1a1   : > { %v10785_v21 = vpop.permute.xlu0 %1181 }
 0x1a2   : > { %1355 = vrot.lane.b32.xlu1 %v10396_v4, %s9654_s30  ;;  %v564_v4 = vld [vmem:[#allocation2 + $0x51] sm:$0xff] }
 0x1a3   : > { %1425 = vrot.lane.b32.xlu0 %v561_v35, %s9655_s6 }
 0x1a4   : > { %v10790_v10 = vpop.permute.xlu1 %1179 }
 0x1a5   : > { %v10792_v7 = vpop.permute.xlu0 %1185 }
 0x1a6   : > { %1359 = vrot.lane.b32.xlu1 %v560_v42, %s9654_s30  ;;  %v566_v42 = vld [vmem:[#allocation2 + $0x69] sm:$0xff] }
 0x1a7   : > { %1429 = vrot.lane.b32.xlu0 %v563_v40, %s9655_s6 }
 0x1a8   : > { %v10796_v41 = vpop.permute.xlu1 %1183 }
 0x1a9   : > { %v10798_v32 = vpop.permute.xlu0 %1189 }
 0x1aa   : > { %16544 = vst [vmem:[#allocation82_spill] sm:$0xff] %v10798_v32  ;;  %1427 = vrot.lane.b32.xlu1 %v562_v3, %s9655_s6  ;;  %v568_v3 = vld [vmem:[#allocation2 + $0x81] sm:$0xff] }
 0x1ab   : > { %1433 = vrot.lane.b32.xlu0 %v565_v37, %s9655_s6 }
 0x1ac   : > { %v10802_v35 = vpop.permute.xlu1 %1187 }
 0x1ad   : > { %16545 = vst [vmem:[#allocation84_spill] sm:$0xff] %v10802_v35  ;;  %v10804_v24 = vpop.permute.xlu0 %1193 }
 0x1ae   : > { %16546 = vst [vmem:[#allocation86_spill] sm:$0xff] %v10804_v24  ;;  %1431 = vrot.lane.b32.xlu1 %v564_v4, %s9655_s6  ;;  %v570_v4 = vld [vmem:[#allocation2 + $0x99] sm:$0xff] }
 0x1af   : > { %1437 = vrot.lane.b32.xlu0 %v567_v38, %s9655_s6 }
 0x1b0   : > { %v10808_v40 = vpop.permute.xlu1 %1191 }
 0x1b1   : > { %16547 = vst [vmem:[#allocation88_spill] sm:$0xff] %v10808_v40  ;;  %v10810_v39 = vpop.permute.xlu0 %1197 }
 0x1b2   : > { %16548 = vst [vmem:[#allocation90_spill] sm:$0xff] %v10810_v39  ;;  %1435 = vrot.lane.b32.xlu1 %v566_v42, %s9655_s6  ;;  %v572_v42 = vld [vmem:[#allocation2 + $0xb1] sm:$0xff]  ;;  %v575_v39 = vld [vmem:[#allocation2 + $0xd9] sm:$0xff] }
 0x1b3   : > { %1441 = vrot.lane.b32.xlu0 %v569_v44, %s9655_s6 }
 0x1b4   : > { %v10814_v37 = vpop.permute.xlu1 %1195 }
 0x1b5   : > { %16549 = vst [vmem:[#allocation92_spill] sm:$0xff] %v10814_v37  ;;  %v10816_v30 = vpop.permute.xlu0 %1201 }
 0x1b6   : > { %16550 = vst [vmem:[#allocation94_spill] sm:$0xff] %v10816_v30  ;;  %1439 = vrot.lane.b32.xlu1 %v568_v3, %s9655_s6  ;;  %v574_v3 = vld [vmem:[#allocation2 + $0xc9] sm:$0xff]  ;;  %v577_v30 = vld [vmem:[#allocation2 + $0xf1] sm:$0xff] }
 0x1b7   : > { %1445 = vrot.lane.b32.xlu0 %v571_v34, %s9655_s6 }
 0x1b8   : > { %v10820_v38 = vpop.permute.xlu1 %1199 }
 0x1b9   : > { %16551 = vst [vmem:[#allocation96_spill] sm:$0xff] %v10820_v38  ;;  %v10822_v45 = vpop.permute.xlu0 %1205 }
 0x1ba   : > { %16552 = vst [vmem:[#allocation99_spill] sm:$0xff] %v10822_v45  ;;  %1443 = vrot.lane.b32.xlu1 %v570_v4, %s9655_s6  ;;  %v576_v4 = vld [vmem:[#allocation2 + $0xe1] sm:$0xff]  ;;  %v579_v45 = vld [vmem:[#allocation2 + $0x109] sm:$0xff] }
 0x1bb   : > { %1449 = vrot.lane.b32.xlu0 %v573_v31, %s9655_s6 }
 0x1bc   : > { %v10826_v44 = vpop.permute.xlu1 %1203 }
 0x1bd   : > { %16553 = vst [vmem:[#allocation147_spill] sm:$0xff] %v10826_v44  ;;  %v10828_v37 = vpop.permute.xlu0 %1209 }
 0x1be   : > { %16554 = vst [vmem:[#allocation148_spill] sm:$0xff] %v10828_v37  ;;  %1447 = vrot.lane.b32.xlu1 %v572_v42, %s9655_s6  ;;  %v578_v42 = vld [vmem:[#allocation2 + $0xf9] sm:$0xff]  ;;  %v581_v37 = vld [vmem:[#allocation2 + $0x121] sm:$0xff] }
 0x1bf   : > { %1453 = vrot.lane.b32.xlu0 %v575_v39, %s9655_s6 }
 0x1c0   : > { %v10832_v34 = vpop.permute.xlu1 %1207 }
 0x1c1   : > { %16555 = vst [vmem:[#allocation149_spill] sm:$0xff] %v10832_v34  ;;  %v10834_v38 = vpop.permute.xlu0 %1213 }
 0x1c2   : > { %16556 = vst [vmem:[#allocation150_spill] sm:$0xff] %v10834_v38  ;;  %1451 = vrot.lane.b32.xlu1 %v574_v3, %s9655_s6  ;;  %v580_v3 = vld [vmem:[#allocation2 + $0x111] sm:$0xff]  ;;  %v583_v38 = vld [vmem:[#allocation2 + $0x139] sm:$0xff] }
 0x1c3   : > { %1457 = vrot.lane.b32.xlu0 %v577_v30, %s9655_s6 }
 0x1c4   : > { %v10838_v31 = vpop.permute.xlu1 %1211 }
 0x1c5   : > { %16557 = vst [vmem:[#allocation151_spill] sm:$0xff] %v10838_v31  ;;  %v10840_v44 = vpop.permute.xlu0 %1217 }
 0x1c6   : > { %16558 = vst [vmem:[#allocation152_spill] sm:$0xff] %v10840_v44  ;;  %1455 = vrot.lane.b32.xlu1 %v576_v4, %s9655_s6  ;;  %v582_v4 = vld [vmem:[#allocation2 + $0x129] sm:$0xff]  ;;  %v585_v44 = vld [vmem:[#allocation2 + $0x151] sm:$0xff] }
 0x1c7   : > { %1461 = vrot.lane.b32.xlu0 %v579_v45, %s9655_s6 }
 0x1c8   : > { %v10844_v39 = vpop.permute.xlu1 %1215 }
 0x1c9   : > { %16559 = vst [vmem:[#allocation153_spill] sm:$0xff] %v10844_v39  ;;  %v10846_v34 = vpop.permute.xlu0 %1221 }
 0x1ca   : > { %16560 = vst [vmem:[#allocation154_spill] sm:$0xff] %v10846_v34  ;;  %1459 = vrot.lane.b32.xlu1 %v578_v42, %s9655_s6  ;;  %v584_v42 = vld [vmem:[#allocation2 + $0x141] sm:$0xff] }
 0x1cb   : > { %1465 = vrot.lane.b32.xlu0 %v581_v37, %s9655_s6  ;;  %v1916_v37 = vld [vmem:[%s16124_s1 + $0x20] sm:$0xf] }
 0x1cc   : > { %v10850_v30 = vpop.permute.xlu1 %1219  ;;  %9309 = vmatprep.subr.msk.mxu0 %vm2021_vm3, %v1916_v37 }
 0x1cd   : > { %16561 = vst [vmem:[#allocation155_spill] sm:$0xff] %v10850_v30  ;;  %v10852_v31 = vpop.permute.xlu0 %1225  ;;  %9310 = vmatpush3.msk.msra.mxu0 %vm2021_vm3, %v1916_v37  ;;  %v1913_v37 = vld [vmem:[%s16124_s1 + $0x8] sm:$0xff] }
 0x1ce   : > { %16562 = vst [vmem:[#allocation156_spill] sm:$0xff] %v10852_v31  ;;  %1463 = vrot.lane.b32.xlu1 %v580_v3, %s9655_s6  ;;  %v1915_v3 = vld [vmem:[%s16124_s1 + $0x18] sm:$0xff] }
 0x1cf   : > { %1469 = vrot.lane.b32.xlu0 %v583_v38, %s9655_s6  ;;  %v587_v38 = vld [vmem:[#allocation2 + $0x169] sm:$0xff]  ;;  %9311 = vmatprep.subr.mxu0 %v1915_v3 }
 0x1d0   : > { %v10856_v45 = vpop.permute.xlu1 %1223  ;;  %9312 = vmatpush3.msra.mxu0 %v1915_v3  ;;  %v1912_v3 = vld [vmem:[%s16124_s1] sm:$0xff] }
 0x1d1   : > { %16563 = vst [vmem:[#allocation157_spill] sm:$0xff] %v10856_v45  ;;  %v10858_v39 = vpop.permute.xlu0 %1229 }
 0x1d2   : > { %16564 = vst [vmem:[#allocation158_spill] sm:$0xff] %v10858_v39  ;;  %1467 = vrot.lane.b32.xlu1 %v582_v4, %s9655_s6  ;;  %v586_v39 = vld [vmem:[#allocation2 + $0x159] sm:$0xff] }
 0x1d3   : > { %1473 = vrot.lane.b32.xlu0 %v585_v44, %s9655_s6  ;;  %v1914_v44 = vld [vmem:[%s16124_s1 + $0x10] sm:$0xff] }
 0x1d4   : > { %v10865_v31 = vpop.permute.xlu1 %1227  ;;  %9313 = vmatprep.subr.mxu0 %v1914_v44 }
 0x1d5   : > { %16565 = vst [vmem:[#allocation159_spill] sm:$0xff] %v10865_v31  ;;  %v10872_v4 = vpop.permute.xlu0 %1297  ;;  %9314 = vmatpush3.msra.mxu0 %v1914_v44  ;;  %v591_v44 = vld [vmem:[#allocation2 + $0x199] sm:$0xff] }
 0x1d6   : > { %1471 = vrot.lane.b32.xlu1 %v584_v42, %s9655_s6  ;;  %9315 = vmatprep.subr.mxu0 %v1913_v37  ;;  %v588_v42 = vld [vmem:[#allocation2 + $0x171] sm:$0xff] }
 0x1d7   : > { %1477 = vrot.lane.b32.xlu0 %v587_v38, %s9655_s6  ;;  %9316 = vmatpush3.msra.mxu0 %v1913_v37  ;;  %v593_v37 = vld [vmem:[#allocation2 + $0x32] sm:$0xff] }
 0x1d8   : > { %v10879_v31 = vpop.permute.xlu1 %1231  ;;  %9317 = vmatprep.subr.mxu0 %v1912_v3 }
 0x1d9   : > { %16566 = vst [vmem:[#allocation160_spill] sm:$0xff] %v10879_v31  ;;  %v10884_v45 = vpop.permute.xlu0 %1301  ;;  %9318 = vmatpush3.msra.mxu0 %v1912_v3  ;;  %v595_v3 = vld [vmem:[#allocation2 + $0x4a] sm:$0xff] }
 0x1da   : > { %1475 = vrot.lane.b32.xlu1 %v586_v39, %s9655_s6 }
 0x1db   : > { %1481 = vrot.lane.b32.xlu0 %v10514_v56, %s9655_s6  ;;  %v592_v56 = vld [vmem:[#allocation2 + $0x1a1] sm:$0xff] }
 0x1dc   : > { %v10892_v38 = vpop.permute.xlu1 %1299 }
 0x1dd   : > { %v10894_v31 = vpop.permute.xlu0 %1305 }
 0x1de   : > { %1479 = vrot.lane.b32.xlu1 %v588_v42, %s9655_s6  ;;  %v594_v42 = vld [vmem:[#allocation2 + $0x3a] sm:$0xff] }
 0x1df   : > { %1485 = vrot.lane.b32.xlu0 %v591_v44, %s9655_s6 }
 0x1e0   : > { %v10898_v39 = vpop.permute.xlu1 %1303 }
 0x1e1   : > { %v10900_v34 = vpop.permute.xlu0 %1309 }
 0x1e2   : > { %1483 = vrot.lane.b32.xlu1 %v10528_v60, %s9655_s6  ;;  %v596_v60 = vld [vmem:[#allocation2 + $0x52] sm:$0xff] }
 0x1e3   : > { %1553 = vrot.lane.b32.xlu0 %v593_v37, %s9656_s17 }
 0x1e4   : > { %v10905_v30 = vpop.permute.xlu1 %1307 }
 0x1e5   : > { %v10907_v47 = vpop.permute.xlu0 %1313 }
 0x1e6   : > { %1487 = vrot.lane.b32.xlu1 %v592_v56, %s9655_s6  ;;  %v598_v56 = vld [vmem:[#allocation2 + $0x6a] sm:$0xff] }
 0x1e7   : > { %1557 = vrot.lane.b32.xlu0 %v595_v3, %s9656_s17 }
 0x1e8   : > { %v10911_v44 = vpop.permute.xlu1 %1311 }
 0x1e9   : > { %v10913_v36 = vpop.permute.xlu0 %1317 }
 0x1ea   : > { %16567 = vst [vmem:[#allocation161_spill] sm:$0xff] %v10913_v36  ;;  %1555 = vrot.lane.b32.xlu1 %v594_v42, %s9656_s17  ;;  %v600_v42 = vld [vmem:[#allocation2 + $0x82] sm:$0xff] }
 0x1eb   : > { %1561 = vrot.lane.b32.xlu0 %v597_v48, %s9656_s17 }
 0x1ec   : > { %v10917_v37 = vpop.permute.xlu1 %1315 }
 0x1ed   : > { %16568 = vst [vmem:[#allocation162_spill] sm:$0xff] %v10917_v37  ;;  %v10919_v24 = vpop.permute.xlu0 %1321 }
 0x1ee   : > { %16569 = vst [vmem:[#allocation163_spill] sm:$0xff] %v10919_v24  ;;  %1559 = vrot.lane.b32.xlu1 %v596_v60, %s9656_s17  ;;  %v602_v60 = vld [vmem:[#allocation2 + $0x9a] sm:$0xff]  ;;  %v605_v24 = vld [vmem:[#allocation2 + $0xc2] sm:$0xff] }
 0x1ef   : > { %1565 = vrot.lane.b32.xlu0 %v599_v5, %s9656_s17 }
 0x1f0   : > { %v10923_v3 = vpop.permute.xlu1 %1319 }
 0x1f1   : > { %16570 = vst [vmem:[#allocation164_spill] sm:$0xff] %v10923_v3  ;;  %v10925_v40 = vpop.permute.xlu0 %1325 }
 0x1f2   : > { %16571 = vst [vmem:[#allocation165_spill] sm:$0xff] %v10925_v40  ;;  %1563 = vrot.lane.b32.xlu1 %v598_v56, %s9656_s17  ;;  %v604_v56 = vld [vmem:[#allocation2 + $0xb2] sm:$0xff]  ;;  %v607_v40 = vld [vmem:[#allocation2 + $0xda] sm:$0xff] }
 0x1f3   : > { %1569 = vrot.lane.b32.xlu0 %v601_v27, %s9656_s17 }
 0x1f4   : > { %v10929_v48 = vpop.permute.xlu1 %1323 }
 0x1f5   : > { %16572 = vst [vmem:[#allocation166_spill] sm:$0xff] %v10929_v48  ;;  %v10931_v13 = vpop.permute.xlu0 %1329 }
 0x1f6   : > { %16573 = vst [vmem:[#allocation167_spill] sm:$0xff] %v10931_v13  ;;  %1567 = vrot.lane.b32.xlu1 %v600_v42, %s9656_s17  ;;  %v606_v42 = vld [vmem:[#allocation2 + $0xca] sm:$0xff]  ;;  %v609_v13 = vld [vmem:[#allocation2 + $0xf2] sm:$0xff] }
 0x1f7   : > { %1573 = vrot.lane.b32.xlu0 %v603_v33, %s9656_s17 }
 0x1f8   : > { %v10935_v5 = vpop.permute.xlu1 %1327 }
 0x1f9   : > { %16574 = vst [vmem:[#allocation168_spill] sm:$0xff] %v10935_v5  ;;  %v10937_v3 = vpop.permute.xlu0 %1333 }
 0x1fa   : > { %16575 = vst [vmem:[#allocation169_spill] sm:$0xff] %v10937_v3  ;;  %1571 = vrot.lane.b32.xlu1 %v602_v60, %s9656_s17  ;;  %v608_v60 = vld [vmem:[#allocation2 + $0xe2] sm:$0xff]  ;;  %v611_v3 = vld [vmem:[#allocation2 + $0x10a] sm:$0xff] }
 0x1fb   : > { %1577 = vrot.lane.b32.xlu0 %v605_v24, %s9656_s17 }
 0x1fc   : > { %v10941_v27 = vpop.permute.xlu1 %1331 }
 0x1fd   : > { %16576 = vst [vmem:[#allocation170_spill] sm:$0xff] %v10941_v27  ;;  %v10943_v48 = vpop.permute.xlu0 %1337 }
 0x1fe   : > { %16577 = vst [vmem:[#allocation171_spill] sm:$0xff] %v10943_v48  ;;  %1575 = vrot.lane.b32.xlu1 %v604_v56, %s9656_s17  ;;  %v610_v56 = vld [vmem:[#allocation2 + $0xfa] sm:$0xff]  ;;  %v613_v48 = vld [vmem:[#allocation2 + $0x122] sm:$0xff] }
 0x1ff   : > { %1581 = vrot.lane.b32.xlu0 %v607_v40, %s9656_s17 }
 0x200   : > { %v10947_v33 = vpop.permute.xlu1 %1335 }
 0x201   : > { %16578 = vst [vmem:[#allocation172_spill] sm:$0xff] %v10947_v33  ;;  %v10949_v5 = vpop.permute.xlu0 %1341 }
 0x202   : > { %16579 = vst [vmem:[#allocation173_spill] sm:$0xff] %v10949_v5  ;;  %1579 = vrot.lane.b32.xlu1 %v606_v42, %s9656_s17  ;;  %v612_v42 = vld [vmem:[#allocation2 + $0x112] sm:$0xff]  ;;  %v615_v5 = vld [vmem:[#allocation2 + $0x13a] sm:$0xff] }
 0x203   : > { %1585 = vrot.lane.b32.xlu0 %v609_v13, %s9656_s17 }
 0x204   : > { %v10953_v24 = vpop.permute.xlu1 %1339 }
 0x205   : > { %16580 = vst [vmem:[#allocation174_spill] sm:$0xff] %v10953_v24  ;;  %v10955_v27 = vpop.permute.xlu0 %1345 }
 0x206   : > { %16581 = vst [vmem:[#allocation175_spill] sm:$0xff] %v10955_v27  ;;  %1583 = vrot.lane.b32.xlu1 %v608_v60, %s9656_s17  ;;  %v614_v60 = vld [vmem:[#allocation2 + $0x12a] sm:$0xff]  ;;  %v617_v27 = vld [vmem:[#allocation2 + $0x152] sm:$0xff] }
 0x207   : > { %1589 = vrot.lane.b32.xlu0 %v611_v3, %s9656_s17 }
 0x208   : > { %v10959_v40 = vpop.permute.xlu1 %1343 }
 0x209   : > { %16582 = vst [vmem:[#allocation176_spill] sm:$0xff] %v10959_v40  ;;  %v10961_v33 = vpop.permute.xlu0 %1349 }
 0x20a   : > { %16583 = vst [vmem:[#allocation177_spill] sm:$0xff] %v10961_v33  ;;  %1587 = vrot.lane.b32.xlu1 %v610_v56, %s9656_s17  ;;  %v616_v56 = vld [vmem:[#allocation2 + $0x142] sm:$0xff]  ;;  %v619_v33 = vld [vmem:[#allocation2 + $0x16a] sm:$0xff] }
 0x20b   : > { %1593 = vrot.lane.b32.xlu0 %v613_v48, %s9656_s17 }
 0x20c   : > { %v10965_v13 = vpop.permute.xlu1 %1347 }
 0x20d   : > { %16584 = vst [vmem:[#allocation178_spill] sm:$0xff] %v10965_v13  ;;  %v10967_v24 = vpop.permute.xlu0 %1353 }
 0x20e   : > { %16585 = vst [vmem:[#allocation179_spill] sm:$0xff] %v10967_v24  ;;  %1591 = vrot.lane.b32.xlu1 %v612_v42, %s9656_s17  ;;  %v618_v42 = vld [vmem:[#allocation2 + $0x15a] sm:$0xff] }
 0x20f   : > { %1597 = vrot.lane.b32.xlu0 %v615_v5, %s9656_s17 }
 0x210   : > { %v10971_v3 = vpop.permute.xlu1 %1351 }
 0x211   : > { %16586 = vst [vmem:[#allocation180_spill] sm:$0xff] %v10971_v3  ;;  %v10973_v40 = vpop.permute.xlu0 %1357 }
 0x212   : > { %16587 = vst [vmem:[#allocation181_spill] sm:$0xff] %v10973_v40  ;;  %1595 = vrot.lane.b32.xlu1 %v614_v60, %s9656_s17  ;;  %v620_v40 = vld [vmem:[#allocation2 + $0x172] sm:$0xff]  ;;  %v623_v60 = vld [vmem:[#allocation2 + $0x19a] sm:$0xff] }
 0x213   : > { %1601 = vrot.lane.b32.xlu0 %v617_v27, %s9656_s17 }
 0x214   : > { %v10977_v48 = vpop.permute.xlu1 %1355 }
 0x215   : > { %16588 = vst [vmem:[#allocation182_spill] sm:$0xff] %v10977_v48  ;;  %v1426_v13 = vpop.permute.xlu0 %1425 }
 0x216   : > { %1599 = vrot.lane.b32.xlu1 %v616_v56, %s9656_s17 }
 0x217   : > { %1605 = vrot.lane.b32.xlu0 %v619_v33, %s9656_s17 }
 0x218   : > { %v10981_v5 = vpop.permute.xlu1 %1359 }
 0x219   : > { %16589 = vst [vmem:[#allocation183_spill] sm:$0xff] %v10981_v5  ;;  %v10983_v24 = vpop.permute.xlu0 %1429 }
 0x21a   : > { %1603 = vrot.lane.b32.xlu1 %v618_v42, %s9656_s17  ;;  %v624_v42 = vld [vmem:[#allocation2 + $0x1a2] sm:$0xff] }
 0x21b   : > { %1609 = vrot.lane.b32.xlu0 %v10646_v16, %s9656_s17 }
 0x21c   : > { %v10988_v27 = vpop.permute.xlu1 %1427 }
 0x21d   : > { %v10990_v48 = vpop.permute.xlu0 %1433 }
 0x21e   : > { %1607 = vrot.lane.b32.xlu1 %v620_v40, %s9656_s17 }
 0x21f   : > { %1613 = vrot.lane.b32.xlu0 %v623_v60, %s9656_s17 }
 0x220   : > { %v10994_v33 = vpop.permute.xlu1 %1431 }
 0x221   : > { %v10996_v56 = vpop.permute.xlu0 %1437 }
 0x222   : > { %1611 = vrot.lane.b32.xlu1 %v10660_v12, %s9656_s17 }
 0x224   : > { %v11000_v5 = vpop.permute.xlu1 %1435 }
 0x225   : > { %v11002_v16 = vpop.permute.xlu0 %1441 }
 0x226   : > { %1615 = vrot.lane.b32.xlu1 %v624_v42, %s9656_s17 }
 0x228   : > { %v11005_v3 = vpop.permute.xlu1 %1439 }
 0x229   : > { %v11007_v8 = vpop.permute.xlu0 %1445 }
 0x22a   : > { %16590 = vst [vmem:[#allocation184_spill] sm:$0xff] %v11007_v8 }
 0x22c   : > { %v11009_v40 = vpop.permute.xlu1 %1443 }
 0x22d   : > { %16591 = vst [vmem:[#allocation185_spill] sm:$0xff] %v11009_v40  ;;  %v11011_v60 = vpop.permute.xlu0 %1449 }
 0x22e   : > { %16592 = vst [vmem:[#allocation186_spill] sm:$0xff] %v11011_v60 }
 0x230   : > { %v11013_v36 = vpop.permute.xlu1 %1447 }
 0x231   : > { %16593 = vst [vmem:[#allocation187_spill] sm:$0xff] %v11013_v36  ;;  %v11015_v62 = vpop.permute.xlu0 %1453 }
 0x232   : > { %16594 = vst [vmem:[#allocation188_spill] sm:$0xff] %v11015_v62 }
 0x234   : > { %v11017_v12 = vpop.permute.xlu1 %1451 }
 0x235   : > { %16595 = vst [vmem:[#allocation189_spill] sm:$0xff] %v11017_v12  ;;  %v11019_v2 = vpop.permute.xlu0 %1457 }
 0x236   : > { %16596 = vst [vmem:[#allocation190_spill] sm:$0xff] %v11019_v2 }
 0x238   : > { %v11021_v37 = vpop.permute.xlu1 %1455 }
 0x239   : > { %16597 = vst [vmem:[#allocation191_spill] sm:$0xff] %v11021_v37  ;;  %v11023_v32 = vpop.permute.xlu0 %1461  ;;  %v336_v37 = vld [vmem:[#allocation2] sm:$0xff] }
 0x23a   : > { %16598 = vst [vmem:[#allocation192_spill] sm:$0xff] %v11023_v32 }
 0x23c   : > { %v11025_v42 = vpop.permute.xlu1 %1459 }
 0x23d   : > { %16599 = vst [vmem:[#allocation193_spill] sm:$0xff] %v11025_v42  ;;  %v11027_v26 = vpop.permute.xlu0 %1465  ;;  %v16615_v42 = vld [vmem:[#allocation38_spill] sm:$0xff] }
 0x23e   : > { %16600 = vst [vmem:[#allocation194_spill] sm:$0xff] %v11027_v26  ;;  %v16609_v26 = vld [vmem:[#allocation35_spill] sm:$0xff] }
 0x240   : > { %v11029_v8 = vpop.permute.xlu1 %1463 }
 0x241   : > { %16601 = vst [vmem:[#allocation195_spill] sm:$0xff] %v11029_v8  ;;  %v11031_v40 = vpop.permute.xlu0 %1469  ;;  %v1649_v8 = vsel %vm225_vm0, %v336_v37, %v16609_v26 }
 0x242   : > { %16602 = vst [vmem:[#allocation196_spill] sm:$0xff] %v11031_v40 }
 0x244   : > { %v11033_v60 = vpop.permute.xlu1 %1467 }
 0x245   : > { %16603 = vst [vmem:[#allocation197_spill] sm:$0xff] %v11033_v60  ;;  %v11035_v36 = vpop.permute.xlu0 %1473  ;;  %v16611_v60 = vld [vmem:[#allocation93_spill] sm:$0xff] }
 0x246   : > { %16604 = vst [vmem:[#allocation198_spill] sm:$0xff] %v11035_v36  ;;  %v1682_v36 = vsel %vm1681_vm4, %v1649_v8, %v16611_v60  ;;  %v16614_v60 = vld [vmem:[#allocation36_spill] sm:$0xff] }
 0x248   : > { %v11037_v62 = vpop.permute.xlu1 %1471 }
 0x249   : > { %16605 = vst [vmem:[#allocation199_spill] sm:$0xff] %v11037_v62  ;;  %v11039_v12 = vpop.permute.xlu0 %1477  ;;  %v337_v62 = vld [vmem:[#allocation2 + $0x8] sm:$0xff] }
 0x24a   : > { %16606 = vst [vmem:[#allocation200_spill] sm:$0xff] %v11039_v12  ;;  %v1715_v12 = vsel %vm1714_vm5, %v1682_v36, %v10498_v52  ;;  %v1650_v52 = vsel %vm225_vm0, %v337_v62, %v16614_v60  ;;  %v9585_v60 = vld [vmem:[#allocation2 + $0x30] sm:$0xff] }
 0x24c   : > { %v11041_v2 = vpop.permute.xlu1 %1475 }
 0x24d   : > { %16607 = vst [vmem:[#allocation201_spill] sm:$0xff] %v11041_v2  ;;  %v11043_v32 = vpop.permute.xlu0 %1481 }
 0x24e   : > { %16608 = vst [vmem:[#allocation202_spill] sm:$0xff] %v11043_v32  ;;  %v1748_v32 = vsel %vm1747_vm6, %v1715_v12, %v10630_v19  ;;  %v16616_v12 = vld [vmem:[#allocation98_spill] sm:$0xff] }
 0x24f   : > { %v1781_v26 = vsel %vm1780_vm7, %v1748_v32, %v10762_v58  ;;  %v1683_v32 = vsel %vm1681_vm4, %v1650_v52, %v16616_v12  ;;  %v16619_v52 = vld [vmem:[#allocation40_spill] sm:$0xff] }
 0x250   : > { %v11047_v40 = vpop.permute.xlu1 %1479  ;;  %v1814_v8 = vsel %vm1813_vm8, %v1781_v26, %v10872_v4  ;;  %v1716_v4 = vsel %vm1714_vm5, %v1683_v32, %v10512_v55  ;;  %v16618_v26 = vld [vmem:[#allocation42_spill] sm:$0xff]  ;;  %v16621_v12 = vld [vmem:[#allocation100_spill] sm:$0xff] }
 0x251   : > { %16610 = vst [vmem:[#allocation35_spill] sm:$0xff] %v11047_v40  ;;  %v11053_v2 = vpop.permute.xlu0 %1485  ;;  %v1847_v36 = vsel %vm1846_vm9, %v1814_v8, %v1426_v13  ;;  %v9583_v40 = vld [vmem:[#allocation2 + $0x18] sm:$0xff] }
 0x252   : > { %16612 = vst [vmem:[#allocation93_spill] sm:$0xff] %v11053_v2  ;;  %v1651_v19 = vsel %vm225_vm0, %v9583_v40, %v16615_v42  ;;  %v1749_v40 = vsel %vm1747_vm6, %v1716_v4, %v10644_v15  ;;  %v9584_v42 = vld [vmem:[#allocation2 + $0x20] sm:$0xff] }
 0x253   : > { %v1782_v55 = vsel %vm1780_vm7, %v1749_v40, %v10776_v22 }
 0x254   : > { %v11059_v37 = vpop.permute.xlu1 %1483 }
 0x255   : > { %16613 = vst [vmem:[#allocation203_spill] sm:$0xff] %v11059_v37  ;;  %v1554_v2 = vpop.permute.xlu0 %1553  ;;  %v16617_v37 = vld [vmem:[#allocation97_spill] sm:$0xff] }
 0x256   : > { %v1880_v58 = vsel %vm1879_vm10, %v1847_v36, %v1554_v2  ;;  %v1684_v35 = vsel %vm1681_vm4, %v1651_v19, %v16617_v37  ;;  %v1652_v2 = vsel %vm225_vm0, %v9584_v42, %v16618_v26  ;;  %v1653_v36 = vsel %vm225_vm0, %v9585_v60, %v16619_v52  ;;  %v16620_v19 = vld [vmem:[#allocation101_spill] sm:$0xff]  ;;  %v9586_v42 = vld [vmem:[#allocation2 + $0x38] sm:$0xff] }
 0x257   : > { %9319 = vmatprep.mubr.msk.f32.mxu0 %vm1924_vm11, %v1880_v58  ;;  %v1717_v13 = vsel %vm1714_vm5, %v1684_v35, %v10506_v54  ;;  %v1685_v54 = vsel %vm1681_vm4, %v1652_v2, %v16620_v19  ;;  %v1815_v35 = vsel %vm1813_vm8, %v1782_v55, %v10892_v38  ;;  %v16624_v55 = vld [vmem:[#allocation103_spill] sm:$0xff] }
 0x258   : > { %v11076_v62 = vpop.permute.xlu1 %1487  ;;  %v1750_v37 = vsel %vm1747_vm6, %v1717_v13, %v10638_v17  ;;  %v1686_v17 = vsel %vm1681_vm4, %v1653_v36, %v16621_v12  ;;  %v1718_v22 = vsel %vm1714_vm5, %v1685_v54, %v10522_v57  ;;  %v1848_v58 = vsel %vm1846_vm9, %v1815_v35, %v10988_v27  ;;  %v16622_v57 = vld [vmem:[#allocation45_spill] sm:$0xff] }
 0x259   : > { %v1558_v8 = vpop.permute.xlu0 %1557  ;;  %v1783_v15 = vsel %vm1780_vm7, %v1750_v37, %v10770_v29  ;;  %v1719_v13 = vsel %vm1714_vm5, %v1686_v17, %v10516_v50  ;;  %v1751_v29 = vsel %vm1747_vm6, %v1718_v22, %v10654_v6  ;;  %v1654_v26 = vsel %vm225_vm0, %v9586_v42, %v16622_v57  ;;  %v9587_v6 = vld [vmem:[#allocation2 + $0x48] sm:$0xff]  ;;  %v16623_v37 = vld [vmem:[#allocation43_spill] sm:$0xff] }
 0x25a   : > { %v1816_v32 = vsel %vm1813_vm8, %v1783_v15, %v10884_v45  ;;  %v1752_v45 = vsel %vm1747_vm6, %v1719_v13, %v10648_v23  ;;  %v1784_v27 = vsel %vm1780_vm7, %v1751_v29, %v10783_v9  ;;  %v1687_v60 = vsel %vm1681_vm4, %v1654_v26, %v16624_v55  ;;  %v16625_v9 = vld [vmem:[#allocation102_spill] sm:$0xff]  ;;  %v9588_v17 = vld [vmem:[#allocation2 + $0x50] sm:$0xff] }
 0x25b   : > { %v1849_v38 = vsel %vm1846_vm9, %v1816_v32, %v10983_v24  ;;  %v1655_v24 = vsel %vm225_vm0, %v9587_v6, %v16623_v37  ;;  %v1785_v52 = vsel %vm1780_vm7, %v1752_v45, %v10778_v43  ;;  %v1817_v23 = vsel %vm1813_vm8, %v1784_v27, %v10898_v39  ;;  %v9590_v45 = vld [vmem:[#allocation2 + $0x68] sm:$0xff] }
 0x25c   : > { %v1556_v4 = vpop.permute.xlu1 %1555  ;;  %v1882_v50 = vsel %vm1879_vm10, %v1849_v38, %v1558_v8  ;;  %v1688_v8 = vsel %vm1681_vm4, %v1655_v24, %v16625_v9  ;;  %v1720_v36 = vsel %vm1714_vm5, %v1687_v60, %v10532_v61  ;;  %v1818_v19 = vsel %vm1813_vm8, %v1785_v52, %v10894_v31  ;;  %v16626_v61 = vld [vmem:[#allocation48_spill] sm:$0xff] }
 0x25d   : > { %v1881_v40 = vsel %vm1879_vm10, %v1848_v58, %v1556_v4  ;;  %v1562_v2 = vpop.permute.xlu0 %1561  ;;  %v1850_v54 = vsel %vm1846_vm9, %v1817_v23, %v10994_v33  ;;  %v1721_v43 = vsel %vm1714_vm5, %v1688_v8, %v10524_v59  ;;  %v1753_v39 = vsel %vm1747_vm6, %v1720_v36, %v10664_v49  ;;  %v9589_v49 = vld [vmem:[#allocation2 + $0x60] sm:$0xff]  ;;  %v16627_v58 = vld [vmem:[#allocation46_spill] sm:$0xff] }
 0x25e   : > { %9320 = vmatmul.mubr.msk.f32.vlgmr.msra.gmra.mxu0 %vm1924_vm11, %v1881_v40  ;;  %v1851_v35 = vsel %vm1846_vm9, %v1818_v19, %v10990_v48  ;;  %v1656_v22 = vsel %vm225_vm0, %v9588_v17, %v16626_v61  ;;  %v1754_v31 = vsel %vm1747_vm6, %v1721_v43, %v10656_v14  ;;  %v1786_v33 = vsel %vm1780_vm7, %v1753_v39, %v10790_v10  ;;  %v16628_v10 = vld [vmem:[#allocation104_spill] sm:$0xff]  ;;  %v9592_v23 = vld [vmem:[#allocation2 + $0x80] sm:$0xff]  ;;  %v16635_v43 = vld [vmem:[#allocation82_spill] sm:$0xff] }
 0x25f   : > { %9322 = vmatprep.mubr.msk.f32.mxu0 %vm1924_vm11, %v1882_v50  ;;  %v1884_v59 = vsel %vm1879_vm10, %v1851_v35, %v1562_v2  ;;  %v1657_v48 = vsel %vm225_vm0, %v9589_v49, %v16627_v58  ;;  %v1689_v4 = vsel %vm1681_vm4, %v1656_v22, %v10408_v1  ;;  %v1787_v13 = vsel %vm1780_vm7, %v1754_v31, %v10785_v21  ;;  %v16630_v2 = vld [vmem:[#allocation49_spill] sm:$0xff]  ;;  %v16636_v35 = vld [vmem:[#allocation162_spill] sm:$0xff]  ;;  %v16638_v61 = vld [vmem:[#allocation127_spill] sm:$0xff] }
 0x260   : > { %v1560_v15 = vpop.permute.xlu1 %1559  ;;  %v1819_v14 = vsel %vm1813_vm8, %v1786_v33, %v10905_v30  ;;  %v1690_v29 = vsel %vm1681_vm4, %v1657_v48, %v16628_v10  ;;  %v1722_v38 = vsel %vm1714_vm5, %v1689_v4, %v10540_v63  ;;  %v1820_v40 = vsel %vm1813_vm8, %v1787_v13, %v10900_v34  ;;  %v16629_v63 = vld [vmem:[#allocation51_spill] sm:$0xff]  ;;  %v16633_v19 = vld [vmem:[#allocation53_spill] sm:$0xff]  ;;  %v16641_v58 = vld [vmem:[#allocation126_spill] sm:$0xff] }
 0x261   : > { %v1883_v12 = vsel %vm1879_vm10, %v1850_v54, %v1560_v15  ;;  %v1566_v32 = vpop.permute.xlu0 %1565  ;;  %v1852_v1 = vsel %vm1846_vm9, %v1819_v14, %v11000_v5  ;;  %v1723_v21 = vsel %vm1714_vm5, %v1690_v29, %v10534_v53  ;;  %v1755_v30 = vsel %vm1747_vm6, %v1722_v38, %v10672_v20  ;;  %v9591_v20 = vld [vmem:[#allocation2 + $0x78] sm:$0xff]  ;;  %v16634_v54 = vld [vmem:[#allocation106_spill] sm:$0xff]  ;;  %v16639_v31 = vld [vmem:[#allocation161_spill] sm:$0xff] }
 0x262   : > { %9323 = vmatmul.mubr.msk.f32.gmra.mxu0 %vm1924_vm11, %v1883_v12  ;;  %v1853_v57 = vsel %vm1846_vm9, %v1820_v40, %v10996_v56  ;;  %v1658_v27 = vsel %vm225_vm0, %v9590_v45, %v16629_v63  ;;  %v1756_v34 = vsel %vm1747_vm6, %v1723_v21, %v10666_v28  ;;  %v1788_v5 = vsel %vm1780_vm7, %v1755_v30, %v10796_v41  ;;  %v16637_v12 = vld [vmem:[#allocation105_spill] sm:$0xff]  ;;  %v16642_v4 = vld [vmem:[#allocation39_spill] sm:$0xff]  ;;  %v16643_v14 = vld [vmem:[#allocation184_spill] sm:$0xff] }
 0x263   : > { %9325 = vmatprep.mubr.msk.f32.mxu0 %vm1924_vm11, %v1884_v59  ;;  %v1886_v53 = vsel %vm1879_vm10, %v1853_v57, %v1566_v32  ;;  %v1659_v56 = vsel %vm225_vm0, %v9591_v20, %v16630_v2  ;;  %v1691_v6 = vsel %vm1681_vm4, %v1658_v27, %v10416_v25  ;;  %v1789_v37 = vsel %vm1780_vm7, %v1756_v34, %v10792_v7  ;;  %v16640_v59 = vld [vmem:[#allocation185_spill] sm:$0xff]  ;;  %v9594_v38 = vld [vmem:[#allocation2 + $0x98] sm:$0xff]  ;;  %v16644_v40 = vld [vmem:[#allocation59_spill] sm:$0xff] }
 0x264   : > { %v1564_v42 = vpop.permute.xlu1 %1563  ;;  %v1821_v28 = vsel %vm1813_vm8, %v1788_v5, %v10911_v44  ;;  %v1692_v41 = vsel %vm1681_vm4, %v1659_v56, %v10410_v11  ;;  %v1724_v24 = vsel %vm1714_vm5, %v1691_v6, %v10548_v0  ;;  %v1822_v55 = vsel %vm1813_vm8, %v1789_v37, %v10907_v47  ;;  %v16631_v0 = vld [vmem:[#allocation55_spill] sm:$0xff]  ;;  %v16646_v30 = vld [vmem:[#allocation88_spill] sm:$0xff]  ;;  %v9595_v63 = vld [vmem:[#allocation2 + $0xa8] sm:$0xff] }
 0x265   : > { %v1885_v26 = vsel %vm1879_vm10, %v1852_v1, %v1564_v42  ;;  %v1570_v50 = vpop.permute.xlu0 %1569  ;;  %v1854_v25 = vsel %vm1846_vm9, %v1821_v28, %v11005_v3  ;;  %v1725_v7 = vsel %vm1714_vm5, %v1692_v41, %v10542_v51  ;;  %v1757_v44 = vsel %vm1747_vm6, %v1724_v24, %v10680_v18  ;;  %v16632_v3 = vld [vmem:[#allocation84_spill] sm:$0xff]  ;;  %v9593_v18 = vld [vmem:[#allocation2 + $0x90] sm:$0xff]  ;;  %v16645_v42 = vld [vmem:[#allocation37_spill] sm:$0xff] }
 0x266   : > { %9326 = vmatmul.mubr.msk.f32.gmra.mxu0 %vm1924_vm11, %v1885_v26  ;;  %v1855_v52 = vsel %vm1846_vm9, %v1822_v55, %v11002_v16  ;;  %v1660_v9 = vsel %vm225_vm0, %v9592_v23, %v16631_v0  ;;  %v1758_v47 = vsel %vm1747_vm6, %v1725_v7, %v10674_v46  ;;  %v1790_v8 = vsel %vm1780_vm7, %v1757_v44, %v16632_v3  ;;  %v16647_v27 = vld [vmem:[#allocation57_spill] sm:$0xff]  ;;  %v16648_v5 = vld [vmem:[#allocation108_spill] sm:$0xff]  ;;  %v16651_v6 = vld [vmem:[#allocation107_spill] sm:$0xff] }
 0x267   : > { %9328 = vmatprep.mubr.msk.f32.mxu0 %vm1924_vm11, %v1886_v53  ;;  %v1888_v51 = vsel %vm1879_vm10, %v1855_v52, %v1570_v50  ;;  %v1661_v16 = vsel %vm225_vm0, %v9593_v18, %v16633_v19  ;;  %v1693_v15 = vsel %vm1681_vm4, %v1660_v9, %v16634_v54  ;;  %v1791_v39 = vsel %vm1780_vm7, %v1758_v47, %v16635_v43  ;;  %v16649_v50 = vld [vmem:[#allocation86_spill] sm:$0xff]  ;;  %v16650_v2 = vld [vmem:[#allocation164_spill] sm:$0xff]  ;;  %v16652_v28 = vld [vmem:[#allocation129_spill] sm:$0xff] }
 0x268   : > { %v1568_v60 = vpop.permute.xlu1 %1567  ;;  %v1823_v46 = vsel %vm1813_vm8, %v1790_v8, %v16636_v35  ;;  %v1694_v17 = vsel %vm1681_vm4, %v1661_v16, %v16637_v12  ;;  %v1726_v22 = vsel %vm1714_vm5, %v1693_v15, %v16638_v61  ;;  %v1824_v33 = vsel %vm1813_vm8, %v1791_v39, %v16639_v31  ;;  %v16653_v24 = vld [vmem:[#allocation163_spill] sm:$0xff]  ;;  %v16655_v44 = vld [vmem:[#allocation128_spill] sm:$0xff]  ;;  %v16657_v0 = vld [vmem:[#allocation186_spill] sm:$0xff] }
 0x269   : > { %v1887_v11 = vsel %vm1879_vm10, %v1854_v25, %v1568_v60  ;;  %v1574_v36 = vpop.permute.xlu0 %1573  ;;  %v1856_v32 = vsel %vm1846_vm9, %v1823_v46, %v16640_v59  ;;  %v1727_v48 = vsel %vm1714_vm5, %v1694_v17, %v16641_v58  ;;  %v1759_v13 = vsel %vm1747_vm6, %v1726_v22, %v16642_v4  ;;  %v16654_v25 = vld [vmem:[#allocation187_spill] sm:$0xff]  ;;  %v16660_v19 = vld [vmem:[#allocation92_spill] sm:$0xff]  ;;  %v9597_v43 = vld [vmem:[#allocation2 + $0xc0] sm:$0xff] }
 0x26a   : > { %9329 = vmatmul.mubr.msk.f32.gmra.mxu0 %vm1924_vm11, %v1887_v11  ;;  %v1857_v10 = vsel %vm1846_vm9, %v1824_v33, %v16643_v14  ;;  %v1662_v1 = vsel %vm225_vm0, %v9594_v38, %v16644_v40  ;;  %v1760_v21 = vsel %vm1747_vm6, %v1727_v48, %v16645_v42  ;;  %v1792_v57 = vsel %vm1780_vm7, %v1759_v13, %v16646_v30  ;;  %v16656_v11 = vld [vmem:[#allocation44_spill] sm:$0xff]  ;;  %v9596_v3 = vld [vmem:[#allocation2 + $0xb0] sm:$0xff]  ;;  %v16661_v39 = vld [vmem:[#allocation61_spill] sm:$0xff] }
 0x26b   : > { %9331 = vmatprep.mubr.msk.f32.mxu0 %vm1924_vm11, %v1888_v51  ;;  %v1890_v26 = vsel %vm1879_vm10, %v1857_v10, %v1574_v36  ;;  %v1663_v34 = vsel %vm225_vm0, %v9595_v63, %v16647_v27  ;;  %v1695_v53 = vsel %vm1681_vm4, %v1662_v1, %v16648_v5  ;;  %v1793_v20 = vsel %vm1780_vm7, %v1760_v21, %v16649_v50  ;;  %v16658_v8 = vld [vmem:[#allocation63_spill] sm:$0xff]  ;;  %v16659_v36 = vld [vmem:[#allocation41_spill] sm:$0xff]  ;;  %v16662_v46 = vld [vmem:[#allocation110_spill] sm:$0xff] }
 0x26c   : > { %v1572_v49 = vpop.permute.xlu1 %1571  ;;  %v1825_v56 = vsel %vm1813_vm8, %v1792_v57, %v16650_v2  ;;  %v1696_v37 = vsel %vm1681_vm4, %v1663_v34, %v16651_v6  ;;  %v1728_v41 = vsel %vm1714_vm5, %v1695_v53, %v16652_v28  ;;  %v1826_v55 = vsel %vm1813_vm8, %v1793_v20, %v16653_v24  ;;  %v16663_v17 = vld [vmem:[#allocation90_spill] sm:$0xff]  ;;  %v16665_v33 = vld [vmem:[#allocation109_spill] sm:$0xff]  ;;  %v16671_v1 = vld [vmem:[#allocation188_spill] sm:$0xff] }
 0x26d   : > { %v1889_v29 = vsel %vm1879_vm10, %v1856_v32, %v1572_v49  ;;  %v1578_v45 = vpop.permute.xlu0 %1577  ;;  %v1858_v60 = vsel %vm1846_vm9, %v1825_v56, %v16654_v25  ;;  %v1729_v52 = vsel %vm1714_vm5, %v1696_v37, %v16655_v44  ;;  %v1761_v23 = vsel %vm1747_vm6, %v1728_v41, %v16656_v11  ;;  %v16664_v22 = vld [vmem:[#allocation166_spill] sm:$0xff]  ;;  %v16666_v32 = vld [vmem:[#allocation131_spill] sm:$0xff]  ;;  %v16667_v58 = vld [vmem:[#allocation165_spill] sm:$0xff] }
 0x26e   : > { %9332 = vmatmul.mubr.msk.f32.gmra.mxu0 %vm1924_vm11, %v1889_v29  ;;  %v1859_v9 = vsel %vm1846_vm9, %v1826_v55, %v16657_v0  ;;  %v1664_v51 = vsel %vm225_vm0, %v9596_v3, %v16658_v8  ;;  %v1762_v18 = vsel %vm1747_vm6, %v1729_v52, %v16659_v36  ;;  %v1794_v16 = vsel %vm1780_vm7, %v1761_v23, %v16660_v19  ;;  %v16668_v4 = vld [vmem:[#allocation189_spill] sm:$0xff]  ;;  %v16669_v10 = vld [vmem:[#allocation130_spill] sm:$0xff]  ;;  %v16672_v57 = vld [vmem:[#allocation67_spill] sm:$0xff] }
 0x26f   : > { %9334 = vmatprep.mubr.msk.f32.mxu0 %vm1924_vm11, %v1890_v26  ;;  %v1892_v54 = vsel %vm1879_vm10, %v1859_v9, %v1578_v45  ;;  %v1665_v35 = vsel %vm225_vm0, %v9597_v43, %v16661_v39  ;;  %v1697_v12 = vsel %vm1681_vm4, %v1664_v51, %v16662_v46  ;;  %v1795_v61 = vsel %vm1780_vm7, %v1762_v18, %v16663_v17  ;;  %v16670_v38 = vld [vmem:[#allocation50_spill] sm:$0xff]  ;;  %v16673_v45 = vld [vmem:[#allocation47_spill] sm:$0xff]  ;;  %v16674_v27 = vld [vmem:[#allocation96_spill] sm:$0xff] }
 0x270   : > { %v1576_v7 = vpop.permute.xlu1 %1575  ;;  %v1827_v31 = vsel %vm1813_vm8, %v1794_v16, %v16664_v22  ;;  %v1698_v59 = vsel %vm1681_vm4, %v1665_v35, %v16665_v33  ;;  %v1730_v49 = vsel %vm1714_vm5, %v1697_v12, %v16666_v32  ;;  %v1828_v48 = vsel %vm1813_vm8, %v1795_v61, %v16667_v58  ;;  %v9598_v30 = vld [vmem:[#allocation2 + $0xc8] sm:$0xff]  ;;  %v9599_v50 = vld [vmem:[#allocation2 + $0xd8] sm:$0xff]  ;;  %v16675_v20 = vld [vmem:[#allocation65_spill] sm:$0xff] }
 0x271   : > { %v1891_v47 = vsel %vm1879_vm10, %v1858_v60, %v1576_v7  ;;  %v1582_v15 = vpop.permute.xlu0 %1581  ;;  %v1860_v13 = vsel %vm1846_vm9, %v1827_v31, %v16668_v4  ;;  %v1731_v29 = vsel %vm1714_vm5, %v1698_v59, %v16669_v10  ;;  %v1763_v40 = vsel %vm1747_vm6, %v1730_v49, %v16670_v38  ;;  %v16676_v56 = vld [vmem:[#allocation112_spill] sm:$0xff]  ;;  %v16677_v37 = vld [vmem:[#allocation94_spill] sm:$0xff]  ;;  %v16679_v55 = vld [vmem:[#allocation111_spill] sm:$0xff] }
 0x272   : > { %9335 = vmatmul.mubr.msk.f32.gmra.mxu0 %vm1924_vm11, %v1891_v47  ;;  %v1861_v42 = vsel %vm1846_vm9, %v1828_v48, %v16671_v1  ;;  %v1666_v26 = vsel %vm225_vm0, %v9598_v30, %v16672_v57  ;;  %v1764_v63 = vsel %vm1747_vm6, %v1731_v29, %v16673_v45  ;;  %v1796_v34 = vsel %vm1780_vm7, %v1763_v40, %v16674_v27  ;;  %v16678_v41 = vld [vmem:[#allocation168_spill] sm:$0xff]  ;;  %v16680_v60 = vld [vmem:[#allocation133_spill] sm:$0xff]  ;;  %v16681_v44 = vld [vmem:[#allocation167_spill] sm:$0xff] }
 0x273   : > { %9337 = vmatprep.mubr.msk.f32.mxu0 %vm1924_vm11, %v1892_v54  ;;  %v1894_v5 = vsel %vm1879_vm10, %v1861_v42, %v1582_v15  ;;  %v1667_v2 = vsel %vm225_vm0, %v9599_v50, %v16675_v20  ;;  %v1699_v6 = vsel %vm1681_vm4, %v1666_v26, %v16676_v56  ;;  %v1797_v28 = vsel %vm1780_vm7, %v1764_v63, %v16677_v37  ;;  %v16682_v11 = vld [vmem:[#allocation191_spill] sm:$0xff]  ;;  %v16683_v9 = vld [vmem:[#allocation132_spill] sm:$0xff]  ;;  %v16684_v3 = vld [vmem:[#allocation54_spill] sm:$0xff] }
 0x274   : > { %v1580_v14 = vpop.permute.xlu1 %1579  ;;  %v1829_v24 = vsel %vm1813_vm8, %v1796_v34, %v16678_v41  ;;  %v1700_v25 = vsel %vm1681_vm4, %v1667_v2, %v16679_v55  ;;  %v1732_v7 = vsel %vm1714_vm5, %v1699_v6, %v16680_v60  ;;  %v1830_v52 = vsel %vm1813_vm8, %v1797_v28, %v16681_v44  ;;  %v16685_v51 = vld [vmem:[#allocation190_spill] sm:$0xff]  ;;  %v9600_v19 = vld [vmem:[#allocation2 + $0xe0] sm:$0xff]  ;;  %v16686_v16 = vld [vmem:[#allocation71_spill] sm:$0xff] }
 0x275   : > { %v1893_v21 = vsel %vm1879_vm10, %v1860_v13, %v1580_v14  ;;  %v1586_v53 = vpop.permute.xlu0 %1585  ;;  %v1862_v23 = vsel %vm1846_vm9, %v1829_v24, %v16682_v11  ;;  %v1733_v47 = vsel %vm1714_vm5, %v1700_v25, %v16683_v9  ;;  %v1765_v8 = vsel %vm1747_vm6, %v1732_v7, %v16684_v3  ;;  %v16687_v15 = vld [vmem:[#allocation52_spill] sm:$0xff]  ;;  %v16688_v39 = vld [vmem:[#allocation147_spill] sm:$0xff]  ;;  %v16689_v61 = vld [vmem:[#allocation69_spill] sm:$0xff] }
 0x276   : > { %9338 = vmatmul.mubr.msk.f32.gmra.mxu0 %vm1924_vm11, %v1893_v21  ;;  %v1863_v36 = vsel %vm1846_vm9, %v1830_v52, %v16685_v51  ;;  %v1668_v54 = vsel %vm225_vm0, %v9600_v19, %v16686_v16  ;;  %v1766_v43 = vsel %vm1747_vm6, %v1733_v47, %v16687_v15  ;;  %v1798_v35 = vsel %vm1780_vm7, %v1765_v8, %v16688_v39  ;;  %v9601_v17 = vld [vmem:[#allocation2 + $0xf0] sm:$0xff]  ;;  %v16690_v31 = vld [vmem:[#allocation114_spill] sm:$0xff]  ;;  %v16693_v48 = vld [vmem:[#allocation113_spill] sm:$0xff] }
 0x277   : > { %9340 = vmatprep.mubr.msk.f32.mxu0 %vm1924_vm11, %v1894_v5  ;;  %v1896_v46 = vsel %vm1879_vm10, %v1863_v36, %v1586_v53  ;;  %v1669_v22 = vsel %vm225_vm0, %v9601_v17, %v16689_v61  ;;  %v1701_v33 = vsel %vm1681_vm4, %v1668_v54, %v16690_v31  ;;  %v16691_v59 = vld [vmem:[#allocation99_spill] sm:$0xff]  ;;  %v16692_v49 = vld [vmem:[#allocation170_spill] sm:$0xff]  ;;  %v16695_v10 = vld [vmem:[#allocation169_spill] sm:$0xff] }
 0x278   : > { %v1584_v0 = vpop.permute.xlu1 %1583  ;;  %v1799_v32 = vsel %vm1780_vm7, %v1766_v43, %v16691_v59  ;;  %v1831_v58 = vsel %vm1813_vm8, %v1798_v35, %v16692_v49  ;;  %v1702_v4 = vsel %vm1681_vm4, %v1669_v22, %v16693_v48  ;;  %v16694_v13 = vld [vmem:[#allocation135_spill] sm:$0xff]  ;;  %v16696_v38 = vld [vmem:[#allocation193_spill] sm:$0xff]  ;;  %v16697_v42 = vld [vmem:[#allocation134_spill] sm:$0xff] }
 0x279   : > { %v1895_v18 = vsel %vm1879_vm10, %v1862_v23, %v1584_v0  ;;  %v1590_v12 = vpop.permute.xlu0 %1589  ;;  %v1734_v14 = vsel %vm1714_vm5, %v1701_v33, %v16694_v13  ;;  %v1832_v29 = vsel %vm1813_vm8, %v1799_v32, %v16695_v10  ;;  %v1864_v40 = vsel %vm1846_vm9, %v1831_v58, %v16696_v38  ;;  %v16698_v30 = vld [vmem:[#allocation58_spill] sm:$0xff]  ;;  %v16699_v26 = vld [vmem:[#allocation192_spill] sm:$0xff]  ;;  %v16700_v34 = vld [vmem:[#allocation75_spill] sm:$0xff] }
 0x27a   : > { %9341 = vmatmul.mubr.msk.f32.gmra.mxu0 %vm1924_vm11, %v1895_v18  ;;  %v1735_v21 = vsel %vm1714_vm5, %v1702_v4, %v16697_v42  ;;  %v1767_v57 = vsel %vm1747_vm6, %v1734_v14, %v16698_v30  ;;  %v1865_v45 = vsel %vm1846_vm9, %v1832_v29, %v16699_v26  ;;  %v9602_v27 = vld [vmem:[#allocation2 + $0xf8] sm:$0xff]  ;;  %v16702_v20 = vld [vmem:[#allocation149_spill] sm:$0xff]  ;;  %v9603_v37 = vld [vmem:[#allocation2 + $0x108] sm:$0xff] }
 0x27b   : > { %9343 = vmatprep.mubr.msk.f32.mxu0 %vm1924_vm11, %v1896_v46  ;;  %v1670_v5 = vsel %vm225_vm0, %v9602_v27, %v16700_v34  ;;  %v16701_v53 = vld [vmem:[#allocation56_spill] sm:$0xff]  ;;  %v1800_v2 = vsel %vm1780_vm7, %v1767_v57, %v16702_v20  ;;  %v1898_v56 = vsel %vm1879_vm10, %v1865_v45, %v1590_v12  ;;  %v16703_v28 = vld [vmem:[#allocation73_spill] sm:$0xff]  ;;  %v16707_v52 = vld [vmem:[#allocation115_spill] sm:$0xff] }
 0x27c   : > { %v1588_v1 = vpop.permute.xlu1 %1587  ;;  %v1768_v50 = vsel %vm1747_vm6, %v1735_v21, %v16701_v53  ;;  %v1671_v41 = vsel %vm225_vm0, %v9603_v37, %v16703_v28  ;;  %v16704_v24 = vld [vmem:[#allocation116_spill] sm:$0xff]  ;;  %v16708_v23 = vld [vmem:[#allocation137_spill] sm:$0xff]  ;;  %v16709_v9 = vld [vmem:[#allocation171_spill] sm:$0xff] }
 0x27d   : > { %v1897_v63 = vsel %vm1879_vm10, %v1864_v40, %v1588_v1  ;;  %v1594_v6 = vpop.permute.xlu0 %1593  ;;  %v1703_v55 = vsel %vm1681_vm4, %v1670_v5, %v16704_v24  ;;  %v16705_v25 = vld [vmem:[#allocation148_spill] sm:$0xff]  ;;  %v1704_v11 = vsel %vm1681_vm4, %v1671_v41, %v16707_v52  ;;  %v16710_v3 = vld [vmem:[#allocation195_spill] sm:$0xff]  ;;  %v16712_v19 = vld [vmem:[#allocation62_spill] sm:$0xff] }
 0x27e   : > { %9344 = vmatmul.mubr.msk.f32.gmra.mxu0 %vm1924_vm11, %v1897_v63  ;;  %v1801_v60 = vsel %vm1780_vm7, %v1768_v50, %v16705_v25  ;;  %v16706_v7 = vld [vmem:[#allocation172_spill] sm:$0xff]  ;;  %v1736_v0 = vsel %vm1714_vm5, %v1703_v55, %v16708_v23  ;;  %v16713_v54 = vld [vmem:[#allocation194_spill] sm:$0xff]  ;;  %v9604_v39 = vld [vmem:[#allocation2 + $0x110] sm:$0xff] }
 0x27f   : > { %v1833_v44 = vsel %vm1813_vm8, %v1800_v2, %v16706_v7  ;;  %9346 = vmatprep.mubr.msk.f32.mxu0 %vm1924_vm11, %v1898_v56  ;;  %v1834_v47 = vsel %vm1813_vm8, %v1801_v60, %v16709_v9  ;;  %v16711_v36 = vld [vmem:[#allocation136_spill] sm:$0xff]  ;;  %v1769_v16 = vsel %vm1747_vm6, %v1736_v0, %v16712_v19  ;;  %v16714_v35 = vld [vmem:[#allocation79_spill] sm:$0xff]  ;;  %v9605_v59 = vld [vmem:[#allocation2 + $0x120] sm:$0xff] }
 0x280   : > { %v1866_v8 = vsel %vm1846_vm9, %v1833_v44, %v16710_v3  ;;  %v1592_v51 = vpop.permute.xlu1 %1591  ;;  %v1737_v18 = vsel %vm1714_vm5, %v1704_v11, %v16711_v36  ;;  %v1867_v15 = vsel %vm1846_vm9, %v1834_v47, %v16713_v54  ;;  %v1672_v46 = vsel %vm225_vm0, %v9604_v39, %v16714_v35  ;;  %v16715_v12 = vld [vmem:[#allocation60_spill] sm:$0xff]  ;;  %v16716_v61 = vld [vmem:[#allocation151_spill] sm:$0xff]  ;;  %v16717_v32 = vld [vmem:[#allocation77_spill] sm:$0xff] }
 0x281   : > { %v1899_v43 = vsel %vm1879_vm10, %v1866_v8, %v1592_v51  ;;  %v1770_v17 = vsel %vm1747_vm6, %v1737_v18, %v16715_v12  ;;  %v1802_v22 = vsel %vm1780_vm7, %v1769_v16, %v16716_v61  ;;  %v1900_v31 = vsel %vm1879_vm10, %v1867_v15, %v1594_v6  ;;  %v1598_v33 = vpop.permute.xlu0 %1597  ;;  %v16718_v58 = vld [vmem:[#allocation118_spill] sm:$0xff]  ;;  %v16721_v29 = vld [vmem:[#allocation117_spill] sm:$0xff]  ;;  %v16722_v40 = vld [vmem:[#allocation139_spill] sm:$0xff] }
 0x282   : > { %9347 = vmatmul.mubr.msk.f32.gmra.mxu0 %vm1924_vm11, %v1899_v43  ;;  %v1673_v49 = vsel %vm225_vm0, %v9605_v59, %v16717_v32  ;;  %v1705_v48 = vsel %vm1681_vm4, %v1672_v46, %v16718_v58  ;;  %v16719_v4 = vld [vmem:[#allocation150_spill] sm:$0xff]  ;;  %v16723_v42 = vld [vmem:[#allocation173_spill] sm:$0xff]  ;;  %v16727_v5 = vld [vmem:[#allocation196_spill] sm:$0xff] }
 0x283   : > { %v1803_v13 = vsel %vm1780_vm7, %v1770_v17, %v16719_v4  ;;  %v16720_v14 = vld [vmem:[#allocation174_spill] sm:$0xff]  ;;  %9349 = vmatprep.mubr.msk.f32.mxu0 %vm1924_vm11, %v1900_v31  ;;  %v1706_v38 = vsel %vm1681_vm4, %v1673_v49, %v16721_v29  ;;  %v1738_v1 = vsel %vm1714_vm5, %v1705_v48, %v16722_v40  ;;  %v16724_v30 = vld [vmem:[#allocation197_spill] sm:$0xff]  ;;  %v16728_v2 = vld [vmem:[#allocation83_spill] sm:$0xff] }
 0x284   : > { %v1835_v10 = vsel %vm1813_vm8, %v1802_v22, %v16720_v14  ;;  %v1836_v21 = vsel %vm1813_vm8, %v1803_v13, %v16723_v42  ;;  %v1596_v26 = vpop.permute.xlu1 %1595  ;;  %v16725_v45 = vld [vmem:[#allocation138_spill] sm:$0xff]  ;;  %v16729_v6 = vld [vmem:[#allocation64_spill] sm:$0xff]  ;;  %v16730_v28 = vld [vmem:[#allocation153_spill] sm:$0xff] }
 0x285   : > { %v1868_v57 = vsel %vm1846_vm9, %v1835_v10, %v16724_v30  ;;  %v1739_v63 = vsel %vm1714_vm5, %v1706_v38, %v16725_v45  ;;  %v16726_v27 = vld [vmem:[#allocation66_spill] sm:$0xff]  ;;  %v1869_v53 = vsel %vm1846_vm9, %v1836_v21, %v16727_v5  ;;  %v1602_v55 = vpop.permute.xlu0 %1601  ;;  %v9607_v25 = vld [vmem:[#allocation2 + $0x138] sm:$0xff]  ;;  %v16731_v60 = vld [vmem:[#allocation81_spill] sm:$0xff] }
 0x286   : > { %v1771_v34 = vsel %vm1747_vm6, %v1738_v1, %v16726_v27  ;;  %v1901_v50 = vsel %vm1879_vm10, %v1868_v57, %v1596_v26  ;;  %v9606_v20 = vld [vmem:[#allocation2 + $0x128] sm:$0xff]  ;;  %v1772_v37 = vsel %vm1747_vm6, %v1739_v63, %v16729_v6  ;;  %v1902_v24 = vsel %vm1879_vm10, %v1869_v53, %v1598_v33  ;;  %v16732_v44 = vld [vmem:[#allocation120_spill] sm:$0xff]  ;;  %v16735_v47 = vld [vmem:[#allocation119_spill] sm:$0xff] }
 0x287   : > { %v1674_v56 = vsel %vm225_vm0, %v9606_v20, %v16728_v2  ;;  %v1804_v41 = vsel %vm1780_vm7, %v1771_v34, %v16730_v28  ;;  %9350 = vmatmul.mubr.msk.f32.gmra.mxu0 %vm1924_vm11, %v1901_v50  ;;  %v1675_v7 = vsel %vm225_vm0, %v9607_v25, %v16731_v60  ;;  %v16733_v11 = vld [vmem:[#allocation152_spill] sm:$0xff]  ;;  %v16736_v8 = vld [vmem:[#allocation141_spill] sm:$0xff]  ;;  %v16737_v36 = vld [vmem:[#allocation175_spill] sm:$0xff] }
 0x288   : > { %v1707_v52 = vsel %vm1681_vm4, %v1674_v56, %v16732_v44  ;;  %v1805_v23 = vsel %vm1780_vm7, %v1772_v37, %v16733_v11  ;;  %v16734_v0 = vld [vmem:[#allocation176_spill] sm:$0xff]  ;;  %9352 = vmatprep.mubr.msk.f32.mxu0 %vm1924_vm11, %v1902_v24  ;;  %v1708_v3 = vsel %vm1681_vm4, %v1675_v7, %v16735_v47  ;;  %v16738_v19 = vld [vmem:[#allocation199_spill] sm:$0xff]  ;;  %v1600_v54 = vpop.permute.xlu1 %1599  ;;  %v16740_v39 = vld [vmem:[#allocation70_spill] sm:$0xff] }
 0x289   : > { %v1837_v9 = vsel %vm1813_vm8, %v1804_v41, %v16734_v0  ;;  %v1740_v51 = vsel %vm1714_vm5, %v1707_v52, %v16736_v8  ;;  %v1838_v18 = vsel %vm1813_vm8, %v1805_v23, %v16737_v36  ;;  %v16739_v15 = vld [vmem:[#allocation140_spill] sm:$0xff]  ;;  %v16741_v46 = vld [vmem:[#allocation198_spill] sm:$0xff]  ;;  %v9608_v61 = vld [vmem:[#allocation2 + $0x140] sm:$0xff]  ;;  %v1606_v48 = vpop.permute.xlu0 %1605 }
 0x28a   : > { %v1870_v16 = vsel %vm1846_vm9, %v1837_v9, %v16738_v19  ;;  %v1741_v43 = vsel %vm1714_vm5, %v1708_v3, %v16739_v15  ;;  %v1773_v35 = vsel %vm1747_vm6, %v1740_v51, %v16740_v39  ;;  %v1871_v12 = vsel %vm1846_vm9, %v1838_v18, %v16741_v46  ;;  %v16742_v22 = vld [vmem:[#allocation87_spill] sm:$0xff]  ;;  %v16743_v33 = vld [vmem:[#allocation68_spill] sm:$0xff]  ;;  %v16745_v13 = vld [vmem:[#allocation85_spill] sm:$0xff] }
 0x28b   : > { %v1903_v17 = vsel %vm1879_vm10, %v1870_v16, %v1600_v54  ;;  %v1676_v31 = vsel %vm225_vm0, %v9608_v61, %v16742_v22  ;;  %v1774_v59 = vsel %vm1747_vm6, %v1741_v43, %v16743_v33  ;;  %v16744_v32 = vld [vmem:[#allocation155_spill] sm:$0xff]  ;;  %v1904_v58 = vsel %vm1879_vm10, %v1871_v12, %v1602_v55  ;;  %v16746_v10 = vld [vmem:[#allocation122_spill] sm:$0xff]  ;;  %v16749_v21 = vld [vmem:[#allocation121_spill] sm:$0xff] }
 0x28c   : > { %v1806_v49 = vsel %vm1780_vm7, %v1773_v35, %v16744_v32  ;;  %9353 = vmatmul.mubr.msk.f32.gmra.mxu0 %vm1924_vm11, %v1903_v17  ;;  %v9609_v4 = vld [vmem:[#allocation2 + $0x150] sm:$0xff]  ;;  %v1709_v29 = vsel %vm1681_vm4, %v1676_v31, %v16746_v10  ;;  %v16747_v38 = vld [vmem:[#allocation154_spill] sm:$0xff]  ;;  %v16751_v45 = vld [vmem:[#allocation177_spill] sm:$0xff]  ;;  %v1604_v5 = vpop.permute.xlu1 %1603 }
 0x28d   : > { %v1677_v14 = vsel %vm225_vm0, %v9609_v4, %v16745_v13  ;;  %v1807_v40 = vsel %vm1780_vm7, %v1774_v59, %v16747_v38  ;;  %v16748_v1 = vld [vmem:[#allocation178_spill] sm:$0xff]  ;;  %9355 = vmatprep.mubr.msk.f32.mxu0 %vm1924_vm11, %v1904_v58  ;;  %v16750_v57 = vld [vmem:[#allocation143_spill] sm:$0xff]  ;;  %v16752_v27 = vld [vmem:[#allocation201_spill] sm:$0xff]  ;;  %v1610_v52 = vpop.permute.xlu0 %1609 }
 0x28e   : > { %v1839_v42 = vsel %vm1813_vm8, %v1806_v49, %v16748_v1  ;;  %v1710_v30 = vsel %vm1681_vm4, %v1677_v14, %v16749_v21  ;;  %v1742_v26 = vsel %vm1714_vm5, %v1709_v29, %v16750_v57  ;;  %v1840_v63 = vsel %vm1813_vm8, %v1807_v40, %v16751_v45  ;;  %v16753_v53 = vld [vmem:[#allocation142_spill] sm:$0xff]  ;;  %v16755_v56 = vld [vmem:[#allocation200_spill] sm:$0xff]  ;;  %v16756_v41 = vld [vmem:[#allocation91_spill] sm:$0xff] }
 0x28f   : > { %v1872_v34 = vsel %vm1846_vm9, %v1839_v42, %v16752_v27  ;;  %v1743_v50 = vsel %vm1714_vm5, %v1710_v30, %v16753_v53  ;;  %v16754_v20 = vld [vmem:[#allocation74_spill] sm:$0xff]  ;;  %v1873_v6 = vsel %vm1846_vm9, %v1840_v63, %v16755_v56  ;;  %v9610_v28 = vld [vmem:[#allocation2 + $0x158] sm:$0xff]  ;;  %v16758_v60 = vld [vmem:[#allocation157_spill] sm:$0xff] }
 0x290   : > { %v1775_v2 = vsel %vm1747_vm6, %v1742_v26, %v16754_v20  ;;  %v1905_v37 = vsel %vm1879_vm10, %v1872_v34, %v1604_v5  ;;  %v1678_v24 = vsel %vm225_vm0, %v9610_v28, %v16756_v41  ;;  %v16757_v55 = vld [vmem:[#allocation72_spill] sm:$0xff]  ;;  %v1906_v44 = vsel %vm1879_vm10, %v1873_v6, %v1606_v48  ;;  %v9611_v11 = vld [vmem:[#allocation2 + $0x168] sm:$0xff]  ;;  %v16759_v23 = vld [vmem:[#allocation89_spill] sm:$0xff]  ;;  %v1608_v46 = vpop.permute.xlu1 %1607 }
 0x291   : > { %v1776_v25 = vsel %vm1747_vm6, %v1743_v50, %v16757_v55  ;;  %v1808_v7 = vsel %vm1780_vm7, %v1775_v2, %v16758_v60  ;;  %9356 = vmatmul.mubr.msk.f32.gmra.mxu0 %vm1924_vm11, %v1905_v37  ;;  %v1679_v0 = vsel %vm225_vm0, %v9611_v11, %v16759_v23  ;;  %v16760_v9 = vld [vmem:[#allocation124_spill] sm:$0xff]  ;;  %v16763_v18 = vld [vmem:[#allocation123_spill] sm:$0xff]  ;;  %v16764_v16 = vld [vmem:[#allocation145_spill] sm:$0xff]  ;;  %v1614_v30 = vpop.permute.xlu0 %1613 }
 0x292   : > { %v1711_v47 = vsel %vm1681_vm4, %v1678_v24, %v16760_v9  ;;  %v16761_v3 = vld [vmem:[#allocation156_spill] sm:$0xff]  ;;  %9358 = vmatprep.mubr.msk.f32.mxu0 %vm1924_vm11, %v1906_v44  ;;  %v1712_v19 = vsel %vm1681_vm4, %v1679_v0, %v16763_v18  ;;  %v16765_v15 = vld [vmem:[#allocation179_spill] sm:$0xff]  ;;  %v16768_v61 = vld [vmem:[#allocation78_spill] sm:$0xff] }
 0x293   : > { %v1809_v8 = vsel %vm1780_vm7, %v1776_v25, %v16761_v3  ;;  %v16762_v51 = vld [vmem:[#allocation180_spill] sm:$0xff]  ;;  %v1744_v54 = vsel %vm1714_vm5, %v1711_v47, %v16764_v16  ;;  %v16766_v39 = vld [vmem:[#allocation35_spill] sm:$0xff]  ;;  %v16769_v31 = vld [vmem:[#allocation202_spill] sm:$0xff] }
 0x294   : > { %v1841_v36 = vsel %vm1813_vm8, %v1808_v7, %v16762_v51  ;;  %v1842_v43 = vsel %vm1813_vm8, %v1809_v8, %v16765_v15  ;;  %v16767_v12 = vld [vmem:[#allocation144_spill] sm:$0xff]  ;;  %v1777_v22 = vsel %vm1747_vm6, %v1744_v54, %v16768_v61  ;;  %v9612_v32 = vld [vmem:[#allocation2 + $0x170] sm:$0xff]  ;;  %v16773_v29 = vld [vmem:[#allocation125_spill] sm:$0xff]  ;;  %v1612_v5 = vpop.permute.xlu1 %1611 }
 0x295   : > { %v1874_v35 = vsel %vm1846_vm9, %v1841_v36, %v16766_v39  ;;  %v1745_v17 = vsel %vm1714_vm5, %v1712_v19, %v16767_v12  ;;  %v1875_v33 = vsel %vm1846_vm9, %v1842_v43, %v16769_v31  ;;  %v16770_v49 = vld [vmem:[#allocation95_spill] sm:$0xff]  ;;  %v16771_v48 = vld [vmem:[#allocation76_spill] sm:$0xff]  ;;  %v16774_v40 = vld [vmem:[#allocation158_spill] sm:$0xff] }
 0x296   : > { %v1907_v59 = vsel %vm1879_vm10, %v1874_v35, %v1608_v46  ;;  %v1680_v58 = vsel %vm225_vm0, %v9612_v32, %v16770_v49  ;;  %v1778_v4 = vsel %vm1747_vm6, %v1745_v17, %v16771_v48  ;;  %v16772_v13 = vld [vmem:[#allocation159_spill] sm:$0xff]  ;;  %v1908_v10 = vsel %vm1879_vm10, %v1875_v33, %v1610_v52  ;;  %v16775_v42 = vld [vmem:[#allocation182_spill] sm:$0xff]  ;;  %v16777_v45 = vld [vmem:[#allocation181_spill] sm:$0xff] }
 0x297   : > { %v1810_v14 = vsel %vm1780_vm7, %v1777_v22, %v16772_v13  ;;  %9359 = vmatmul.mubr.msk.f32.gmra.mxu0 %vm1924_vm11, %v1907_v59  ;;  %v1713_v38 = vsel %vm1681_vm4, %v1680_v58, %v16773_v29  ;;  %v1811_v1 = vsel %vm1780_vm7, %v1778_v4, %v16774_v40  ;;  %v16776_v57 = vld [vmem:[#allocation146_spill] sm:$0xff]  ;;  %v16778_v27 = vld [vmem:[#allocation203_spill] sm:$0xff]  ;;  %v16779_v53 = vld [vmem:[#allocation80_spill] sm:$0xff] }
 0x298   : > { %v1843_v21 = vsel %vm1813_vm8, %v1810_v14, %v16775_v42  ;;  %9361 = vmatprep.mubr.msk.f32.mxu0 %vm1924_vm11, %v1908_v10  ;;  %v1746_v26 = vsel %vm1714_vm5, %v1713_v38, %v16776_v57  ;;  %v1844_v63 = vsel %vm1813_vm8, %v1811_v1, %v16777_v45  ;;  %v16780_v20 = vld [vmem:[#allocation93_spill] sm:$0xff]  ;;  %v16781_v6 = vld [vmem:[#allocation160_spill] sm:$0xff]  ;;  %v16782_v41 = vld [vmem:[#allocation183_spill] sm:$0xff]  ;;  %v1616_v25 = vpop.permute.xlu1 %1615 }
 0x299   : > { %v1876_v34 = vsel %vm1846_vm9, %v1843_v21, %v16778_v27  ;;  %v1779_v50 = vsel %vm1747_vm6, %v1746_v26, %v16779_v53  ;;  %v1877_v2 = vsel %vm1846_vm9, %v1844_v63, %v16780_v20  ;;  %v2347_v7 = vld [vmem:[#allocation2 + $0x9] sm:$0xff]  ;;  %v2346_v44 = vld [vmem:[#allocation2 + $0x1] sm:$0xff]  ;;  %v11569_v52 = vld [vmem:[%s16125_s2] ss:$0 sm:$0xff] }
 0x29a   : > { %v1909_v56 = vsel %vm1879_vm10, %v1876_v34, %v1612_v5  ;;  %v1812_v37 = vsel %vm1780_vm7, %v1779_v50, %v16781_v6  ;;  %v1910_v28 = vsel %vm1879_vm10, %v1877_v2, %v1614_v30  ;;  %2636 = vrot.lane.b32.xlu1 %v2347_v7, %s9649_s25  ;;  %2634 = vrot.lane.b32.xlu0 %v2346_v44, %s9649_s25 }
 0x29b   : > { %9362 = vmatmul.mubr.msk.f32.gmra.mxu0 %vm1924_vm11, %v1909_v56  ;;  %v1845_v24 = vsel %vm1813_vm8, %v1812_v37, %v16782_v41 }
 0x29c   : > { %9364 = vmatprep.mubr.msk.f32.mxu0 %vm1924_vm11, %v1910_v28  ;;  %v1878_v55 = vsel %vm1846_vm9, %v1845_v24, %v11076_v62 }
 0x29d   : > { %v1911_v60 = vsel %vm1879_vm10, %v1878_v55, %v1616_v25 }
 0x29f   : > { %9365 = vmatmul.mubr.msk.f32.gmra.mxu0 %vm1924_vm11, %v1911_v60 }
 0x31e   : > { %v9321_v11 = vpop.f32.mrf.mxu0 }
 0x31f   : > { %v2097_v23 = vadd.f32 %v9321_v11, %v11569_v52 }
 0x320   : > { %v2091_v62 = vpop.f32.mrf.mxu0 }
 0x321   : > { %v2251_v0 = vmax.f32 %v2097_v23, 0.0  ;;  %v2092_v9 = vadd.f32 %v11569_v52, %v2091_v62 }
 0x322   : > { %v9324_v47 = vpop.f32.mrf.mxu0 }
 0x323   : > { %2283 = vst.msk [vmem:[#allocation2 + $0x21] sm:$0xff] %vm225_vm0, %v2251_v0  ;;  %v2250_v3 = vmax.f32 %v2092_v9, 0.0  ;;  %v2107_v8 = vadd.f32 %v9324_v47, %v11569_v52 }
 0x324   : > { %v2101_v51 = vpop.f32.mrf.mxu0 }
 0x325   : > { %2282 = vst.msk [vmem:[#allocation2 + $0x19] sm:$0xff] %vm225_vm0, %v2250_v3  ;;  %v2253_v36 = vmax.f32 %v2107_v8, 0.0  ;;  %v2102_v18 = vadd.f32 %v11569_v52, %v2101_v51 }
 0x326   : > { %v9327_v19 = vpop.f32.mrf.mxu0 }
 0x327   : > { %2285 = vst.msk [vmem:[#allocation2 + $0x39] sm:$0xff] %vm225_vm0, %v2253_v36  ;;  %v2252_v16 = vmax.f32 %v2102_v18, 0.0  ;;  %v2117_v54 = vadd.f32 %v9327_v19, %v11569_v52 }
 0x328   : > { %v2111_v15 = vpop.f32.mrf.mxu0 }
 0x329   : > { %2284 = vst.msk [vmem:[#allocation2 + $0x31] sm:$0xff] %vm225_vm0, %v2252_v16  ;;  %v2255_v43 = vmax.f32 %v2117_v54, 0.0  ;;  %v2112_v39 = vadd.f32 %v11569_v52, %v2111_v15 }
 0x32a   : > { %v9330_v35 = vpop.f32.mrf.mxu0  ;;  %v11581_v46 = vld [vmem:[#allocation2 + $0x21] sm:$0xff] }
 0x32b   : > { %2287 = vst.msk [vmem:[#allocation2 + $0x51] sm:$0xff] %vm225_vm0, %v2255_v43  ;;  %v2254_v12 = vmax.f32 %v2112_v39, 0.0  ;;  %v2127_v17 = vadd.f32 %v9330_v35, %v11569_v52  ;;  %2640 = vrot.lane.b32.xlu1 %v11581_v46, %s9649_s25 }
 0x32c   : > { %v2121_v61 = vpop.f32.mrf.mxu0  ;;  %v11587_v22 = vld [vmem:[#allocation2 + $0x19] sm:$0xff] }
 0x32d   : > { %2286 = vst.msk [vmem:[#allocation2 + $0x49] sm:$0xff] %vm225_vm0, %v2254_v12  ;;  %v2257_v31 = vmax.f32 %v2127_v17, 0.0  ;;  %v2122_v33 = vadd.f32 %v11569_v52, %v2121_v61  ;;  %2638 = vrot.lane.b32.xlu0 %v11587_v22, %s9649_s25 }
 0x32e   : > { %v9333_v59 = vpop.f32.mrf.mxu0  ;;  %v11593_v32 = vld [vmem:[#allocation2 + $0x39] sm:$0xff] }
 0x32f   : > { %2289 = vst.msk [vmem:[#allocation2 + $0x69] sm:$0xff] %vm225_vm0, %v2257_v31  ;;  %v2256_v49 = vmax.f32 %v2122_v33, 0.0  ;;  %v2137_v58 = vadd.f32 %v9333_v59, %v11569_v52  ;;  %2644 = vrot.lane.b32.xlu1 %v11593_v32, %s9649_s25 }
 0x330   : > { %v2131_v48 = vpop.f32.mrf.mxu0  ;;  %v11599_v4 = vld [vmem:[#allocation2 + $0x31] sm:$0xff] }
 0x331   : > { %2288 = vst.msk [vmem:[#allocation2 + $0x61] sm:$0xff] %vm225_vm0, %v2256_v49  ;;  %v2259_v13 = vmax.f32 %v2137_v58, 0.0  ;;  %v2132_v14 = vadd.f32 %v11569_v52, %v2131_v48  ;;  %2642 = vrot.lane.b32.xlu0 %v11599_v4, %s9649_s25 }
 0x332   : > { %v9336_v10 = vpop.f32.mrf.mxu0  ;;  %v11605_v29 = vld [vmem:[#allocation2 + $0x51] sm:$0xff] }
 0x333   : > { %2291 = vst.msk [vmem:[#allocation2 + $0x81] sm:$0xff] %vm225_vm0, %v2259_v13  ;;  %v2258_v38 = vmax.f32 %v2132_v14, 0.0  ;;  %v2147_v40 = vadd.f32 %v9336_v10, %v11569_v52  ;;  %2648 = vrot.lane.b32.xlu1 %v11605_v29, %s9649_s25 }
 0x334   : > { %v2141_v1 = vpop.f32.mrf.mxu0  ;;  %v11611_v42 = vld [vmem:[#allocation2 + $0x49] sm:$0xff] }
 0x335   : > { %2290 = vst.msk [vmem:[#allocation2 + $0x79] sm:$0xff] %vm225_vm0, %v2258_v38  ;;  %v2261_v21 = vmax.f32 %v2147_v40, 0.0  ;;  %v2142_v30 = vadd.f32 %v11569_v52, %v2141_v1  ;;  %2646 = vrot.lane.b32.xlu0 %v11611_v42, %s9649_s25 }
 0x336   : > { %v9339_v57 = vpop.f32.mrf.mxu0  ;;  %v11617_v26 = vld [vmem:[#allocation2 + $0x69] sm:$0xff] }
 0x337   : > { %2293 = vst.msk [vmem:[#allocation2 + $0x99] sm:$0xff] %vm225_vm0, %v2261_v21  ;;  %v2260_v45 = vmax.f32 %v2142_v30, 0.0  ;;  %v2157_v63 = vadd.f32 %v9339_v57, %v11569_v52  ;;  %2652 = vrot.lane.b32.xlu1 %v11617_v26, %s9649_s25 }
 0x338   : > { %v2151_v27 = vpop.f32.mrf.mxu0  ;;  %v11623_v34 = vld [vmem:[#allocation2 + $0x61] sm:$0xff] }
 0x339   : > { %2292 = vst.msk [vmem:[#allocation2 + $0x91] sm:$0xff] %vm225_vm0, %v2260_v45  ;;  %v2263_v5 = vmax.f32 %v2157_v63, 0.0  ;;  %v2152_v53 = vadd.f32 %v11569_v52, %v2151_v27  ;;  %2650 = vrot.lane.b32.xlu0 %v11623_v34, %s9649_s25 }
 0x33a   : > { %v9342_v50 = vpop.f32.mrf.mxu0  ;;  %v11629_v20 = vld [vmem:[#allocation2 + $0x81] sm:$0xff] }
 0x33b   : > { %2295 = vst.msk [vmem:[#allocation2 + $0xb1] sm:$0xff] %vm225_vm0, %v2263_v5  ;;  %v2262_v2 = vmax.f32 %v2152_v53, 0.0  ;;  %v2167_v56 = vadd.f32 %v9342_v50, %v11569_v52  ;;  %2656 = vrot.lane.b32.xlu1 %v11629_v20, %s9649_s25 }
 0x33c   : > { %v2161_v6 = vpop.f32.mrf.mxu0  ;;  %v11635_v37 = vld [vmem:[#allocation2 + $0x79] sm:$0xff] }
 0x33d   : > { %2294 = vst.msk [vmem:[#allocation2 + $0xa9] sm:$0xff] %vm225_vm0, %v2262_v2  ;;  %v2265_v28 = vmax.f32 %v2167_v56, 0.0  ;;  %v2162_v41 = vadd.f32 %v11569_v52, %v2161_v6  ;;  %2654 = vrot.lane.b32.xlu0 %v11635_v37, %s9649_s25 }
 0x33e   : > { %v9345_v24 = vpop.f32.mrf.mxu0  ;;  %v11641_v55 = vld [vmem:[#allocation2 + $0x99] sm:$0xff] }
 0x33f   : > { %2297 = vst.msk [vmem:[#allocation2 + $0xc9] sm:$0xff] %vm225_vm0, %v2265_v28  ;;  %v2264_v25 = vmax.f32 %v2162_v41, 0.0  ;;  %v2177_v60 = vadd.f32 %v9345_v24, %v11569_v52  ;;  %2660 = vrot.lane.b32.xlu1 %v11641_v55, %s9649_s25 }
 0x340   : > { %v2171_v7 = vpop.f32.mrf.mxu0  ;;  %v11647_v44 = vld [vmem:[#allocation2 + $0x91] sm:$0xff] }
 0x341   : > { %2296 = vst.msk [vmem:[#allocation2 + $0xc1] sm:$0xff] %vm225_vm0, %v2264_v25  ;;  %v2267_v11 = vmax.f32 %v2177_v60, 0.0  ;;  %v2172_v23 = vadd.f32 %v11569_v52, %v2171_v7  ;;  %2658 = vrot.lane.b32.xlu0 %v11647_v44, %s9649_s25 }
 0x342   : > { %v9348_v62 = vpop.f32.mrf.mxu0  ;;  %v11653_v0 = vld [vmem:[#allocation2 + $0xb1] sm:$0xff] }
 0x343   : > { %2299 = vst.msk [vmem:[#allocation2 + $0xe1] sm:$0xff] %vm225_vm0, %v2267_v11  ;;  %v2266_v9 = vmax.f32 %v2172_v23, 0.0  ;;  %v2187_v47 = vadd.f32 %v9348_v62, %v11569_v52  ;;  %2664 = vrot.lane.b32.xlu1 %v11653_v0, %s9649_s25 }
 0x344   : > { %v2181_v3 = vpop.f32.mrf.mxu0  ;;  %v11659_v8 = vld [vmem:[#allocation2 + $0xa9] sm:$0xff] }
 0x345   : > { %2298 = vst.msk [vmem:[#allocation2 + $0xd9] sm:$0xff] %vm225_vm0, %v2266_v9  ;;  %v2269_v51 = vmax.f32 %v2187_v47, 0.0  ;;  %v2182_v36 = vadd.f32 %v11569_v52, %v2181_v3  ;;  %2662 = vrot.lane.b32.xlu0 %v11659_v8, %s9649_s25 }
 0x346   : > { %v11665_v19 = vld [vmem:[#allocation2 + $0xc9] sm:$0xff] }
 0x347   : > { %v9351_v18 = vpop.f32.mrf.mxu0  ;;  %2301 = vst.msk [vmem:[#allocation2 + $0xf9] sm:$0xff] %vm225_vm0, %v2269_v51  ;;  %v2268_v16 = vmax.f32 %v2182_v36, 0.0  ;;  %2668 = vrot.lane.b32.xlu1 %v11665_v19, %s9649_s25 }
 0x348   : > { %v2197_v54 = vadd.f32 %v9351_v18, %v11569_v52  ;;  %v11671_v43 = vld [vmem:[#allocation2 + $0xc1] sm:$0xff] }
 0x349   : > { %v2191_v15 = vpop.f32.mrf.mxu0  ;;  %2300 = vst.msk [vmem:[#allocation2 + $0xf1] sm:$0xff] %vm225_vm0, %v2268_v16  ;;  %2666 = vrot.lane.b32.xlu0 %v11671_v43, %s9649_s25 }
 0x34a   : > { %v2271_v39 = vmax.f32 %v2197_v54, 0.0  ;;  %v2192_v35 = vadd.f32 %v11569_v52, %v2191_v15  ;;  %v11677_v17 = vld [vmem:[#allocation2 + $0xe1] sm:$0xff]  ;;  %v2379_v15 = vld [vmem:[#allocation2 + $0xa] sm:$0xff] }
 0x34b   : > { %2672 = vrot.lane.b32.xlu1 %v11677_v17, %s9649_s25 }
 0x34c   : > { %v9354_v12 = vpop.f32.mrf.mxu0  ;;  %2303 = vst.msk [vmem:[#allocation2 + $0x111] sm:$0xff] %vm225_vm0, %v2271_v39  ;;  %v2270_v61 = vmax.f32 %v2192_v35, 0.0  ;;  %v11683_v59 = vld [vmem:[#allocation2 + $0xd9] sm:$0xff]  ;;  %v2378_v39 = vld [vmem:[#allocation2 + $0x2] sm:$0xff] }
 0x34d   : > { %v2207_v31 = vadd.f32 %v9354_v12, %v11569_v52  ;;  %2670 = vrot.lane.b32.xlu0 %v11683_v59, %s9649_s25  ;;  %v11757_v35 = vld [vmem:[#allocation2 + $0x22] sm:$0xff]  ;;  %v11761_v12 = vld [vmem:[#allocation2 + $0x1a] sm:$0xff] }
 0x34e   : > { %v2201_v33 = vpop.f32.mrf.mxu0  ;;  %2302 = vst.msk [vmem:[#allocation2 + $0x109] sm:$0xff] %vm225_vm0, %v2270_v61  ;;  %v11689_v13 = vld [vmem:[#allocation2 + $0xf9] sm:$0xff] }
 0x34f   : > { %v2273_v49 = vmax.f32 %v2207_v31, 0.0  ;;  %v2202_v58 = vadd.f32 %v11569_v52, %v2201_v33  ;;  %2676 = vrot.lane.b32.xlu1 %v11689_v13, %s9649_s25  ;;  %v11765_v61 = vld [vmem:[#allocation2 + $0x3a] sm:$0xff]  ;;  %v11769_v31 = vld [vmem:[#allocation2 + $0x32] sm:$0xff] }
 0x350   : > { %v11695_v40 = vld [vmem:[#allocation2 + $0xf1] sm:$0xff] }
 0x351   : > { %v9357_v48 = vpop.f32.mrf.mxu0  ;;  %2305 = vst.msk [vmem:[#allocation2 + $0x129] sm:$0xff] %vm225_vm0, %v2273_v49  ;;  %v2272_v14 = vmax.f32 %v2202_v58, 0.0  ;;  %2674 = vrot.lane.b32.xlu0 %v11695_v40, %s9649_s25  ;;  %v11773_v33 = vld [vmem:[#allocation2 + $0x52] sm:$0xff]  ;;  %v11777_v49 = vld [vmem:[#allocation2 + $0x4a] sm:$0xff] }
 0x352   : > { %v2217_v10 = vadd.f32 %v9357_v48, %v11569_v52  ;;  %v11781_v58 = vld [vmem:[#allocation2 + $0x6a] sm:$0xff]  ;;  %v11785_v48 = vld [vmem:[#allocation2 + $0x62] sm:$0xff] }
 0x353   : > { %v2211_v38 = vpop.f32.mrf.mxu0  ;;  %2304 = vst.msk [vmem:[#allocation2 + $0x121] sm:$0xff] %vm225_vm0, %v2272_v14  ;;  %v11701_v57 = vld [vmem:[#allocation2 + $0x111] sm:$0xff]  ;;  %v11789_v14 = vld [vmem:[#allocation2 + $0x82] sm:$0xff] }
 0x354   : > { %v2275_v1 = vmax.f32 %v2217_v10, 0.0  ;;  %v2212_v21 = vadd.f32 %v11569_v52, %v2211_v38  ;;  %2680 = vrot.lane.b32.xlu1 %v11701_v57, %s9649_s25  ;;  %v11793_v10 = vld [vmem:[#allocation2 + $0x7a] sm:$0xff] }
 0x355   : > { %v11707_v5 = vld [vmem:[#allocation2 + $0x109] sm:$0xff]  ;;  %v11797_v38 = vld [vmem:[#allocation2 + $0x9a] sm:$0xff] }
 0x356   : > { %2307 = vst.msk [vmem:[#allocation2 + $0x141] sm:$0xff] %vm225_vm0, %v2275_v1  ;;  %v2274_v45 = vmax.f32 %v2212_v21, 0.0  ;;  %2678 = vrot.lane.b32.xlu0 %v11707_v5, %s9649_s25  ;;  %v11801_v1 = vld [vmem:[#allocation2 + $0x92] sm:$0xff] }
 0x357   : > { %v9360_v30 = vpop.f32.mrf.mxu0  ;;  %v11805_v21 = vld [vmem:[#allocation2 + $0xb2] sm:$0xff] }
 0x358   : > { %v2227_v63 = vadd.f32 %v9360_v30, %v11569_v52  ;;  %2306 = vst.msk [vmem:[#allocation2 + $0x139] sm:$0xff] %vm225_vm0, %v2274_v45  ;;  %v11713_v56 = vld [vmem:[#allocation2 + $0x129] sm:$0xff] }
 0x359   : > { %v2221_v27 = vpop.f32.mrf.mxu0  ;;  %2684 = vrot.lane.b32.xlu1 %v11713_v56, %s9649_s25  ;;  %v11809_v30 = vld [vmem:[#allocation2 + $0xaa] sm:$0xff] }
 0x35a   : > { %v2277_v53 = vmax.f32 %v2227_v63, 0.0  ;;  %v2222_v50 = vadd.f32 %v11569_v52, %v2221_v27  ;;  %v11719_v24 = vld [vmem:[#allocation2 + $0x121] sm:$0xff]  ;;  %v11813_v45 = vld [vmem:[#allocation2 + $0xca] sm:$0xff] }
 0x35b   : > { %v9363_v2 = vpop.f32.mrf.mxu0  ;;  %2682 = vrot.lane.b32.xlu0 %v11719_v24, %s9649_s25  ;;  %v11817_v63 = vld [vmem:[#allocation2 + $0xc2] sm:$0xff] }
 0x35c   : > { %2309 = vst.msk [vmem:[#allocation2 + $0x159] sm:$0xff] %vm225_vm0, %v2277_v53  ;;  %v2276_v6 = vmax.f32 %v2222_v50, 0.0  ;;  %v2237_v28 = vadd.f32 %v9363_v2, %v11569_v52  ;;  %v11821_v27 = vld [vmem:[#allocation2 + $0xe2] sm:$0xff]  ;;  %v11825_v53 = vld [vmem:[#allocation2 + $0xda] sm:$0xff]  ;;  %v11833_v2 = vld [vmem:[#allocation2 + $0xf2] sm:$0xff] }
 0x35d   : > { %v2231_v41 = vpop.f32.mrf.mxu0  ;;  %v11725_v11 = vld [vmem:[#allocation2 + $0x141] sm:$0xff] }
 0x35e   : > { %2308 = vst.msk [vmem:[#allocation2 + $0x151] sm:$0xff] %vm225_vm0, %v2276_v6  ;;  %v2279_v25 = vmax.f32 %v2237_v28, 0.0  ;;  %v2232_v60 = vadd.f32 %v11569_v52, %v2231_v41  ;;  %2688 = vrot.lane.b32.xlu1 %v11725_v11, %s9649_s25  ;;  %v11829_v50 = vld [vmem:[#allocation2 + $0xfa] sm:$0xff]  ;;  %v11837_v6 = vld [vmem:[#allocation2 + $0x112] sm:$0xff]  ;;  %v11841_v28 = vld [vmem:[#allocation2 + $0x10a] sm:$0xff] }
 0x35f   : > { %v9366_v7 = vpop.f32.mrf.mxu0  ;;  %v11731_v47 = vld [vmem:[#allocation2 + $0x139] sm:$0xff]  ;;  %v11845_v41 = vld [vmem:[#allocation2 + $0x12a] sm:$0xff] }
 0x360   : > { %2311 = vst.msk [vmem:[#allocation2 + $0x171] sm:$0xff] %vm225_vm0, %v2279_v25  ;;  %v2278_v23 = vmax.f32 %v2232_v60, 0.0  ;;  %v2247_v62 = vadd.f32 %v9366_v7, %v11569_v52  ;;  %2686 = vrot.lane.b32.xlu0 %v11731_v47, %s9649_s25  ;;  %v11849_v25 = vpop.permute.xlu1 %2636  ;;  %v11851_v60 = vld [vmem:[#allocation2 + $0x122] sm:$0xff]  ;;  %v11855_v7 = vpop.permute.xlu0 %2634 }
 0x361   : > { %v2241_v9 = vpop.f32.mrf.mxu0  ;;  %16783 = vst [vmem:[#allocation36_spill] sm:$0xff] %v11849_v25  ;;  %16784 = vst [vmem:[#allocation38_spill] sm:$0xff] %v11855_v7  ;;  %v11891_v7 = vld [vmem:[#allocation2 + $0x20] sm:$0xff] }
 0x362   : > { %2310 = vst.msk [vmem:[#allocation2 + $0x169] sm:$0xff] %vm225_vm0, %v2278_v23  ;;  %v2281_v3 = vmax.f32 %v2247_v62, 0.0  ;;  %v2242_v51 = vadd.f32 %v11569_v52, %v2241_v9  ;;  %v11857_v23 = vld [vmem:[#allocation2 + $0x142] sm:$0xff]  ;;  %v11861_v62 = vld [vmem:[#allocation2 + $0x13a] sm:$0xff]  ;;  %16796 = vst [vmem:[#allocation46_spill] sm:$0xff] %v11891_v7 }
 0x363   : > { %v11737_v36 = vld [vmem:[#allocation2 + $0x159] sm:$0xff]  ;;  %16785 = vst [vmem:[#allocation98_spill] sm:$0xff] %v11857_v23  ;;  %16786 = vst [vmem:[#allocation97_spill] sm:$0xff] %v11861_v62 }
 0x364   : > { %2313 = vst.msk [vmem:[#allocation2 + $0x189] sm:$0xff] %vm225_vm0, %v2281_v3  ;;  %v2280_v18 = vmax.f32 %v2242_v51, 0.0  ;;  %2692 = vrot.lane.b32.xlu1 %v11737_v36, %s9649_s25  ;;  %v11867_v3 = vld [vmem:[#allocation2 + $0x15a] sm:$0xff] }
 0x365   : > { %v11742_v16 = vld [vmem:[#allocation2 + $0x151] sm:$0xff]  ;;  %16788 = vst [vmem:[#allocation40_spill] sm:$0xff] %v11867_v3 }
 0x366   : > { %2312 = vst.msk [vmem:[#allocation2 + $0x181] sm:$0xff] %vm225_vm0, %v2280_v18  ;;  %2690 = vrot.lane.b32.xlu0 %v11742_v16, %s9649_s25  ;;  %v11873_v18 = vld [vmem:[#allocation2 + $0x152] sm:$0xff] }
 0x367   : > { %v11747_v54 = vld [vmem:[#allocation2 + $0x171] sm:$0xff]  ;;  %16790 = vst [vmem:[#allocation100_spill] sm:$0xff] %v11873_v18 }
 0x368   : > { %2696 = vrot.lane.b32.xlu1 %v11747_v54, %s9649_s25 }
 0x369   : > { %v11751_v52 = vld [vmem:[#allocation2 + $0x169] sm:$0xff] }
 0x36a   : > { %2694 = vrot.lane.b32.xlu0 %v11751_v52, %s9649_s25  ;;  %v11885_v25 = vld [vmem:[#allocation2 + $0x16a] sm:$0xff] }
 0x36b   : > { %16794 = vst [vmem:[#allocation102_spill] sm:$0xff] %v11885_v25 }
 0x36c   : > { %2764 = vrot.lane.b32.xlu1 %v2379_v15, %s9650_s26 }
 0x36e   : > { %2762 = vrot.lane.b32.xlu0 %v2378_v39, %s9650_s26  ;;  %v11879_v39 = vld [vmem:[#allocation2 + $0x172] sm:$0xff] }
 0x36f   : > { %16792 = vst [vmem:[#allocation43_spill] sm:$0xff] %v11879_v39 }
 0x370   : > { %2768 = vrot.lane.b32.xlu1 %v11757_v35, %s9650_s26 }
 0x372   : > { %2766 = vrot.lane.b32.xlu0 %v11761_v12, %s9650_s26 }
 0x374   : > { %2772 = vrot.lane.b32.xlu1 %v11765_v61, %s9650_s26 }
 0x376   : > { %2770 = vrot.lane.b32.xlu0 %v11769_v31, %s9650_s26 }
 0x378   : > { %2776 = vrot.lane.b32.xlu1 %v11773_v33, %s9650_s26 }
 0x37a   : > { %2774 = vrot.lane.b32.xlu0 %v11777_v49, %s9650_s26 }
 0x37c   : > { %2780 = vrot.lane.b32.xlu1 %v11781_v58, %s9650_s26 }
 0x37e   : > { %2778 = vrot.lane.b32.xlu0 %v11785_v48, %s9650_s26 }
 0x380   : > { %2784 = vrot.lane.b32.xlu1 %v11789_v14, %s9650_s26 }
 0x382   : > { %2782 = vrot.lane.b32.xlu0 %v11793_v10, %s9650_s26 }
 0x384   : > { %2788 = vrot.lane.b32.xlu1 %v11797_v38, %s9650_s26 }
 0x386   : > { %2786 = vrot.lane.b32.xlu0 %v11801_v1, %s9650_s26 }
 0x388   : > { %2792 = vrot.lane.b32.xlu1 %v11805_v21, %s9650_s26 }
 0x38a   : > { %2790 = vrot.lane.b32.xlu0 %v11809_v30, %s9650_s26 }
 0x38c   : > { %2796 = vrot.lane.b32.xlu1 %v11813_v45, %s9650_s26 }
 0x38e   : > { %2794 = vrot.lane.b32.xlu0 %v11817_v63, %s9650_s26 }
 0x390   : > { %2800 = vrot.lane.b32.xlu1 %v11821_v27, %s9650_s26 }
 0x392   : > { %2798 = vrot.lane.b32.xlu0 %v11825_v53, %s9650_s26 }
 0x394   : > { %2804 = vrot.lane.b32.xlu1 %v11829_v50, %s9650_s26 }
 0x396   : > { %2802 = vrot.lane.b32.xlu0 %v11833_v2, %s9650_s26 }
 0x398   : > { %2808 = vrot.lane.b32.xlu1 %v11837_v6, %s9650_s26 }
 0x39a   : > { %2806 = vrot.lane.b32.xlu0 %v11841_v28, %s9650_s26 }
 0x39c   : > { %2812 = vrot.lane.b32.xlu1 %v11845_v41, %s9650_s26 }
 0x39d   : > { %v11863_v9 = vpop.permute.xlu1 %2640 }
 0x39e   : > { %2810 = vrot.lane.b32.xlu0 %v11851_v60, %s9650_s26  ;;  %16787 = vst [vmem:[#allocation42_spill] sm:$0xff] %v11863_v9 }
 0x39f   : > { %v11869_v51 = vpop.permute.xlu0 %2638 }
 0x3a0   : > { %2816 = vrot.lane.b32.xlu1 %v11857_v23, %s9650_s26  ;;  %16789 = vst [vmem:[#allocation101_spill] sm:$0xff] %v11869_v51 }
 0x3a1   : > { %v11875_v15 = vpop.permute.xlu1 %2644 }
 0x3a2   : > { %2814 = vrot.lane.b32.xlu0 %v11861_v62, %s9650_s26  ;;  %16791 = vst [vmem:[#allocation45_spill] sm:$0xff] %v11875_v15  ;;  %v2336_v62 = vld [vmem:[#allocation2 + $0x108] sm:$0xff] }
 0x3a3   : > { %v11883_v9 = vpop.permute.xlu0 %2642 }
 0x3a4   : > { %2820 = vrot.lane.b32.xlu1 %v11867_v3, %s9650_s26  ;;  %16793 = vst [vmem:[#allocation103_spill] sm:$0xff] %v11883_v9  ;;  %v11903_v9 = vld [vmem:[#allocation2 + $0x38] sm:$0xff] }
 0x3a5   : > { %v11887_v51 = vpop.permute.xlu1 %2648  ;;  %16800 = vst [vmem:[#allocation55_spill] sm:$0xff] %v11903_v9 }
 0x3a6   : > { %2818 = vrot.lane.b32.xlu0 %v11873_v18, %s9650_s26  ;;  %16795 = vst [vmem:[#allocation48_spill] sm:$0xff] %v11887_v51  ;;  %v11897_v18 = vld [vmem:[#allocation2 + $0x18] sm:$0xff] }
 0x3a7   : > { %v11895_v15 = vpop.permute.xlu0 %2646  ;;  %16798 = vst [vmem:[#allocation51_spill] sm:$0xff] %v11897_v18 }
 0x3a8   : > { %2824 = vrot.lane.b32.xlu1 %v11879_v39, %s9650_s26  ;;  %16797 = vst [vmem:[#allocation104_spill] sm:$0xff] %v11895_v15  ;;  %v11915_v15 = vld [vmem:[#allocation2 + $0x50] sm:$0xff] }
 0x3a9   : > { %v11899_v3 = vpop.permute.xlu1 %2652  ;;  %16804 = vst [vmem:[#allocation82_spill] sm:$0xff] %v11915_v15 }
 0x3aa   : > { %2822 = vrot.lane.b32.xlu0 %v11885_v25, %s9650_s26  ;;  %16799 = vst [vmem:[#allocation49_spill] sm:$0xff] %v11899_v3  ;;  %v11909_v25 = vld [vmem:[#allocation2 + $0x30] sm:$0xff] }
 0x3ab   : > { %v11907_v51 = vpop.permute.xlu0 %2650  ;;  %16802 = vst [vmem:[#allocation53_spill] sm:$0xff] %v11909_v25 }
 0x3ac   : > { %2892 = vrot.lane.b32.xlu1 %v11891_v7, %s9651_s27  ;;  %16801 = vst [vmem:[#allocation84_spill] sm:$0xff] %v11907_v51  ;;  %v11921_v7 = vld [vmem:[#allocation2 + $0x48] sm:$0xff] }
 0x3ad   : > { %v11911_v39 = vpop.permute.xlu1 %2656  ;;  %16806 = vst [vmem:[#allocation105_spill] sm:$0xff] %v11921_v7  ;;  %v11927_v51 = vld [vmem:[#allocation2 + $0x68] sm:$0xff] }
 0x3ae   : > { %2890 = vrot.lane.b32.xlu0 %v11897_v18, %s9651_s27  ;;  %16803 = vst [vmem:[#allocation106_spill] sm:$0xff] %v11911_v39  ;;  %16808 = vst [vmem:[#allocation161_spill] sm:$0xff] %v11927_v51 }
 0x3af   : > { %v11919_v3 = vpop.permute.xlu0 %2654 }
 0x3b0   : > { %2896 = vrot.lane.b32.xlu1 %v11903_v9, %s9651_s27  ;;  %16805 = vst [vmem:[#allocation162_spill] sm:$0xff] %v11919_v3  ;;  %v11939_v3 = vld [vmem:[#allocation2 + $0x80] sm:$0xff] }
 0x3b1   : > { %v11923_v18 = vpop.permute.xlu1 %2660  ;;  %16812 = vst [vmem:[#allocation184_spill] sm:$0xff] %v11939_v3 }
 0x3b2   : > { %2894 = vrot.lane.b32.xlu0 %v11909_v25, %s9651_s27  ;;  %16807 = vst [vmem:[#allocation127_spill] sm:$0xff] %v11923_v18  ;;  %v11933_v25 = vld [vmem:[#allocation2 + $0x60] sm:$0xff] }
 0x3b3   : > { %v11931_v39 = vpop.permute.xlu0 %2658  ;;  %16810 = vst [vmem:[#allocation126_spill] sm:$0xff] %v11933_v25 }
 0x3b4   : > { %2900 = vrot.lane.b32.xlu1 %v11915_v15, %s9651_s27  ;;  %16809 = vst [vmem:[#allocation185_spill] sm:$0xff] %v11931_v39  ;;  %v11951_v39 = vld [vmem:[#allocation2 + $0x98] sm:$0xff] }
 0x3b5   : > { %v11935_v9 = vpop.permute.xlu1 %2664  ;;  %16816 = vst [vmem:[#allocation57_spill] sm:$0xff] %v11951_v39 }
 0x3b6   : > { %2898 = vrot.lane.b32.xlu0 %v11921_v7, %s9651_s27  ;;  %16811 = vst [vmem:[#allocation39_spill] sm:$0xff] %v11935_v9  ;;  %v11945_v7 = vld [vmem:[#allocation2 + $0x78] sm:$0xff] }
 0x3b7   : > { %v11943_v18 = vpop.permute.xlu0 %2662  ;;  %16814 = vst [vmem:[#allocation37_spill] sm:$0xff] %v11945_v7 }
 0x3b8   : > { %2904 = vrot.lane.b32.xlu1 %v11927_v51, %s9651_s27  ;;  %16813 = vst [vmem:[#allocation59_spill] sm:$0xff] %v11943_v18  ;;  %v11963_v18 = vld [vmem:[#allocation2 + $0xb0] sm:$0xff] }
 0x3b9   : > { %v11947_v15 = vpop.permute.xlu1 %2668  ;;  %16820 = vst [vmem:[#allocation107_spill] sm:$0xff] %v11963_v18 }
 0x3ba   : > { %2902 = vrot.lane.b32.xlu0 %v11933_v25, %s9651_s27  ;;  %16815 = vst [vmem:[#allocation88_spill] sm:$0xff] %v11947_v15  ;;  %v11957_v25 = vld [vmem:[#allocation2 + $0x90] sm:$0xff] }
 0x3bb   : > { %v11955_v9 = vpop.permute.xlu0 %2666  ;;  %16818 = vst [vmem:[#allocation86_spill] sm:$0xff] %v11957_v25 }
 0x3bc   : > { %2908 = vrot.lane.b32.xlu1 %v11939_v3, %s9651_s27  ;;  %16817 = vst [vmem:[#allocation108_spill] sm:$0xff] %v11955_v9  ;;  %v11975_v9 = vld [vmem:[#allocation2 + $0xc8] sm:$0xff] }
 0x3bd   : > { %v11959_v51 = vpop.permute.xlu1 %2672  ;;  %16824 = vst [vmem:[#allocation128_spill] sm:$0xff] %v11975_v9 }
 0x3be   : > { %2906 = vrot.lane.b32.xlu0 %v11945_v7, %s9651_s27  ;;  %16819 = vst [vmem:[#allocation164_spill] sm:$0xff] %v11959_v51  ;;  %v11969_v7 = vld [vmem:[#allocation2 + $0xa8] sm:$0xff] }
 0x3bf   : > { %v11967_v15 = vpop.permute.xlu0 %2670  ;;  %16822 = vst [vmem:[#allocation163_spill] sm:$0xff] %v11969_v7 }
 0x3c0   : > { %2912 = vrot.lane.b32.xlu1 %v11951_v39, %s9651_s27  ;;  %16821 = vst [vmem:[#allocation129_spill] sm:$0xff] %v11967_v15  ;;  %v11987_v15 = vld [vmem:[#allocation2 + $0xe0] sm:$0xff] }
 0x3c1   : > { %v11971_v3 = vpop.permute.xlu1 %2676  ;;  %16828 = vst [vmem:[#allocation41_spill] sm:$0xff] %v11987_v15 }
 0x3c2   : > { %2910 = vrot.lane.b32.xlu0 %v11957_v25, %s9651_s27  ;;  %16823 = vst [vmem:[#allocation187_spill] sm:$0xff] %v11971_v3  ;;  %v11981_v25 = vld [vmem:[#allocation2 + $0xc0] sm:$0xff] }
 0x3c3   : > { %v11979_v51 = vpop.permute.xlu0 %2674  ;;  %16826 = vst [vmem:[#allocation186_spill] sm:$0xff] %v11981_v25 }
 0x3c4   : > { %2916 = vrot.lane.b32.xlu1 %v11963_v18, %s9651_s27  ;;  %16825 = vst [vmem:[#allocation44_spill] sm:$0xff] %v11979_v51  ;;  %v2335_v51 = vld [vmem:[#allocation2 + $0xf8] sm:$0xff] }
 0x3c6   : > { %2914 = vrot.lane.b32.xlu0 %v11969_v7, %s9651_s27  ;;  %v11983_v39 = vpop.permute.xlu1 %2680  ;;  %v11993_v7 = vld [vmem:[#allocation2 + $0xd8] sm:$0xff] }
 0x3c7   : > { %16827 = vst [vmem:[#allocation63_spill] sm:$0xff] %v11983_v39  ;;  %16830 = vst [vmem:[#allocation61_spill] sm:$0xff] %v11993_v7 }
 0x3c8   : > { %2920 = vrot.lane.b32.xlu1 %v11975_v9, %s9651_s27  ;;  %v11991_v3 = vpop.permute.xlu0 %2678 }
 0x3c9   : > { %16829 = vst [vmem:[#allocation92_spill] sm:$0xff] %v11991_v3 }
 0x3ca   : > { %2918 = vrot.lane.b32.xlu0 %v11981_v25, %s9651_s27  ;;  %v2334_v25 = vld [vmem:[#allocation2 + $0xf0] sm:$0xff] }
 0x3cb   : > { %v11995_v18 = vpop.permute.xlu1 %2684 }
 0x3cc   : > { %2924 = vrot.lane.b32.xlu1 %v11987_v15, %s9651_s27  ;;  %16831 = vst [vmem:[#allocation110_spill] sm:$0xff] %v11995_v18  ;;  %v2337_v15 = vld [vmem:[#allocation2 + $0x110] sm:$0xff] }
 0x3cd   : > { %v12000_v39 = vpop.permute.xlu0 %2682 }
 0x3ce   : > { %2922 = vrot.lane.b32.xlu0 %v11993_v7, %s9651_s27  ;;  %16832 = vst [vmem:[#allocation90_spill] sm:$0xff] %v12000_v39  ;;  %v2339_v7 = vld [vmem:[#allocation2 + $0x128] sm:$0xff]  ;;  %v2338_v39 = vld [vmem:[#allocation2 + $0x120] sm:$0xff] }
 0x3d0   : > { %2928 = vrot.lane.b32.xlu1 %v2335_v51, %s9651_s27  ;;  %v12002_v9 = vpop.permute.xlu1 %2688 }
 0x3d1   : > { %16833 = vst [vmem:[#allocation166_spill] sm:$0xff] %v12002_v9  ;;  %v2340_v9 = vld [vmem:[#allocation2 + $0x138] sm:$0xff] }
 0x3d2   : > { %2926 = vrot.lane.b32.xlu0 %v2334_v25, %s9651_s27  ;;  %v12006_v3 = vpop.permute.xlu0 %2686  ;;  %v2341_v25 = vld [vmem:[#allocation2 + $0x140] sm:$0xff] }
 0x3d3   : > { %16834 = vst [vmem:[#allocation109_spill] sm:$0xff] %v12006_v3 }
 0x3d4   : > { %2932 = vrot.lane.b32.xlu1 %v2337_v15, %s9651_s27 }
 0x3d6   : > { %v12008_v18 = vpop.permute.xlu1 %2692  ;;  %2930 = vrot.lane.b32.xlu0 %v2336_v62, %s9651_s27  ;;  %v2343_v62 = vld [vmem:[#allocation2 + $0x158] sm:$0xff] }
 0x3d7   : > { %16835 = vst [vmem:[#allocation131_spill] sm:$0xff] %v12008_v18  ;;  %v2342_v18 = vld [vmem:[#allocation2 + $0x150] sm:$0xff] }
 0x3d8   : > { %2936 = vrot.lane.b32.xlu1 %v2339_v7, %s9651_s27  ;;  %v12012_v51 = vpop.permute.xlu0 %2690 }
 0x3d9   : > { %16836 = vst [vmem:[#allocation165_spill] sm:$0xff] %v12012_v51 }
 0x3da   : > { %v12014_v23 = vpop.permute.xlu1 %2696  ;;  %2934 = vrot.lane.b32.xlu0 %v2338_v39, %s9651_s27  ;;  %v2345_v39 = vld [vmem:[#allocation2 + $0x170] sm:$0xff] }
 0x3db   : > { %16837 = vst [vmem:[#allocation189_spill] sm:$0xff] %v12014_v23  ;;  %v2344_v23 = vld [vmem:[#allocation2 + $0x168] sm:$0xff] }
 0x3dc   : > { %2940 = vrot.lane.b32.xlu1 %v2341_v25, %s9651_s27  ;;  %v12018_v15 = vpop.permute.xlu0 %2694 }
 0x3dd   : > { %16838 = vst [vmem:[#allocation130_spill] sm:$0xff] %v12018_v15 }
 0x3de   : > { %v12020_v3 = vpop.permute.xlu1 %2764  ;;  %2938 = vrot.lane.b32.xlu0 %v2340_v9, %s9651_s27  ;;  %v2441_v9 = vld [vmem:[#allocation2 + $0x188] sm:$0xff] }
 0x3df   : > { %16839 = vst [vmem:[#allocation50_spill] sm:$0xff] %v12020_v3  ;;  %v2440_v3 = vld [vmem:[#allocation2 + $0x180] sm:$0xff] }
 0x3e0   : > { %2944 = vrot.lane.b32.xlu1 %v2343_v62, %s9651_s27  ;;  %v12024_v7 = vpop.permute.xlu0 %2762 }
 0x3e1   : > { %16840 = vst [vmem:[#allocation188_spill] sm:$0xff] %v12024_v7 }
 0x3e2   : > { %v12026_v51 = vpop.permute.xlu1 %2768  ;;  %2942 = vrot.lane.b32.xlu0 %v2342_v18, %s9651_s27 }
 0x3e4   : > { %2948 = vrot.lane.b32.xlu1 %v2345_v39, %s9651_s27  ;;  %v12030_v25 = vpop.permute.xlu0 %2766 }
 0x3e6   : > { %v12032_v15 = vpop.permute.xlu1 %2772  ;;  %2946 = vrot.lane.b32.xlu0 %v2344_v23, %s9651_s27 }
 0x3e8   : > { %2952 = vrot.lane.b32.xlu1 %v2441_v9, %s9651_s27  ;;  %v12036_v62 = vpop.permute.xlu0 %2770 }
 0x3ea   : > { %v12038_v7 = vpop.permute.xlu1 %2776  ;;  %2950 = vrot.lane.b32.xlu0 %v2440_v3, %s9651_s27 }
 0x3ec   : > { %3020 = vrot.lane.b32.xlu1 %v11581_v46, %s9652_s28  ;;  %v12043_v18 = vpop.permute.xlu0 %2774 }
 0x3ee   : > { %v12045_v39 = vpop.permute.xlu1 %2780  ;;  %3018 = vrot.lane.b32.xlu0 %v11587_v22, %s9652_s28 }
 0x3f0   : > { %3024 = vrot.lane.b32.xlu1 %v11593_v32, %s9652_s28  ;;  %v12051_v23 = vpop.permute.xlu0 %2778 }
 0x3f2   : > { %v12053_v9 = vpop.permute.xlu1 %2784  ;;  %3022 = vrot.lane.b32.xlu0 %v11599_v4, %s9652_s28 }
 0x3f3   : > { %16841 = vst [vmem:[#allocation67_spill] sm:$0xff] %v12053_v9  ;;  %v2592_v9 = vld [vmem:[#allocation2 + $0x13a] sm:$0xff] }
 0x3f4   : > { %3028 = vrot.lane.b32.xlu1 %v11605_v29, %s9652_s28  ;;  %v12059_v46 = vpop.permute.xlu0 %2782 }
 0x3f5   : > { %16842 = vst [vmem:[#allocation47_spill] sm:$0xff] %v12059_v46 }
 0x3f6   : > { %v12061_v3 = vpop.permute.xlu1 %2788  ;;  %3026 = vrot.lane.b32.xlu0 %v11611_v42, %s9652_s28 }
 0x3f7   : > { %16843 = vst [vmem:[#allocation96_spill] sm:$0xff] %v12061_v3  ;;  %v2558_v3 = vld [vmem:[#allocation2 + $0x121] sm:$0xff] }
 0x3f8   : > { %3032 = vrot.lane.b32.xlu1 %v11617_v26, %s9652_s28  ;;  %v12067_v22 = vpop.permute.xlu0 %2786 }
 0x3f9   : > { %16844 = vst [vmem:[#allocation65_spill] sm:$0xff] %v12067_v22 }
 0x3fa   : > { %v12069_v32 = vpop.permute.xlu1 %2792  ;;  %3030 = vrot.lane.b32.xlu0 %v11623_v34, %s9652_s28 }
 0x3fb   : > { %16845 = vst [vmem:[#allocation112_spill] sm:$0xff] %v12069_v32  ;;  %v2548_v32 = vld [vmem:[#allocation2 + $0xa9] sm:$0xff] }
 0x3fc   : > { %3036 = vrot.lane.b32.xlu1 %v11629_v20, %s9652_s28  ;;  %v12075_v4 = vpop.permute.xlu0 %2790 }
 0x3fd   : > { %16846 = vst [vmem:[#allocation94_spill] sm:$0xff] %v12075_v4 }
 0x3fe   : > { %v12077_v29 = vpop.permute.xlu1 %2796  ;;  %3034 = vrot.lane.b32.xlu0 %v11635_v37, %s9652_s28 }
 0x3ff   : > { %16847 = vst [vmem:[#allocation168_spill] sm:$0xff] %v12077_v29  ;;  %v2576_v29 = vld [vmem:[#allocation2 + $0x7a] sm:$0xff] }
 0x400   : > { %3040 = vrot.lane.b32.xlu1 %v11641_v55, %s9652_s28  ;;  %v12083_v42 = vpop.permute.xlu0 %2794 }
 0x401   : > { %16848 = vst [vmem:[#allocation111_spill] sm:$0xff] %v12083_v42 }
 0x402   : > { %v12085_v26 = vpop.permute.xlu1 %2800  ;;  %3038 = vrot.lane.b32.xlu0 %v11647_v44, %s9652_s28 }
 0x403   : > { %16849 = vst [vmem:[#allocation133_spill] sm:$0xff] %v12085_v26  ;;  %v9022_v26 = vld [vmem:[%s16124_s1 + $0x38] sm:$0xff] }
 0x404   : > { %3044 = vrot.lane.b32.xlu1 %v11653_v0, %s9652_s28  ;;  %v12091_v34 = vpop.permute.xlu0 %2798 }
 0x405   : > { %16850 = vst [vmem:[#allocation167_spill] sm:$0xff] %v12091_v34  ;;  %v16912_v34 = vld [vmem:[#allocation163_spill] sm:$0xff] }
 0x406   : > { %v12093_v20 = vpop.permute.xlu1 %2804  ;;  %3042 = vrot.lane.b32.xlu0 %v11659_v8, %s9652_s28 }
 0x407   : > { %16851 = vst [vmem:[#allocation191_spill] sm:$0xff] %v12093_v20 }
 0x408   : > { %3048 = vrot.lane.b32.xlu1 %v11665_v19, %s9652_s28  ;;  %v12099_v37 = vpop.permute.xlu0 %2802 }
 0x409   : > { %16852 = vst [vmem:[#allocation132_spill] sm:$0xff] %v12099_v37  ;;  %v16904_v37 = vld [vmem:[#allocation37_spill] sm:$0xff] }
 0x40a   : > { %v12101_v55 = vpop.permute.xlu1 %2808  ;;  %3046 = vrot.lane.b32.xlu0 %v11671_v43, %s9652_s28 }
 0x40b   : > { %16853 = vst [vmem:[#allocation54_spill] sm:$0xff] %v12101_v55 }
 0x40c   : > { %3052 = vrot.lane.b32.xlu1 %v11677_v17, %s9652_s28  ;;  %v12107_v44 = vpop.permute.xlu0 %2806 }
 0x40d   : > { %16854 = vst [vmem:[#allocation190_spill] sm:$0xff] %v12107_v44 }
 0x40e   : > { %v12109_v0 = vpop.permute.xlu1 %2812  ;;  %3050 = vrot.lane.b32.xlu0 %v11683_v59, %s9652_s28 }
 0x40f   : > { %16855 = vst [vmem:[#allocation71_spill] sm:$0xff] %v12109_v0 }
 0x410   : > { %3056 = vrot.lane.b32.xlu1 %v11689_v13, %s9652_s28  ;;  %v12115_v8 = vpop.permute.xlu0 %2810 }
 0x411   : > { %16856 = vst [vmem:[#allocation52_spill] sm:$0xff] %v12115_v8 }
 0x412   : > { %v12117_v19 = vpop.permute.xlu1 %2816  ;;  %3054 = vrot.lane.b32.xlu0 %v11695_v40, %s9652_s28 }
 0x413   : > { %16857 = vst [vmem:[#allocation147_spill] sm:$0xff] %v12117_v19  ;;  %v12299_v19 = vld [vmem:[#allocation2 + $0x182] sm:$0xff] }
 0x414   : > { %3060 = vrot.lane.b32.xlu1 %v11701_v57, %s9652_s28  ;;  %v12123_v43 = vpop.permute.xlu0 %2814 }
 0x415   : > { %16858 = vst [vmem:[#allocation69_spill] sm:$0xff] %v12123_v43 }
 0x416   : > { %v12125_v17 = vpop.permute.xlu1 %2820  ;;  %3058 = vrot.lane.b32.xlu0 %v11707_v5, %s9652_s28 }
 0x417   : > { %16859 = vst [vmem:[#allocation114_spill] sm:$0xff] %v12125_v17 }
 0x418   : > { %3064 = vrot.lane.b32.xlu1 %v11713_v56, %s9652_s28  ;;  %v12131_v59 = vpop.permute.xlu0 %2818 }
 0x419   : > { %16860 = vst [vmem:[#allocation99_spill] sm:$0xff] %v12131_v59 }
 0x41a   : > { %v12133_v13 = vpop.permute.xlu1 %2824  ;;  %3062 = vrot.lane.b32.xlu0 %v11719_v24, %s9652_s28 }
 0x41b   : > { %16861 = vst [vmem:[#allocation170_spill] sm:$0xff] %v12133_v13  ;;  %v12167_v13 = vld [vmem:[#allocation2 + $0x181] sm:$0xff] }
 0x41c   : > { %3068 = vrot.lane.b32.xlu1 %v11725_v11, %s9652_s28  ;;  %v12139_v40 = vpop.permute.xlu0 %2822 }
 0x41d   : > { %16862 = vst [vmem:[#allocation113_spill] sm:$0xff] %v12139_v40 }
 0x41e   : > { %v12141_v57 = vpop.permute.xlu1 %2892  ;;  %3066 = vrot.lane.b32.xlu0 %v11731_v47, %s9652_s28  ;;  %v12161_v47 = vld [vmem:[#allocation2 + $0x189] sm:$0xff] }
 0x420   : > { %3072 = vrot.lane.b32.xlu1 %v11737_v36, %s9652_s28  ;;  %v12147_v5 = vpop.permute.xlu0 %2890 }
 0x422   : > { %v12149_v56 = vpop.permute.xlu1 %2896  ;;  %3070 = vrot.lane.b32.xlu0 %v11742_v16, %s9652_s28 }
 0x424   : > { %3076 = vrot.lane.b32.xlu1 %v11747_v54, %s9652_s28  ;;  %v12155_v24 = vpop.permute.xlu0 %2894 }
 0x426   : > { %v12157_v11 = vpop.permute.xlu1 %2900  ;;  %3074 = vrot.lane.b32.xlu0 %v11751_v52, %s9652_s28 }
 0x428   : > { %3080 = vrot.lane.b32.xlu1 %v12161_v47, %s9652_s28  ;;  %v12165_v36 = vpop.permute.xlu0 %2898 }
 0x42a   : > { %v12169_v16 = vpop.permute.xlu1 %2904  ;;  %3078 = vrot.lane.b32.xlu0 %v12167_v13, %s9652_s28 }
 0x42c   : > { %3148 = vrot.lane.b32.xlu1 %v11757_v35, %s9653_s29  ;;  %v12175_v54 = vpop.permute.xlu0 %2902 }
 0x42e   : > { %v12177_v52 = vpop.permute.xlu1 %2908  ;;  %3146 = vrot.lane.b32.xlu0 %v11761_v12, %s9653_s29 }
 0x430   : > { %3152 = vrot.lane.b32.xlu1 %v11765_v61, %s9653_s29  ;;  %v12183_v40 = vpop.permute.xlu0 %2906 }
 0x432   : > { %v12185_v17 = vpop.permute.xlu1 %2912  ;;  %3150 = vrot.lane.b32.xlu0 %v11769_v31, %s9653_s29 }
 0x433   : > { %16863 = vst [vmem:[#allocation135_spill] sm:$0xff] %v12185_v17  ;;  %v2560_v17 = vld [vmem:[#allocation2 + $0x139] sm:$0xff] }
 0x434   : > { %3156 = vrot.lane.b32.xlu1 %v11773_v33, %s9653_s29  ;;  %v12191_v35 = vpop.permute.xlu0 %2910 }
 0x435   : > { %16864 = vst [vmem:[#allocation169_spill] sm:$0xff] %v12191_v35 }
 0x436   : > { %v12193_v59 = vpop.permute.xlu1 %2916  ;;  %3154 = vrot.lane.b32.xlu0 %v11777_v49, %s9653_s29 }
 0x437   : > { %16865 = vst [vmem:[#allocation193_spill] sm:$0xff] %v12193_v59  ;;  %v2550_v59 = vld [vmem:[#allocation2 + $0xc1] sm:$0xff] }
 0x438   : > { %3160 = vrot.lane.b32.xlu1 %v11781_v58, %s9653_s29  ;;  %v12199_v12 = vpop.permute.xlu0 %2914 }
 0x439   : > { %16866 = vst [vmem:[#allocation134_spill] sm:$0xff] %v12199_v12 }
 0x43a   : > { %v12201_v61 = vpop.permute.xlu1 %2920  ;;  %3158 = vrot.lane.b32.xlu0 %v11785_v48, %s9653_s29 }
 0x43b   : > { %16867 = vst [vmem:[#allocation58_spill] sm:$0xff] %v12201_v61  ;;  %v2578_v61 = vld [vmem:[#allocation2 + $0x92] sm:$0xff] }
 0x43c   : > { %3164 = vrot.lane.b32.xlu1 %v11789_v14, %s9653_s29  ;;  %v12207_v31 = vpop.permute.xlu0 %2918 }
 0x43d   : > { %16868 = vst [vmem:[#allocation192_spill] sm:$0xff] %v12207_v31 }
 0x43e   : > { %v12209_v33 = vpop.permute.xlu1 %2924  ;;  %3162 = vrot.lane.b32.xlu0 %v11793_v10, %s9653_s29 }
 0x43f   : > { %16869 = vst [vmem:[#allocation75_spill] sm:$0xff] %v12209_v33  ;;  %v2539_v33 = vld [vmem:[#allocation2 + $0x39] sm:$0xff] }
 0x440   : > { %3168 = vrot.lane.b32.xlu1 %v11797_v38, %s9653_s29  ;;  %v12215_v49 = vpop.permute.xlu0 %2922 }
 0x441   : > { %16870 = vst [vmem:[#allocation56_spill] sm:$0xff] %v12215_v49 }
 0x442   : > { %v12217_v58 = vpop.permute.xlu1 %2928  ;;  %3166 = vrot.lane.b32.xlu0 %v11801_v1, %s9653_s29 }
 0x443   : > { %16871 = vst [vmem:[#allocation149_spill] sm:$0xff] %v12217_v58  ;;  %v9024_v58 = vld [vmem:[%s16124_s1 + $0x48] sm:$0xf] }
 0x444   : > { %3172 = vrot.lane.b32.xlu1 %v11805_v21, %s9653_s29  ;;  %v12223_v48 = vpop.permute.xlu0 %2926  ;;  %9367 = vmatprep.subr.msk.mxu1 %vm2021_vm3, %v9024_v58 }
 0x445   : > { %16872 = vst [vmem:[#allocation73_spill] sm:$0xff] %v12223_v48  ;;  %9368 = vmatpush3.msk.msra.mxu1 %vm2021_vm3, %v9024_v58  ;;  %v9021_v58 = vld [vmem:[%s16124_s1 + $0x30] sm:$0xff] }
 0x446   : > { %v12225_v14 = vpop.permute.xlu1 %2932  ;;  %3170 = vrot.lane.b32.xlu0 %v11809_v30, %s9653_s29 }
 0x447   : > { %16873 = vst [vmem:[#allocation116_spill] sm:$0xff] %v12225_v14  ;;  %v16900_v14 = vld [vmem:[#allocation126_spill] sm:$0xff] }
 0x448   : > { %3176 = vrot.lane.b32.xlu1 %v11813_v45, %s9653_s29  ;;  %v12231_v10 = vpop.permute.xlu0 %2930 }
 0x449   : > { %16874 = vst [vmem:[#allocation148_spill] sm:$0xff] %v12231_v10  ;;  %v16901_v10 = vld [vmem:[#allocation184_spill] sm:$0xff] }
 0x44a   : > { %v12233_v38 = vpop.permute.xlu1 %2936  ;;  %3174 = vrot.lane.b32.xlu0 %v11817_v63, %s9653_s29 }
 0x44b   : > { %16875 = vst [vmem:[#allocation172_spill] sm:$0xff] %v12233_v38  ;;  %v16896_v38 = vld [vmem:[#allocation105_spill] sm:$0xff] }
 0x44c   : > { %3180 = vrot.lane.b32.xlu1 %v11821_v27, %s9653_s29  ;;  %v12239_v1 = vpop.permute.xlu0 %2934 }
 0x44d   : > { %16876 = vst [vmem:[#allocation115_spill] sm:$0xff] %v12239_v1  ;;  %v16897_v1 = vld [vmem:[#allocation161_spill] sm:$0xff] }
 0x44e   : > { %v12241_v21 = vpop.permute.xlu1 %2940  ;;  %3178 = vrot.lane.b32.xlu0 %v11825_v53, %s9653_s29 }
 0x44f   : > { %16877 = vst [vmem:[#allocation137_spill] sm:$0xff] %v12241_v21  ;;  %v16893_v21 = vld [vmem:[#allocation53_spill] sm:$0xff] }
 0x450   : > { %3184 = vrot.lane.b32.xlu1 %v11829_v50, %s9653_s29  ;;  %v12247_v30 = vpop.permute.xlu0 %2938 }
 0x451   : > { %16878 = vst [vmem:[#allocation171_spill] sm:$0xff] %v12247_v30  ;;  %v16894_v30 = vld [vmem:[#allocation82_spill] sm:$0xff] }
 0x452   : > { %v12249_v45 = vpop.permute.xlu1 %2944  ;;  %3182 = vrot.lane.b32.xlu0 %v11833_v2, %s9653_s29  ;;  %v16884_v2 = vld [vmem:[#allocation98_spill] sm:$0xff] }
 0x453   : > { %16879 = vst [vmem:[#allocation195_spill] sm:$0xff] %v12249_v45 }
 0x454   : > { %3188 = vrot.lane.b32.xlu1 %v11837_v6, %s9653_s29  ;;  %v12255_v63 = vpop.permute.xlu0 %2942 }
 0x455   : > { %16880 = vst [vmem:[#allocation136_spill] sm:$0xff] %v12255_v63  ;;  %v16890_v63 = vld [vmem:[#allocation102_spill] sm:$0xff] }
 0x456   : > { %v12257_v27 = vpop.permute.xlu1 %2948  ;;  %3186 = vrot.lane.b32.xlu0 %v11841_v28, %s9653_s29  ;;  %v16887_v28 = vld [vmem:[#allocation40_spill] sm:$0xff] }
 0x457   : > { %16881 = vst [vmem:[#allocation62_spill] sm:$0xff] %v12257_v27  ;;  %v16886_v27 = vld [vmem:[#allocation97_spill] sm:$0xff] }
 0x458   : > { %3192 = vrot.lane.b32.xlu1 %v11845_v41, %s9653_s29  ;;  %v12263_v53 = vpop.permute.xlu0 %2946 }
 0x459   : > { %16882 = vst [vmem:[#allocation194_spill] sm:$0xff] %v12263_v53 }
 0x45a   : > { %v12265_v50 = vpop.permute.xlu1 %2952  ;;  %3190 = vrot.lane.b32.xlu0 %v11851_v60, %s9653_s29  ;;  %v16889_v60 = vld [vmem:[#allocation43_spill] sm:$0xff] }
 0x45b   : > { %16883 = vst [vmem:[#allocation79_spill] sm:$0xff] %v12265_v50  ;;  %v16888_v50 = vld [vmem:[#allocation100_spill] sm:$0xff] }
 0x45c   : > { %3196 = vrot.lane.b32.xlu1 %v16884_v2, %s9653_s29  ;;  %v12271_v6 = vpop.permute.xlu0 %2950 }
 0x45d   : > { %16885 = vst [vmem:[#allocation60_spill] sm:$0xff] %v12271_v6 }
 0x45e   : > { %v12273_v45 = vpop.permute.xlu1 %3020  ;;  %3194 = vrot.lane.b32.xlu0 %v16886_v27, %s9653_s29  ;;  %v12293_v27 = vld [vmem:[#allocation2 + $0x18a] sm:$0xff] }
 0x460   : > { %3200 = vrot.lane.b32.xlu1 %v16887_v28, %s9653_s29  ;;  %v12279_v41 = vpop.permute.xlu0 %3018 }
 0x462   : > { %v12281_v53 = vpop.permute.xlu1 %3024  ;;  %3198 = vrot.lane.b32.xlu0 %v16888_v50, %s9653_s29 }
 0x464   : > { %3204 = vrot.lane.b32.xlu1 %v16889_v60, %s9653_s29  ;;  %v12287_v2 = vpop.permute.xlu0 %3022  ;;  %v16891_v60 = vld [vmem:[#allocation55_spill] sm:$0xff] }
 0x466   : > { %v12289_v6 = vpop.permute.xlu1 %3028  ;;  %3202 = vrot.lane.b32.xlu0 %v16890_v63, %s9653_s29 }
 0x468   : > { %3208 = vrot.lane.b32.xlu1 %v12293_v27, %s9653_s29  ;;  %v12297_v28 = vpop.permute.xlu0 %3026 }
 0x46a   : > { %v12301_v50 = vpop.permute.xlu1 %3032  ;;  %3206 = vrot.lane.b32.xlu0 %v12299_v19, %s9653_s29 }
 0x46c   : > { %3276 = vrot.lane.b32.xlu1 %v16891_v60, %s9654_s30  ;;  %v12307_v43 = vpop.permute.xlu0 %3030 }
 0x46e   : > { %v12309_v63 = vpop.permute.xlu1 %3036  ;;  %3274 = vrot.lane.b32.xlu0 %v16893_v21, %s9654_s30 }
 0x46f   : > { %16892 = vst [vmem:[#allocation151_spill] sm:$0xff] %v12309_v63 }
 0x470   : > { %3280 = vrot.lane.b32.xlu1 %v16894_v30, %s9654_s30  ;;  %v12315_v0 = vpop.permute.xlu0 %3034 }
 0x472   : > { %v12317_v8 = vpop.permute.xlu1 %3040  ;;  %3278 = vrot.lane.b32.xlu0 %v16896_v38, %s9654_s30  ;;  %v16905_v38 = vld [vmem:[#allocation57_spill] sm:$0xff] }
 0x473   : > { %16895 = vst [vmem:[#allocation77_spill] sm:$0xff] %v12317_v8  ;;  %v2528_v8 = vld [vmem:[#allocation2 + $0x138] sm:$0xff] }
 0x474   : > { %3284 = vrot.lane.b32.xlu1 %v16897_v1, %s9654_s30  ;;  %v12323_v55 = vpop.permute.xlu0 %3038 }
 0x475   : > { %16898 = vst [vmem:[#allocation118_spill] sm:$0xff] %v12323_v55 }
 0x476   : > { %v12325_v44 = vpop.permute.xlu1 %3044  ;;  %3282 = vrot.lane.b32.xlu0 %v16900_v14, %s9654_s30 }
 0x477   : > { %16899 = vst [vmem:[#allocation150_spill] sm:$0xff] %v12325_v44  ;;  %v2580_v44 = vld [vmem:[#allocation2 + $0xaa] sm:$0xff] }
 0x478   : > { %3288 = vrot.lane.b32.xlu1 %v16901_v10, %s9654_s30  ;;  %v12331_v30 = vpop.permute.xlu0 %3042  ;;  %v16908_v10 = vld [vmem:[#allocation86_spill] sm:$0xff] }
 0x479   : > { %16902 = vst [vmem:[#allocation174_spill] sm:$0xff] %v12331_v30 }
 0x47a   : > { %v12333_v20 = vpop.permute.xlu1 %3048  ;;  %3286 = vrot.lane.b32.xlu0 %v16904_v37, %s9654_s30  ;;  %v9023_v37 = vld [vmem:[%s16124_s1 + $0x40] sm:$0xff] }
 0x47b   : > { %16903 = vst [vmem:[#allocation117_spill] sm:$0xff] %v12333_v20  ;;  %9369 = vmatprep.subr.mxu1 %v9023_v37  ;;  %v2546_v20 = vld [vmem:[#allocation2 + $0x91] sm:$0xff] }
 0x47c   : > { %3292 = vrot.lane.b32.xlu1 %v16905_v38, %s9654_s30  ;;  %v12339_v1 = vpop.permute.xlu0 %3046  ;;  %v16909_v38 = vld [vmem:[#allocation107_spill] sm:$0xff]  ;;  %9370 = vmatpush3.msra.mxu1 %v9023_v37  ;;  %v9020_v37 = vld [vmem:[%s16124_s1 + $0x28] sm:$0xff] }
 0x47d   : > { %16906 = vst [vmem:[#allocation139_spill] sm:$0xff] %v12339_v1  ;;  %9371 = vmatprep.subr.mxu1 %v9022_v26 }
 0x47e   : > { %v12344_v14 = vpop.permute.xlu1 %3052  ;;  %3290 = vrot.lane.b32.xlu0 %v16908_v10, %s9654_s30  ;;  %9372 = vmatpush3.msra.mxu1 %v9022_v26  ;;  %v16917_v26 = vld [vmem:[#allocation41_spill] sm:$0xff] }
 0x47f   : > { %16907 = vst [vmem:[#allocation173_spill] sm:$0xff] %v12344_v14  ;;  %9373 = vmatprep.subr.mxu1 %v9021_v58 }
 0x480   : > { %3296 = vrot.lane.b32.xlu1 %v16909_v38, %s9654_s30  ;;  %v12355_v48 = vpop.permute.xlu0 %3050  ;;  %v16913_v38 = vld [vmem:[#allocation128_spill] sm:$0xff]  ;;  %9374 = vmatpush3.msra.mxu1 %v9021_v58 }
 0x481   : > { %16910 = vst [vmem:[#allocation197_spill] sm:$0xff] %v12355_v48  ;;  %9375 = vmatprep.subr.mxu1 %v9020_v37 }
 0x482   : > { %v12360_v10 = vpop.permute.xlu1 %3056  ;;  %3294 = vrot.lane.b32.xlu0 %v16912_v34, %s9654_s30  ;;  %v16916_v34 = vld [vmem:[#allocation186_spill] sm:$0xff]  ;;  %9376 = vmatpush3.msra.mxu1 %v9020_v37  ;;  %v2571_v37 = vld [vmem:[#allocation2 + $0x3a] sm:$0xff] }
 0x483   : > { %16911 = vst [vmem:[#allocation138_spill] sm:$0xff] %v12360_v10 }
 0x484   : > { %3300 = vrot.lane.b32.xlu1 %v16913_v38, %s9654_s30  ;;  %v12369_v14 = vpop.permute.xlu0 %3054 }
 0x485   : > { %16914 = vst [vmem:[#allocation66_spill] sm:$0xff] %v12369_v14  ;;  %v16920_v14 = vld [vmem:[#allocation61_spill] sm:$0xff] }
 0x486   : > { %v12374_v10 = vpop.permute.xlu1 %3060  ;;  %3298 = vrot.lane.b32.xlu0 %v16916_v34, %s9654_s30 }
 0x487   : > { %16915 = vst [vmem:[#allocation196_spill] sm:$0xff] %v12374_v10  ;;  %v2538_v10 = vld [vmem:[#allocation2 + $0x31] sm:$0xff] }
 0x488   : > { %3304 = vrot.lane.b32.xlu1 %v16917_v26, %s9654_s30  ;;  %v12380_v48 = vpop.permute.xlu0 %3058  ;;  %v2570_v26 = vld [vmem:[#allocation2 + $0x32] sm:$0xff] }
 0x489   : > { %16918 = vst [vmem:[#allocation83_spill] sm:$0xff] %v12380_v48 }
 0x48a   : > { %v12382_v38 = vpop.permute.xlu1 %3064  ;;  %3302 = vrot.lane.b32.xlu0 %v16920_v14, %s9654_s30  ;;  %v2541_v14 = vld [vmem:[#allocation2 + $0x51] sm:$0xff] }
 0x48b   : > { %16919 = vst [vmem:[#allocation64_spill] sm:$0xff] %v12382_v38 }
 0x48c   : > { %3404 = vrot.lane.b32.xlu1 %v2539_v33, %s9655_s6  ;;  %v12387_v58 = vpop.permute.xlu0 %3062 }
 0x48d   : > { %16921 = vst [vmem:[#allocation153_spill] sm:$0xff] %v12387_v58  ;;  %v2540_v58 = vld [vmem:[#allocation2 + $0x49] sm:$0xff] }
 0x48e   : > { %v12389_v49 = vpop.permute.xlu1 %3068  ;;  %3402 = vrot.lane.b32.xlu0 %v2538_v10, %s9655_s6  ;;  %v2573_v10 = vld [vmem:[#allocation2 + $0x52] sm:$0xff] }
 0x48f   : > { %16922 = vst [vmem:[#allocation81_spill] sm:$0xff] %v12389_v49  ;;  %v2572_v49 = vld [vmem:[#allocation2 + $0x4a] sm:$0xff] }
 0x490   : > { %3532 = vrot.lane.b32.xlu1 %v2571_v37, %s9656_s17  ;;  %v12393_v34 = vpop.permute.xlu0 %3066 }
 0x491   : > { %16923 = vst [vmem:[#allocation120_spill] sm:$0xff] %v12393_v34 }
 0x492   : > { %v12395_v38 = vpop.permute.xlu1 %3072  ;;  %3530 = vrot.lane.b32.xlu0 %v2570_v26, %s9656_s17  ;;  %v2543_v26 = vld [vmem:[#allocation2 + $0x69] sm:$0xff] }
 0x493   : > { %16924 = vst [vmem:[#allocation152_spill] sm:$0xff] %v12395_v38  ;;  %v2542_v38 = vld [vmem:[#allocation2 + $0x61] sm:$0xff] }
 0x494   : > { %3408 = vrot.lane.b32.xlu1 %v2541_v14, %s9655_s6  ;;  %v12399_v33 = vpop.permute.xlu0 %3070 }
 0x495   : > { %16925 = vst [vmem:[#allocation176_spill] sm:$0xff] %v12399_v33 }
 0x496   : > { %v12401_v48 = vpop.permute.xlu1 %3076  ;;  %3406 = vrot.lane.b32.xlu0 %v2540_v58, %s9655_s6  ;;  %v2575_v58 = vld [vmem:[#allocation2 + $0x6a] sm:$0xff] }
 0x497   : > { %16926 = vst [vmem:[#allocation119_spill] sm:$0xff] %v12401_v48  ;;  %v2574_v48 = vld [vmem:[#allocation2 + $0x62] sm:$0xff] }
 0x498   : > { %3536 = vrot.lane.b32.xlu1 %v2573_v10, %s9656_s17  ;;  %v12405_v37 = vpop.permute.xlu0 %3074 }
 0x499   : > { %16927 = vst [vmem:[#allocation141_spill] sm:$0xff] %v12405_v37 }
 0x49a   : > { %v12407_v34 = vpop.permute.xlu1 %3080  ;;  %3534 = vrot.lane.b32.xlu0 %v2572_v49, %s9656_s17  ;;  %v2545_v49 = vld [vmem:[#allocation2 + $0x81] sm:$0xff] }
 0x49b   : > { %16928 = vst [vmem:[#allocation175_spill] sm:$0xff] %v12407_v34  ;;  %v2544_v34 = vld [vmem:[#allocation2 + $0x79] sm:$0xff] }
 0x49c   : > { %3412 = vrot.lane.b32.xlu1 %v2543_v26, %s9655_s6  ;;  %v12411_v14 = vpop.permute.xlu0 %3078 }
 0x49d   : > { %16929 = vst [vmem:[#allocation199_spill] sm:$0xff] %v12411_v14 }
 0x49e   : > { %v12413_v33 = vpop.permute.xlu1 %3148  ;;  %3410 = vrot.lane.b32.xlu0 %v2542_v38, %s9655_s6  ;;  %v2577_v38 = vld [vmem:[#allocation2 + $0x82] sm:$0xff] }
 0x4a0   : > { %3540 = vrot.lane.b32.xlu1 %v2575_v58, %s9656_s17  ;;  %v12417_v10 = vpop.permute.xlu0 %3146 }
 0x4a2   : > { %v12419_v37 = vpop.permute.xlu1 %3152  ;;  %3538 = vrot.lane.b32.xlu0 %v2574_v48, %s9656_s17  ;;  %v2547_v48 = vld [vmem:[#allocation2 + $0x99] sm:$0xff] }
 0x4a4   : > { %3416 = vrot.lane.b32.xlu1 %v2545_v49, %s9655_s6  ;;  %v12423_v26 = vpop.permute.xlu0 %3150 }
 0x4a6   : > { %v12425_v14 = vpop.permute.xlu1 %3156  ;;  %3414 = vrot.lane.b32.xlu0 %v2544_v34, %s9655_s6  ;;  %v2579_v34 = vld [vmem:[#allocation2 + $0x9a] sm:$0xff] }
 0x4a8   : > { %3544 = vrot.lane.b32.xlu1 %v2577_v38, %s9656_s17  ;;  %v12429_v58 = vpop.permute.xlu0 %3154 }
 0x4aa   : > { %v12431_v42 = vpop.permute.xlu1 %3160  ;;  %3542 = vrot.lane.b32.xlu0 %v2576_v29, %s9656_s17  ;;  %v2549_v29 = vld [vmem:[#allocation2 + $0xb1] sm:$0xff] }
 0x4ac   : > { %3420 = vrot.lane.b32.xlu1 %v2547_v48, %s9655_s6  ;;  %v12435_v49 = vpop.permute.xlu0 %3158 }
 0x4ae   : > { %v12437_v1 = vpop.permute.xlu1 %3164  ;;  %3418 = vrot.lane.b32.xlu0 %v2546_v20, %s9655_s6  ;;  %v2581_v20 = vld [vmem:[#allocation2 + $0xb2] sm:$0xff] }
 0x4af   : > { %16930 = vst [vmem:[#allocation140_spill] sm:$0xff] %v12437_v1  ;;  %v2563_v1 = vld [vmem:[#allocation2 + $0x159] sm:$0xff] }
 0x4b0   : > { %3548 = vrot.lane.b32.xlu1 %v2579_v34, %s9656_s17  ;;  %v12441_v38 = vpop.permute.xlu0 %3162 }
 0x4b1   : > { %16931 = vst [vmem:[#allocation70_spill] sm:$0xff] %v12441_v38  ;;  %v16965_v38 = vld [vmem:[#allocation50_spill] sm:$0xff] }
 0x4b2   : > { %v12443_v31 = vpop.permute.xlu1 %3168  ;;  %3546 = vrot.lane.b32.xlu0 %v2578_v61, %s9656_s17  ;;  %v2551_v61 = vld [vmem:[#allocation2 + $0xc9] sm:$0xff] }
 0x4b3   : > { %16932 = vst [vmem:[#allocation198_spill] sm:$0xff] %v12443_v31  ;;  %v2590_v31 = vld [vmem:[#allocation2 + $0x122] sm:$0xff] }
 0x4b4   : > { %3424 = vrot.lane.b32.xlu1 %v2549_v29, %s9655_s6  ;;  %v12447_v48 = vpop.permute.xlu0 %3166 }
 0x4b5   : > { %16933 = vst [vmem:[#allocation87_spill] sm:$0xff] %v12447_v48 }
 0x4b6   : > { %v12449_v4 = vpop.permute.xlu1 %3172  ;;  %3422 = vrot.lane.b32.xlu0 %v2548_v32, %s9655_s6  ;;  %v2583_v32 = vld [vmem:[#allocation2 + $0xca] sm:$0xff] }
 0x4b7   : > { %16934 = vst [vmem:[#allocation68_spill] sm:$0xff] %v12449_v4  ;;  %v2582_v4 = vld [vmem:[#allocation2 + $0xc2] sm:$0xff] }
 0x4b8   : > { %3552 = vrot.lane.b32.xlu1 %v2581_v20, %s9656_s17  ;;  %v12453_v34 = vpop.permute.xlu0 %3170 }
 0x4b9   : > { %16935 = vst [vmem:[#allocation155_spill] sm:$0xff] %v12453_v34 }
 0x4ba   : > { %v12455_v30 = vpop.permute.xlu1 %3176  ;;  %3550 = vrot.lane.b32.xlu0 %v2580_v44, %s9656_s17  ;;  %v2553_v44 = vld [vmem:[#allocation2 + $0xe1] sm:$0xff] }
 0x4bb   : > { %16936 = vst [vmem:[#allocation85_spill] sm:$0xff] %v12455_v30  ;;  %v2552_v30 = vld [vmem:[#allocation2 + $0xd9] sm:$0xff] }
 0x4bc   : > { %3428 = vrot.lane.b32.xlu1 %v2551_v61, %s9655_s6  ;;  %v12459_v29 = vpop.permute.xlu0 %3174 }
 0x4bd   : > { %16937 = vst [vmem:[#allocation122_spill] sm:$0xff] %v12459_v29 }
 0x4be   : > { %v12461_v12 = vpop.permute.xlu1 %3180  ;;  %3426 = vrot.lane.b32.xlu0 %v2550_v59, %s9655_s6  ;;  %v2585_v59 = vld [vmem:[#allocation2 + $0xe2] sm:$0xff] }
 0x4bf   : > { %16938 = vst [vmem:[#allocation154_spill] sm:$0xff] %v12461_v12  ;;  %v2584_v12 = vld [vmem:[#allocation2 + $0xda] sm:$0xff] }
 0x4c0   : > { %3556 = vrot.lane.b32.xlu1 %v2583_v32, %s9656_s17  ;;  %v12465_v20 = vpop.permute.xlu0 %3178 }
 0x4c1   : > { %16939 = vst [vmem:[#allocation178_spill] sm:$0xff] %v12465_v20 }
 0x4c2   : > { %v12467_v34 = vpop.permute.xlu1 %3184  ;;  %3554 = vrot.lane.b32.xlu0 %v2582_v4, %s9656_s17  ;;  %v2523_v4 = vld [vmem:[#allocation2 + $0xf8] sm:$0xff] }
 0x4c3   : > { %16940 = vst [vmem:[#allocation121_spill] sm:$0xff] %v12467_v34  ;;  %v2522_v34 = vld [vmem:[#allocation2 + $0xf0] sm:$0xff] }
 0x4c4   : > { %3432 = vrot.lane.b32.xlu1 %v2553_v44, %s9655_s6  ;;  %v12471_v61 = vpop.permute.xlu0 %3182 }
 0x4c5   : > { %16941 = vst [vmem:[#allocation143_spill] sm:$0xff] %v12471_v61 }
 0x4c6   : > { %v12473_v29 = vpop.permute.xlu1 %3188  ;;  %3430 = vrot.lane.b32.xlu0 %v2552_v30, %s9655_s6  ;;  %v2555_v30 = vld [vmem:[#allocation2 + $0xf9] sm:$0xff] }
 0x4c7   : > { %16942 = vst [vmem:[#allocation177_spill] sm:$0xff] %v12473_v29  ;;  %v2554_v29 = vld [vmem:[#allocation2 + $0xf1] sm:$0xff] }
 0x4c8   : > { %3560 = vrot.lane.b32.xlu1 %v2585_v59, %s9656_s17  ;;  %v12477_v32 = vpop.permute.xlu0 %3186 }
 0x4c9   : > { %16943 = vst [vmem:[#allocation201_spill] sm:$0xff] %v12477_v32 }
 0x4ca   : > { %v12479_v20 = vpop.permute.xlu1 %3192  ;;  %3558 = vrot.lane.b32.xlu0 %v2584_v12, %s9656_s17  ;;  %v2587_v12 = vld [vmem:[#allocation2 + $0xfa] sm:$0xff] }
 0x4cb   : > { %16944 = vst [vmem:[#allocation142_spill] sm:$0xff] %v12479_v20  ;;  %v2586_v20 = vld [vmem:[#allocation2 + $0xf2] sm:$0xff] }
 0x4cc   : > { %3308 = vrot.lane.b32.xlu1 %v2523_v4, %s9654_s30  ;;  %v12483_v44 = vpop.permute.xlu0 %3190 }
 0x4cd   : > { %16945 = vst [vmem:[#allocation74_spill] sm:$0xff] %v12483_v44 }
 0x4ce   : > { %v12485_v61 = vpop.permute.xlu1 %3196  ;;  %3306 = vrot.lane.b32.xlu0 %v2522_v34, %s9654_s30  ;;  %v2525_v34 = vld [vmem:[#allocation2 + $0x110] sm:$0xff] }
 0x4cf   : > { %16946 = vst [vmem:[#allocation200_spill] sm:$0xff] %v12485_v61  ;;  %v2524_v61 = vld [vmem:[#allocation2 + $0x108] sm:$0xff] }
 0x4d0   : > { %3436 = vrot.lane.b32.xlu1 %v2555_v30, %s9655_s6  ;;  %v12489_v59 = vpop.permute.xlu0 %3194 }
 0x4d1   : > { %16947 = vst [vmem:[#allocation91_spill] sm:$0xff] %v12489_v59 }
 0x4d2   : > { %v12491_v32 = vpop.permute.xlu1 %3200  ;;  %3434 = vrot.lane.b32.xlu0 %v2554_v29, %s9655_s6  ;;  %v2557_v29 = vld [vmem:[#allocation2 + $0x111] sm:$0xff] }
 0x4d3   : > { %16948 = vst [vmem:[#allocation72_spill] sm:$0xff] %v12491_v32  ;;  %v2556_v32 = vld [vmem:[#allocation2 + $0x109] sm:$0xff] }
 0x4d4   : > { %3564 = vrot.lane.b32.xlu1 %v2587_v12, %s9656_s17  ;;  %v12495_v4 = vpop.permute.xlu0 %3198 }
 0x4d5   : > { %16949 = vst [vmem:[#allocation157_spill] sm:$0xff] %v12495_v4 }
 0x4d6   : > { %v12497_v44 = vpop.permute.xlu1 %3204  ;;  %3562 = vrot.lane.b32.xlu0 %v2586_v20, %s9656_s17  ;;  %v2589_v20 = vld [vmem:[#allocation2 + $0x112] sm:$0xff] }
 0x4d7   : > { %16950 = vst [vmem:[#allocation89_spill] sm:$0xff] %v12497_v44  ;;  %v2588_v44 = vld [vmem:[#allocation2 + $0x10a] sm:$0xff] }
 0x4d8   : > { %3312 = vrot.lane.b32.xlu1 %v2525_v34, %s9654_s30  ;;  %v12501_v30 = vpop.permute.xlu0 %3202 }
 0x4d9   : > { %16951 = vst [vmem:[#allocation124_spill] sm:$0xff] %v12501_v30 }
 0x4da   : > { %v12503_v59 = vpop.permute.xlu1 %3208  ;;  %3310 = vrot.lane.b32.xlu0 %v2524_v61, %s9654_s30  ;;  %v2527_v61 = vld [vmem:[#allocation2 + $0x128] sm:$0xff] }
 0x4db   : > { %16952 = vst [vmem:[#allocation156_spill] sm:$0xff] %v12503_v59  ;;  %v2526_v59 = vld [vmem:[#allocation2 + $0x120] sm:$0xff] }
 0x4dc   : > { %3440 = vrot.lane.b32.xlu1 %v2557_v29, %s9655_s6  ;;  %v12507_v12 = vpop.permute.xlu0 %3206 }
 0x4dd   : > { %16953 = vst [vmem:[#allocation180_spill] sm:$0xff] %v12507_v12 }
 0x4de   : > { %v12509_v4 = vpop.permute.xlu1 %3276  ;;  %3438 = vrot.lane.b32.xlu0 %v2556_v32, %s9655_s6  ;;  %v2559_v32 = vld [vmem:[#allocation2 + $0x129] sm:$0xff] }
 0x4e0   : > { %3568 = vrot.lane.b32.xlu1 %v2589_v20, %s9656_s17  ;;  %v12513_v34 = vpop.permute.xlu0 %3274 }
 0x4e2   : > { %v12515_v30 = vpop.permute.xlu1 %3280  ;;  %3566 = vrot.lane.b32.xlu0 %v2588_v44, %s9656_s17  ;;  %v2591_v44 = vld [vmem:[#allocation2 + $0x12a] sm:$0xff] }
 0x4e4   : > { %3316 = vrot.lane.b32.xlu1 %v2527_v61, %s9654_s30  ;;  %v12519_v29 = vpop.permute.xlu0 %3278 }
 0x4e6   : > { %v12521_v12 = vpop.permute.xlu1 %3284  ;;  %3314 = vrot.lane.b32.xlu0 %v2526_v59, %s9654_s30  ;;  %v2529_v59 = vld [vmem:[#allocation2 + $0x140] sm:$0xff] }
 0x4e8   : > { %3444 = vrot.lane.b32.xlu1 %v2559_v32, %s9655_s6  ;;  %v12525_v20 = vpop.permute.xlu0 %3282 }
 0x4ea   : > { %v12527_v22 = vpop.permute.xlu1 %3288  ;;  %3442 = vrot.lane.b32.xlu0 %v2558_v3, %s9655_s6  ;;  %v2561_v3 = vld [vmem:[#allocation2 + $0x141] sm:$0xff] }
 0x4ec   : > { %3572 = vrot.lane.b32.xlu1 %v2591_v44, %s9656_s17  ;;  %v12531_v61 = vpop.permute.xlu0 %3286 }
 0x4ee   : > { %v12533_v48 = vpop.permute.xlu1 %3292  ;;  %3570 = vrot.lane.b32.xlu0 %v2590_v31, %s9656_s17  ;;  %v2593_v31 = vld [vmem:[#allocation2 + $0x142] sm:$0xff] }
 0x4ef   : > { %16954 = vst [vmem:[#allocation123_spill] sm:$0xff] %v12533_v48  ;;  %v16962_v48 = vld [vmem:[#allocation38_spill] sm:$0xff] }
 0x4f0   : > { %3320 = vrot.lane.b32.xlu1 %v2529_v59, %s9654_s30  ;;  %v12537_v32 = vpop.permute.xlu0 %3290 }
 0x4f1   : > { %16955 = vst [vmem:[#allocation145_spill] sm:$0xff] %v12537_v32 }
 0x4f2   : > { %v12539_v55 = vpop.permute.xlu1 %3296  ;;  %3318 = vrot.lane.b32.xlu0 %v2528_v8, %s9654_s30  ;;  %v2314_v8 = vld [vmem:[#allocation2] sm:$0xff] }
 0x4f3   : > { %16956 = vst [vmem:[#allocation179_spill] sm:$0xff] %v12539_v55  ;;  %v2531_v55 = vld [vmem:[#allocation2 + $0x158] sm:$0xff] }
 0x4f4   : > { %3448 = vrot.lane.b32.xlu1 %v2561_v3, %s9655_s6  ;;  %v12543_v44 = vpop.permute.xlu0 %3294  ;;  %v2315_v3 = vld [vmem:[#allocation2 + $0x8] sm:$0xff] }
 0x4f5   : > { %16957 = vst [vmem:[#allocation35_spill] sm:$0xff] %v12543_v44 }
 0x4f6   : > { %v12545_v35 = vpop.permute.xlu1 %3300  ;;  %3446 = vrot.lane.b32.xlu0 %v2560_v17, %s9655_s6  ;;  %v3626_v17 = vsel %vm225_vm0, %v2314_v8, %v16962_v48  ;;  %v2562_v8 = vld [vmem:[#allocation2 + $0x151] sm:$0xff] }
 0x4f7   : > { %16958 = vst [vmem:[#allocation144_spill] sm:$0xff] %v12545_v35  ;;  %v2530_v35 = vld [vmem:[#allocation2 + $0x150] sm:$0xff] }
 0x4f8   : > { %3576 = vrot.lane.b32.xlu1 %v2593_v31, %s9656_s17  ;;  %v12549_v59 = vpop.permute.xlu0 %3298  ;;  %v16963_v31 = vld [vmem:[#allocation36_spill] sm:$0xff] }
 0x4f9   : > { %16959 = vst [vmem:[#allocation78_spill] sm:$0xff] %v12549_v59  ;;  %v3627_v59 = vsel %vm225_vm0, %v2315_v3, %v16963_v31  ;;  %v16966_v31 = vld [vmem:[#allocation101_spill] sm:$0xff] }
 0x4fa   : > { %v12551_v46 = vpop.permute.xlu1 %3304  ;;  %3574 = vrot.lane.b32.xlu0 %v2592_v9, %s9656_s17  ;;  %v3659_v63 = vsel %vm1681_vm4, %v3627_v59, %v16965_v38  ;;  %v2594_v59 = vld [vmem:[#allocation2 + $0x152] sm:$0xff] }
 0x4fb   : > { %16960 = vst [vmem:[#allocation202_spill] sm:$0xff] %v12551_v46  ;;  %v16964_v46 = vld [vmem:[#allocation188_spill] sm:$0xff]  ;;  %v3691_v48 = vsel %vm1714_vm5, %v3659_v63, %v12141_v57 }
 0x4fc   : > { %3324 = vrot.lane.b32.xlu1 %v2531_v55, %s9654_s30  ;;  %v12555_v44 = vpop.permute.xlu0 %3302  ;;  %v3658_v9 = vsel %vm1681_vm4, %v3626_v17, %v16964_v46  ;;  %v3723_v46 = vsel %vm1747_vm6, %v3691_v48, %v12273_v45  ;;  %v2595_v57 = vld [vmem:[#allocation2 + $0x15a] sm:$0xff] }
 0x4fd   : > { %16961 = vst [vmem:[#allocation95_spill] sm:$0xff] %v12555_v44  ;;  %v3690_v55 = vsel %vm1714_vm5, %v3658_v9, %v12147_v5  ;;  %v3755_v5 = vsel %vm1780_vm7, %v3723_v46, %v12413_v33  ;;  %v16967_v9 = vld [vmem:[#allocation51_spill] sm:$0xff] }
 0x4fe   : > { %v3405_v32 = vpop.permute.xlu1 %3404  ;;  %3322 = vrot.lane.b32.xlu0 %v2530_v35, %s9654_s30  ;;  %v3722_v35 = vsel %vm1747_vm6, %v3690_v55, %v12279_v41  ;;  %v3787_v41 = vsel %vm1813_vm8, %v3755_v5, %v12509_v4  ;;  %v3628_v33 = vsel %vm225_vm0, %v16967_v9, %v16966_v31  ;;  %v16968_v4 = vld [vmem:[#allocation42_spill] sm:$0xff] }
 0x4ff   : > { %v3754_v3 = vsel %vm1780_vm7, %v3722_v35, %v12417_v10  ;;  %v3819_v10 = vsel %vm1846_vm9, %v3787_v41, %v3405_v32  ;;  %v3660_v32 = vsel %vm1681_vm4, %v3628_v33, %v12030_v25  ;;  %v2533_v35 = vld [vmem:[#allocation2 + $0x170] sm:$0xff] }
 0x500   : > { %3452 = vrot.lane.b32.xlu1 %v2563_v1, %s9655_s6  ;;  %v3403_v44 = vpop.permute.xlu0 %3402  ;;  %v3786_v1 = vsel %vm1813_vm8, %v3754_v3, %v12513_v34  ;;  %v3692_v46 = vsel %vm1714_vm5, %v3660_v32, %v12155_v24  ;;  %v2597_v33 = vld [vmem:[#allocation2 + $0x172] sm:$0xff] }
 0x501   : > { %v3818_v63 = vsel %vm1846_vm9, %v3786_v1, %v3403_v44  ;;  %v16969_v44 = vld [vmem:[#allocation46_spill] sm:$0xff]  ;;  %v3724_v5 = vsel %vm1747_vm6, %v3692_v46, %v12287_v2  ;;  %v2534_v46 = vld [vmem:[#allocation2 + $0x180] sm:$0xff] }
 0x502   : > { %v3533_v38 = vpop.permute.xlu1 %3532  ;;  %3450 = vrot.lane.b32.xlu0 %v2562_v8, %s9655_s6  ;;  %v3629_v48 = vsel %vm225_vm0, %v16969_v44, %v16968_v4  ;;  %v2532_v1 = vld [vmem:[#allocation2 + $0x168] sm:$0xff] }
 0x503   : > { %v3851_v34 = vsel %vm1879_vm10, %v3819_v10, %v3533_v38  ;;  %v3661_v8 = vsel %vm1681_vm4, %v3629_v48, %v12026_v51  ;;  %v2564_v10 = vld [vmem:[#allocation2 + $0x169] sm:$0xff] }
 0x504   : > { %3580 = vrot.lane.b32.xlu1 %v2595_v57, %s9656_s17  ;;  %v3531_v45 = vpop.permute.xlu0 %3530  ;;  %v3693_v38 = vsel %vm1714_vm5, %v3661_v8, %v12149_v56  ;;  %v3756_v57 = vsel %vm1780_vm7, %v3724_v5, %v12423_v26  ;;  %v2565_v56 = vld [vmem:[#allocation2 + $0x171] sm:$0xff] }
 0x505   : > { %v3850_v17 = vsel %vm1879_vm10, %v3818_v63, %v3531_v45  ;;  %v3725_v25 = vsel %vm1747_vm6, %v3693_v38, %v12281_v53  ;;  %v3788_v41 = vsel %vm1813_vm8, %v3756_v57, %v12519_v29  ;;  %v2596_v44 = vld [vmem:[#allocation2 + $0x16a] sm:$0xff]  ;;  %v16972_v38 = vld [vmem:[#allocation104_spill] sm:$0xff] }
 0x506   : > { %v3409_v55 = vpop.permute.xlu1 %3408  ;;  %3578 = vrot.lane.b32.xlu0 %v2594_v59, %s9656_s17  ;;  %9377 = vmatprep.mubr.msk.f32.mxu1 %vm1924_vm11, %v3850_v17  ;;  %v3757_v24 = vsel %vm1780_vm7, %v3725_v25, %v12419_v37  ;;  %v16970_v59 = vld [vmem:[#allocation103_spill] sm:$0xff] }
 0x507   : > { %9378 = vmatmul.mubr.msk.f32.vlgmr.msra.gmra.mxu1 %vm1924_vm11, %v3851_v34  ;;  %v3789_v2 = vsel %vm1813_vm8, %v3757_v24, %v12515_v30  ;;  %v3630_v37 = vsel %vm225_vm0, %v16893_v21, %v16970_v59  ;;  %v16971_v30 = vld [vmem:[#allocation45_spill] sm:$0xff] }
 0x508   : > { %3328 = vrot.lane.b32.xlu1 %v2533_v35, %s9654_s30  ;;  %v3407_v3 = vpop.permute.xlu0 %3406  ;;  %v3821_v26 = vsel %vm1846_vm9, %v3789_v2, %v3409_v55  ;;  %v3631_v31 = vsel %vm225_vm0, %v16891_v60, %v16971_v30  ;;  %v3662_v9 = vsel %vm1681_vm4, %v3630_v37, %v12036_v62 }
 0x509   : > { %v3820_v63 = vsel %vm1846_vm9, %v3788_v41, %v3407_v3  ;;  %v3663_v21 = vsel %vm1681_vm4, %v3631_v31, %v12032_v15  ;;  %v3694_v34 = vsel %vm1714_vm5, %v3662_v9, %v12165_v36  ;;  %v9613_v3 = vld [vmem:[#allocation2 + $0x48] sm:$0xff] }
 0x50a   : > { %v3537_v51 = vpop.permute.xlu1 %3536  ;;  %3326 = vrot.lane.b32.xlu0 %v2532_v1, %s9654_s30  ;;  %v3695_v4 = vsel %vm1714_vm5, %v3663_v21, %v12157_v11  ;;  %v3726_v60 = vsel %vm1747_vm6, %v3694_v34, %v12297_v28  ;;  %v2535_v11 = vld [vmem:[#allocation2 + $0x188] sm:$0xff]  ;;  %v16973_v1 = vld [vmem:[#allocation48_spill] sm:$0xff] }
 0x50b   : > { %v3853_v29 = vsel %vm1879_vm10, %v3821_v26, %v3537_v51  ;;  %v3727_v62 = vsel %vm1747_vm6, %v3695_v4, %v12289_v6  ;;  %v3758_v48 = vsel %vm1780_vm7, %v3726_v60, %v12429_v58  ;;  %v9615_v26 = vld [vmem:[#allocation2 + $0x60] sm:$0xff]  ;;  %v16977_v34 = vld [vmem:[#allocation70_spill] sm:$0xff] }
 0x50c   : > { %3456 = vrot.lane.b32.xlu1 %v2565_v56, %s9655_s6  ;;  %v3535_v53 = vpop.permute.xlu0 %3534  ;;  %v3759_v36 = vsel %vm1780_vm7, %v3727_v62, %v12425_v14  ;;  %v3790_v32 = vsel %vm1813_vm8, %v3758_v48, %v12525_v20  ;;  %v3632_v14 = vsel %vm225_vm0, %v9613_v3, %v16972_v38  ;;  %v16979_v60 = vld [vmem:[#allocation145_spill] sm:$0xff]  ;;  %v16980_v62 = vld [vmem:[#allocation123_spill] sm:$0xff]  ;;  %v16982_v3 = vld [vmem:[#allocation106_spill] sm:$0xff] }
 0x50d   : > { %v3852_v45 = vsel %vm1879_vm10, %v3820_v63, %v3535_v53  ;;  %v3791_v28 = vsel %vm1813_vm8, %v3759_v36, %v12521_v12  ;;  %v9614_v12 = vld [vmem:[#allocation2 + $0x50] sm:$0xff]  ;;  %v3664_v57 = vsel %vm1681_vm4, %v3632_v14, %v12043_v18 }
 0x50e   : > { %v3413_v17 = vpop.permute.xlu1 %3412  ;;  %3454 = vrot.lane.b32.xlu0 %v2564_v10, %s9655_s6  ;;  %9380 = vmatprep.mubr.msk.f32.mxu1 %vm1924_vm11, %v3852_v45  ;;  %v3633_v25 = vsel %vm225_vm0, %v9614_v12, %v16973_v1  ;;  %v3696_v24 = vsel %vm1714_vm5, %v3664_v57, %v12175_v54  ;;  %v16974_v45 = vld [vmem:[#allocation84_spill] sm:$0xff]  ;;  %v16983_v14 = vld [vmem:[#allocation47_spill] sm:$0xff] }
 0x50f   : > { %9381 = vmatmul.mubr.msk.f32.gmra.mxu1 %vm1924_vm11, %v3853_v29  ;;  %v3823_v58 = vsel %vm1846_vm9, %v3791_v28, %v3413_v17  ;;  %v3665_v51 = vsel %vm1681_vm4, %v3633_v25, %v12038_v7  ;;  %v3728_v2 = vsel %vm1747_vm6, %v3696_v24, %v12307_v43  ;;  %v2536_v29 = vld [vmem:[#allocation2 + $0x198] sm:$0xff]  ;;  %v16984_v12 = vld [vmem:[#allocation67_spill] sm:$0xff]  ;;  %v16985_v25 = vld [vmem:[#allocation169_spill] sm:$0xff] }
 0x510   : > { %3584 = vrot.lane.b32.xlu1 %v2597_v33, %s9656_s17  ;;  %v3411_v55 = vpop.permute.xlu0 %3410  ;;  %v3697_v56 = vsel %vm1714_vm5, %v3665_v51, %v12169_v16  ;;  %v3760_v63 = vsel %vm1780_vm7, %v3728_v2, %v12435_v49  ;;  %v2569_v33 = vld [vmem:[#allocation2 + $0x1a1] sm:$0xff]  ;;  %v9617_v28 = vld [vmem:[#allocation2 + $0x78] sm:$0xff]  ;;  %v16986_v24 = vld [vmem:[#allocation135_spill] sm:$0xff] }
 0x511   : > { %v3822_v35 = vsel %vm1846_vm9, %v3790_v32, %v3411_v55  ;;  %v3729_v18 = vsel %vm1747_vm6, %v3697_v56, %v12301_v50  ;;  %v3792_v54 = vsel %vm1813_vm8, %v3760_v63, %v12531_v61  ;;  %v16987_v56 = vld [vmem:[#allocation118_spill] sm:$0xff] }
 0x512   : > { %v3541_v15 = vpop.permute.xlu1 %3540  ;;  %3582 = vrot.lane.b32.xlu0 %v2596_v44, %s9656_s17 }
 0x513   : > { %v3855_v20 = vsel %vm1879_vm10, %v3823_v58, %v3541_v15 }
 0x514   : > { %3332 = vrot.lane.b32.xlu1 %v2535_v11, %s9654_s30  ;;  %v3539_v6 = vpop.permute.xlu0 %3538  ;;  %v2601_v11 = vld [vmem:[#allocation2 + $0x1a2] sm:$0xff] }
 0x515   : > { %v3854_v8 = vsel %vm1879_vm10, %v3822_v35, %v3539_v6  ;;  %v16981_v35 = vld [vmem:[#allocation162_spill] sm:$0xff] }
 0x516   : > { %v3417_v5 = vpop.permute.xlu1 %3416  ;;  %3330 = vrot.lane.b32.xlu0 %v2534_v46, %s9654_s30  ;;  %9383 = vmatprep.mubr.msk.f32.mxu1 %vm1924_vm11, %v3854_v8  ;;  %v3636_v6 = vsel %vm225_vm0, %v9617_v28, %v16981_v35  ;;  %v9618_v46 = vld [vmem:[#allocation2 + $0x80] sm:$0xff] }
 0x517   : > { %9384 = vmatmul.mubr.msk.f32.gmra.mxu1 %vm1924_vm11, %v3855_v20  ;;  %v3637_v38 = vsel %vm225_vm0, %v9618_v46, %v16982_v3  ;;  %v3668_v20 = vsel %vm1681_vm4, %v3636_v6, %v16983_v14  ;;  %v9621_v46 = vld [vmem:[#allocation2 + $0xa8] sm:$0xff]  ;;  %v17005_v3 = vld [vmem:[#allocation59_spill] sm:$0xff] }
 0x518   : > { %3460 = vrot.lane.b32.xlu1 %v12161_v47, %s9655_s6  ;;  %v3415_v41 = vpop.permute.xlu0 %3414  ;;  %v3761_v47 = vsel %vm1780_vm7, %v3729_v18, %v12431_v42  ;;  %v3634_v42 = vsel %vm225_vm0, %v9615_v26, %v16974_v45  ;;  %v3669_v1 = vsel %vm1681_vm4, %v3637_v38, %v16984_v12  ;;  %v3700_v57 = vsel %vm1714_vm5, %v3668_v20, %v16985_v25  ;;  %v16988_v18 = vld [vmem:[#allocation77_spill] sm:$0xff]  ;;  %v17006_v12 = vld [vmem:[#allocation39_spill] sm:$0xff]  ;;  %v17007_v25 = vld [vmem:[#allocation94_spill] sm:$0xff] }
 0x519   : > { %v3793_v16 = vsel %vm1813_vm8, %v3761_v47, %v12527_v22  ;;  %v3824_v43 = vsel %vm1846_vm9, %v3792_v54, %v3415_v41  ;;  %v9616_v22 = vld [vmem:[#allocation2 + $0x68] sm:$0xff]  ;;  %v3666_v37 = vsel %vm1681_vm4, %v3634_v42, %v12051_v23  ;;  %v16976_v23 = vld [vmem:[#allocation151_spill] sm:$0xff]  ;;  %v3701_v41 = vsel %vm1714_vm5, %v3669_v1, %v16986_v24 }
 0x51a   : > { %v3545_v7 = vpop.permute.xlu1 %3544  ;;  %3458 = vrot.lane.b32.xlu0 %v12167_v13, %s9655_s6  ;;  %v3825_v49 = vsel %vm1846_vm9, %v3793_v16, %v3417_v5  ;;  %v2537_v13 = vld [vmem:[#allocation2 + $0x1a0] sm:$0xff]  ;;  %v3698_v30 = vsel %vm1714_vm5, %v3666_v37, %v12183_v40  ;;  %v16978_v40 = vld [vmem:[#allocation140_spill] sm:$0xff]  ;;  %v3732_v2 = vsel %vm1747_vm6, %v3700_v57, %v16987_v56  ;;  %v3733_v63 = vsel %vm1747_vm6, %v3701_v41, %v16988_v18  ;;  %v16990_v16 = vld [vmem:[#allocation198_spill] sm:$0xff] }
 0x51b   : > { %v3857_v61 = vsel %vm1879_vm10, %v3825_v49, %v3545_v7  ;;  %v3730_v9 = vsel %vm1747_vm6, %v3698_v30, %v12315_v0  ;;  %v2600_v5 = vld [vmem:[#allocation2 + $0x19a] sm:$0xff]  ;;  %v16989_v7 = vld [vmem:[#allocation87_spill] sm:$0xff]  ;;  %v3640_v38 = vsel %vm225_vm0, %v9621_v46, %v17005_v3  ;;  %v17010_v18 = vld [vmem:[#allocation58_spill] sm:$0xff] }
 0x51c   : > { %3588 = vrot.lane.b32.xlu1 %v12293_v27, %s9656_s17  ;;  %v3543_v50 = vpop.permute.xlu0 %3542  ;;  %v16975_v27 = vld [vmem:[#allocation49_spill] sm:$0xff]  ;;  %v3762_v55 = vsel %vm1780_vm7, %v3730_v9, %v16977_v34  ;;  %v3764_v47 = vsel %vm1780_vm7, %v3732_v2, %v16989_v7  ;;  %v16996_v9 = vld [vmem:[#allocation96_spill] sm:$0xff]  ;;  %v3672_v57 = vsel %vm1681_vm4, %v3640_v38, %v17007_v25  ;;  %v17011_v7 = vld [vmem:[#allocation139_spill] sm:$0xff] }
 0x51d   : > { %v3856_v53 = vsel %vm1879_vm10, %v3824_v43, %v3543_v50  ;;  %v3635_v59 = vsel %vm225_vm0, %v9616_v22, %v16975_v27  ;;  %v3794_v44 = vsel %vm1813_vm8, %v3762_v55, %v16979_v60  ;;  %v3765_v43 = vsel %vm1780_vm7, %v3733_v63, %v16990_v16  ;;  %v16991_v50 = vld [vmem:[#allocation35_spill] sm:$0xff]  ;;  %v16993_v22 = vld [vmem:[#allocation185_spill] sm:$0xff]  ;;  %v17000_v60 = vld [vmem:[#allocation150_spill] sm:$0xff] }
 0x51e   : > { %v3421_v10 = vpop.permute.xlu1 %3420  ;;  %3586 = vrot.lane.b32.xlu0 %v12299_v19, %s9656_s17  ;;  %9386 = vmatprep.mubr.msk.f32.mxu1 %vm1924_vm11, %v3856_v53  ;;  %v3667_v17 = vsel %vm1681_vm4, %v3635_v59, %v12045_v39  ;;  %v3796_v49 = vsel %vm1813_vm8, %v3764_v47, %v16991_v50  ;;  %v16992_v53 = vld [vmem:[#allocation179_spill] sm:$0xff]  ;;  %v16998_v55 = vld [vmem:[#allocation193_spill] sm:$0xff]  ;;  %v17009_v41 = vld [vmem:[#allocation192_spill] sm:$0xff] }
 0x51f   : > { %9387 = vmatmul.mubr.msk.f32.gmra.mxu1 %vm1924_vm11, %v3857_v61  ;;  %v3699_v31 = vsel %vm1714_vm5, %v3667_v17, %v12177_v52  ;;  %v2568_v52 = vld [vmem:[#allocation2 + $0x199] sm:$0xff]  ;;  %v16994_v17 = vld [vmem:[#allocation127_spill] sm:$0xff]  ;;  %v3704_v56 = vsel %vm1714_vm5, %v3672_v57, %v17009_v41 }
 0x520   : > { %3336 = vrot.lane.b32.xlu1 %v2537_v13, %s9654_s30  ;;  %v3419_v19 = vpop.permute.xlu0 %3418  ;;  %v3731_v21 = vsel %vm1747_vm6, %v3699_v31, %v16976_v23  ;;  %v3797_v13 = vsel %vm1813_vm8, %v3765_v43, %v16992_v53  ;;  %v16997_v23 = vld [vmem:[#allocation134_spill] sm:$0xff]  ;;  %v3736_v47 = vsel %vm1747_vm6, %v3704_v56, %v17011_v7  ;;  %v17014_v53 = vld [vmem:[#allocation85_spill] sm:$0xff]  ;;  %v17028_v41 = vld [vmem:[#allocation164_spill] sm:$0xff] }
 0x521   : > { %v3763_v4 = vsel %vm1780_vm7, %v3731_v21, %v16978_v40  ;;  %v3826_v48 = vsel %vm1846_vm9, %v3794_v44, %v3419_v19  ;;  %v16995_v19 = vld [vmem:[#allocation65_spill] sm:$0xff]  ;;  %v16999_v40 = vld [vmem:[#allocation174_spill] sm:$0xff] }
 0x522   : > { %v3549_v39 = vpop.permute.xlu1 %3548  ;;  %3334 = vrot.lane.b32.xlu0 %v2536_v29, %s9654_s30  ;;  %v3795_v0 = vsel %vm1813_vm8, %v3763_v4, %v16980_v62  ;;  %v9620_v29 = vld [vmem:[#allocation2 + $0x98] sm:$0xff]  ;;  %v17013_v43 = vld [vmem:[#allocation122_spill] sm:$0xff]  ;;  %v17027_v25 = vld [vmem:[#allocation129_spill] sm:$0xff] }
 0x523   : > { %v3827_v36 = vsel %vm1846_vm9, %v3795_v0, %v3421_v10  ;;  %v9619_v10 = vld [vmem:[#allocation2 + $0x90] sm:$0xff]  ;;  %v3639_v30 = vsel %vm225_vm0, %v9620_v29, %v16994_v17  ;;  %v3768_v50 = vsel %vm1780_vm7, %v3736_v47, %v17013_v43  ;;  %v17031_v47 = vld [vmem:[#allocation73_spill] sm:$0xff] }
 0x524   : > { %3464 = vrot.lane.b32.xlu1 %v2569_v33, %s9655_s6  ;;  %v3547_v15 = vpop.permute.xlu0 %3546  ;;  %v3859_v58 = vsel %vm1879_vm10, %v3827_v36, %v3549_v39  ;;  %v3638_v27 = vsel %vm225_vm0, %v9619_v10, %v16993_v22  ;;  %v3671_v33 = vsel %vm1681_vm4, %v3639_v30, %v16996_v9  ;;  %v17003_v36 = vld [vmem:[#allocation78_spill] sm:$0xff]  ;;  %v9623_v30 = vld [vmem:[#allocation2 + $0xc0] sm:$0xff] }
 0x525   : > { %v3858_v32 = vsel %vm1879_vm10, %v3826_v48, %v3547_v15  ;;  %v3670_v31 = vsel %vm1681_vm4, %v3638_v27, %v16995_v19  ;;  %v3703_v39 = vsel %vm1714_vm5, %v3671_v33, %v16998_v55  ;;  %v17002_v48 = vld [vmem:[#allocation68_spill] sm:$0xff]  ;;  %v9624_v33 = vld [vmem:[#allocation2 + $0xc8] sm:$0xff]  ;;  %v17032_v43 = vld [vmem:[#allocation149_spill] sm:$0xff] }
 0x526   : > { %v3425_v8 = vpop.permute.xlu1 %3424  ;;  %3462 = vrot.lane.b32.xlu0 %v2568_v52, %s9655_s6  ;;  %9389 = vmatprep.mubr.msk.f32.mxu1 %vm1924_vm11, %v3858_v32  ;;  %v3702_v21 = vsel %vm1714_vm5, %v3670_v31, %v16997_v23  ;;  %v3735_v44 = vsel %vm1747_vm6, %v3703_v39, %v17000_v60  ;;  %v17001_v52 = vld [vmem:[#allocation155_spill] sm:$0xff]  ;;  %v17017_v19 = vld [vmem:[#allocation108_spill] sm:$0xff] }
 0x527   : > { %9390 = vmatmul.mubr.msk.f32.gmra.mxu1 %vm1924_vm11, %v3859_v58  ;;  %v3829_v42 = vsel %vm1846_vm9, %v3797_v13, %v3425_v8  ;;  %v3734_v4 = vsel %vm1747_vm6, %v3702_v21, %v16999_v40  ;;  %v3767_v15 = vsel %vm1780_vm7, %v3735_v44, %v17002_v48  ;;  %v3642_v31 = vsel %vm225_vm0, %v9623_v30, %v17017_v19  ;;  %v17018_v23 = vld [vmem:[#allocation88_spill] sm:$0xff]  ;;  %v4316_v30 = vld [vmem:[#allocation2 + $0x1] sm:$0xff] }
 0x528   : > { %3592 = vrot.lane.b32.xlu1 %v2601_v11, %s9656_s17  ;;  %v3423_v51 = vpop.permute.xlu0 %3422  ;;  %v3766_v62 = vsel %vm1780_vm7, %v3734_v4, %v17001_v52  ;;  %v17004_v11 = vld [vmem:[#allocation144_spill] sm:$0xff]  ;;  %v3643_v21 = vsel %vm225_vm0, %v9624_v33, %v17018_v23  ;;  %v17022_v52 = vld [vmem:[#allocation75_spill] sm:$0xff] }
 0x529   : > { %v3828_v26 = vsel %vm1846_vm9, %v3796_v49, %v3423_v51  ;;  %v3798_v32 = vsel %vm1813_vm8, %v3766_v62, %v17003_v36  ;;  %v3799_v28 = vsel %vm1813_vm8, %v3767_v15, %v17004_v11  ;;  %v17008_v51 = vld [vmem:[#allocation112_spill] sm:$0xff]  ;;  %v17024_v15 = vld [vmem:[#allocation173_spill] sm:$0xff] }
 0x52a   : > { %v3553_v54 = vpop.permute.xlu1 %3552  ;;  %3590 = vrot.lane.b32.xlu0 %v2600_v5, %s9656_s17  ;;  %v9622_v5 = vld [vmem:[#allocation2 + $0xb0] sm:$0xff]  ;;  %v17020_v39 = vld [vmem:[#allocation168_spill] sm:$0xff] }
 0x52b   : > { %v3861_v59 = vsel %vm1879_vm10, %v3829_v42, %v3553_v54  ;;  %v3641_v1 = vsel %vm225_vm0, %v9622_v5, %v17006_v12  ;;  %v17012_v54 = vld [vmem:[#allocation117_spill] sm:$0xff]  ;;  %v17016_v42 = vld [vmem:[#allocation202_spill] sm:$0xff]  ;;  %v3675_v40 = vsel %vm1681_vm4, %v3643_v21, %v17020_v39  ;;  %v17021_v4 = vld [vmem:[#allocation56_spill] sm:$0xff] }
 0x52c   : > { %v3551_v45 = vpop.permute.xlu0 %3550  ;;  %v3673_v24 = vsel %vm1681_vm4, %v3641_v1, %v17008_v51  ;;  %v3707_v62 = vsel %vm1714_vm5, %v3675_v40, %v17022_v52  ;;  %v9625_v1 = vld [vmem:[#allocation2 + $0xd8] sm:$0xff]  ;;  %v9627_v21 = vld [vmem:[#allocation2 + $0xf0] sm:$0xff] }
 0x52d   : > { %v3860_v61 = vsel %vm1879_vm10, %v3828_v26, %v3551_v45  ;;  %v3705_v63 = vsel %vm1714_vm5, %v3673_v24, %v17010_v18  ;;  %v17015_v26 = vld [vmem:[#allocation95_spill] sm:$0xff]  ;;  %v3739_v36 = vsel %vm1747_vm6, %v3707_v62, %v17024_v15  ;;  %v3644_v57 = vsel %vm225_vm0, %v9625_v1, %v17027_v25  ;;  %v9626_v24 = vld [vmem:[#allocation2 + $0xe0] sm:$0xff]  ;;  %v9628_v40 = vld [vmem:[#allocation2 + $0xf8] sm:$0xff] }
 0x52e   : > { %v3429_v37 = vpop.permute.xlu1 %3428  ;;  %9392 = vmatprep.mubr.msk.f32.mxu1 %vm1924_vm11, %v3860_v61  ;;  %v3737_v16 = vsel %vm1747_vm6, %v3705_v63, %v17012_v54  ;;  %v3800_v45 = vsel %vm1813_vm8, %v3768_v50, %v17015_v26  ;;  %v3645_v56 = vsel %vm225_vm0, %v9626_v24, %v17028_v41  ;;  %v17030_v63 = vld [vmem:[#allocation133_spill] sm:$0xff]  ;;  %4604 = vrot.lane.b32.xlu0 %v4316_v30, %s9649_s25  ;;  %v17040_v62 = vld [vmem:[#allocation191_spill] sm:$0xff] }
 0x52f   : > { %9393 = vmatmul.mubr.msk.f32.gmra.mxu1 %vm1924_vm11, %v3861_v59  ;;  %v3831_v58 = vsel %vm1846_vm9, %v3799_v28, %v3429_v37  ;;  %v3769_v13 = vsel %vm1780_vm7, %v3737_v16, %v17014_v53  ;;  %v3677_v7 = vsel %vm1681_vm4, %v3645_v56, %v17030_v63  ;;  %v9629_v56 = vld [vmem:[#allocation2 + $0x108] sm:$0xff] }
 0x530   : > { %v3427_v34 = vpop.permute.xlu0 %3426  ;;  %v3801_v61 = vsel %vm1813_vm8, %v3769_v13, %v17016_v42  ;;  %v3709_v50 = vsel %vm1714_vm5, %v3677_v7, %v17032_v43  ;;  %v17034_v13 = vld [vmem:[#allocation138_spill] sm:$0xff]  ;;  %v9630_v7 = vld [vmem:[#allocation2 + $0x110] sm:$0xff] }
 0x531   : > { %v3830_v35 = vsel %vm1846_vm9, %v3798_v32, %v3427_v34  ;;  %v17019_v34 = vld [vmem:[#allocation111_spill] sm:$0xff]  ;;  %v17025_v32 = vld [vmem:[#allocation178_spill] sm:$0xff]  ;;  %v3741_v26 = vsel %vm1747_vm6, %v3709_v50, %v17034_v13 }
 0x532   : > { %v3557_v0 = vpop.permute.xlu1 %3556  ;;  %v3674_v55 = vsel %vm1681_vm4, %v3642_v31, %v17019_v34  ;;  %v17037_v34 = vld [vmem:[#allocation44_spill] sm:$0xff]  ;;  %v17050_v50 = vld [vmem:[#allocation54_spill] sm:$0xff] }
 0x533   : > { %v3863_v14 = vsel %vm1879_vm10, %v3831_v58, %v3557_v0  ;;  %v3706_v60 = vsel %vm1714_vm5, %v3674_v55, %v17021_v4  ;;  %v17023_v0 = vld [vmem:[#allocation197_spill] sm:$0xff]  ;;  %v3646_v55 = vsel %vm225_vm0, %v9627_v21, %v17037_v34  ;;  %v17038_v4 = vld [vmem:[#allocation187_spill] sm:$0xff] }
 0x534   : > { %v3555_v6 = vpop.permute.xlu0 %3554  ;;  %v3738_v48 = vsel %vm1747_vm6, %v3706_v60, %v17023_v0  ;;  %v3647_v60 = vsel %vm225_vm0, %v9628_v40, %v17038_v4  ;;  %v9631_v40 = vld [vmem:[#allocation2 + $0x120] sm:$0xff]  ;;  %v17057_v4 = vld [vmem:[#allocation90_spill] sm:$0xff] }
 0x535   : > { %v3862_v8 = vsel %vm1879_vm10, %v3830_v35, %v3555_v6  ;;  %v3770_v11 = vsel %vm1780_vm7, %v3738_v48, %v17025_v32  ;;  %v17026_v35 = vld [vmem:[#allocation154_spill] sm:$0xff]  ;;  %v3679_v0 = vsel %vm1681_vm4, %v3647_v60, %v17040_v62  ;;  %v17041_v48 = vld [vmem:[#allocation148_spill] sm:$0xff]  ;;  %v3650_v60 = vsel %vm225_vm0, %v9631_v40, %v17057_v4 }
 0x536   : > { %v3433_v20 = vpop.permute.xlu1 %3432  ;;  %9395 = vmatprep.mubr.msk.f32.mxu1 %vm1924_vm11, %v3862_v8  ;;  %v3771_v6 = vsel %vm1780_vm7, %v3739_v36, %v17026_v35  ;;  %v17042_v32 = vld [vmem:[#allocation116_spill] sm:$0xff]  ;;  %v17058_v62 = vld [vmem:[#allocation110_spill] sm:$0xff] }
 0x537   : > { %9396 = vmatmul.mubr.msk.f32.gmra.mxu1 %vm1924_vm11, %v3863_v14  ;;  %v3833_v27 = vsel %vm1846_vm9, %v3801_v61, %v3433_v20 }
 0x538   : > { %v3431_v2 = vpop.permute.xlu0 %3430 }
 0x539   : > { %v3832_v10 = vsel %vm1846_vm9, %v3800_v45, %v3431_v2  ;;  %v17029_v2 = vld [vmem:[#allocation167_spill] sm:$0xff] }
 0x53a   : > { %v3561_v49 = vpop.permute.xlu1 %3560  ;;  %v3676_v18 = vsel %vm1681_vm4, %v3644_v57, %v17029_v2  ;;  %v17035_v45 = vld [vmem:[#allocation143_spill] sm:$0xff]  ;;  %v17047_v2 = vld [vmem:[#allocation92_spill] sm:$0xff] }
 0x53b   : > { %v3865_v37 = vsel %vm1879_vm10, %v3833_v27, %v3561_v49  ;;  %v3708_v54 = vsel %vm1714_vm5, %v3676_v18, %v17031_v47  ;;  %v17033_v49 = vld [vmem:[#allocation66_spill] sm:$0xff]  ;;  %v3648_v18 = vsel %vm225_vm0, %v9629_v56, %v17047_v2  ;;  %v17048_v47 = vld [vmem:[#allocation63_spill] sm:$0xff] }
 0x53c   : > { %v3559_v22 = vpop.permute.xlu0 %3558  ;;  %v3740_v53 = vsel %vm1747_vm6, %v3708_v54, %v17033_v49  ;;  %v3649_v54 = vsel %vm225_vm0, %v9630_v7, %v17048_v47  ;;  %v9633_v7 = vld [vmem:[#allocation2 + $0x138] sm:$0xff]  ;;  %v17067_v47 = vld [vmem:[#allocation109_spill] sm:$0xff] }
 0x53d   : > { %v3864_v59 = vsel %vm1879_vm10, %v3832_v10, %v3559_v22  ;;  %v3772_v42 = vsel %vm1780_vm7, %v3740_v53, %v17035_v45  ;;  %v4317_v10 = vld [vmem:[#allocation2 + $0x9] sm:$0xff]  ;;  %v17036_v22 = vld [vmem:[#allocation121_spill] sm:$0xff]  ;;  %v3681_v49 = vsel %vm1681_vm4, %v3649_v54, %v17050_v50  ;;  %v17052_v45 = vld [vmem:[#allocation172_spill] sm:$0xff]  ;;  %v3652_v54 = vsel %vm225_vm0, %v9633_v7, %v17067_v47 }
 0x53e   : > { %v3309_v29 = vpop.permute.xlu1 %3308  ;;  %9398 = vmatprep.mubr.msk.f32.mxu1 %vm1924_vm11, %v3864_v59  ;;  %v3773_v27 = vsel %vm1780_vm7, %v3741_v26, %v17036_v22  ;;  %4606 = vrot.lane.b32.xlu1 %v4317_v10, %s9649_s25  ;;  %v17051_v53 = vld [vmem:[#allocation115_spill] sm:$0xff]  ;;  %v17054_v22 = vld [vmem:[#allocation64_spill] sm:$0xff]  ;;  %v17068_v50 = vld [vmem:[#allocation166_spill] sm:$0xff] }
 0x53f   : > { %9399 = vmatmul.mubr.msk.f32.gmra.mxu1 %vm1924_vm11, %v3865_v37  ;;  %v3803_v8 = vsel %vm1813_vm8, %v3771_v6, %v3309_v29  ;;  %v17044_v6 = vld [vmem:[#allocation196_spill] sm:$0xff] }
 0x540   : > { %v3307_v17 = vpop.permute.xlu0 %3306 }
 0x541   : > { %v3802_v58 = vsel %vm1813_vm8, %v3770_v11, %v3307_v17  ;;  %v3711_v11 = vsel %vm1714_vm5, %v3679_v0, %v17042_v32 }
 0x542   : > { %v3437_v9 = vpop.permute.xlu1 %3436 }
 0x543   : > { %v3835_v38 = vsel %vm1846_vm9, %v3803_v8, %v3437_v9  ;;  %v17045_v8 = vld [vmem:[#allocation201_spill] sm:$0xff] }
 0x544   : > { %v3435_v44 = vpop.permute.xlu0 %3434 }
 0x545   : > { %v3834_v46 = vsel %vm1846_vm9, %v3802_v58, %v3435_v44  ;;  %v17039_v44 = vld [vmem:[#allocation132_spill] sm:$0xff]  ;;  %v3743_v58 = vsel %vm1747_vm6, %v3711_v11, %v17044_v6  ;;  %v17061_v11 = vld [vmem:[#allocation171_spill] sm:$0xff]  ;;  %v17062_v6 = vld [vmem:[#allocation137_spill] sm:$0xff] }
 0x546   : > { %v3565_v28 = vpop.permute.xlu1 %3564  ;;  %v3678_v52 = vsel %vm1681_vm4, %v3646_v55, %v17039_v44 }
 0x547   : > { %v3867_v20 = vsel %vm1879_vm10, %v3835_v38, %v3565_v28  ;;  %v3710_v15 = vsel %vm1714_vm5, %v3678_v52, %v17041_v48  ;;  %v17043_v28 = vld [vmem:[#allocation83_spill] sm:$0xff]  ;;  %v17046_v38 = vld [vmem:[#allocation177_spill] sm:$0xff]  ;;  %v9632_v52 = vld [vmem:[#allocation2 + $0x128] sm:$0xff] }
 0x548   : > { %v3563_v3 = vpop.permute.xlu0 %3562  ;;  %v3742_v35 = vsel %vm1747_vm6, %v3710_v15, %v17043_v28  ;;  %v3651_v0 = vsel %vm225_vm0, %v9632_v52, %v17058_v62  ;;  %v17059_v48 = vld [vmem:[#allocation52_spill] sm:$0xff]  ;;  %v9635_v52 = vld [vmem:[#allocation2 + $0x150] sm:$0xff]  ;;  %v17077_v62 = vld [vmem:[#allocation165_spill] sm:$0xff] }
 0x549   : > { %v3866_v14 = vsel %vm1879_vm10, %v3834_v46, %v3563_v3  ;;  %v3774_v46 = vsel %vm1780_vm7, %v3742_v35, %v17045_v8  ;;  %v3682_v15 = vsel %vm1681_vm4, %v3650_v60, %v17059_v48  ;;  %v17063_v8 = vld [vmem:[#allocation120_spill] sm:$0xff] }
 0x54a   : > { %v3313_v5 = vpop.permute.xlu1 %3312  ;;  %9401 = vmatprep.mubr.msk.f32.mxu1 %vm1924_vm11, %v3866_v14  ;;  %v3775_v14 = vsel %vm1780_vm7, %v3743_v58, %v17046_v38  ;;  %v3714_v28 = vsel %vm1714_vm5, %v3682_v15, %v17061_v11  ;;  %v9636_v15 = vld [vmem:[#allocation2 + $0x158] sm:$0xff]  ;;  %v17079_v11 = vld [vmem:[#allocation99_spill] sm:$0xff] }
 0x54b   : > { %9402 = vmatmul.mubr.msk.f32.gmra.mxu1 %vm1924_vm11, %v3867_v20  ;;  %v3805_v37 = vsel %vm1813_vm8, %v3773_v27, %v3313_v5 }
 0x54c   : > { %v3311_v12 = vpop.permute.xlu0 %3310 }
 0x54d   : > { %v3804_v59 = vsel %vm1813_vm8, %v3772_v42, %v3311_v12  ;;  %v3713_v42 = vsel %vm1714_vm5, %v3681_v49, %v17052_v45 }
 0x54e   : > { %v3441_v51 = vpop.permute.xlu1 %3440  ;;  %v3745_v27 = vsel %vm1747_vm6, %v3713_v42, %v17054_v22  ;;  %v17071_v42 = vld [vmem:[#allocation136_spill] sm:$0xff]  ;;  %v17072_v22 = vld [vmem:[#allocation195_spill] sm:$0xff] }
 0x54f   : > { %v3837_v19 = vsel %vm1846_vm9, %v3805_v37, %v3441_v51 }
 0x550   : > { %v3439_v16 = vpop.permute.xlu0 %3438 }
 0x551   : > { %v3836_v29 = vsel %vm1846_vm9, %v3804_v59, %v3439_v16  ;;  %v17049_v16 = vld [vmem:[#allocation190_spill] sm:$0xff] }
 0x552   : > { %v3569_v61 = vpop.permute.xlu1 %3568  ;;  %v3680_v43 = vsel %vm1681_vm4, %v3648_v18, %v17049_v16  ;;  %v17055_v59 = vld [vmem:[#allocation74_spill] sm:$0xff] }
 0x553   : > { %v3869_v9 = vsel %vm1879_vm10, %v3837_v19, %v3569_v61  ;;  %v3712_v13 = vsel %vm1714_vm5, %v3680_v43, %v17051_v53  ;;  %v17053_v61 = vld [vmem:[#allocation153_spill] sm:$0xff] }
 0x554   : > { %v3567_v17 = vpop.permute.xlu0 %3566  ;;  %v3744_v10 = vsel %vm1747_vm6, %v3712_v13, %v17053_v61  ;;  %v9634_v43 = vld [vmem:[#allocation2 + $0x140] sm:$0xff] }
 0x555   : > { %v3868_v31 = vsel %vm1879_vm10, %v3836_v29, %v3567_v17  ;;  %v3776_v37 = vsel %vm1780_vm7, %v3744_v10, %v17055_v59  ;;  %v17056_v17 = vld [vmem:[#allocation142_spill] sm:$0xff]  ;;  %v3653_v49 = vsel %vm225_vm0, %v9634_v43, %v17068_v50  ;;  %v17069_v53 = vld [vmem:[#allocation69_spill] sm:$0xff]  ;;  %v17073_v59 = vld [vmem:[#allocation176_spill] sm:$0xff] }
 0x556   : > { %v3317_v33 = vpop.permute.xlu1 %3316  ;;  %9404 = vmatprep.mubr.msk.f32.mxu1 %vm1924_vm11, %v3868_v31  ;;  %v3777_v30 = vsel %vm1780_vm7, %v3745_v27, %v17056_v17  ;;  %v3684_v13 = vsel %vm1681_vm4, %v3652_v54, %v17069_v53  ;;  %v9637_v43 = vld [vmem:[#allocation2 + $0x168] sm:$0xff] }
 0x557   : > { %9405 = vmatmul.mubr.msk.f32.gmra.mxu1 %vm1924_vm11, %v3869_v9  ;;  %v3807_v5 = vsel %vm1813_vm8, %v3775_v14, %v3317_v33  ;;  %v17065_v14 = vld [vmem:[#allocation91_spill] sm:$0xff]  ;;  %v3716_v61 = vsel %vm1714_vm5, %v3684_v13, %v17071_v42  ;;  %v17087_v50 = vld [vmem:[#allocation130_spill] sm:$0xff]  ;;  %v17089_v42 = vld [vmem:[#allocation113_spill] sm:$0xff] }
 0x558   : > { %v3315_v23 = vpop.permute.xlu0 %3314  ;;  %v9638_v13 = vld [vmem:[#allocation2 + $0x170] sm:$0xff] }
 0x559   : > { %v3806_v20 = vsel %vm1813_vm8, %v3774_v46, %v3315_v23  ;;  %v3746_v46 = vsel %vm1747_vm6, %v3714_v28, %v17063_v8 }
 0x55a   : > { %v3445_v39 = vpop.permute.xlu1 %3444 }
 0x55b   : > { %v3839_v25 = vsel %vm1846_vm9, %v3807_v5, %v3445_v39 }
 0x55c   : > { %v3443_v36 = vpop.permute.xlu0 %3442 }
 0x55d   : > { %v3838_v12 = vsel %vm1846_vm9, %v3806_v20, %v3443_v36  ;;  %v17060_v36 = vld [vmem:[#allocation71_spill] sm:$0xff]  ;;  %v3778_v20 = vsel %vm1780_vm7, %v3746_v46, %v17065_v14  ;;  %v17083_v14 = vld [vmem:[#allocation141_spill] sm:$0xff] }
 0x55e   : > { %v3573_v3 = vpop.permute.xlu1 %3572  ;;  %v3683_v32 = vsel %vm1681_vm4, %v3651_v0, %v17060_v36  ;;  %v3654_v0 = vsel %vm225_vm0, %v9635_v52, %v17077_v62  ;;  %v17078_v36 = vld [vmem:[#allocation131_spill] sm:$0xff] }
 0x55f   : > { %v3871_v51 = vsel %vm1879_vm10, %v3839_v25, %v3573_v3  ;;  %v3715_v58 = vsel %vm1714_vm5, %v3683_v32, %v17062_v6  ;;  %v17064_v3 = vld [vmem:[#allocation81_spill] sm:$0xff]  ;;  %v3655_v32 = vsel %vm225_vm0, %v9636_v15, %v17078_v36  ;;  %v3686_v28 = vsel %vm1681_vm4, %v3654_v0, %v17079_v11 }
 0x560   : > { %v3571_v1 = vpop.permute.xlu0 %3570  ;;  %v3747_v38 = vsel %vm1747_vm6, %v3715_v58, %v17064_v3  ;;  %v17081_v58 = vld [vmem:[#allocation194_spill] sm:$0xff]  ;;  %v13057_v0 = vld [vmem:[%s16125_s2 + $0x1] ss:$0 sm:$0xff] }
 0x561   : > { %v3870_v57 = vsel %vm1879_vm10, %v3838_v12, %v3571_v1  ;;  %v17066_v12 = vld [vmem:[#allocation200_spill] sm:$0xff]  ;;  %v3718_v8 = vsel %vm1714_vm5, %v3686_v28, %v17081_v58  ;;  %v17082_v3 = vld [vmem:[#allocation62_spill] sm:$0xff] }
 0x562   : > { %v3321_v24 = vpop.permute.xlu1 %3320  ;;  %9407 = vmatprep.mubr.msk.f32.mxu1 %vm1924_vm11, %v3870_v57  ;;  %v3779_v1 = vsel %vm1780_vm7, %v3747_v38, %v17066_v12 }
 0x563   : > { %9408 = vmatmul.mubr.msk.f32.gmra.mxu1 %vm1924_vm11, %v3871_v51  ;;  %v3809_v31 = vsel %vm1813_vm8, %v3777_v30, %v3321_v24  ;;  %v17075_v30 = vld [vmem:[#allocation157_spill] sm:$0xff] }
 0x564   : > { %v3319_v41 = vpop.permute.xlu0 %3318 }
 0x565   : > { %v3808_v19 = vsel %vm1813_vm8, %v3776_v37, %v3319_v41  ;;  %v3748_v37 = vsel %vm1747_vm6, %v3716_v61, %v17073_v59 }
 0x566   : > { %v3449_v63 = vpop.permute.xlu1 %3448 }
 0x567   : > { %v3841_v23 = vsel %vm1846_vm9, %v3809_v31, %v3449_v63 }
 0x568   : > { %v3447_v26 = vpop.permute.xlu0 %3446 }
 0x569   : > { %v3840_v9 = vsel %vm1846_vm9, %v3808_v19, %v3447_v26  ;;  %v17070_v26 = vld [vmem:[#allocation147_spill] sm:$0xff]  ;;  %v3780_v19 = vsel %vm1780_vm7, %v3748_v37, %v17075_v30 }
 0x56a   : > { %v3577_v29 = vpop.permute.xlu1 %3576  ;;  %v3685_v45 = vsel %vm1681_vm4, %v3653_v49, %v17070_v26  ;;  %v3656_v49 = vsel %vm225_vm0, %v9637_v43, %v17087_v50  ;;  %v17088_v26 = vld [vmem:[#allocation189_spill] sm:$0xff]  ;;  %v17093_v30 = vld [vmem:[#allocation199_spill] sm:$0xff] }
 0x56b   : > { %v3873_v34 = vsel %vm1879_vm10, %v3841_v23, %v3577_v29  ;;  %v3717_v27 = vsel %vm1714_vm5, %v3685_v45, %v17072_v22  ;;  %v17074_v29 = vld [vmem:[#allocation152_spill] sm:$0xff]  ;;  %v3657_v45 = vsel %vm225_vm0, %v9638_v13, %v17088_v26  ;;  %v3688_v61 = vsel %vm1681_vm4, %v3656_v49, %v17089_v42  ;;  %v17110_v43 = vld [vmem:[#allocation11_spill] sm:$0xff] }
 0x56c   : > { %v3575_v33 = vpop.permute.xlu0 %3574  ;;  %v3749_v17 = vsel %vm1747_vm6, %v3717_v27, %v17074_v29  ;;  %v17091_v27 = vld [vmem:[#allocation60_spill] sm:$0xff]  ;;  %v17092_v29 = vld [vmem:[#allocation79_spill] sm:$0xff] }
 0x56d   : > { %v3872_v21 = vsel %vm1879_vm10, %v3840_v9, %v3575_v33  ;;  %v17076_v9 = vld [vmem:[#allocation72_spill] sm:$0xff]  ;;  %v3720_v59 = vsel %vm1714_vm5, %v3688_v61, %v17091_v27 }
 0x56e   : > { %v3325_v55 = vpop.permute.xlu1 %3324  ;;  %9410 = vmatprep.mubr.msk.f32.mxu1 %vm1924_vm11, %v3872_v21  ;;  %v3781_v33 = vsel %vm1780_vm7, %v3749_v17, %v17076_v9  ;;  %v17112_v13 = vld [vmem:[#allocation8_spill] sm:$0xff] }
 0x56f   : > { %9411 = vmatmul.mubr.msk.f32.gmra.mxu1 %vm1924_vm11, %v3873_v34  ;;  %v3811_v57 = vsel %vm1813_vm8, %v3779_v1, %v3325_v55  ;;  %v17085_v1 = vld [vmem:[#allocation124_spill] sm:$0xff] }
 0x570   : > { %v3323_v39 = vpop.permute.xlu0 %3322 }
 0x571   : > { %v3810_v25 = vsel %vm1813_vm8, %v3778_v20, %v3323_v39  ;;  %v3750_v20 = vsel %vm1747_vm6, %v3718_v8, %v17083_v14 }
 0x572   : > { %v3453_v44 = vpop.permute.xlu1 %3452 }
 0x573   : > { %v3843_v41 = vsel %vm1846_vm9, %v3811_v57, %v3453_v44 }
 0x574   : > { %v3451_v35 = vpop.permute.xlu0 %3450 }
 0x575   : > { %v3842_v51 = vsel %vm1846_vm9, %v3810_v25, %v3451_v35  ;;  %v17080_v35 = vld [vmem:[#allocation114_spill] sm:$0xff]  ;;  %v3782_v25 = vsel %vm1780_vm7, %v3750_v20, %v17085_v1 }
 0x576   : > { %v3581_v5 = vpop.permute.xlu1 %3580  ;;  %v3687_v6 = vsel %vm1681_vm4, %v3655_v32, %v17080_v35  ;;  %v17098_v32 = vld [vmem:[#allocation5_spill] sm:$0xff]  ;;  %v17100_v35 = vld [vmem:[#allocation3_spill] sm:$0xff] }
 0x577   : > { %v3875_v2 = vsel %vm1879_vm10, %v3843_v41, %v3581_v5  ;;  %v3719_v38 = vsel %vm1714_vm5, %v3687_v6, %v17082_v3  ;;  %v17084_v5 = vld [vmem:[#allocation119_spill] sm:$0xff] }
 0x578   : > { %v3579_v24 = vpop.permute.xlu0 %3578  ;;  %v3751_v12 = vsel %vm1747_vm6, %v3719_v38, %v17084_v5  ;;  %v17102_v3 = vld [vmem:[#allocation7_spill] sm:$0xff]  ;;  %v17104_v5 = vld [vmem:[#allocation4_spill] sm:$0xff] }
 0x579   : > { %v3874_v56 = vsel %vm1879_vm10, %v3842_v51, %v3579_v24  ;;  %v17086_v51 = vld [vmem:[#allocation89_spill] sm:$0xff] }
 0x57a   : > { %v3329_v18 = vpop.permute.xlu1 %3328  ;;  %9413 = vmatprep.mubr.msk.f32.mxu1 %vm1924_vm11, %v3874_v56  ;;  %v3783_v24 = vsel %vm1780_vm7, %v3751_v12, %v17086_v51 }
 0x57b   : > { %9414 = vmatmul.mubr.msk.f32.gmra.mxu1 %vm1924_vm11, %v3875_v2  ;;  %v3813_v21 = vsel %vm1813_vm8, %v3781_v33, %v3329_v18  ;;  %v17095_v33 = vld [vmem:[#allocation180_spill] sm:$0xff] }
 0x57c   : > { %v3327_v63 = vpop.permute.xlu0 %3326 }
 0x57d   : > { %v3812_v23 = vsel %vm1813_vm8, %v3780_v19, %v3327_v63  ;;  %v3752_v19 = vsel %vm1747_vm6, %v3720_v59, %v17093_v30 }
 0x57e   : > { %v3457_v16 = vpop.permute.xlu1 %3456 }
 0x57f   : > { %v3845_v39 = vsel %vm1846_vm9, %v3813_v21, %v3457_v16  ;;  %v17096_v21 = vld [vmem:[#allocation156_spill] sm:$0xff] }
 0x580   : > { %v3455_v10 = vpop.permute.xlu0 %3454 }
 0x581   : > { %v3844_v34 = vsel %vm1846_vm9, %v3812_v23, %v3455_v10  ;;  %v17090_v10 = vld [vmem:[#allocation170_spill] sm:$0xff]  ;;  %v3784_v23 = vsel %vm1780_vm7, %v3752_v19, %v17095_v33  ;;  %v17118_v33 = vld [vmem:[#allocation15_spill] sm:$0xff] }
 0x582   : > { %v3585_v31 = vpop.permute.xlu1 %3584  ;;  %v3689_v22 = vsel %vm1681_vm4, %v3657_v45, %v17090_v10 }
 0x583   : > { %v3877_v4 = vsel %vm1879_vm10, %v3845_v39, %v3585_v31  ;;  %v3721_v17 = vsel %vm1714_vm5, %v3689_v22, %v17092_v29  ;;  %v17094_v31 = vld [vmem:[#allocation175_spill] sm:$0xff]  ;;  %v17114_v22 = vld [vmem:[#allocation13_spill] sm:$0xff]  ;;  %v17116_v29 = vld [vmem:[#allocation10_spill] sm:$0xff] }
 0x584   : > { %v3583_v55 = vpop.permute.xlu0 %3582  ;;  %v3753_v9 = vsel %vm1747_vm6, %v3721_v17, %v17094_v31 }
 0x585   : > { %v3876_v40 = vsel %vm1879_vm10, %v3844_v34, %v3583_v55  ;;  %v3785_v34 = vsel %vm1780_vm7, %v3753_v9, %v17096_v21 }
 0x586   : > { %v3333_v60 = vpop.permute.xlu1 %3332  ;;  %9416 = vmatprep.mubr.msk.f32.mxu1 %vm1924_vm11, %v3876_v40 }
 0x587   : > { %9417 = vmatmul.mubr.msk.f32.gmra.mxu1 %vm1924_vm11, %v3877_v4  ;;  %v3815_v56 = vsel %vm1813_vm8, %v3783_v24, %v3333_v60  ;;  %v17106_v24 = vld [vmem:[#allocation9_spill] sm:$0xff] }
 0x588   : > { %v3331_v44 = vpop.permute.xlu0 %3330 }
 0x589   : > { %v3814_v41 = vsel %vm1813_vm8, %v3782_v25, %v3331_v44 }
 0x58a   : > { %v3461_v48 = vpop.permute.xlu1 %3460 }
 0x58b   : > { %v3847_v63 = vsel %vm1846_vm9, %v3815_v56, %v3461_v48 }
 0x58c   : > { %v3459_v46 = vpop.permute.xlu0 %3458 }
 0x58d   : > { %v3846_v2 = vsel %vm1846_vm9, %v3814_v41, %v3459_v46 }
 0x58e   : > { %v3589_v57 = vpop.permute.xlu1 %3588 }
 0x58f   : > { %v3879_v47 = vsel %vm1879_vm10, %v3847_v63, %v3589_v57 }
 0x590   : > { %v3587_v18 = vpop.permute.xlu0 %3586 }
 0x591   : > { %v3878_v7 = vsel %vm1879_vm10, %v3846_v2, %v3587_v18  ;;  %v17108_v18 = vld [vmem:[#allocation6_spill] sm:$0xff] }
 0x592   : > { %v3337_v54 = vpop.permute.xlu1 %3336  ;;  %9419 = vmatprep.mubr.msk.f32.mxu1 %vm1924_vm11, %v3878_v7 }
 0x593   : > { %9420 = vmatmul.mubr.msk.f32.gmra.mxu1 %vm1924_vm11, %v3879_v47  ;;  %v3817_v40 = vsel %vm1813_vm8, %v3785_v34, %v3337_v54 }
 0x594   : > { %v3335_v16 = vpop.permute.xlu0 %3334 }
 0x595   : > { %v3816_v55 = vsel %vm1813_vm8, %v3784_v23, %v3335_v16 }
 0x596   : > { %v3465_v53 = vpop.permute.xlu1 %3464 }
 0x597   : > { %v3849_v44 = vsel %vm1846_vm9, %v3817_v40, %v3465_v53 }
 0x598   : > { %v3463_v37 = vpop.permute.xlu0 %3462 }
 0x599   : > { %v3848_v4 = vsel %vm1846_vm9, %v3816_v55, %v3463_v37  ;;  %v17120_v55 = vld [vmem:[#allocation12_spill] sm:$0xff] }
 0x59a   : > { %v3593_v39 = vpop.permute.xlu1 %3592 }
 0x59b   : > { %v3881_v62 = vsel %vm1879_vm10, %v3849_v44, %v3593_v39 }
 0x59c   : > { %v3591_v60 = vpop.permute.xlu0 %3590 }
 0x59d   : > { %v3880_v52 = vsel %vm1879_vm10, %v3848_v4, %v3591_v60 }
 0x59e   : > { %9422 = vmatprep.mubr.msk.f32.mxu1 %vm1924_vm11, %v3880_v52  ;;  %v17122_v52 = vld [vmem:[#allocation17_spill] sm:$0xff] }
 0x59f   : > { %9423 = vmatmul.mubr.msk.f32.gmra.mxu1 %vm1924_vm11, %v3881_v62 }
 0x5c7   : > { %v9379_v48 = vpop.f32.mrf.mxu1 }
 0x5c8   : > { %v13060_v15 = vadd.f32 %v9379_v48, %v13057_v0 }
 0x5c9   : > { %v4061_v36 = vpop.f32.mrf.mxu1 }
 0x5ca   : > { %17097 = vst [vmem:[#allocation76_spill] sm:$0xff] %v13060_v15  ;;  %v4221_v11 = vadd.f32 %v13060_v15, %v17098_v32  ;;  %v13065_v28 = vadd.f32 %v13057_v0, %v4061_v36 }
 0x5cc   : > { %17099 = vst [vmem:[#allocation159_spill] sm:$0xff] %v13065_v28  ;;  %4253 = vst.msk [vmem:[#allocation2 + $0x21] sm:$0xff] %vm225_vm0, %v4221_v11  ;;  %v4220_v6 = vadd.f32 %v13065_v28, %v17100_v35  ;;  %v17124_v11 = vld [vmem:[#allocation14_spill] sm:$0xff] }
 0x5ce   : > { %4252 = vst.msk [vmem:[#allocation2 + $0x19] sm:$0xff] %vm225_vm0, %v4220_v6 }
 0x5cf   : > { %v9382_v58 = vpop.f32.mrf.mxu1 }
 0x5d0   : > { %v13072_v8 = vadd.f32 %v9382_v58, %v13057_v0 }
 0x5d1   : > { %v4071_v46 = vpop.f32.mrf.mxu1 }
 0x5d2   : > { %17101 = vst [vmem:[#allocation125_spill] sm:$0xff] %v13072_v8  ;;  %v4223_v38 = vadd.f32 %v13072_v8, %v17102_v3  ;;  %v13077_v14 = vadd.f32 %v13057_v0, %v4071_v46 }
 0x5d3   : > { %v13079_v20 = vld [vmem:[#allocation2 + $0x21] sm:$0xff] }
 0x5d4   : > { %17103 = vst [vmem:[#allocation158_spill] sm:$0xff] %v13077_v14  ;;  %4255 = vst.msk [vmem:[#allocation2 + $0x39] sm:$0xff] %vm225_vm0, %v4223_v38  ;;  %v4222_v12 = vadd.f32 %v13077_v14, %v17104_v5  ;;  %4610 = vrot.lane.b32.xlu1 %v13079_v20, %s9649_s25 }
 0x5d5   : > { %v13086_v1 = vld [vmem:[#allocation2 + $0x19] sm:$0xff] }
 0x5d6   : > { %4254 = vst.msk [vmem:[#allocation2 + $0x31] sm:$0xff] %vm225_vm0, %v4222_v12  ;;  %4608 = vrot.lane.b32.xlu0 %v13086_v1, %s9649_s25 }
 0x5d7   : > { %v9385_v25 = vpop.f32.mrf.mxu1 }
 0x5d8   : > { %v13092_v57 = vadd.f32 %v9385_v25, %v13057_v0  ;;  %v17126_v25 = vld [vmem:[#allocation19_spill] sm:$0xff] }
 0x5d9   : > { %v4081_v51 = vpop.f32.mrf.mxu1 }
 0x5da   : > { %17105 = vst [vmem:[#allocation182_spill] sm:$0xff] %v13092_v57  ;;  %v4225_v41 = vadd.f32 %v13092_v57, %v17106_v24  ;;  %v13097_v56 = vadd.f32 %v13057_v0, %v4081_v51 }
 0x5db   : > { %v13099_v2 = vld [vmem:[#allocation2 + $0x39] sm:$0xff] }
 0x5dc   : > { %17107 = vst [vmem:[#allocation146_spill] sm:$0xff] %v13097_v56  ;;  %4257 = vst.msk [vmem:[#allocation2 + $0x51] sm:$0xff] %vm225_vm0, %v4225_v41  ;;  %v4224_v63 = vadd.f32 %v13097_v56, %v17108_v18  ;;  %4614 = vrot.lane.b32.xlu1 %v13099_v2, %s9649_s25 }
 0x5dd   : > { %v13106_v7 = vld [vmem:[#allocation2 + $0x31] sm:$0xff] }
 0x5de   : > { %4256 = vst.msk [vmem:[#allocation2 + $0x49] sm:$0xff] %vm225_vm0, %v4224_v63  ;;  %4612 = vrot.lane.b32.xlu0 %v13106_v7, %s9649_s25 }
 0x5df   : > { %v9388_v47 = vpop.f32.mrf.mxu1 }
 0x5e0   : > { %v13112_v54 = vadd.f32 %v9388_v47, %v13057_v0  ;;  %v17128_v47 = vld [vmem:[#allocation16_spill] sm:$0xff] }
 0x5e1   : > { %v4091_v16 = vpop.f32.mrf.mxu1 }
 0x5e2   : > { %17109 = vst [vmem:[#allocation181_spill] sm:$0xff] %v13112_v54  ;;  %v4227_v50 = vadd.f32 %v13112_v54, %v17110_v43  ;;  %v13117_v49 = vadd.f32 %v13057_v0, %v4091_v16 }
 0x5e3   : > { %v13119_v53 = vld [vmem:[#allocation2 + $0x51] sm:$0xff] }
 0x5e4   : > { %17111 = vst [vmem:[#allocation203_spill] sm:$0xff] %v13117_v49  ;;  %4259 = vst.msk [vmem:[#allocation2 + $0x69] sm:$0xff] %vm225_vm0, %v4227_v50  ;;  %v4226_v26 = vadd.f32 %v13117_v49, %v17112_v13  ;;  %4618 = vrot.lane.b32.xlu1 %v13119_v53, %s9649_s25 }
 0x5e5   : > { %v13126_v45 = vld [vmem:[#allocation2 + $0x49] sm:$0xff] }
 0x5e6   : > { %4258 = vst.msk [vmem:[#allocation2 + $0x61] sm:$0xff] %vm225_vm0, %v4226_v26  ;;  %4616 = vrot.lane.b32.xlu0 %v13126_v45, %s9649_s25 }
 0x5e7   : > { %v9391_v42 = vpop.f32.mrf.mxu1 }
 0x5e8   : > { %v13132_v61 = vadd.f32 %v9391_v42, %v13057_v0 }
 0x5e9   : > { %v4101_v10 = vpop.f32.mrf.mxu1 }
 0x5ea   : > { %17113 = vst [vmem:[#allocation80_spill] sm:$0xff] %v13132_v61  ;;  %v4229_v27 = vadd.f32 %v13132_v61, %v17114_v22  ;;  %v13137_v59 = vadd.f32 %v13057_v0, %v4101_v10 }
 0x5eb   : > { %v13139_v37 = vld [vmem:[#allocation2 + $0x69] sm:$0xff] }
 0x5ec   : > { %17115 = vst [vmem:[#allocation93_spill] sm:$0xff] %v13137_v59  ;;  %4261 = vst.msk [vmem:[#allocation2 + $0x81] sm:$0xff] %vm225_vm0, %v4229_v27  ;;  %v4228_v17 = vadd.f32 %v13137_v59, %v17116_v29  ;;  %4622 = vrot.lane.b32.xlu1 %v13139_v37, %s9649_s25 }
 0x5ed   : > { %v13146_v30 = vld [vmem:[#allocation2 + $0x61] sm:$0xff] }
 0x5ee   : > { %4260 = vst.msk [vmem:[#allocation2 + $0x79] sm:$0xff] %vm225_vm0, %v4228_v17  ;;  %4620 = vrot.lane.b32.xlu0 %v13146_v30, %s9649_s25  ;;  %v13535_v49 = vld [vmem:[#allocation2 + $0x60] sm:$0xff]  ;;  %v13549_v56 = vld [vmem:[#allocation2 + $0x68] sm:$0xff] }
 0x5ef   : > { %v9394_v19 = vpop.f32.mrf.mxu1 }
 0x5f0   : > { %v13152_v31 = vadd.f32 %v9394_v19, %v13057_v0  ;;  %v17130_v19 = vld [vmem:[#allocation21_spill] sm:$0xff] }
 0x5f1   : > { %v4111_v9 = vpop.f32.mrf.mxu1 }
 0x5f2   : > { %17117 = vst [vmem:[#allocation160_spill] sm:$0xff] %v13152_v31  ;;  %v4231_v23 = vadd.f32 %v13152_v31, %v17118_v33  ;;  %v13157_v21 = vadd.f32 %v13057_v0, %v4111_v9 }
 0x5f3   : > { %v13159_v34 = vld [vmem:[#allocation2 + $0x81] sm:$0xff] }
 0x5f4   : > { %17119 = vst [vmem:[#allocation183_spill] sm:$0xff] %v13157_v21  ;;  %4263 = vst.msk [vmem:[#allocation2 + $0x99] sm:$0xff] %vm225_vm0, %v4231_v23  ;;  %v4230_v39 = vadd.f32 %v13157_v21, %v17120_v55  ;;  %4626 = vrot.lane.b32.xlu1 %v13159_v34, %s9649_s25  ;;  %v17158_v55 = vld [vmem:[#allocation34_spill] sm:$0xff] }
 0x5f5   : > { %v13166_v40 = vld [vmem:[#allocation2 + $0x79] sm:$0xff] }
 0x5f6   : > { %4262 = vst.msk [vmem:[#allocation2 + $0x91] sm:$0xff] %vm225_vm0, %v4230_v39  ;;  %4624 = vrot.lane.b32.xlu0 %v13166_v40, %s9649_s25  ;;  %v17132_v39 = vld [vmem:[#allocation18_spill] sm:$0xff] }
 0x5f7   : > { %v9397_v4 = vpop.f32.mrf.mxu1 }
 0x5f8   : > { %v13172_v60 = vadd.f32 %v9397_v4, %v13057_v0 }
 0x5f9   : > { %v4121_v44 = vpop.f32.mrf.mxu1 }
 0x5fa   : > { %17121 = vst [vmem:[#allocation98_spill] sm:$0xff] %v13172_v60  ;;  %v4233_v62 = vadd.f32 %v13172_v60, %v17122_v52  ;;  %v13177_v48 = vadd.f32 %v13057_v0, %v4121_v44 }
 0x5fb   : > { %v13179_v36 = vld [vmem:[#allocation2 + $0x99] sm:$0xff] }
 0x5fc   : > { %17123 = vst [vmem:[#allocation97_spill] sm:$0xff] %v13177_v48  ;;  %4265 = vst.msk [vmem:[#allocation2 + $0xb1] sm:$0xff] %vm225_vm0, %v4233_v62  ;;  %v4232_v6 = vadd.f32 %v13177_v48, %v17124_v11  ;;  %4630 = vrot.lane.b32.xlu1 %v13179_v36, %s9649_s25  ;;  %v13353_v22 = vld [vmem:[#allocation2 + $0x9a] sm:$0xff] }
 0x5fd   : > { %v13186_v58 = vld [vmem:[#allocation2 + $0x91] sm:$0xff] }
 0x5fe   : > { %4264 = vst.msk [vmem:[#allocation2 + $0xa9] sm:$0xff] %vm225_vm0, %v4232_v6  ;;  %4628 = vrot.lane.b32.xlu0 %v13186_v58, %s9649_s25  ;;  %v13357_v29 = vld [vmem:[#allocation2 + $0x92] sm:$0xff] }
 0x5ff   : > { %v9400_v46 = vpop.f32.mrf.mxu1 }
 0x600   : > { %v13192_v38 = vadd.f32 %v9400_v46, %v13057_v0 }
 0x601   : > { %v4131_v12 = vpop.f32.mrf.mxu1 }
 0x602   : > { %17125 = vst [vmem:[#allocation40_spill] sm:$0xff] %v13192_v38  ;;  %v4235_v51 = vadd.f32 %v13192_v38, %v17126_v25  ;;  %v13197_v41 = vadd.f32 %v13057_v0, %v4131_v12 }
 0x603   : > { %v4331_v63 = vld [vmem:[#allocation2 + $0xb1] sm:$0xff] }
 0x604   : > { %17127 = vst [vmem:[#allocation100_spill] sm:$0xff] %v13197_v41  ;;  %4267 = vst.msk [vmem:[#allocation2 + $0xc9] sm:$0xff] %vm225_vm0, %v4235_v51  ;;  %v4234_v16 = vadd.f32 %v13197_v41, %v17128_v47  ;;  %4634 = vrot.lane.b32.xlu1 %v4331_v63, %s9649_s25  ;;  %v17134_v51 = vld [vmem:[#allocation23_spill] sm:$0xff] }
 0x605   : > { %v4330_v50 = vld [vmem:[#allocation2 + $0xa9] sm:$0xff]  ;;  %v13361_v43 = vld [vmem:[#allocation2 + $0xb2] sm:$0xff] }
 0x606   : > { %4266 = vst.msk [vmem:[#allocation2 + $0xc1] sm:$0xff] %vm225_vm0, %v4234_v16  ;;  %4632 = vrot.lane.b32.xlu0 %v4330_v50, %s9649_s25  ;;  %v17136_v50 = vld [vmem:[#allocation20_spill] sm:$0xff]  ;;  %v13365_v13 = vld [vmem:[#allocation2 + $0xaa] sm:$0xff] }
 0x607   : > { %v13497_v41 = vld [vmem:[#allocation2 + $0x50] sm:$0xff] }
 0x60b   : > { %v9403_v26 = vpop.f32.mrf.mxu1  ;;  %v4333_v42 = vld [vmem:[#allocation2 + $0xc9] sm:$0xff] }
 0x60c   : > { %v13206_v10 = vadd.f32 %v9403_v26, %v13057_v0  ;;  %4638 = vrot.lane.b32.xlu1 %v4333_v42, %s9649_s25  ;;  %v13369_v24 = vld [vmem:[#allocation2 + $0xca] sm:$0xff] }
 0x60d   : > { %v4141_v27 = vpop.f32.mrf.mxu1  ;;  %v4332_v17 = vld [vmem:[#allocation2 + $0xc1] sm:$0xff] }
 0x60e   : > { %17129 = vst [vmem:[#allocation43_spill] sm:$0xff] %v13206_v10  ;;  %v4237_v9 = vadd.f32 %v13206_v10, %v17130_v19  ;;  %v13212_v23 = vadd.f32 %v13057_v0, %v4141_v27  ;;  %4636 = vrot.lane.b32.xlu0 %v4332_v17, %s9649_s25  ;;  %v13373_v18 = vld [vmem:[#allocation2 + $0xc2] sm:$0xff] }
 0x610   : > { %17131 = vst [vmem:[#allocation102_spill] sm:$0xff] %v13212_v23  ;;  %4269 = vst.msk [vmem:[#allocation2 + $0xe1] sm:$0xff] %vm225_vm0, %v4237_v9  ;;  %v4236_v4 = vadd.f32 %v13212_v23, %v17132_v39  ;;  %v13483_v23 = vld [vmem:[#allocation2 + $0x48] sm:$0xff] }
 0x612   : > { %4268 = vst.msk [vmem:[#allocation2 + $0xd9] sm:$0xff] %vm225_vm0, %v4236_v4 }
 0x617   : > { %v9406_v44 = vpop.f32.mrf.mxu1  ;;  %v4335_v62 = vld [vmem:[#allocation2 + $0xe1] sm:$0xff] }
 0x618   : > { %v13220_v6 = vadd.f32 %v9406_v44, %v13057_v0  ;;  %4642 = vrot.lane.b32.xlu1 %v4335_v62, %s9649_s25  ;;  %v17138_v44 = vld [vmem:[#allocation25_spill] sm:$0xff] }
 0x619   : > { %v4151_v46 = vpop.f32.mrf.mxu1  ;;  %v4334_v12 = vld [vmem:[#allocation2 + $0xd9] sm:$0xff]  ;;  %v13377_v3 = vld [vmem:[#allocation2 + $0xe2] sm:$0xff] }
 0x61a   : > { %17133 = vst [vmem:[#allocation55_spill] sm:$0xff] %v13220_v6  ;;  %v4239_v63 = vadd.f32 %v13220_v6, %v17134_v51  ;;  %v13226_v16 = vadd.f32 %v13057_v0, %v4151_v46  ;;  %4640 = vrot.lane.b32.xlu0 %v4334_v12, %s9649_s25  ;;  %v17140_v12 = vld [vmem:[#allocation22_spill] sm:$0xff]  ;;  %v13381_v5 = vld [vmem:[#allocation2 + $0xda] sm:$0xff] }
 0x61c   : > { %17135 = vst [vmem:[#allocation53_spill] sm:$0xff] %v13226_v16  ;;  %4271 = vst.msk [vmem:[#allocation2 + $0xf9] sm:$0xff] %vm225_vm0, %v4239_v63  ;;  %v4238_v26 = vadd.f32 %v13226_v16, %v17136_v50 }
 0x61e   : > { %4270 = vst.msk [vmem:[#allocation2 + $0xf1] sm:$0xff] %vm225_vm0, %v4238_v26 }
 0x623   : > { %v9409_v42 = vpop.f32.mrf.mxu1  ;;  %v4337_v27 = vld [vmem:[#allocation2 + $0xf9] sm:$0xff] }
 0x624   : > { %v13234_v17 = vadd.f32 %v9409_v42, %v13057_v0  ;;  %4646 = vrot.lane.b32.xlu1 %v4337_v27, %s9649_s25  ;;  %v13385_v32 = vld [vmem:[#allocation2 + $0xfa] sm:$0xff] }
 0x625   : > { %v4161_v9 = vpop.f32.mrf.mxu1  ;;  %v4336_v4 = vld [vmem:[#allocation2 + $0xf1] sm:$0xff] }
 0x626   : > { %17137 = vst [vmem:[#allocation82_spill] sm:$0xff] %v13234_v17  ;;  %v4241_v62 = vadd.f32 %v13234_v17, %v17138_v44  ;;  %v13240_v46 = vadd.f32 %v13057_v0, %v4161_v9  ;;  %4644 = vrot.lane.b32.xlu0 %v4336_v4, %s9649_s25  ;;  %v17142_v9 = vld [vmem:[#allocation27_spill] sm:$0xff] }
 0x627   : > { %v13389_v35 = vld [vmem:[#allocation2 + $0xf2] sm:$0xff] }
 0x628   : > { %17139 = vst [vmem:[#allocation105_spill] sm:$0xff] %v13240_v46  ;;  %4273 = vst.msk [vmem:[#allocation2 + $0x111] sm:$0xff] %vm225_vm0, %v4241_v62  ;;  %v4240_v63 = vadd.f32 %v13240_v46, %v17140_v12  ;;  %v17144_v62 = vld [vmem:[#allocation24_spill] sm:$0xff]  ;;  %v17161_v46 = vmov 0.0  }
 0x62a   : > { %4272 = vst.msk [vmem:[#allocation2 + $0x109] sm:$0xff] %vm225_vm0, %v4240_v63 }
 0x62f   : > { %v9412_v26 = vpop.f32.mrf.mxu1  ;;  %v4339_v42 = vld [vmem:[#allocation2 + $0x111] sm:$0xff] }
 0x630   : > { %v13248_v27 = vadd.f32 %v9412_v26, %v13057_v0  ;;  %4650 = vrot.lane.b32.xlu1 %v4339_v42, %s9649_s25 }
 0x631   : > { %v4171_v44 = vpop.f32.mrf.mxu1  ;;  %v4338_v51 = vld [vmem:[#allocation2 + $0x109] sm:$0xff] }
 0x632   : > { %17141 = vst [vmem:[#allocation161_spill] sm:$0xff] %v13248_v27  ;;  %v4243_v50 = vadd.f32 %v13248_v27, %v17142_v9  ;;  %v13254_v4 = vadd.f32 %v13057_v0, %v4171_v44  ;;  %4648 = vrot.lane.b32.xlu0 %v4338_v51, %s9649_s25  ;;  %v17146_v44 = vld [vmem:[#allocation29_spill] sm:$0xff]  ;;  %v9061_v27 = vld [vmem:[%s16124_s1 + $0x58] sm:$0xff] }
 0x634   : > { %17143 = vst [vmem:[#allocation126_spill] sm:$0xff] %v13254_v4  ;;  %4275 = vst.msk [vmem:[#allocation2 + $0x129] sm:$0xff] %vm225_vm0, %v4243_v50  ;;  %v4242_v63 = vadd.f32 %v13254_v4, %v17144_v62  ;;  %v17148_v50 = vld [vmem:[#allocation26_spill] sm:$0xff] }
 0x636   : > { %4274 = vst.msk [vmem:[#allocation2 + $0x121] sm:$0xff] %vm225_vm0, %v4242_v63 }
 0x63b   : > { %v9415_v26 = vpop.f32.mrf.mxu1  ;;  %v4341_v12 = vld [vmem:[#allocation2 + $0x129] sm:$0xff] }
 0x63c   : > { %v13262_v42 = vadd.f32 %v9415_v26, %v13057_v0  ;;  %4654 = vrot.lane.b32.xlu1 %v4341_v12, %s9649_s25 }
 0x63d   : > { %v4181_v9 = vpop.f32.mrf.mxu1  ;;  %v4340_v19 = vld [vmem:[#allocation2 + $0x121] sm:$0xff] }
 0x63e   : > { %17145 = vst [vmem:[#allocation184_spill] sm:$0xff] %v13262_v42  ;;  %v4245_v39 = vadd.f32 %v13262_v42, %v17146_v44  ;;  %v13268_v51 = vadd.f32 %v13057_v0, %v4181_v9  ;;  %4652 = vrot.lane.b32.xlu0 %v4340_v19, %s9649_s25  ;;  %v17150_v9 = vld [vmem:[#allocation31_spill] sm:$0xff] }
 0x63f   : > { %v9064_v42 = vld [vmem:[%s16124_s1 + $0x70] sm:$0xf] }
 0x640   : > { %17147 = vst [vmem:[#allocation37_spill] sm:$0xff] %v13268_v51  ;;  %4277 = vst.msk [vmem:[#allocation2 + $0x141] sm:$0xff] %vm225_vm0, %v4245_v39  ;;  %v4244_v63 = vadd.f32 %v13268_v51, %v17148_v50  ;;  %v17152_v39 = vld [vmem:[#allocation28_spill] sm:$0xff]  ;;  %9425 = vmatprep.subr.msk.mxu0 %vm2021_vm3, %v9064_v42 }
 0x641   : > { %9426 = vmatpush3.msk.msra.mxu0 %vm2021_vm3, %v9064_v42  ;;  %v13438_v42 = vld [vmem:[#allocation2 + $0x38] sm:$0xff] }
 0x642   : > { %4276 = vst.msk [vmem:[#allocation2 + $0x139] sm:$0xff] %vm225_vm0, %v4244_v63 }
 0x647   : > { %v9418_v26 = vpop.f32.mrf.mxu1  ;;  %v4343_v62 = vld [vmem:[#allocation2 + $0x141] sm:$0xff] }
 0x648   : > { %v13276_v12 = vadd.f32 %v9418_v26, %v13057_v0  ;;  %4658 = vrot.lane.b32.xlu1 %v4343_v62, %s9649_s25 }
 0x649   : > { %v4191_v44 = vpop.f32.mrf.mxu1  ;;  %v4342_v25 = vld [vmem:[#allocation2 + $0x139] sm:$0xff] }
 0x64a   : > { %17149 = vst [vmem:[#allocation57_spill] sm:$0xff] %v13276_v12  ;;  %v4247_v47 = vadd.f32 %v13276_v12, %v17150_v9  ;;  %v13282_v19 = vadd.f32 %v13057_v0, %v4191_v44  ;;  %4656 = vrot.lane.b32.xlu0 %v4342_v25, %s9649_s25  ;;  %v17154_v44 = vld [vmem:[#allocation32_spill] sm:$0xff] }
 0x64c   : > { %17151 = vst [vmem:[#allocation86_spill] sm:$0xff] %v13282_v19  ;;  %4279 = vst.msk [vmem:[#allocation2 + $0x159] sm:$0xff] %vm225_vm0, %v4247_v47  ;;  %v4246_v63 = vadd.f32 %v13282_v19, %v17152_v39  ;;  %v17156_v47 = vld [vmem:[#allocation30_spill] sm:$0xff]  ;;  %v13413_v19 = vld [vmem:[#allocation2 + $0x30] sm:$0xff] }
 0x64e   : > { %4278 = vst.msk [vmem:[#allocation2 + $0x151] sm:$0xff] %vm225_vm0, %v4246_v63 }
 0x653   : > { %v9421_v26 = vpop.f32.mrf.mxu1  ;;  %v4345_v50 = vld [vmem:[#allocation2 + $0x159] sm:$0xff] }
 0x654   : > { %v13290_v62 = vadd.f32 %v9421_v26, %v13057_v0  ;;  %4662 = vrot.lane.b32.xlu1 %v4345_v50, %s9649_s25 }
 0x655   : > { %v4201_v9 = vpop.f32.mrf.mxu1  ;;  %v4344_v52 = vld [vmem:[#allocation2 + $0x151] sm:$0xff] }
 0x656   : > { %17153 = vst [vmem:[#allocation107_spill] sm:$0xff] %v13290_v62  ;;  %v4249_v11 = vadd.f32 %v13290_v62, %v17154_v44  ;;  %v13296_v25 = vadd.f32 %v13057_v0, %v4201_v9  ;;  %4660 = vrot.lane.b32.xlu0 %v4344_v52, %s9649_s25  ;;  %v4349_v9 = vld [vmem:[#allocation2 + $0xa] sm:$0xff]  ;;  %v13401_v62 = vpop.permute.xlu1 %4606 }
 0x658   : > { %17155 = vst [vmem:[#allocation163_spill] sm:$0xff] %v13296_v25  ;;  %4281 = vst.msk [vmem:[#allocation2 + $0x171] sm:$0xff] %vm225_vm0, %v4249_v11  ;;  %v4248_v63 = vadd.f32 %v13296_v25, %v17156_v47  ;;  %v4348_v47 = vld [vmem:[#allocation2 + $0x2] sm:$0xff]  ;;  %v13405_v25 = vpop.permute.xlu0 %4604 }
 0x65a   : > { %4280 = vst.msk [vmem:[#allocation2 + $0x169] sm:$0xff] %vm225_vm0, %v4248_v63  ;;  %v17160_v63 = vld [vmem:[#allocation33_spill] sm:$0xff]  ;;  %v13410_v12 = vpop.permute.xlu1 %4610 }
 0x65c   : > { %v13418_v51 = vpop.permute.xlu0 %4608 }
 0x65f   : > { %v9424_v26 = vpop.f32.mrf.mxu1  ;;  %v4347_v39 = vld [vmem:[#allocation2 + $0x171] sm:$0xff] }
 0x660   : > { %v13304_v50 = vadd.f32 %v9424_v26, %v13057_v0  ;;  %4666 = vrot.lane.b32.xlu1 %v4347_v39, %s9649_s25  ;;  %v4351_v39 = vld [vmem:[#allocation2 + $0x22] sm:$0xff] }
 0x661   : > { %v4211_v44 = vpop.f32.mrf.mxu1  ;;  %v4346_v33 = vld [vmem:[#allocation2 + $0x169] sm:$0xff] }
 0x662   : > { %17157 = vst [vmem:[#allocation128_spill] sm:$0xff] %v13304_v50  ;;  %v4251_v52 = vadd.f32 %v13304_v50, %v17158_v55  ;;  %v13310_v11 = vadd.f32 %v13057_v0, %v4211_v44  ;;  %4664 = vrot.lane.b32.xlu0 %v4346_v33, %s9649_s25  ;;  %v4350_v55 = vld [vmem:[#allocation2 + $0x1a] sm:$0xff]  ;;  %v13325_v33 = vld [vmem:[#allocation2 + $0x32] sm:$0xff] }
 0x663   : > { %v13321_v0 = vld [vmem:[#allocation2 + $0x3a] sm:$0xff]  ;;  %v13329_v44 = vld [vmem:[#allocation2 + $0x52] sm:$0xff] }
 0x664   : > { %17159 = vst [vmem:[#allocation186_spill] sm:$0xff] %v13310_v11  ;;  %4283 = vst.msk [vmem:[#allocation2 + $0x189] sm:$0xff] %vm225_vm0, %v4251_v52  ;;  %v4250_v26 = vadd.f32 %v13310_v11, %v17160_v63  ;;  %4734 = vrot.lane.b32.xlu1 %v4349_v9, %s9650_s26  ;;  %v13337_v9 = vld [vmem:[#allocation2 + $0x6a] sm:$0xff]  ;;  %v13341_v52 = vld [vmem:[#allocation2 + $0x62] sm:$0xff] }
 0x665   : > { %v13349_v63 = vld [vmem:[#allocation2 + $0x7a] sm:$0xff] }
 0x666   : > { %4282 = vst.msk [vmem:[#allocation2 + $0x181] sm:$0xff] %vm225_vm0, %v4250_v26  ;;  %4732 = vrot.lane.b32.xlu0 %v4348_v47, %s9650_s26  ;;  %v13333_v47 = vld [vmem:[#allocation2 + $0x4a] sm:$0xff]  ;;  %v13345_v26 = vld [vmem:[#allocation2 + $0x82] sm:$0xff]  ;;  %v13397_v11 = vld [vmem:[#allocation2 + $0x18] sm:$0xff] }
 0x667   : > { %v13393_v50 = vld [vmem:[#allocation2 + $0x20] sm:$0xff] }
 0x668   : > { %4738 = vrot.lane.b32.xlu1 %v4351_v39, %s9650_s26 }
 0x66a   : > { %4736 = vrot.lane.b32.xlu0 %v4350_v55, %s9650_s26 }
 0x66c   : > { %4742 = vrot.lane.b32.xlu1 %v13321_v0, %s9650_s26 }
 0x66e   : > { %4740 = vrot.lane.b32.xlu0 %v13325_v33, %s9650_s26 }
 0x670   : > { %4746 = vrot.lane.b32.xlu1 %v13329_v44, %s9650_s26 }
 0x672   : > { %4744 = vrot.lane.b32.xlu0 %v13333_v47, %s9650_s26 }
 0x674   : > { %4750 = vrot.lane.b32.xlu1 %v13337_v9, %s9650_s26 }
 0x676   : > { %4748 = vrot.lane.b32.xlu0 %v13341_v52, %s9650_s26 }
 0x678   : > { %4754 = vrot.lane.b32.xlu1 %v13345_v26, %s9650_s26 }
 0x67a   : > { %4752 = vrot.lane.b32.xlu0 %v13349_v63, %s9650_s26 }
 0x67c   : > { %4758 = vrot.lane.b32.xlu1 %v13353_v22, %s9650_s26 }
 0x67e   : > { %4756 = vrot.lane.b32.xlu0 %v13357_v29, %s9650_s26 }
 0x680   : > { %4762 = vrot.lane.b32.xlu1 %v13361_v43, %s9650_s26 }
 0x682   : > { %4760 = vrot.lane.b32.xlu0 %v13365_v13, %s9650_s26 }
 0x684   : > { %4766 = vrot.lane.b32.xlu1 %v13369_v24, %s9650_s26 }
 0x686   : > { %4764 = vrot.lane.b32.xlu0 %v13373_v18, %s9650_s26 }
 0x688   : > { %4770 = vrot.lane.b32.xlu1 %v13377_v3, %s9650_s26 }
 0x68a   : > { %4768 = vrot.lane.b32.xlu0 %v13381_v5, %s9650_s26 }
 0x68c   : > { %4774 = vrot.lane.b32.xlu1 %v13385_v32, %s9650_s26 }
 0x68e   : > { %4772 = vrot.lane.b32.xlu0 %v13389_v35, %s9650_s26 }
 0x690   : > { %4862 = vrot.lane.b32.xlu1 %v13393_v50, %s9651_s27 }
 0x692   : > { %4860 = vrot.lane.b32.xlu0 %v13397_v11, %s9651_s27 }
 0x694   : > { %4990 = vrot.lane.b32.xlu1 %v13079_v20, %s9652_s28  ;;  %v9063_v20 = vld [vmem:[%s16124_s1 + $0x68] sm:$0xff] }
 0x695   : > { %9427 = vmatprep.subr.mxu0 %v9063_v20 }
 0x696   : > { %4988 = vrot.lane.b32.xlu0 %v13086_v1, %s9652_s28  ;;  %v13427_v1 = vpop.permute.xlu1 %4614  ;;  %9428 = vmatpush3.msra.mxu0 %v9063_v20  ;;  %v9060_v20 = vld [vmem:[%s16124_s1 + $0x50] sm:$0xff] }
 0x698   : > { %5118 = vrot.lane.b32.xlu1 %v4351_v39, %s9653_s29  ;;  %v13434_v39 = vpop.permute.xlu0 %4612 }
 0x69a   : > { %5116 = vrot.lane.b32.xlu0 %v4350_v55, %s9653_s29  ;;  %v9062_v55 = vld [vmem:[%s16124_s1 + $0x60] sm:$0xff]  ;;  %v13443_v4 = vpop.permute.xlu1 %4618 }
 0x69b   : > { %9429 = vmatprep.subr.mxu0 %v9062_v55 }
 0x69c   : > { %4864 = vrot.lane.b32.xlu1 %v13413_v19, %s9651_s27  ;;  %9430 = vmatpush3.msra.mxu0 %v9062_v55  ;;  %v13450_v17 = vpop.permute.xlu0 %4616 }
 0x69d   : > { %9431 = vmatprep.subr.mxu0 %v9061_v27 }
 0x69e   : > { %5244 = vrot.lane.b32.xlu0 %v13413_v19, %s9654_s30  ;;  %9432 = vmatpush3.msra.mxu0 %v9061_v27  ;;  %v13454_v55 = vpop.permute.xlu1 %4622 }
 0x69f   : > { %9433 = vmatprep.subr.mxu0 %v9060_v20 }
 0x6a0   : > { %5372 = vrot.lane.b32.xlu1 %v13106_v7, %s9655_s6  ;;  %9434 = vmatpush3.msra.mxu0 %v9060_v20  ;;  %v13459_v6 = vpop.permute.xlu0 %4620 }
 0x6a1   : > { %9541 = vmatprep.subr.mxu0 %v17161_v46 }
 0x6a2   : > { %5246 = vrot.lane.b32.xlu0 %v13438_v42, %s9654_s30  ;;  %v13463_v27 = vpop.permute.xlu1 %4626 }
 0x6a4   : > { %4992 = vrot.lane.b32.xlu1 %v13106_v7, %s9652_s28  ;;  %v13467_v7 = vpop.permute.xlu0 %4624 }
 0x6a6   : > { %4866 = vrot.lane.b32.xlu0 %v13438_v42, %s9651_s27  ;;  %v13471_v20 = vpop.permute.xlu1 %4630 }
 0x6a8   : > { %5500 = vrot.lane.b32.xlu1 %v13325_v33, %s9656_s17  ;;  %v13475_v16 = vpop.permute.xlu0 %4628 }
 0x6aa   : > { %5374 = vrot.lane.b32.xlu0 %v13099_v2, %s9655_s6  ;;  %v13479_v10 = vpop.permute.xlu1 %4634 }
 0x6ab   : > { %17162 = vst [vmem:[#allocation41_spill] sm:$0xff] %v13479_v10 }
 0x6ac   : > { %5120 = vrot.lane.b32.xlu1 %v13325_v33, %s9653_s29  ;;  %v13485_v38 = vpop.permute.xlu0 %4632 }
 0x6ad   : > { %17163 = vst [vmem:[#allocation61_spill] sm:$0xff] %v13485_v38 }
 0x6ae   : > { %4994 = vrot.lane.b32.xlu0 %v13099_v2, %s9652_s28  ;;  %v13489_v33 = vpop.permute.xlu1 %4638 }
 0x6af   : > { %17164 = vst [vmem:[#allocation38_spill] sm:$0xff] %v13489_v33 }
 0x6b0   : > { %5122 = vrot.lane.b32.xlu1 %v13321_v0, %s9653_s29  ;;  %v13493_v2 = vpop.permute.xlu0 %4636 }
 0x6b1   : > { %17165 = vst [vmem:[#allocation36_spill] sm:$0xff] %v13493_v2 }
 0x6b2   : > { %5502 = vrot.lane.b32.xlu0 %v13321_v0, %s9656_s17  ;;  %v13499_v0 = vpop.permute.xlu1 %4642 }
 0x6b3   : > { %17166 = vst [vmem:[#allocation188_spill] sm:$0xff] %v13499_v0  ;;  %v13639_v0 = vld [vmem:[#allocation2 + $0x90] sm:$0xff] }
 0x6b4   : > { %4868 = vrot.lane.b32.xlu1 %v13483_v23, %s9651_s27  ;;  %v13503_v60 = vpop.permute.xlu0 %4640 }
 0x6b5   : > { %17167 = vst [vmem:[#allocation50_spill] sm:$0xff] %v13503_v60 }
 0x6b6   : > { %5248 = vrot.lane.b32.xlu0 %v13483_v23, %s9654_s30  ;;  %v13507_v48 = vpop.permute.xlu1 %4646 }
 0x6b7   : > { %17168 = vst [vmem:[#allocation101_spill] sm:$0xff] %v13507_v48 }
 0x6b8   : > { %5376 = vrot.lane.b32.xlu1 %v13126_v45, %s9655_s6  ;;  %v13511_v31 = vpop.permute.xlu0 %4644 }
 0x6b9   : > { %17169 = vst [vmem:[#allocation51_spill] sm:$0xff] %v13511_v31 }
 0x6ba   : > { %5250 = vrot.lane.b32.xlu0 %v13497_v41, %s9654_s30  ;;  %v13515_v21 = vpop.permute.xlu1 %4650 }
 0x6bb   : > { %17170 = vst [vmem:[#allocation42_spill] sm:$0xff] %v13515_v21 }
 0x6bc   : > { %4996 = vrot.lane.b32.xlu1 %v13126_v45, %s9652_s28  ;;  %v13519_v61 = vpop.permute.xlu0 %4648 }
 0x6bd   : > { %17171 = vst [vmem:[#allocation46_spill] sm:$0xff] %v13519_v61 }
 0x6be   : > { %4870 = vrot.lane.b32.xlu0 %v13497_v41, %s9651_s27  ;;  %v13523_v45 = vpop.permute.xlu1 %4654 }
 0x6bf   : > { %17172 = vst [vmem:[#allocation103_spill] sm:$0xff] %v13523_v45 }
 0x6c0   : > { %5504 = vrot.lane.b32.xlu1 %v13333_v47, %s9656_s17  ;;  %v13527_v59 = vpop.permute.xlu0 %4652 }
 0x6c1   : > { %17173 = vst [vmem:[#allocation45_spill] sm:$0xff] %v13527_v59 }
 0x6c2   : > { %5378 = vrot.lane.b32.xlu0 %v13119_v53, %s9655_s6  ;;  %v13531_v54 = vpop.permute.xlu1 %4658 }
 0x6c3   : > { %17174 = vst [vmem:[#allocation104_spill] sm:$0xff] %v13531_v54 }
 0x6c4   : > { %5124 = vrot.lane.b32.xlu1 %v13333_v47, %s9653_s29  ;;  %v13537_v57 = vpop.permute.xlu0 %4656 }
 0x6c5   : > { %17175 = vst [vmem:[#allocation48_spill] sm:$0xff] %v13537_v57  ;;  %v13601_v57 = vld [vmem:[#allocation2 + $0x80] sm:$0xff] }
 0x6c6   : > { %4998 = vrot.lane.b32.xlu0 %v13119_v53, %s9652_s28  ;;  %v13541_v47 = vpop.permute.xlu1 %4662 }
 0x6c7   : > { %17176 = vst [vmem:[#allocation84_spill] sm:$0xff] %v13541_v47 }
 0x6c8   : > { %5126 = vrot.lane.b32.xlu1 %v13329_v44, %s9653_s29  ;;  %v13545_v53 = vpop.permute.xlu0 %4660 }
 0x6c9   : > { %17177 = vst [vmem:[#allocation49_spill] sm:$0xff] %v13545_v53  ;;  %v13587_v53 = vld [vmem:[#allocation2 + $0x78] sm:$0xff] }
 0x6ca   : > { %5506 = vrot.lane.b32.xlu0 %v13329_v44, %s9656_s17 }
 0x6cc   : > { %4872 = vrot.lane.b32.xlu1 %v13535_v49, %s9651_s27 }
 0x6ce   : > { %5252 = vrot.lane.b32.xlu0 %v13535_v49, %s9654_s30 }
 0x6d0   : > { %5380 = vrot.lane.b32.xlu1 %v13146_v30, %s9655_s6 }
 0x6d2   : > { %v13551_v44 = vpop.permute.xlu1 %4666  ;;  %5254 = vrot.lane.b32.xlu0 %v13549_v56, %s9654_s30 }
 0x6d3   : > { %17178 = vst [vmem:[#allocation151_spill] sm:$0xff] %v13551_v44 }
 0x6d4   : > { %5000 = vrot.lane.b32.xlu1 %v13146_v30, %s9652_s28  ;;  %v13557_v8 = vpop.permute.xlu0 %4664 }
 0x6d5   : > { %17179 = vst [vmem:[#allocation70_spill] sm:$0xff] %v13557_v8 }
 0x6d6   : > { %v13559_v14 = vpop.permute.xlu1 %4734  ;;  %4874 = vrot.lane.b32.xlu0 %v13549_v56, %s9651_s27 }
 0x6d8   : > { %5508 = vrot.lane.b32.xlu1 %v13341_v52, %s9656_s17  ;;  %v13565_v15 = vpop.permute.xlu0 %4732 }
 0x6da   : > { %v13567_v28 = vpop.permute.xlu1 %4738  ;;  %5382 = vrot.lane.b32.xlu0 %v13139_v37, %s9655_s6 }
 0x6dc   : > { %5128 = vrot.lane.b32.xlu1 %v13341_v52, %s9653_s29  ;;  %v13573_v30 = vpop.permute.xlu0 %4736 }
 0x6de   : > { %v13575_v8 = vpop.permute.xlu1 %4742  ;;  %5002 = vrot.lane.b32.xlu0 %v13139_v37, %s9652_s28 }
 0x6e0   : > { %5130 = vrot.lane.b32.xlu1 %v13337_v9, %s9653_s29  ;;  %v13581_v44 = vpop.permute.xlu0 %4740 }
 0x6e2   : > { %v13583_v47 = vpop.permute.xlu1 %4746  ;;  %5510 = vrot.lane.b32.xlu0 %v13337_v9, %s9656_s17 }
 0x6e4   : > { %4876 = vrot.lane.b32.xlu1 %v13587_v53, %s9651_s27  ;;  %v13591_v52 = vpop.permute.xlu0 %4744 }
 0x6e6   : > { %v13593_v54 = vpop.permute.xlu1 %4750  ;;  %5256 = vrot.lane.b32.xlu0 %v13587_v53, %s9654_s30 }
 0x6e8   : > { %5384 = vrot.lane.b32.xlu1 %v13166_v40, %s9655_s6  ;;  %v13599_v37 = vpop.permute.xlu0 %4748 }
 0x6ea   : > { %v13603_v9 = vpop.permute.xlu1 %4754  ;;  %5258 = vrot.lane.b32.xlu0 %v13601_v57, %s9654_s30 }
 0x6ec   : > { %5004 = vrot.lane.b32.xlu1 %v13166_v40, %s9652_s28  ;;  %v13609_v46 = vpop.permute.xlu0 %4752 }
 0x6ee   : > { %v13611_v45 = vpop.permute.xlu1 %4758  ;;  %4878 = vrot.lane.b32.xlu0 %v13601_v57, %s9651_s27 }
 0x6ef   : > { %17180 = vst [vmem:[#allocation140_spill] sm:$0xff] %v13611_v45 }
 0x6f0   : > { %5512 = vrot.lane.b32.xlu1 %v13349_v63, %s9656_s17  ;;  %v13617_v59 = vpop.permute.xlu0 %4756 }
 0x6f2   : > { %v13619_v21 = vpop.permute.xlu1 %4762  ;;  %5386 = vrot.lane.b32.xlu0 %v13159_v34, %s9655_s6 }
 0x6f3   : > { %17181 = vst [vmem:[#allocation145_spill] sm:$0xff] %v13619_v21 }
 0x6f4   : > { %5132 = vrot.lane.b32.xlu1 %v13349_v63, %s9653_s29  ;;  %v13625_v40 = vpop.permute.xlu0 %4760 }
 0x6f5   : > { %17182 = vst [vmem:[#allocation123_spill] sm:$0xff] %v13625_v40 }
 0x6f6   : > { %v13627_v61 = vpop.permute.xlu1 %4766  ;;  %5006 = vrot.lane.b32.xlu0 %v13159_v34, %s9652_s28 }
 0x6f7   : > { %17183 = vst [vmem:[#allocation162_spill] sm:$0xff] %v13627_v61 }
 0x6f8   : > { %5134 = vrot.lane.b32.xlu1 %v13345_v26, %s9653_s29  ;;  %v13633_v48 = vpop.permute.xlu0 %4764 }
 0x6f9   : > { %17184 = vst [vmem:[#allocation106_spill] sm:$0xff] %v13633_v48  ;;  %v4423_v48 = vld [vmem:[#allocation2 + $0x99] sm:$0xff] }
 0x6fa   : > { %v13635_v31 = vpop.permute.xlu1 %4770  ;;  %5514 = vrot.lane.b32.xlu0 %v13345_v26, %s9656_s17 }
 0x6fb   : > { %17185 = vst [vmem:[#allocation47_spill] sm:$0xff] %v13635_v31  ;;  %v13653_v31 = vld [vmem:[#allocation2 + $0x98] sm:$0xff] }
 0x6fc   : > { %4880 = vrot.lane.b32.xlu1 %v13639_v0, %s9651_s27  ;;  %v13643_v63 = vpop.permute.xlu0 %4768  ;;  %17189 = vst [vmem:[#allocation118_spill] sm:$0xff] %v13653_v31 }
 0x6fd   : > { %17186 = vst [vmem:[#allocation67_spill] sm:$0xff] %v13643_v63 }
 0x6fe   : > { %v13645_v60 = vpop.permute.xlu1 %4774  ;;  %5260 = vrot.lane.b32.xlu0 %v13639_v0, %s9654_s30 }
 0x6ff   : > { %17187 = vst [vmem:[#allocation169_spill] sm:$0xff] %v13645_v60 }
 0x700   : > { %5388 = vrot.lane.b32.xlu1 %v13186_v58, %s9655_s6  ;;  %v13651_v34 = vpop.permute.xlu0 %4772 }
 0x701   : > { %17188 = vst [vmem:[#allocation135_spill] sm:$0xff] %v13651_v34 }
 0x702   : > { %v4863_v26 = vpop.permute.xlu1 %4862  ;;  %5262 = vrot.lane.b32.xlu0 %v13653_v31, %s9654_s30 }
 0x704   : > { %5008 = vrot.lane.b32.xlu1 %v13186_v58, %s9652_s28  ;;  %v4861_v63 = vpop.permute.xlu0 %4860  ;;  %v4284_v58 = vld [vmem:[#allocation2] sm:$0xff] }
 0x705   : > { %v5596_v10 = vsel %vm225_vm0, %v4284_v58, %v13405_v25  ;;  %v4518_v58 = vld [vmem:[#allocation2 + $0xa9] sm:$0xff] }
 0x706   : > { %v4991_v61 = vpop.permute.xlu1 %4990  ;;  %4882 = vrot.lane.b32.xlu0 %v13653_v31, %s9651_s27 }
 0x708   : > { %5516 = vrot.lane.b32.xlu1 %v13357_v29, %s9656_s17  ;;  %v4989_v60 = vpop.permute.xlu0 %4988 }
 0x70a   : > { %v5119_v33 = vpop.permute.xlu1 %5118  ;;  %5390 = vrot.lane.b32.xlu0 %v13179_v36, %s9655_s6  ;;  %v13674_v36 = vld [vmem:[#allocation2 + $0xa8] sm:$0xff] }
 0x70c   : > { %5136 = vrot.lane.b32.xlu1 %v13357_v29, %s9653_s29  ;;  %v5117_v34 = vpop.permute.xlu0 %5116  ;;  %v5628_v29 = vsel %vm1681_vm4, %v5596_v10, %v13565_v15  ;;  %v13687_v10 = vld [vmem:[#allocation2 + $0xb0] sm:$0xff] }
 0x70d   : > { %v5660_v38 = vsel %vm1714_vm5, %v5628_v29, %v4861_v63 }
 0x70e   : > { %v4865_v2 = vpop.permute.xlu1 %4864  ;;  %5010 = vrot.lane.b32.xlu0 %v4423_v48, %s9652_s28  ;;  %v5692_v45 = vsel %vm1747_vm6, %v5660_v38, %v4989_v60  ;;  %v4285_v60 = vld [vmem:[#allocation2 + $0x8] sm:$0xff] }
 0x70f   : > { %v5724_v31 = vsel %vm1780_vm7, %v5692_v45, %v5117_v34 }
 0x710   : > { %5138 = vrot.lane.b32.xlu1 %v13353_v22, %s9653_s29  ;;  %v5245_v21 = vpop.permute.xlu0 %5244 }
 0x712   : > { %v5373_v40 = vpop.permute.xlu1 %5372  ;;  %5518 = vrot.lane.b32.xlu0 %v13353_v22, %s9656_s17  ;;  %v5756_v22 = vsel %vm1813_vm8, %v5724_v31, %v5245_v21  ;;  %v5597_v21 = vsel %vm225_vm0, %v4285_v60, %v13401_v62 }
 0x713   : > { %v5788_v63 = vsel %vm1846_vm9, %v5756_v22, %v5373_v40  ;;  %v5629_v40 = vsel %vm1681_vm4, %v5597_v21, %v13559_v14 }
 0x714   : > { %4884 = vrot.lane.b32.xlu1 %v13674_v36, %s9651_s27  ;;  %v5247_v48 = vpop.permute.xlu0 %5246  ;;  %v5661_v34 = vsel %vm1714_vm5, %v5629_v40, %v4863_v26 }
 0x716   : > { %v4993_v25 = vpop.permute.xlu1 %4992  ;;  %5264 = vrot.lane.b32.xlu0 %v13674_v36, %s9654_s30 }
 0x718   : > { %5392 = vrot.lane.b32.xlu1 %v4518_v58, %s9655_s6  ;;  %v4867_v15 = vpop.permute.xlu0 %4866 }
 0x71a   : > { %v5501_v29 = vpop.permute.xlu1 %5500  ;;  %5266 = vrot.lane.b32.xlu0 %v13687_v10, %s9654_s30 }
 0x71b   : > { %v5820_v38 = vsel %vm1879_vm10, %v5788_v63, %v5501_v29  ;;  %v4519_v63 = vld [vmem:[#allocation2 + $0xb1] sm:$0xff] }
 0x71c   : > { %5012 = vrot.lane.b32.xlu1 %v4518_v58, %s9652_s28  ;;  %9435 = vmatprep.mubr.msk.f32.mxu0 %vm1924_vm11, %v5820_v38  ;;  %v5375_v31 = vpop.permute.xlu0 %5374  ;;  %v5693_v58 = vsel %vm1747_vm6, %v5661_v34, %v4991_v61 }
 0x71d   : > { %v5725_v29 = vsel %vm1780_vm7, %v5693_v58, %v5119_v33  ;;  %v5598_v33 = vsel %vm225_vm0, %v13397_v11, %v13418_v51  ;;  %v4520_v11 = vld [vmem:[#allocation2 + $0xc1] sm:$0xff] }
 0x71e   : > { %v5121_v45 = vpop.permute.xlu1 %5120  ;;  %4886 = vrot.lane.b32.xlu0 %v13687_v10, %s9651_s27  ;;  %v5757_v62 = vsel %vm1813_vm8, %v5725_v29, %v5247_v48  ;;  %v13734_v29 = vld [vmem:[#allocation2 + $0xc8] sm:$0xff] }
 0x71f   : > { %v5789_v60 = vsel %vm1846_vm9, %v5757_v62, %v5375_v31  ;;  %v5630_v31 = vsel %vm1681_vm4, %v5598_v33, %v13573_v30 }
 0x720   : > { %5520 = vrot.lane.b32.xlu1 %v13365_v13, %s9656_s17  ;;  %v4995_v22 = vpop.permute.xlu0 %4994  ;;  %v5662_v40 = vsel %vm1714_vm5, %v5630_v31, %v4865_v2 }
 0x721   : > { %v5694_v58 = vsel %vm1747_vm6, %v5662_v40, %v4993_v25 }
 0x722   : > { %v5123_v38 = vpop.permute.xlu1 %5122  ;;  %5394 = vrot.lane.b32.xlu0 %v4519_v63, %s9655_s6 }
 0x724   : > { %5140 = vrot.lane.b32.xlu1 %v13365_v13, %s9653_s29  ;;  %v5503_v14 = vpop.permute.xlu0 %5502  ;;  %v13721_v13 = vld [vmem:[#allocation2 + $0xc0] sm:$0xff] }
 0x725   : > { %v5821_v26 = vsel %vm1879_vm10, %v5789_v60, %v5503_v14 }
 0x726   : > { %v4869_v21 = vpop.permute.xlu1 %4868  ;;  %5014 = vrot.lane.b32.xlu0 %v4519_v63, %s9652_s28  ;;  %9436 = vmatmul.mubr.msk.f32.vlgmr.msra.gmra.mxu0 %vm1924_vm11, %v5821_v26  ;;  %v5726_v63 = vsel %vm1780_vm7, %v5694_v58, %v5121_v45  ;;  %v5599_v45 = vsel %vm225_vm0, %v13393_v50, %v13410_v12  ;;  %v4521_v50 = vld [vmem:[#allocation2 + $0xc9] sm:$0xff] }
 0x727   : > { %v5631_v14 = vsel %vm1681_vm4, %v5599_v45, %v13567_v28  ;;  %v13782_v45 = vld [vmem:[#allocation2 + $0xe0] sm:$0xff] }
 0x728   : > { %5142 = vrot.lane.b32.xlu1 %v13361_v43, %s9653_s29  ;;  %v5249_v61 = vpop.permute.xlu0 %5248  ;;  %v5663_v26 = vsel %vm1714_vm5, %v5631_v14, %v4867_v15  ;;  %v5601_v14 = vsel %vm225_vm0, %v13438_v42, %v13427_v1  ;;  %v4523_v42 = vld [vmem:[#allocation2 + $0xe1] sm:$0xff] }
 0x729   : > { %v5695_v33 = vsel %vm1747_vm6, %v5663_v26, %v4995_v22 }
 0x72a   : > { %v5377_v48 = vpop.permute.xlu1 %5376  ;;  %5522 = vrot.lane.b32.xlu0 %v13361_v43, %s9656_s17  ;;  %v5758_v43 = vsel %vm1813_vm8, %v5726_v63, %v5249_v61 }
 0x72b   : > { %v5790_v2 = vsel %vm1846_vm9, %v5758_v43, %v5377_v48  ;;  %v5727_v48 = vsel %vm1780_vm7, %v5695_v33, %v5123_v38 }
 0x72c   : > { %4888 = vrot.lane.b32.xlu1 %v13721_v13, %s9651_s27  ;;  %v5251_v34 = vpop.permute.xlu0 %5250 }
 0x72d   : > { %v5759_v28 = vsel %vm1813_vm8, %v5727_v48, %v5251_v34  ;;  %v5600_v34 = vsel %vm225_vm0, %v13413_v19, %v13434_v39  ;;  %v4522_v39 = vld [vmem:[#allocation2 + $0xd9] sm:$0xff] }
 0x72e   : > { %v4997_v51 = vpop.permute.xlu1 %4996  ;;  %5268 = vrot.lane.b32.xlu0 %v13721_v13, %s9654_s30  ;;  %v5632_v43 = vsel %vm1681_vm4, %v5600_v34, %v13581_v44 }
 0x730   : > { %5396 = vrot.lane.b32.xlu1 %v4520_v11, %s9655_s6  ;;  %v4871_v30 = vpop.permute.xlu0 %4870 }
 0x732   : > { %v5505_v62 = vpop.permute.xlu1 %5504  ;;  %5270 = vrot.lane.b32.xlu0 %v13734_v29, %s9654_s30 }
 0x733   : > { %v5822_v25 = vsel %vm1879_vm10, %v5790_v2, %v5505_v62 }
 0x734   : > { %5016 = vrot.lane.b32.xlu1 %v4520_v11, %s9652_s28  ;;  %9438 = vmatprep.mubr.msk.f32.mxu0 %vm1924_vm11, %v5822_v25  ;;  %v5379_v60 = vpop.permute.xlu0 %5378  ;;  %v5664_v11 = vsel %vm1714_vm5, %v5632_v43, %v4869_v21 }
 0x735   : > { %v5791_v15 = vsel %vm1846_vm9, %v5759_v28, %v5379_v60  ;;  %v5696_v62 = vsel %vm1747_vm6, %v5664_v11, %v4997_v51 }
 0x736   : > { %v5125_v61 = vpop.permute.xlu1 %5124  ;;  %4890 = vrot.lane.b32.xlu0 %v13734_v29, %s9651_s27 }
 0x737   : > { %v5728_v25 = vsel %vm1780_vm7, %v5696_v62, %v5125_v61  ;;  %v5633_v61 = vsel %vm1681_vm4, %v5601_v14, %v13575_v8 }
 0x738   : > { %5524 = vrot.lane.b32.xlu1 %v13373_v18, %s9656_s17  ;;  %v4999_v12 = vpop.permute.xlu0 %4998  ;;  %v5665_v33 = vsel %vm1714_vm5, %v5633_v61, %v4871_v30 }
 0x739   : > { %v5697_v48 = vsel %vm1747_vm6, %v5665_v33, %v4999_v12 }
 0x73a   : > { %v5127_v31 = vpop.permute.xlu1 %5126  ;;  %5398 = vrot.lane.b32.xlu0 %v4521_v50, %s9655_s6 }
 0x73b   : > { %v5729_v28 = vsel %vm1780_vm7, %v5697_v48, %v5127_v31 }
 0x73c   : > { %5144 = vrot.lane.b32.xlu1 %v13373_v18, %s9653_s29  ;;  %v5507_v40 = vpop.permute.xlu0 %5506  ;;  %v13769_v18 = vld [vmem:[#allocation2 + $0xd8] sm:$0xff] }
 0x73d   : > { %v5823_v22 = vsel %vm1879_vm10, %v5791_v15, %v5507_v40 }
 0x73e   : > { %v4873_v58 = vpop.permute.xlu1 %4872  ;;  %5018 = vrot.lane.b32.xlu0 %v4521_v50, %s9652_s28  ;;  %9439 = vmatmul.mubr.msk.f32.gmra.mxu0 %vm1924_vm11, %v5823_v22 }
 0x740   : > { %5146 = vrot.lane.b32.xlu1 %v13369_v24, %s9653_s29  ;;  %v5253_v38 = vpop.permute.xlu0 %5252 }
 0x742   : > { %v5381_v63 = vpop.permute.xlu1 %5380  ;;  %5526 = vrot.lane.b32.xlu0 %v13369_v24, %s9656_s17  ;;  %v5760_v24 = vsel %vm1813_vm8, %v5728_v25, %v5253_v38  ;;  %v5602_v38 = vsel %vm225_vm0, %v13483_v23, %v13450_v17  ;;  %v4524_v17 = vld [vmem:[#allocation2 + $0xf1] sm:$0xff] }
 0x743   : > { %v5792_v21 = vsel %vm1846_vm9, %v5760_v24, %v5381_v63  ;;  %v5634_v63 = vsel %vm1681_vm4, %v5602_v38, %v13591_v52  ;;  %v13830_v25 = vld [vmem:[#allocation2 + $0xf8] sm:$0xff]  ;;  %v13878_v38 = vld [vmem:[#allocation2 + $0x110] sm:$0xff] }
 0x744   : > { %4892 = vrot.lane.b32.xlu1 %v13769_v18, %s9651_s27  ;;  %v5255_v2 = vpop.permute.xlu0 %5254  ;;  %v5666_v43 = vsel %vm1714_vm5, %v5634_v63, %v4873_v58 }
 0x745   : > { %v5761_v8 = vsel %vm1813_vm8, %v5729_v28, %v5255_v2  ;;  %v5604_v28 = vsel %vm225_vm0, %v13535_v49, %v13459_v6  ;;  %v4526_v6 = vld [vmem:[#allocation2 + $0x109] sm:$0xff] }
 0x746   : > { %v5001_v19 = vpop.permute.xlu1 %5000  ;;  %5272 = vrot.lane.b32.xlu0 %v13769_v18, %s9654_s30 }
 0x747   : > { %v5698_v2 = vsel %vm1747_vm6, %v5666_v43, %v5001_v19  ;;  %v5605_v43 = vsel %vm225_vm0, %v13549_v56, %v13454_v55  ;;  %v4527_v55 = vld [vmem:[#allocation2 + $0x111] sm:$0xff] }
 0x748   : > { %5400 = vrot.lane.b32.xlu1 %v4522_v39, %s9655_s6  ;;  %v4875_v44 = vpop.permute.xlu0 %4874 }
 0x74a   : > { %v5509_v60 = vpop.permute.xlu1 %5508  ;;  %5274 = vrot.lane.b32.xlu0 %v13782_v45, %s9654_s30 }
 0x74b   : > { %v5824_v51 = vsel %vm1879_vm10, %v5792_v21, %v5509_v60 }
 0x74c   : > { %5020 = vrot.lane.b32.xlu1 %v4522_v39, %s9652_s28  ;;  %9441 = vmatprep.mubr.msk.f32.mxu0 %vm1924_vm11, %v5824_v51  ;;  %v5383_v26 = vpop.permute.xlu0 %5382  ;;  %v5603_v39 = vsel %vm225_vm0, %v13497_v41, %v13443_v4  ;;  %v4525_v4 = vld [vmem:[#allocation2 + $0xf9] sm:$0xff] }
 0x74d   : > { %v5793_v30 = vsel %vm1846_vm9, %v5761_v8, %v5383_v26  ;;  %v5635_v60 = vsel %vm1681_vm4, %v5603_v39, %v13583_v47  ;;  %v5636_v8 = vsel %vm1681_vm4, %v5604_v28, %v13599_v37  ;;  %v5607_v28 = vsel %vm225_vm0, %v13601_v57, %v13463_v27 }
 0x74e   : > { %v5129_v50 = vpop.permute.xlu1 %5128  ;;  %4894 = vrot.lane.b32.xlu0 %v13782_v45, %s9651_s27  ;;  %v5667_v51 = vsel %vm1714_vm5, %v5635_v60, %v4875_v44 }
 0x74f   : > { %v5730_v62 = vsel %vm1780_vm7, %v5698_v2, %v5129_v50  ;;  %v5637_v2 = vsel %vm1681_vm4, %v5605_v43, %v13593_v54 }
 0x750   : > { %5528 = vrot.lane.b32.xlu1 %v13381_v5, %s9656_s17  ;;  %v5003_v1 = vpop.permute.xlu0 %5002 }
 0x751   : > { %v5699_v26 = vsel %vm1747_vm6, %v5667_v51, %v5003_v1  ;;  %v4559_v51 = vld [vmem:[#allocation2 + $0x112] sm:$0xff] }
 0x752   : > { %v5131_v15 = vpop.permute.xlu1 %5130  ;;  %5402 = vrot.lane.b32.xlu0 %v4523_v42, %s9655_s6 }
 0x753   : > { %v5731_v61 = vsel %vm1780_vm7, %v5699_v26, %v5131_v15 }
 0x754   : > { %5148 = vrot.lane.b32.xlu1 %v13381_v5, %s9653_s29  ;;  %v5511_v40 = vpop.permute.xlu0 %5510  ;;  %v13817_v5 = vld [vmem:[#allocation2 + $0xf0] sm:$0xff] }
 0x755   : > { %v5825_v12 = vsel %vm1879_vm10, %v5793_v30, %v5511_v40 }
 0x756   : > { %v4877_v22 = vpop.permute.xlu1 %4876  ;;  %5022 = vrot.lane.b32.xlu0 %v4523_v42, %s9652_s28  ;;  %9442 = vmatmul.mubr.msk.f32.gmra.mxu0 %vm1924_vm11, %v5825_v12 }
 0x757   : > { %v5668_v30 = vsel %vm1714_vm5, %v5636_v8, %v4877_v22  ;;  %v13930_v8 = vld [vmem:[#allocation2 + $0x128] sm:$0xff] }
 0x758   : > { %5150 = vrot.lane.b32.xlu1 %v13377_v3, %s9653_s29  ;;  %v5257_v31 = vpop.permute.xlu0 %5256 }
 0x75a   : > { %v5385_v34 = vpop.permute.xlu1 %5384  ;;  %5530 = vrot.lane.b32.xlu0 %v13377_v3, %s9656_s17  ;;  %v5762_v3 = vsel %vm1813_vm8, %v5730_v62, %v5257_v31 }
 0x75b   : > { %v5794_v58 = vsel %vm1846_vm9, %v5762_v3, %v5385_v34 }
 0x75c   : > { %4896 = vrot.lane.b32.xlu1 %v13817_v5, %s9651_s27  ;;  %v5259_v11 = vpop.permute.xlu0 %5258 }
 0x75d   : > { %v5763_v47 = vsel %vm1813_vm8, %v5731_v61, %v5259_v11 }
 0x75e   : > { %v5005_v23 = vpop.permute.xlu1 %5004  ;;  %5276 = vrot.lane.b32.xlu0 %v13817_v5, %s9654_s30 }
 0x75f   : > { %v5700_v12 = vsel %vm1747_vm6, %v5668_v30, %v5005_v23  ;;  %v5639_v30 = vsel %vm1681_vm4, %v5607_v28, %v13603_v9  ;;  %v4560_v9 = vld [vmem:[#allocation2 + $0x122] sm:$0xff] }
 0x760   : > { %5404 = vrot.lane.b32.xlu1 %v4524_v17, %s9655_s6  ;;  %v4879_v52 = vpop.permute.xlu0 %4878  ;;  %v4531_v28 = vld [vmem:[#allocation2 + $0x141] sm:$0xff] }
 0x761   : > { %v5669_v62 = vsel %vm1714_vm5, %v5637_v2, %v4879_v52 }
 0x762   : > { %v5513_v24 = vpop.permute.xlu1 %5512  ;;  %5278 = vrot.lane.b32.xlu0 %v13830_v25, %s9654_s30 }
 0x763   : > { %v5826_v19 = vsel %vm1879_vm10, %v5794_v58, %v5513_v24 }
 0x764   : > { %5024 = vrot.lane.b32.xlu1 %v4524_v17, %s9652_s28  ;;  %v5387_v21 = vpop.permute.xlu0 %5386  ;;  %9444 = vmatprep.mubr.msk.f32.mxu0 %vm1924_vm11, %v5826_v19  ;;  %v4558_v17 = vld [vmem:[#allocation2 + $0x10a] sm:$0xff] }
 0x765   : > { %v5795_v44 = vsel %vm1846_vm9, %v5763_v47, %v5387_v21 }
 0x766   : > { %v5133_v14 = vpop.permute.xlu1 %5132  ;;  %4898 = vrot.lane.b32.xlu0 %v13830_v25, %s9651_s27 }
 0x767   : > { %v5732_v31 = vsel %vm1780_vm7, %v5700_v12, %v5133_v14  ;;  %v5606_v14 = vsel %vm225_vm0, %v13587_v53, %v13467_v7 }
 0x768   : > { %5532 = vrot.lane.b32.xlu1 %v13389_v35, %s9656_s17  ;;  %v5007_v41 = vpop.permute.xlu0 %5006 }
 0x769   : > { %v5701_v3 = vsel %vm1747_vm6, %v5669_v62, %v5007_v41  ;;  %v13909_v41 = vld [vmem:[#allocation2 + $0x120] sm:$0xff] }
 0x76a   : > { %v5135_v33 = vpop.permute.xlu1 %5134  ;;  %5406 = vrot.lane.b32.xlu0 %v4525_v4, %s9655_s6 }
 0x76b   : > { %v5733_v58 = vsel %vm1780_vm7, %v5701_v3, %v5135_v33 }
 0x76c   : > { %5152 = vrot.lane.b32.xlu1 %v13389_v35, %s9653_s29  ;;  %v5515_v50 = vpop.permute.xlu0 %5514  ;;  %v13865_v35 = vld [vmem:[#allocation2 + $0x108] sm:$0xff] }
 0x76d   : > { %v5827_v48 = vsel %vm1879_vm10, %v5795_v44, %v5515_v50 }
 0x76e   : > { %v4881_v1 = vpop.permute.xlu1 %4880  ;;  %5026 = vrot.lane.b32.xlu0 %v4525_v4, %s9652_s28  ;;  %9445 = vmatmul.mubr.msk.f32.gmra.mxu0 %vm1924_vm11, %v5827_v48  ;;  %v5638_v4 = vsel %vm1681_vm4, %v5606_v14, %v13609_v46 }
 0x76f   : > { %v5670_v61 = vsel %vm1714_vm5, %v5638_v4, %v4881_v1 }
 0x770   : > { %5154 = vrot.lane.b32.xlu1 %v13385_v32, %s9653_s29  ;;  %v5261_v42 = vpop.permute.xlu0 %5260 }
 0x772   : > { %v5389_v15 = vpop.permute.xlu1 %5388  ;;  %5534 = vrot.lane.b32.xlu0 %v13385_v32, %s9656_s17  ;;  %v5764_v32 = vsel %vm1813_vm8, %v5732_v31, %v5261_v42  ;;  %v4528_v42 = vld [vmem:[#allocation2 + $0x121] sm:$0xff] }
 0x773   : > { %v5796_v22 = vsel %vm1846_vm9, %v5764_v32, %v5389_v15 }
 0x774   : > { %4900 = vrot.lane.b32.xlu1 %v13865_v35, %s9651_s27  ;;  %v5263_v40 = vpop.permute.xlu0 %5262 }
 0x775   : > { %v5765_v54 = vsel %vm1813_vm8, %v5733_v58, %v5263_v40 }
 0x776   : > { %v5009_v49 = vpop.permute.xlu1 %5008  ;;  %5280 = vrot.lane.b32.xlu0 %v13865_v35, %s9654_s30 }
 0x777   : > { %v5702_v47 = vsel %vm1747_vm6, %v5670_v61, %v5009_v49  ;;  %v4530_v61 = vld [vmem:[#allocation2 + $0x139] sm:$0xff] }
 0x778   : > { %5408 = vrot.lane.b32.xlu1 %v4526_v6, %s9655_s6  ;;  %v4883_v37 = vpop.permute.xlu0 %4882 }
 0x779   : > { %v5671_v40 = vsel %vm1714_vm5, %v5639_v30, %v4883_v37 }
 0x77a   : > { %v5517_v34 = vpop.permute.xlu1 %5516  ;;  %5282 = vrot.lane.b32.xlu0 %v13878_v38, %s9654_s30 }
 0x77b   : > { %v5828_v63 = vsel %vm1879_vm10, %v5796_v22, %v5517_v34  ;;  %v4529_v34 = vld [vmem:[#allocation2 + $0x129] sm:$0xff] }
 0x77c   : > { %5028 = vrot.lane.b32.xlu1 %v4526_v6, %s9652_s28  ;;  %v5391_v11 = vpop.permute.xlu0 %5390  ;;  %9447 = vmatprep.mubr.msk.f32.mxu0 %vm1924_vm11, %v5828_v63 }
 0x77d   : > { %v5797_v52 = vsel %vm1846_vm9, %v5765_v54, %v5391_v11  ;;  %v5608_v11 = vsel %vm225_vm0, %v13639_v0, %v13475_v16  ;;  %v13960_v16 = vld [vmem:[#allocation2 + $0x138] sm:$0xff] }
 0x77e   : > { %v5137_v23 = vpop.permute.xlu1 %5136  ;;  %4902 = vrot.lane.b32.xlu0 %v13878_v38, %s9651_s27  ;;  %v5640_v62 = vsel %vm1681_vm4, %v5608_v11, %v13617_v59  ;;  %v17194_v11 = vld [vmem:[#allocation41_spill] sm:$0xff] }
 0x77f   : > { %v5734_v44 = vsel %vm1780_vm7, %v5702_v47, %v5137_v23 }
 0x780   : > { %5536 = vrot.lane.b32.xlu1 %v4558_v17, %s9656_s17  ;;  %v5011_v56 = vpop.permute.xlu0 %5010 }
 0x781   : > { %v5703_v31 = vsel %vm1747_vm6, %v5671_v40, %v5011_v56  ;;  %v4561_v56 = vld [vmem:[#allocation2 + $0x12a] sm:$0xff] }
 0x782   : > { %v5139_v24 = vpop.permute.xlu1 %5138  ;;  %5410 = vrot.lane.b32.xlu0 %v4527_v55, %s9655_s6 }
 0x783   : > { %v5735_v27 = vsel %vm1780_vm7, %v5703_v31, %v5139_v24 }
 0x784   : > { %5156 = vrot.lane.b32.xlu1 %v4558_v17, %s9653_s29  ;;  %v5519_v19 = vpop.permute.xlu0 %5518 }
 0x785   : > { %v5829_v39 = vsel %vm1879_vm10, %v5797_v52, %v5519_v19  ;;  %v17190_v19 = vld [vmem:[#allocation118_spill] sm:$0xff] }
 0x786   : > { %v4885_v21 = vpop.permute.xlu1 %4884  ;;  %5030 = vrot.lane.b32.xlu0 %v4527_v55, %s9652_s28  ;;  %9448 = vmatmul.mubr.msk.f32.gmra.mxu0 %vm1924_vm11, %v5829_v39  ;;  %v5609_v39 = vsel %vm225_vm0, %v17190_v19, %v13471_v20 }
 0x787   : > { %v5672_v23 = vsel %vm1714_vm5, %v5640_v62, %v4885_v21 }
 0x788   : > { %4776 = vrot.lane.b32.xlu1 %v4558_v17, %s9650_s26  ;;  %v5265_v60 = vpop.permute.xlu0 %5264 }
 0x789   : > { %v5766_v7 = vsel %vm1813_vm8, %v5734_v44, %v5265_v60  ;;  %v17191_v60 = vld [vmem:[#allocation140_spill] sm:$0xff] }
 0x78a   : > { %v5393_v26 = vpop.permute.xlu1 %5392  ;;  %5538 = vrot.lane.b32.xlu0 %v4559_v51, %s9656_s17 }
 0x78b   : > { %v5798_v46 = vsel %vm1846_vm9, %v5766_v7, %v5393_v26 }
 0x78c   : > { %5284 = vrot.lane.b32.xlu1 %v13909_v41, %s9654_s30  ;;  %v5267_v33 = vpop.permute.xlu0 %5266 }
 0x78d   : > { %v5767_v32 = vsel %vm1813_vm8, %v5735_v27, %v5267_v33  ;;  %v4499_v33 = vld [vmem:[#allocation2 + $0x140] sm:$0xff] }
 0x78e   : > { %v5013_v50 = vpop.permute.xlu1 %5012  ;;  %5158 = vrot.lane.b32.xlu0 %v4559_v51, %s9653_s29 }
 0x78f   : > { %v5704_v17 = vsel %vm1747_vm6, %v5672_v23, %v5013_v50  ;;  %v17195_v23 = vld [vmem:[#allocation145_spill] sm:$0xff] }
 0x790   : > { %4904 = vrot.lane.b32.xlu1 %v13909_v41, %s9651_s27  ;;  %v4887_v53 = vpop.permute.xlu0 %4886 }
 0x792   : > { %v5521_v48 = vpop.permute.xlu1 %5520  ;;  %4778 = vrot.lane.b32.xlu0 %v4559_v51, %s9650_s26  ;;  %v5641_v51 = vsel %vm1681_vm4, %v5609_v39, %v17191_v60  ;;  %v4501_v39 = vld [vmem:[#allocation2 + $0x158] sm:$0xff] }
 0x793   : > { %v5830_v1 = vsel %vm1879_vm10, %v5798_v46, %v5521_v48  ;;  %v5673_v14 = vsel %vm1714_vm5, %v5641_v51, %v4887_v53  ;;  %v17196_v51 = vld [vmem:[#allocation36_spill] sm:$0xff] }
 0x794   : > { %5412 = vrot.lane.b32.xlu1 %v4528_v42, %s9655_s6  ;;  %v5395_v15 = vpop.permute.xlu0 %5394  ;;  %9450 = vmatprep.mubr.msk.f32.mxu0 %vm1924_vm11, %v5830_v1  ;;  %v4562_v1 = vld [vmem:[#allocation2 + $0x13a] sm:$0xff] }
 0x795   : > { %v5799_v6 = vsel %vm1846_vm9, %v5767_v32, %v5395_v15  ;;  %v17192_v15 = vld [vmem:[#allocation61_spill] sm:$0xff] }
 0x796   : > { %v5141_v12 = vpop.permute.xlu1 %5140  ;;  %5286 = vrot.lane.b32.xlu0 %v13930_v8, %s9654_s30  ;;  %v5610_v30 = vsel %vm225_vm0, %v13674_v36, %v17192_v15 }
 0x797   : > { %v5736_v55 = vsel %vm1780_vm7, %v5704_v17, %v5141_v12  ;;  %v17193_v12 = vld [vmem:[#allocation123_spill] sm:$0xff] }
 0x798   : > { %5032 = vrot.lane.b32.xlu1 %v4528_v42, %s9652_s28  ;;  %v5015_v57 = vpop.permute.xlu0 %5014  ;;  %v5642_v31 = vsel %vm1681_vm4, %v5610_v30, %v17193_v12 }
 0x799   : > { %v5705_v4 = vsel %vm1747_vm6, %v5673_v14, %v5015_v57  ;;  %v5612_v14 = vsel %vm225_vm0, %v13721_v13, %v17196_v51 }
 0x79a   : > { %v5143_v49 = vpop.permute.xlu1 %5142  ;;  %4906 = vrot.lane.b32.xlu0 %v13930_v8, %s9651_s27 }
 0x79b   : > { %v5737_v47 = vsel %vm1780_vm7, %v5705_v4, %v5143_v49  ;;  %v17197_v4 = vld [vmem:[#allocation106_spill] sm:$0xff] }
 0x79c   : > { %5540 = vrot.lane.b32.xlu1 %v4560_v9, %s9656_s17  ;;  %v5523_v37 = vpop.permute.xlu0 %5522 }
 0x79d   : > { %v5831_v22 = vsel %vm1879_vm10, %v5799_v6, %v5523_v37  ;;  %v4563_v37 = vld [vmem:[#allocation2 + $0x142] sm:$0xff] }
 0x79e   : > { %v4889_v63 = vpop.permute.xlu1 %4888  ;;  %5414 = vrot.lane.b32.xlu0 %v4529_v34, %s9655_s6  ;;  %9451 = vmatmul.mubr.msk.f32.gmra.mxu0 %vm1924_vm11, %v5831_v22 }
 0x79f   : > { %v5674_v57 = vsel %vm1714_vm5, %v5642_v31, %v4889_v63  ;;  %v4565_v31 = vld [vmem:[#allocation2 + $0x15a] sm:$0xff] }
 0x7a0   : > { %5160 = vrot.lane.b32.xlu1 %v4560_v9, %s9653_s29  ;;  %v5269_v43 = vpop.permute.xlu0 %5268 }
 0x7a1   : > { %v5768_v0 = vsel %vm1813_vm8, %v5736_v55, %v5269_v43  ;;  %v4500_v43 = vld [vmem:[#allocation2 + $0x150] sm:$0xff] }
 0x7a2   : > { %v5397_v2 = vpop.permute.xlu1 %5396  ;;  %5034 = vrot.lane.b32.xlu0 %v4529_v34, %s9652_s28 }
 0x7a3   : > { %v5800_v24 = vsel %vm1846_vm9, %v5768_v0, %v5397_v2  ;;  %v5611_v2 = vsel %vm225_vm0, %v13687_v10, %v17194_v11 }
 0x7a4   : > { %4780 = vrot.lane.b32.xlu1 %v4560_v9, %s9650_s26  ;;  %v5271_v3 = vpop.permute.xlu0 %5270 }
 0x7a5   : > { %v5769_v50 = vsel %vm1813_vm8, %v5737_v47, %v5271_v3  ;;  %v5643_v3 = vsel %vm1681_vm4, %v5611_v2, %v17195_v23 }
 0x7a6   : > { %v5017_v58 = vpop.permute.xlu1 %5016  ;;  %5542 = vrot.lane.b32.xlu0 %v4561_v56, %s9656_s17 }
 0x7a7   : > { %v5706_v49 = vsel %vm1747_vm6, %v5674_v57, %v5017_v58 }
 0x7a8   : > { %5288 = vrot.lane.b32.xlu1 %v13960_v16, %s9654_s30  ;;  %v4891_v59 = vpop.permute.xlu0 %4890 }
 0x7a9   : > { %v5675_v17 = vsel %vm1714_vm5, %v5643_v3, %v4891_v59 }
 0x7aa   : > { %v5525_v54 = vpop.permute.xlu1 %5524  ;;  %5162 = vrot.lane.b32.xlu0 %v4561_v56, %s9653_s29 }
 0x7ab   : > { %v5832_v52 = vsel %vm1879_vm10, %v5800_v24, %v5525_v54  ;;  %v4532_v54 = vld [vmem:[#allocation2 + $0x151] sm:$0xff] }
 0x7ac   : > { %4908 = vrot.lane.b32.xlu1 %v13960_v16, %s9651_s27  ;;  %v5399_v21 = vpop.permute.xlu0 %5398  ;;  %9453 = vmatprep.mubr.msk.f32.mxu0 %vm1924_vm11, %v5832_v52 }
 0x7ad   : > { %v5801_v7 = vsel %vm1846_vm9, %v5769_v50, %v5399_v21  ;;  %v4533_v50 = vld [vmem:[#allocation2 + $0x159] sm:$0xff] }
 0x7ae   : > { %v5145_v26 = vpop.permute.xlu1 %5144  ;;  %4782 = vrot.lane.b32.xlu0 %v4561_v56, %s9650_s26 }
 0x7af   : > { %v5738_v32 = vsel %vm1780_vm7, %v5706_v49, %v5145_v26 }
 0x7b0   : > { %5416 = vrot.lane.b32.xlu1 %v4530_v61, %s9655_s6  ;;  %v5019_v20 = vpop.permute.xlu0 %5018 }
 0x7b1   : > { %v5707_v55 = vsel %vm1747_vm6, %v5675_v17, %v5019_v20  ;;  %v4564_v20 = vld [vmem:[#allocation2 + $0x152] sm:$0xff] }
 0x7b2   : > { %v5147_v44 = vpop.permute.xlu1 %5146  ;;  %5290 = vrot.lane.b32.xlu0 %v4499_v33, %s9654_s30 }
 0x7b3   : > { %v5739_v10 = vsel %vm1780_vm7, %v5707_v55, %v5147_v44  ;;  %v4503_v55 = vld [vmem:[#allocation2 + $0x170] sm:$0xff] }
 0x7b4   : > { %5036 = vrot.lane.b32.xlu1 %v4530_v61, %s9652_s28  ;;  %v5527_v53 = vpop.permute.xlu0 %5526  ;;  %v5644_v61 = vsel %vm1681_vm4, %v5612_v14, %v17197_v4  ;;  %v4566_v14 = vld [vmem:[#allocation2 + $0x16a] sm:$0xff] }
 0x7b5   : > { %v5833_v46 = vsel %vm1879_vm10, %v5801_v7, %v5527_v53 }
 0x7b6   : > { %v4893_v48 = vpop.permute.xlu1 %4892  ;;  %4910 = vrot.lane.b32.xlu0 %v4499_v33, %s9651_s27  ;;  %9454 = vmatmul.mubr.msk.f32.gmra.mxu0 %vm1924_vm11, %v5833_v46 }
 0x7b7   : > { %v5676_v33 = vsel %vm1714_vm5, %v5644_v61, %v4893_v48 }
 0x7b8   : > { %5544 = vrot.lane.b32.xlu1 %v4562_v1, %s9656_s17  ;;  %v5273_v42 = vpop.permute.xlu0 %5272 }
 0x7b9   : > { %v5770_v36 = vsel %vm1813_vm8, %v5738_v32, %v5273_v42  ;;  %v4502_v32 = vld [vmem:[#allocation2 + $0x168] sm:$0xff] }
 0x7ba   : > { %v5401_v40 = vpop.permute.xlu1 %5400  ;;  %5418 = vrot.lane.b32.xlu0 %v4531_v28, %s9655_s6 }
 0x7bb   : > { %v5802_v22 = vsel %vm1846_vm9, %v5770_v36, %v5401_v40  ;;  %v17199_v40 = vld [vmem:[#allocation162_spill] sm:$0xff] }
 0x7bc   : > { %5164 = vrot.lane.b32.xlu1 %v4562_v1, %s9653_s29  ;;  %v5275_v27 = vpop.permute.xlu0 %5274 }
 0x7bd   : > { %v5771_v24 = vsel %vm1813_vm8, %v5739_v10, %v5275_v27 }
 0x7be   : > { %v5021_v9 = vpop.permute.xlu1 %5020  ;;  %5038 = vrot.lane.b32.xlu0 %v4531_v28, %s9652_s28  ;;  %v17198_v28 = vld [vmem:[#allocation38_spill] sm:$0xff] }
 0x7bf   : > { %v5708_v44 = vsel %vm1747_vm6, %v5676_v33, %v5021_v9  ;;  %v5613_v15 = vsel %vm225_vm0, %v13734_v29, %v17198_v28  ;;  %v17202_v33 = vld [vmem:[#allocation188_spill] sm:$0xff] }
 0x7c0   : > { %4784 = vrot.lane.b32.xlu1 %v4562_v1, %s9650_s26  ;;  %v4895_v6 = vpop.permute.xlu0 %4894  ;;  %v5645_v12 = vsel %vm1681_vm4, %v5613_v15, %v17199_v40 }
 0x7c1   : > { %v5677_v57 = vsel %vm1714_vm5, %v5645_v12, %v4895_v6 }
 0x7c2   : > { %v5529_v34 = vpop.permute.xlu1 %5528  ;;  %5546 = vrot.lane.b32.xlu0 %v4563_v37, %s9656_s17 }
 0x7c3   : > { %v5834_v63 = vsel %vm1879_vm10, %v5802_v22, %v5529_v34  ;;  %v14064_v34 = vld [vmem:[%s16125_s2 + $0x2] ss:$0 sm:$0xff] }
 0x7c4   : > { %5292 = vrot.lane.b32.xlu1 %v4500_v43, %s9654_s30  ;;  %v5403_v62 = vpop.permute.xlu0 %5402  ;;  %9456 = vmatprep.mubr.msk.f32.mxu0 %vm1924_vm11, %v5834_v63 }
 0x7c5   : > { %v5803_v52 = vsel %vm1846_vm9, %v5771_v24, %v5403_v62  ;;  %v4534_v62 = vld [vmem:[#allocation2 + $0x169] sm:$0xff] }
 0x7c6   : > { %v5149_v56 = vpop.permute.xlu1 %5148  ;;  %5166 = vrot.lane.b32.xlu0 %v4563_v37, %s9653_s29  ;;  %v17201_v24 = vld [vmem:[#allocation67_spill] sm:$0xff] }
 0x7c7   : > { %v5740_v7 = vsel %vm1780_vm7, %v5708_v44, %v5149_v56 }
 0x7c8   : > { %4912 = vrot.lane.b32.xlu1 %v4500_v43, %s9651_s27  ;;  %v5023_v58 = vpop.permute.xlu0 %5022 }
 0x7c9   : > { %v5709_v49 = vsel %vm1747_vm6, %v5677_v57, %v5023_v58  ;;  %v17200_v58 = vld [vmem:[#allocation50_spill] sm:$0xff] }
 0x7ca   : > { %v5151_v0 = vpop.permute.xlu1 %5150  ;;  %4786 = vrot.lane.b32.xlu0 %v4563_v37, %s9650_s26  ;;  %v5614_v10 = vsel %vm225_vm0, %v13769_v18, %v17200_v58 }
 0x7cb   : > { %v5741_v9 = vsel %vm1780_vm7, %v5709_v49, %v5151_v0 }
 0x7cc   : > { %5420 = vrot.lane.b32.xlu1 %v4532_v54, %s9655_s6  ;;  %v5531_v59 = vpop.permute.xlu0 %5530 }
 0x7cd   : > { %v5835_v19 = vsel %vm1879_vm10, %v5803_v52, %v5531_v59 }
 0x7ce   : > { %v14022_v21 = vpop.permute.xlu1 %4896  ;;  %5294 = vrot.lane.b32.xlu0 %v4501_v39, %s9654_s30  ;;  %9457 = vmatmul.mubr.msk.f32.gmra.mxu0 %vm1924_vm11, %v5835_v19 }
 0x7d0   : > { %5040 = vrot.lane.b32.xlu1 %v4532_v54, %s9652_s28  ;;  %v5277_v60 = vpop.permute.xlu0 %5276  ;;  %v5646_v54 = vsel %vm1681_vm4, %v5614_v10, %v17201_v24  ;;  %v4568_v10 = vld [vmem:[#allocation2 + $0x182] sm:$0xff] }
 0x7d1   : > { %v5772_v13 = vsel %vm1813_vm8, %v5740_v7, %v5277_v60  ;;  %v5678_v59 = vsel %vm1714_vm5, %v5646_v54, %v14022_v21  ;;  %v4535_v21 = vld [vmem:[#allocation2 + $0x171] sm:$0xff]  ;;  %v4537_v54 = vld [vmem:[#allocation2 + $0x189] sm:$0xff] }
 0x7d2   : > { %v5405_v26 = vpop.permute.xlu1 %5404  ;;  %4914 = vrot.lane.b32.xlu0 %v4501_v39, %s9651_s27 }
 0x7d3   : > { %v5804_v1 = vsel %vm1846_vm9, %v5772_v13, %v5405_v26 }
 0x7d4   : > { %5548 = vrot.lane.b32.xlu1 %v4564_v20, %s9656_s17  ;;  %v5279_v47 = vpop.permute.xlu0 %5278 }
 0x7d5   : > { %v5773_v37 = vsel %vm1813_vm8, %v5741_v9, %v5279_v47  ;;  %v5615_v47 = vsel %vm225_vm0, %v13782_v45, %v17202_v33  ;;  %v4567_v45 = vld [vmem:[#allocation2 + $0x172] sm:$0xff]  ;;  %v4507_v33 = vld [vmem:[#allocation2 + $0x1a0] sm:$0xff] }
 0x7d6   : > { %v5025_v53 = vpop.permute.xlu1 %5024  ;;  %5422 = vrot.lane.b32.xlu0 %v4533_v50, %s9655_s6 }
 0x7d7   : > { %v5710_v39 = vsel %vm1747_vm6, %v5678_v59, %v5025_v53 }
 0x7d8   : > { %5168 = vrot.lane.b32.xlu1 %v4564_v20, %s9653_s29  ;;  %v14040_v46 = vpop.permute.xlu0 %4898 }
 0x7da   : > { %v5533_v48 = vpop.permute.xlu1 %5532  ;;  %5042 = vrot.lane.b32.xlu0 %v4533_v50, %s9652_s28  ;;  %v17203_v50 = vld [vmem:[#allocation47_spill] sm:$0xff] }
 0x7db   : > { %v5836_v42 = vsel %vm1879_vm10, %v5804_v1, %v5533_v48  ;;  %v5647_v7 = vsel %vm1681_vm4, %v5615_v47, %v17203_v50 }
 0x7dc   : > { %4788 = vrot.lane.b32.xlu1 %v4564_v20, %s9650_s26  ;;  %v5407_v30 = vpop.permute.xlu0 %5406  ;;  %9459 = vmatprep.mubr.msk.f32.mxu0 %vm1924_vm11, %v5836_v42  ;;  %v5679_v53 = vsel %vm1714_vm5, %v5647_v7, %v14040_v46 }
 0x7dd   : > { %v5805_v22 = vsel %vm1846_vm9, %v5773_v37, %v5407_v30  ;;  %v4504_v30 = vld [vmem:[#allocation2 + $0x180] sm:$0xff] }
 0x7de   : > { %v5153_v27 = vpop.permute.xlu1 %5152  ;;  %5550 = vrot.lane.b32.xlu0 %v4565_v31, %s9656_s17 }
 0x7df   : > { %v5742_v18 = vsel %vm1780_vm7, %v5710_v39, %v5153_v27  ;;  %v17206_v39 = vld [vmem:[#allocation101_spill] sm:$0xff] }
 0x7e0   : > { %5296 = vrot.lane.b32.xlu1 %v4502_v32, %s9654_s30  ;;  %v5027_v29 = vpop.permute.xlu0 %5026 }
 0x7e1   : > { %v5711_v1 = vsel %vm1747_vm6, %v5679_v53, %v5027_v29  ;;  %v4506_v53 = vld [vmem:[#allocation2 + $0x198] sm:$0xff] }
 0x7e2   : > { %v5155_v36 = vpop.permute.xlu1 %5154  ;;  %5170 = vrot.lane.b32.xlu0 %v4565_v31, %s9653_s29 }
 0x7e3   : > { %v5743_v42 = vsel %vm1780_vm7, %v5711_v1, %v5155_v36 }
 0x7e4   : > { %4916 = vrot.lane.b32.xlu1 %v4502_v32, %s9651_s27  ;;  %v5535_v6 = vpop.permute.xlu0 %5534 }
 0x7e5   : > { %v5837_v63 = vsel %vm1879_vm10, %v5805_v22, %v5535_v6  ;;  %v4536_v22 = vld [vmem:[#allocation2 + $0x181] sm:$0xff] }
 0x7e6   : > { %v14067_v43 = vpop.permute.xlu1 %4900  ;;  %v9437_v11 = vpop.f32.mrf.mxu0  ;;  %4790 = vrot.lane.b32.xlu0 %v4565_v31, %s9650_s26  ;;  %9460 = vmatmul.mubr.msk.f32.gmra.mxu0 %vm1924_vm11, %v5837_v63  ;;  %v4505_v63 = vld [vmem:[#allocation2 + $0x188] sm:$0xff] }
 0x7e7   : > { %v6037_v2 = vadd.f32 %v9437_v11, %v14064_v34 }
 0x7e8   : > { %5424 = vrot.lane.b32.xlu1 %v4534_v62, %s9655_s6  ;;  %v6031_v23 = vpop.f32.mrf.mxu0  ;;  %v5281_v3 = vpop.permute.xlu0 %5280 }
 0x7e9   : > { %v6191_v17 = vmax.f32 %v6037_v2, 0.0  ;;  %v6032_v56 = vadd.f32 %v14064_v34, %v6031_v23  ;;  %v5774_v51 = vsel %vm1813_vm8, %v5742_v18, %v5281_v3  ;;  %v17204_v2 = vld [vmem:[#allocation51_spill] sm:$0xff]  ;;  %v5617_v18 = vsel %vm225_vm0, %v13830_v25, %v17206_v39 }
 0x7ea   : > { %v5409_v0 = vpop.permute.xlu1 %5408  ;;  %5298 = vrot.lane.b32.xlu0 %v4503_v55, %s9654_s30  ;;  %v17205_v3 = vld [vmem:[#allocation135_spill] sm:$0xff] }
 0x7eb   : > { %6223 = vst.msk [vmem:[#allocation2 + $0x21] sm:$0xff] %vm225_vm0, %v6191_v17  ;;  %v6190_v52 = vmax.f32 %v6032_v56, 0.0  ;;  %v5806_v4 = vsel %vm1846_vm9, %v5774_v51, %v5409_v0  ;;  %v17207_v51 = vld [vmem:[#allocation169_spill] sm:$0xff] }
 0x7ec   : > { %5044 = vrot.lane.b32.xlu1 %v4534_v62, %s9652_s28  ;;  %v5283_v19 = vpop.permute.xlu0 %5282  ;;  %v5616_v62 = vsel %vm225_vm0, %v13817_v5, %v17204_v2  ;;  %v6319_v2 = vld [vmem:[#allocation2 + $0xa] sm:$0xff] }
 0x7ed   : > { %6222 = vst.msk [vmem:[#allocation2 + $0x19] sm:$0xff] %vm225_vm0, %v6190_v52  ;;  %v5775_v15 = vsel %vm1813_vm8, %v5743_v42, %v5283_v19  ;;  %v5648_v17 = vsel %vm1681_vm4, %v5616_v62, %v17205_v3 }
 0x7ee   : > { %v5029_v60 = vpop.permute.xlu1 %5028  ;;  %4918 = vrot.lane.b32.xlu0 %v4503_v55, %s9651_s27  ;;  %v5680_v56 = vsel %vm1714_vm5, %v5648_v17, %v14067_v43  ;;  %v6318_v17 = vld [vmem:[#allocation2 + $0x2] sm:$0xff] }
 0x7ef   : > { %v5712_v58 = vsel %vm1747_vm6, %v5680_v56, %v5029_v60 }
 0x7f0   : > { %5552 = vrot.lane.b32.xlu1 %v4566_v14, %s9656_s17  ;;  %v14090_v26 = vpop.permute.xlu0 %4902 }
 0x7f2   : > { %v5537_v61 = vpop.permute.xlu1 %5536  ;;  %5426 = vrot.lane.b32.xlu0 %v4535_v21, %s9655_s6 }
 0x7f3   : > { %v5838_v20 = vsel %vm1879_vm10, %v5806_v4, %v5537_v61 }
 0x7f4   : > { %5172 = vrot.lane.b32.xlu1 %v4566_v14, %s9653_s29  ;;  %v5411_v44 = vpop.permute.xlu0 %5410  ;;  %9462 = vmatprep.mubr.msk.f32.mxu0 %vm1924_vm11, %v5838_v20 }
 0x7f5   : > { %v5807_v46 = vsel %vm1846_vm9, %v5775_v15, %v5411_v44  ;;  %v4539_v15 = vld [vmem:[#allocation2 + $0x1a1] sm:$0xff] }
 0x7f6   : > { %v5157_v13 = vpop.permute.xlu1 %5156  ;;  %5046 = vrot.lane.b32.xlu0 %v4535_v21, %s9652_s28  ;;  %v4475_v21 = vld [vmem:[#allocation2 + $0x18a] sm:$0xff] }
 0x7f7   : > { %v5744_v0 = vsel %vm1780_vm7, %v5712_v58, %v5157_v13 }
 0x7f8   : > { %4792 = vrot.lane.b32.xlu1 %v4566_v14, %s9650_s26  ;;  %v5031_v48 = vpop.permute.xlu0 %5030  ;;  %v5649_v14 = vsel %vm1681_vm4, %v5617_v18, %v17207_v51  ;;  %v6288_v18 = vld [vmem:[#allocation2 + $0x19] sm:$0xff] }
 0x7f9   : > { %v5681_v4 = vsel %vm1714_vm5, %v5649_v14, %v14090_v26 }
 0x7fa   : > { %v14108_v28 = vpop.permute.xlu1 %4776  ;;  %5554 = vrot.lane.b32.xlu0 %v4567_v45, %s9656_s17  ;;  %v5713_v20 = vsel %vm1747_vm6, %v5681_v4, %v5031_v48 }
 0x7fc   : > { %5300 = vrot.lane.b32.xlu1 %v4504_v30, %s9654_s30  ;;  %v5539_v40 = vpop.permute.xlu0 %5538 }
 0x7fd   : > { %v5839_v12 = vsel %vm1879_vm10, %v5807_v46, %v5539_v40  ;;  %v4538_v40 = vld [vmem:[#allocation2 + $0x199] sm:$0xff] }
 0x7fe   : > { %v5285_v31 = vpop.permute.xlu1 %5284  ;;  %v9440_v57 = vpop.f32.mrf.mxu0  ;;  %5174 = vrot.lane.b32.xlu0 %v4567_v45, %s9653_s29  ;;  %9463 = vmatmul.mubr.msk.f32.gmra.mxu0 %vm1924_vm11, %v5839_v12 }
 0x7ff   : > { %v6047_v27 = vadd.f32 %v9440_v57, %v14064_v34  ;;  %v5776_v24 = vsel %vm1813_vm8, %v5744_v0, %v5285_v31  ;;  %v4571_v31 = vld [vmem:[#allocation2 + $0x1a2] sm:$0xff] }
 0x800   : > { %4920 = vrot.lane.b32.xlu1 %v4504_v30, %s9651_s27  ;;  %v6041_v49 = vpop.f32.mrf.mxu0  ;;  %v5159_v32 = vpop.permute.xlu0 %5158  ;;  %v14206_v0 = vld [vmem:[#allocation2 + $0x20] sm:$0xff] }
 0x801   : > { %v6193_v29 = vmax.f32 %v6047_v27, 0.0  ;;  %v6042_v9 = vadd.f32 %v14064_v34, %v6041_v49  ;;  %v5745_v47 = vsel %vm1780_vm7, %v5713_v20, %v5159_v32  ;;  %v4570_v27 = vld [vmem:[#allocation2 + $0x19a] sm:$0xff]  ;;  %v6287_v32 = vld [vmem:[#allocation2 + $0x9] sm:$0xff] }
 0x802   : > { %v14120_v36 = vpop.permute.xlu1 %4904  ;;  %4794 = vrot.lane.b32.xlu0 %v4567_v45, %s9650_s26 }
 0x803   : > { %6225 = vst.msk [vmem:[#allocation2 + $0x39] sm:$0xff] %vm225_vm0, %v6193_v29  ;;  %v6192_v37 = vmax.f32 %v6042_v9, 0.0  ;;  %v6286_v9 = vld [vmem:[#allocation2 + $0x1] sm:$0xff] }
 0x804   : > { %5428 = vrot.lane.b32.xlu1 %v4536_v22, %s9655_s6  ;;  %v14125_v6 = vpop.permute.xlu0 %4778 }
 0x805   : > { %6224 = vst.msk [vmem:[#allocation2 + $0x31] sm:$0xff] %vm225_vm0, %v6192_v37  ;;  %v17208_v37 = vld [vmem:[#allocation46_spill] sm:$0xff] }
 0x806   : > { %v5413_v11 = vpop.permute.xlu1 %5412  ;;  %5302 = vrot.lane.b32.xlu0 %v4505_v63, %s9654_s30 }
 0x807   : > { %v5808_v52 = vsel %vm1846_vm9, %v5776_v24, %v5413_v11  ;;  %v14211_v24 = vld [vmem:[#allocation2 + $0x18] sm:$0xff] }
 0x808   : > { %5048 = vrot.lane.b32.xlu1 %v4536_v22, %s9652_s28  ;;  %v5287_v23 = vpop.permute.xlu0 %5286  ;;  %v5618_v22 = vsel %vm225_vm0, %v13865_v35, %v17208_v37 }
 0x809   : > { %v5777_v50 = vsel %vm1813_vm8, %v5745_v47, %v5287_v23  ;;  %v5650_v11 = vsel %vm1681_vm4, %v5618_v22, %v14108_v28  ;;  %v6414_v47 = vld [vmem:[#allocation2 + $0x1a] sm:$0xff] }
 0x80a   : > { %v14137_v55 = vpop.permute.xlu1 %5032  ;;  %4922 = vrot.lane.b32.xlu0 %v4505_v63, %s9651_s27  ;;  %v5682_v62 = vsel %vm1714_vm5, %v5650_v11, %v14120_v36 }
 0x80b   : > { %v5714_v3 = vsel %vm1747_vm6, %v5682_v62, %v14137_v55 }
 0x80c   : > { %5556 = vrot.lane.b32.xlu1 %v4568_v10, %s9656_s17  ;;  %v14143_v5 = vpop.permute.xlu0 %4906  ;;  %v14284_v22 = vld [vmem:[#allocation2 + $0x38] sm:$0xff] }
 0x80e   : > { %v5541_v59 = vpop.permute.xlu1 %5540  ;;  %5430 = vrot.lane.b32.xlu0 %v4537_v54, %s9655_s6 }
 0x80f   : > { %v5840_v43 = vsel %vm1879_vm10, %v5808_v52, %v5541_v59 }
 0x810   : > { %5176 = vrot.lane.b32.xlu1 %v4568_v10, %s9653_s29  ;;  %v5415_v19 = vpop.permute.xlu0 %5414  ;;  %9465 = vmatprep.mubr.msk.f32.mxu0 %vm1924_vm11, %v5840_v43 }
 0x811   : > { %v5809_v26 = vsel %vm1846_vm9, %v5777_v50, %v5415_v19 }
 0x812   : > { %v5161_v60 = vpop.permute.xlu1 %5160  ;;  %5050 = vrot.lane.b32.xlu0 %v4537_v54, %s9652_s28  ;;  %v17209_v54 = vld [vmem:[#allocation42_spill] sm:$0xff] }
 0x813   : > { %v5746_v35 = vsel %vm1780_vm7, %v5714_v3, %v5161_v60  ;;  %v5619_v52 = vsel %vm225_vm0, %v13878_v38, %v17209_v54 }
 0x814   : > { %5178 = vrot.lane.b32.xlu1 %v4475_v21, %s9653_s29  ;;  %v14160_v61 = vpop.permute.xlu0 %5034  ;;  %v5651_v19 = vsel %vm1681_vm4, %v5619_v52, %v14125_v6 }
 0x815   : > { %v5683_v60 = vsel %vm1714_vm5, %v5651_v19, %v14143_v5 }
 0x816   : > { %v14164_v25 = vpop.permute.xlu1 %4780  ;;  %v9443_v44 = vpop.f32.mrf.mxu0  ;;  %5558 = vrot.lane.b32.xlu0 %v4475_v21, %s9656_s17  ;;  %v5715_v38 = vsel %vm1747_vm6, %v5683_v60, %v14160_v61 }
 0x817   : > { %v6057_v7 = vadd.f32 %v9443_v44, %v14064_v34 }
 0x818   : > { %5306 = vrot.lane.b32.xlu1 %v4507_v33, %s9654_s30  ;;  %v6051_v13 = vpop.f32.mrf.mxu0  ;;  %v5543_v1 = vpop.permute.xlu0 %5542 }
 0x819   : > { %v6195_v48 = vmax.f32 %v6057_v7, 0.0  ;;  %v6052_v45 = vadd.f32 %v14064_v34, %v6051_v13  ;;  %v5841_v42 = vsel %vm1879_vm10, %v5809_v26, %v5543_v1  ;;  %v6383_v7 = vld [vmem:[#allocation2 + $0x21] sm:$0xff]  ;;  %v14247_v1 = vld [vmem:[#allocation2 + $0x30] sm:$0xff] }
 0x81a   : > { %v5289_v30 = vpop.permute.xlu1 %5288  ;;  %5304 = vrot.lane.b32.xlu0 %v4506_v53, %s9654_s30  ;;  %9466 = vmatmul.mubr.msk.f32.gmra.mxu0 %vm1924_vm11, %v5841_v42  ;;  %v9104_v42 = vld [vmem:[%s16124_s1 + $0x98] sm:$0xf] }
 0x81b   : > { %6227 = vst.msk [vmem:[#allocation2 + $0x51] sm:$0xff] %vm225_vm0, %v6195_v48  ;;  %v6194_v46 = vmax.f32 %v6052_v45, 0.0  ;;  %v5778_v28 = vsel %vm1813_vm8, %v5746_v35, %v5289_v30  ;;  %v6415_v45 = vld [vmem:[#allocation2 + $0x22] sm:$0xff]  ;;  %9483 = vmatprep.subr.msk.mxu1 %vm2021_vm3, %v9104_v42 }
 0x81c   : > { %5434 = vrot.lane.b32.xlu1 %v4539_v15, %s9655_s6  ;;  %v5163_v12 = vpop.permute.xlu0 %5162  ;;  %9484 = vmatpush3.msk.msra.mxu1 %vm2021_vm3, %v9104_v42  ;;  %v17210_v30 = vld [vmem:[#allocation45_spill] sm:$0xff] }
 0x81d   : > { %6226 = vst.msk [vmem:[#allocation2 + $0x49] sm:$0xff] %vm225_vm0, %v6194_v46  ;;  %v5747_v20 = vsel %vm1780_vm7, %v5715_v38, %v5163_v12  ;;  %v5620_v46 = vsel %vm225_vm0, %v13909_v41, %v17210_v30 }
 0x81e   : > { %v14178_v57 = vpop.permute.xlu1 %4908  ;;  %5432 = vrot.lane.b32.xlu0 %v4538_v40, %s9655_s6  ;;  %v5652_v12 = vsel %vm1681_vm4, %v5620_v46, %v14164_v25 }
 0x820   : > { %5562 = vrot.lane.b32.xlu1 %v4571_v31, %s9656_s17  ;;  %v14182_v49 = vpop.permute.xlu0 %4782  ;;  %v5684_v31 = vsel %vm1714_vm5, %v5652_v12, %v14178_v57  ;;  %v9102_v57 = vld [vmem:[%s16124_s1 + $0x88] sm:$0xff] }
 0x822   : > { %v5417_v29 = vpop.permute.xlu1 %5416  ;;  %5560 = vrot.lane.b32.xlu0 %v4570_v27, %s9656_s17 }
 0x823   : > { %v5810_v58 = vsel %vm1846_vm9, %v5778_v28, %v5417_v29  ;;  %v6478_v29 = vld [vmem:[#allocation2 + $0x31] sm:$0xff] }
 0x824   : > { %6576 = vrot.lane.b32.xlu1 %v6287_v32, %s9649_s25  ;;  %v5291_v63 = vpop.permute.xlu0 %5290  ;;  %v9103_v32 = vld [vmem:[%s16124_s1 + $0x90] sm:$0xff] }
 0x825   : > { %v5779_v33 = vsel %vm1813_vm8, %v5747_v20, %v5291_v63  ;;  %9485 = vmatprep.subr.mxu1 %v9103_v32  ;;  %v9101_v63 = vld [vmem:[%s16124_s1 + $0x80] sm:$0xff] }
 0x826   : > { %v14193_v23 = vpop.permute.xlu1 %5036  ;;  %6574 = vrot.lane.b32.xlu0 %v6286_v9, %s9649_s25  ;;  %9486 = vmatpush3.msra.mxu1 %v9103_v32  ;;  %v6511_v20 = vld [vmem:[#allocation2 + $0x3a] sm:$0xff] }
 0x827   : > { %v5716_v41 = vsel %vm1747_vm6, %v5684_v31, %v14193_v23  ;;  %9487 = vmatprep.subr.mxu1 %v9102_v57 }
 0x828   : > { %6704 = vrot.lane.b32.xlu1 %v6319_v2, %s9650_s26  ;;  %v14200_v56 = vpop.permute.xlu0 %4910  ;;  %9488 = vmatpush3.msra.mxu1 %v9102_v57 }
 0x829   : > { %9489 = vmatprep.subr.mxu1 %v9101_v63 }
 0x82a   : > { %v5545_v10 = vpop.permute.xlu1 %5544  ;;  %6702 = vrot.lane.b32.xlu0 %v6318_v17, %s9650_s26  ;;  %v9100_v17 = vld [vmem:[%s16124_s1 + $0x78] sm:$0xff]  ;;  %9490 = vmatpush3.msra.mxu1 %v9101_v63  ;;  %v14367_v63 = vld [vmem:[#allocation2 + $0x50] sm:$0xff] }
 0x82b   : > { %v5842_v36 = vsel %vm1879_vm10, %v5810_v58, %v5545_v10  ;;  %9491 = vmatprep.subr.mxu1 %v9100_v17 }
 0x82c   : > { %6832 = vrot.lane.b32.xlu1 %v14206_v0, %s9651_s27  ;;  %v5419_v55 = vpop.permute.xlu0 %5418  ;;  %9468 = vmatprep.mubr.msk.f32.mxu0 %vm1924_vm11, %v5842_v36  ;;  %v17211_v36 = vld [vmem:[#allocation103_spill] sm:$0xff] }
 0x82d   : > { %v5811_v44 = vsel %vm1846_vm9, %v5779_v33, %v5419_v55  ;;  %v5621_v55 = vsel %vm225_vm0, %v13930_v8, %v17211_v36  ;;  %9492 = vmatpush3.msra.mxu1 %v9100_v17  ;;  %v17212_v8 = vmov 0.0  }
 0x82e   : > { %v5165_v59 = vpop.permute.xlu1 %5164  ;;  %6830 = vrot.lane.b32.xlu0 %v14211_v24, %s9651_s27  ;;  %v9446_v43 = vpop.f32.mrf.mxu0  ;;  %v5653_v52 = vsel %vm1681_vm4, %v5621_v55, %v14182_v49  ;;  %9546 = vmatprep.subr.mxu1 %v17212_v8  ;;  %v6479_v49 = vld [vmem:[#allocation2 + $0x39] sm:$0xff] }
 0x82f   : > { %v6067_v39 = vadd.f32 %v9446_v43, %v14064_v34  ;;  %v5748_v9 = vsel %vm1780_vm7, %v5716_v41, %v5165_v59  ;;  %v6510_v43 = vld [vmem:[#allocation2 + $0x32] sm:$0xff]  ;;  %v5685_v19 = vsel %vm1714_vm5, %v5653_v52, %v14200_v56 }
 0x830   : > { %6578 = vrot.lane.b32.xlu1 %v6288_v18, %s9649_s25  ;;  %v14224_v51 = vpop.permute.xlu0 %5038  ;;  %v6061_v14 = vpop.f32.mrf.mxu0 }
 0x831   : > { %v6197_v21 = vmax.f32 %v6067_v39, 0.0  ;;  %v6062_v4 = vadd.f32 %v14064_v34, %v6061_v14 }
 0x832   : > { %v14230_v6 = vpop.permute.xlu1 %4784  ;;  %6958 = vrot.lane.b32.xlu0 %v6288_v18, %s9652_s28  ;;  %v5717_v18 = vsel %vm1747_vm6, %v5685_v19, %v14224_v51  ;;  %v6513_v19 = vld [vmem:[#allocation2 + $0x52] sm:$0xff] }
 0x833   : > { %6229 = vst.msk [vmem:[#allocation2 + $0x69] sm:$0xff] %vm225_vm0, %v6197_v21  ;;  %v6196_v5 = vmax.f32 %v6062_v4, 0.0 }
 0x834   : > { %7086 = vrot.lane.b32.xlu1 %v6414_v47, %s9653_s29  ;;  %v5547_v61 = vpop.permute.xlu0 %5546 }
 0x835   : > { %6228 = vst.msk [vmem:[#allocation2 + $0x61] sm:$0xff] %vm225_vm0, %v6196_v5  ;;  %v5843_v50 = vsel %vm1879_vm10, %v5811_v44, %v5547_v61  ;;  %v14336_v61 = vld [vmem:[#allocation2 + $0x48] sm:$0xff] }
 0x836   : > { %v5293_v53 = vpop.permute.xlu1 %5292  ;;  %6960 = vrot.lane.b32.xlu0 %v6383_v7, %s9652_s28  ;;  %9469 = vmatmul.mubr.msk.f32.gmra.mxu0 %vm1924_vm11, %v5843_v50  ;;  %v17213_v50 = vld [vmem:[#allocation48_spill] sm:$0xff] }
 0x837   : > { %v5780_v37 = vsel %vm1813_vm8, %v5748_v9, %v5293_v53  ;;  %v6480_v9 = vld [vmem:[#allocation2 + $0x49] sm:$0xff] }
 0x838   : > { %6706 = vrot.lane.b32.xlu1 %v6414_v47, %s9650_s26  ;;  %v14242_v26 = vpop.permute.xlu0 %5166 }
 0x839   : > { %v5749_v60 = vsel %vm1780_vm7, %v5717_v18, %v14242_v26 }
 0x83a   : > { %v14244_v13 = vpop.permute.xlu1 %4912  ;;  %6580 = vrot.lane.b32.xlu0 %v6383_v7, %s9649_s25  ;;  %v5622_v7 = vsel %vm225_vm0, %v13960_v16, %v17213_v50 }
 0x83b   : > { %v5654_v26 = vsel %vm1681_vm4, %v5622_v7, %v14230_v6 }
 0x83c   : > { %7214 = vrot.lane.b32.xlu1 %v14247_v1, %s9654_s30  ;;  %v14251_v48 = vpop.permute.xlu0 %4786 }
 0x83e   : > { %v5421_v15 = vpop.permute.xlu1 %5420  ;;  %7088 = vrot.lane.b32.xlu0 %v6415_v45, %s9653_s29 }
 0x83f   : > { %v5812_v11 = vsel %vm1846_vm9, %v5780_v37, %v5421_v15  ;;  %v4311_v37 = vld [vmem:[#allocation2 + $0x140] sm:$0xff] }
 0x840   : > { %6834 = vrot.lane.b32.xlu1 %v14247_v1, %s9651_s27  ;;  %v5295_v40 = vpop.permute.xlu0 %5294 }
 0x841   : > { %v5781_v56 = vsel %vm1813_vm8, %v5749_v60, %v5295_v40  ;;  %v4312_v60 = vld [vmem:[#allocation2 + $0x150] sm:$0xff] }
 0x842   : > { %v14268_v27 = vpop.permute.xlu1 %5040  ;;  %6708 = vrot.lane.b32.xlu0 %v6415_v45, %s9650_s26  ;;  %v5686_v45 = vsel %vm1714_vm5, %v5654_v26, %v14244_v13 }
 0x843   : > { %v5718_v30 = vsel %vm1747_vm6, %v5686_v45, %v14268_v27  ;;  %v14414_v45 = vld [vmem:[#allocation2 + $0x60] sm:$0xff] }
 0x844   : > { %7342 = vrot.lane.b32.xlu1 %v6478_v29, %s9655_s6  ;;  %v14278_v25 = vpop.permute.xlu0 %4914 }
 0x846   : > { %v5549_v2 = vpop.permute.xlu1 %5548  ;;  %7216 = vrot.lane.b32.xlu0 %v14284_v22, %s9654_s30  ;;  %v9449_v62 = vpop.f32.mrf.mxu0 }
 0x847   : > { %v5844_v23 = vsel %vm1879_vm10, %v5812_v11, %v5549_v2  ;;  %v6077_v3 = vadd.f32 %v9449_v62, %v14064_v34  ;;  %v17214_v11 = vld [vmem:[#allocation104_spill] sm:$0xff] }
 0x848   : > { %6962 = vrot.lane.b32.xlu1 %v6478_v29, %s9652_s28  ;;  %v5423_v35 = vpop.permute.xlu0 %5422  ;;  %v6071_v28 = vpop.f32.mrf.mxu0  ;;  %9471 = vmatprep.mubr.msk.f32.mxu0 %vm1924_vm11, %v5844_v23  ;;  %v5623_v2 = vsel %vm225_vm0, %v4311_v37, %v17214_v11 }
 0x849   : > { %v6199_v58 = vmax.f32 %v6077_v3, 0.0  ;;  %v6072_v10 = vadd.f32 %v14064_v34, %v6071_v28  ;;  %v5813_v38 = vsel %vm1846_vm9, %v5781_v56, %v5423_v35  ;;  %v5655_v23 = vsel %vm1681_vm4, %v5623_v2, %v14251_v48  ;;  %v6512_v48 = vld [vmem:[#allocation2 + $0x4a] sm:$0xff] }
 0x84a   : > { %v5169_v54 = vpop.permute.xlu1 %5168  ;;  %6836 = vrot.lane.b32.xlu0 %v14284_v22, %s9651_s27  ;;  %v5687_v3 = vsel %vm1714_vm5, %v5655_v23, %v14278_v25 }
 0x84b   : > { %6231 = vst.msk [vmem:[#allocation2 + $0x81] sm:$0xff] %vm225_vm0, %v6199_v58  ;;  %v6198_v59 = vmax.f32 %v6072_v10, 0.0  ;;  %v5750_v46 = vsel %vm1780_vm7, %v5718_v30, %v5169_v54  ;;  %v6481_v54 = vld [vmem:[#allocation2 + $0x51] sm:$0xff] }
 0x84c   : > { %7470 = vrot.lane.b32.xlu1 %v6510_v43, %s9656_s17  ;;  %v14311_v39 = vpop.permute.xlu0 %5042 }
 0x84d   : > { %6230 = vst.msk [vmem:[#allocation2 + $0x79] sm:$0xff] %vm225_vm0, %v6198_v59  ;;  %v5719_v35 = vsel %vm1747_vm6, %v5687_v3, %v14311_v39  ;;  %v6514_v3 = vld [vmem:[#allocation2 + $0x62] sm:$0xff] }
 0x84e   : > { %v14319_v14 = vpop.permute.xlu1 %4788  ;;  %7344 = vrot.lane.b32.xlu0 %v6479_v49, %s9655_s6 }
 0x850   : > { %6964 = vrot.lane.b32.xlu1 %v6479_v49, %s9652_s28  ;;  %v5551_v21 = vpop.permute.xlu0 %5550 }
 0x851   : > { %v5845_v4 = vsel %vm1879_vm10, %v5813_v38, %v5551_v21  ;;  %v17215_v38 = vld [vmem:[#allocation49_spill] sm:$0xff] }
 0x852   : > { %v5297_v51 = vpop.permute.xlu1 %5296  ;;  %6582 = vrot.lane.b32.xlu0 %v6478_v29, %s9649_s25  ;;  %9472 = vmatmul.mubr.msk.f32.gmra.mxu0 %vm1924_vm11, %v5845_v4  ;;  %v5624_v21 = vsel %vm225_vm0, %v4312_v60, %v17215_v38 }
 0x853   : > { %v5782_v13 = vsel %vm1813_vm8, %v5750_v46, %v5297_v51 }
 0x854   : > { %7472 = vrot.lane.b32.xlu1 %v6511_v20, %s9656_s17  ;;  %v5171_v33 = vpop.permute.xlu0 %5170 }
 0x855   : > { %v5751_v28 = vsel %vm1780_vm7, %v5719_v35, %v5171_v33 }
 0x856   : > { %v14329_v5 = vpop.permute.xlu1 %4916  ;;  %7090 = vrot.lane.b32.xlu0 %v6510_v43, %s9653_s29 }
 0x858   : > { %6710 = vrot.lane.b32.xlu1 %v6510_v43, %s9650_s26  ;;  %v14333_v47 = vpop.permute.xlu0 %4790 }
 0x85a   : > { %v5425_v44 = vpop.permute.xlu1 %5424  ;;  %6584 = vrot.lane.b32.xlu0 %v6479_v49, %s9649_s25 }
 0x85b   : > { %v5814_v32 = vsel %vm1846_vm9, %v5782_v13, %v5425_v44  ;;  %v17216_v13 = vld [vmem:[#allocation84_spill] sm:$0xff] }
 0x85c   : > { %v5299_v53 = vpop.permute.xlu0 %5298  ;;  %7218 = vrot.lane.b32.xlu1 %v14336_v61, %s9654_s30 }
 0x85d   : > { %v5783_v10 = vsel %vm1813_vm8, %v5751_v28, %v5299_v53  ;;  %v17217_v28 = vld [vmem:[#allocation151_spill] sm:$0xff] }
 0x85e   : > { %v14347_v42 = vpop.permute.xlu1 %5044  ;;  %7092 = vrot.lane.b32.xlu0 %v6511_v20, %s9653_s29  ;;  %v9452_v15 = vpop.f32.mrf.mxu0 }
 0x85f   : > { %v6087_v16 = vadd.f32 %v9452_v15, %v14064_v34 }
 0x860   : > { %v14354_v40 = vpop.permute.xlu0 %4918  ;;  %6838 = vrot.lane.b32.xlu1 %v14336_v61, %s9651_s27  ;;  %v6081_v6 = vpop.f32.mrf.mxu0 }
 0x861   : > { %v6201_v12 = vmax.f32 %v6087_v16, 0.0  ;;  %v6082_v31 = vadd.f32 %v14064_v34, %v6081_v6  ;;  %v4313_v6 = vld [vmem:[#allocation2 + $0x158] sm:$0xff] }
 0x862   : > { %v5553_v41 = vpop.permute.xlu1 %5552  ;;  %6712 = vrot.lane.b32.xlu0 %v6511_v20, %s9650_s26  ;;  %v5656_v20 = vsel %vm1681_vm4, %v5624_v21, %v14319_v14 }
 0x863   : > { %6233 = vst.msk [vmem:[#allocation2 + $0x99] sm:$0xff] %vm225_vm0, %v6201_v12  ;;  %v6200_v27 = vmax.f32 %v6082_v31, 0.0  ;;  %v5846_v29 = vsel %vm1879_vm10, %v5814_v32, %v5553_v41  ;;  %v5688_v50 = vsel %vm1714_vm5, %v5656_v20, %v14329_v5  ;;  %v5625_v12 = vsel %vm225_vm0, %v4313_v6, %v17216_v13  ;;  %v6482_v41 = vld [vmem:[#allocation2 + $0x61] sm:$0xff] }
 0x864   : > { %v5427_v57 = vpop.permute.xlu0 %5426  ;;  %7346 = vrot.lane.b32.xlu1 %v6480_v9, %s9655_s6  ;;  %9474 = vmatprep.mubr.msk.f32.mxu0 %vm1924_vm11, %v5846_v29  ;;  %v5720_v53 = vsel %vm1747_vm6, %v5688_v50, %v14347_v42  ;;  %v5657_v32 = vsel %vm1681_vm4, %v5625_v12, %v14333_v47  ;;  %v6515_v50 = vld [vmem:[#allocation2 + $0x6a] sm:$0xff] }
 0x865   : > { %6232 = vst.msk [vmem:[#allocation2 + $0x91] sm:$0xff] %vm225_vm0, %v6200_v27  ;;  %v5815_v36 = vsel %vm1846_vm9, %v5783_v10, %v5427_v57  ;;  %v5689_v27 = vsel %vm1714_vm5, %v5657_v32, %v14354_v40  ;;  %v14437_v57 = vld [vmem:[#allocation2 + $0x68] sm:$0xff]  ;;  %v6484_v32 = vld [vmem:[#allocation2 + $0x79] sm:$0xff] }
 0x866   : > { %v5173_v62 = vpop.permute.xlu1 %5172  ;;  %7220 = vrot.lane.b32.xlu0 %v14367_v63, %s9654_s30 }
 0x867   : > { %v5752_v15 = vsel %vm1780_vm7, %v5720_v53, %v5173_v62 }
 0x868   : > { %v14377_v17 = vpop.permute.xlu0 %5046  ;;  %6966 = vrot.lane.b32.xlu1 %v6480_v9, %s9652_s28 }
 0x86a   : > { %v14383_v58 = vpop.permute.xlu1 %4792  ;;  %6840 = vrot.lane.b32.xlu0 %v14367_v63, %s9651_s27 }
 0x86c   : > { %v5555_v25 = vpop.permute.xlu0 %5554  ;;  %7474 = vrot.lane.b32.xlu1 %v6512_v48, %s9656_s17 }
 0x86d   : > { %v5847_v55 = vsel %vm1879_vm10, %v5815_v36, %v5555_v25  ;;  %v6483_v36 = vld [vmem:[#allocation2 + $0x69] sm:$0xff] }
 0x86e   : > { %v5301_v52 = vpop.permute.xlu1 %5300  ;;  %7348 = vrot.lane.b32.xlu0 %v6481_v54, %s9655_s6  ;;  %9475 = vmatmul.mubr.msk.f32.gmra.mxu0 %vm1924_vm11, %v5847_v55  ;;  %v17218_v25 = vld [vmem:[#allocation70_spill] sm:$0xff] }
 0x86f   : > { %v5784_v30 = vsel %vm1813_vm8, %v5752_v15, %v5301_v52 }
 0x870   : > { %v5175_v59 = vpop.permute.xlu0 %5174  ;;  %6968 = vrot.lane.b32.xlu1 %v6481_v54, %s9652_s28 }
 0x872   : > { %v14394_v43 = vpop.permute.xlu1 %4920  ;;  %6586 = vrot.lane.b32.xlu0 %v6480_v9, %s9649_s25  ;;  %v5721_v9 = vsel %vm1747_vm6, %v5689_v27, %v14377_v17  ;;  %v4315_v17 = vld [vmem:[#allocation2 + $0x170] sm:$0xff]  ;;  %v14501_v27 = vld [vmem:[#allocation2 + $0x80] sm:$0xff] }
 0x873   : > { %v5753_v37 = vsel %vm1780_vm7, %v5721_v9, %v5175_v59  ;;  %v5627_v10 = vsel %vm225_vm0, %v4315_v17, %v17217_v28 }
 0x874   : > { %v14397_v39 = vpop.permute.xlu0 %4794  ;;  %7476 = vrot.lane.b32.xlu1 %v6513_v19, %s9656_s17 }
 0x876   : > { %v5429_v18 = vpop.permute.xlu1 %5428  ;;  %7094 = vrot.lane.b32.xlu0 %v6512_v48, %s9653_s29  ;;  %v9455_v49 = vpop.f32.mrf.mxu0 }
 0x877   : > { %v6097_v56 = vadd.f32 %v9455_v49, %v14064_v34  ;;  %v5816_v5 = vsel %vm1846_vm9, %v5784_v30, %v5429_v18 }
 0x878   : > { %v5303_v4 = vpop.permute.xlu0 %5302  ;;  %6714 = vrot.lane.b32.xlu1 %v6512_v48, %s9650_s26  ;;  %v6091_v51 = vpop.f32.mrf.mxu0  ;;  %v4314_v48 = vld [vmem:[#allocation2 + $0x168] sm:$0xff] }
 0x879   : > { %v6203_v33 = vmax.f32 %v6097_v56, 0.0  ;;  %v6092_v44 = vadd.f32 %v14064_v34, %v6091_v51  ;;  %v5785_v47 = vsel %vm1813_vm8, %v5753_v37, %v5303_v4  ;;  %v5626_v55 = vsel %vm225_vm0, %v4314_v48, %v17218_v25  ;;  %v6517_v25 = vld [vmem:[#allocation2 + $0x82] sm:$0xff] }
 0x87a   : > { %v5049_v7 = vpop.permute.xlu1 %5048  ;;  %6588 = vrot.lane.b32.xlu0 %v6481_v54, %s9649_s25  ;;  %v5659_v54 = vsel %vm1681_vm4, %v5627_v10, %v14397_v39 }
 0x87b   : > { %6235 = vst.msk [vmem:[#allocation2 + $0xb1] sm:$0xff] %vm225_vm0, %v6203_v33  ;;  %v6202_v26 = vmax.f32 %v6092_v44, 0.0 }
 0x87c   : > { %v4923_v14 = vpop.permute.xlu0 %4922  ;;  %7222 = vrot.lane.b32.xlu1 %v14414_v45, %s9654_s30 }
 0x87d   : > { %6234 = vst.msk [vmem:[#allocation2 + $0xa9] sm:$0xff] %vm225_vm0, %v6202_v26  ;;  %v5691_v18 = vsel %vm1714_vm5, %v5659_v54, %v4923_v14 }
 0x87e   : > { %v5557_v16 = vpop.permute.xlu1 %5556  ;;  %7096 = vrot.lane.b32.xlu0 %v6513_v19, %s9653_s29 }
 0x87f   : > { %v5848_v42 = vsel %vm1879_vm10, %v5816_v5, %v5557_v16 }
 0x880   : > { %v5431_v46 = vpop.permute.xlu0 %5430  ;;  %9477 = vmatprep.mubr.msk.f32.mxu0 %vm1924_vm11, %v5848_v42  ;;  %6842 = vrot.lane.b32.xlu1 %v14414_v45, %s9651_s27 }
 0x881   : > { %v5817_v2 = vsel %vm1846_vm9, %v5785_v47, %v5431_v46  ;;  %v14488_v46 = vld [vmem:[#allocation2 + $0x78] sm:$0xff] }
 0x882   : > { %v5177_v31 = vpop.permute.xlu1 %5176  ;;  %6716 = vrot.lane.b32.xlu0 %v6513_v19, %s9650_s26  ;;  %v5658_v19 = vsel %vm1681_vm4, %v5626_v55, %v14383_v58 }
 0x883   : > { %v5690_v60 = vsel %vm1714_vm5, %v5658_v19, %v14394_v43 }
 0x884   : > { %v5051_v29 = vpop.permute.xlu0 %5050  ;;  %7350 = vrot.lane.b32.xlu1 %v6482_v41, %s9655_s6  ;;  %v5722_v39 = vsel %vm1747_vm6, %v5690_v60, %v5049_v7 }
 0x885   : > { %v5723_v56 = vsel %vm1747_vm6, %v5691_v18, %v5051_v29  ;;  %v5754_v58 = vsel %vm1780_vm7, %v5722_v39, %v5177_v31 }
 0x886   : > { %v5179_v11 = vpop.permute.xlu1 %5178  ;;  %7224 = vrot.lane.b32.xlu0 %v14437_v57, %s9654_s30 }
 0x887   : > { %v5755_v33 = vsel %vm1780_vm7, %v5723_v56, %v5179_v11  ;;  %v6255_v56 = vld [vmem:[#allocation2 + $0x8] sm:$0xff] }
 0x888   : > { %v5559_v62 = vpop.permute.xlu0 %5558  ;;  %6970 = vrot.lane.b32.xlu1 %v6482_v41, %s9652_s28 }
 0x889   : > { %v5849_v40 = vsel %vm1879_vm10, %v5817_v2, %v5559_v62 }
 0x88a   : > { %v5307_v23 = vpop.permute.xlu1 %5306  ;;  %9478 = vmatmul.mubr.msk.f32.gmra.mxu0 %vm1924_vm11, %v5849_v40  ;;  %6844 = vrot.lane.b32.xlu0 %v14437_v57, %s9651_s27 }
 0x88b   : > { %v5787_v53 = vsel %vm1813_vm8, %v5755_v33, %v5307_v23 }
 0x88c   : > { %v5305_v35 = vpop.permute.xlu0 %5304  ;;  %7478 = vrot.lane.b32.xlu1 %v6514_v3, %s9656_s17 }
 0x88d   : > { %v5786_v43 = vsel %vm1813_vm8, %v5754_v58, %v5305_v35  ;;  %v6485_v35 = vld [vmem:[#allocation2 + $0x81] sm:$0xff] }
 0x88e   : > { %v5435_v52 = vpop.permute.xlu1 %5434  ;;  %v9458_v59 = vpop.f32.mrf.mxu0  ;;  %7352 = vrot.lane.b32.xlu0 %v6483_v36, %s9655_s6 }
 0x88f   : > { %v6107_v49 = vadd.f32 %v9458_v59, %v14064_v34  ;;  %v5819_v15 = vsel %vm1846_vm9, %v5787_v53, %v5435_v52 }
 0x890   : > { %v5433_v38 = vpop.permute.xlu0 %5432  ;;  %v6101_v21 = vpop.f32.mrf.mxu0  ;;  %6972 = vrot.lane.b32.xlu1 %v6483_v36, %s9652_s28 }
 0x891   : > { %v6205_v4 = vmax.f32 %v6107_v49, 0.0  ;;  %v6102_v51 = vadd.f32 %v14064_v34, %v6101_v21  ;;  %v5818_v7 = vsel %vm1846_vm9, %v5786_v43, %v5433_v38  ;;  %v14534_v38 = vld [vmem:[#allocation2 + $0x90] sm:$0xff] }
 0x892   : > { %v5563_v20 = vpop.permute.xlu1 %5562  ;;  %6590 = vrot.lane.b32.xlu0 %v6482_v41, %s9649_s25 }
 0x893   : > { %6237 = vst.msk [vmem:[#allocation2 + $0xc9] sm:$0xff] %vm225_vm0, %v6205_v4  ;;  %v6204_v44 = vmax.f32 %v6102_v51, 0.0  ;;  %v5851_v30 = vsel %vm1879_vm10, %v5819_v15, %v5563_v20 }
 0x894   : > { %v5561_v26 = vpop.permute.xlu0 %5560  ;;  %7480 = vrot.lane.b32.xlu1 %v6515_v50, %s9656_s17 }
 0x895   : > { %6236 = vst.msk [vmem:[#allocation2 + $0xc1] sm:$0xff] %vm225_vm0, %v6204_v44  ;;  %v5850_v14 = vsel %vm1879_vm10, %v5818_v7, %v5561_v26 }
 0x896   : > { %v14479_v5 = vpop.permute.xlu1 %6576  ;;  %9480 = vmatprep.mubr.msk.f32.mxu0 %vm1924_vm11, %v5850_v14  ;;  %7098 = vrot.lane.b32.xlu0 %v6514_v3, %s9653_s29 }
 0x897   : > { %9481 = vmatmul.mubr.msk.f32.gmra.mxu0 %vm1924_vm11, %v5851_v30  ;;  %v7567_v51 = vsel %vm225_vm0, %v6255_v56, %v14479_v5 }
 0x898   : > { %v6575_v16 = vpop.permute.xlu0 %6574  ;;  %6718 = vrot.lane.b32.xlu1 %v6514_v3, %s9650_s26  ;;  %v6516_v3 = vld [vmem:[#allocation2 + $0x7a] sm:$0xff]  ;;  %9543 = vmatprep.mubr.msk.f32.mxu0 %vm9657_vm12, %v17212_v8 }
 0x89a   : > { %v14485_v42 = vpop.permute.xlu1 %6704  ;;  %6592 = vrot.lane.b32.xlu0 %v6483_v36, %s9649_s25  ;;  %v6254_v36 = vld [vmem:[#allocation2] sm:$0xff] }
 0x89b   : > { %v7566_v54 = vsel %vm225_vm0, %v6254_v36, %v6575_v16  ;;  %v7599_v7 = vsel %vm1681_vm4, %v7567_v51, %v14485_v42  ;;  %v14567_v42 = vld [vmem:[#allocation2 + $0x98] sm:$0xff] }
 0x89c   : > { %v6703_v6 = vpop.permute.xlu0 %6702  ;;  %7226 = vrot.lane.b32.xlu1 %v14488_v46, %s9654_s30 }
 0x89d   : > { %v7598_v59 = vsel %vm1681_vm4, %v7566_v54, %v6703_v6  ;;  %v6486_v6 = vld [vmem:[#allocation2 + $0x91] sm:$0xff] }
 0x89e   : > { %v14492_v13 = vpop.permute.xlu1 %6832  ;;  %7100 = vrot.lane.b32.xlu0 %v6515_v50, %s9653_s29 }
 0x89f   : > { %v7631_v14 = vsel %vm1714_vm5, %v7599_v7, %v14492_v13 }
 0x8a0   : > { %v6831_v12 = vpop.permute.xlu0 %6830  ;;  %6846 = vrot.lane.b32.xlu1 %v14488_v46, %s9651_s27 }
 0x8a1   : > { %v7630_v19 = vsel %vm1714_vm5, %v7598_v59, %v6831_v12 }
 0x8a2   : > { %v14497_v31 = vpop.permute.xlu1 %6578  ;;  %6720 = vrot.lane.b32.xlu0 %v6515_v50, %s9650_s26 }
 0x8a3   : > { %v7568_v36 = vsel %vm225_vm0, %v14211_v24, %v14497_v31  ;;  %v14607_v24 = vld [vmem:[%s16125_s2 + $0x2] ss:$0 sm:$0xff] }
 0x8a4   : > { %v6959_v41 = vpop.permute.xlu0 %6958  ;;  %7354 = vrot.lane.b32.xlu1 %v6484_v32, %s9655_s6 }
 0x8a5   : > { %v7662_v49 = vsel %vm1747_vm6, %v7630_v19, %v6959_v41 }
 0x8a6   : > { %v7087_v29 = vpop.permute.xlu1 %7086  ;;  %v9461_v9 = vpop.f32.mrf.mxu0  ;;  %7228 = vrot.lane.b32.xlu0 %v14501_v27, %s9654_s30 }
 0x8a7   : > { %v6117_v37 = vadd.f32 %v9461_v9, %v14064_v34  ;;  %v7694_v21 = vsel %vm1780_vm7, %v7662_v49, %v7087_v29  ;;  %v14610_v49 = vld [vmem:[#allocation2 + $0xa8] sm:$0xff] }
 0x8a8   : > { %v6961_v11 = vpop.permute.xlu0 %6960  ;;  %v6111_v47 = vpop.f32.mrf.mxu0  ;;  %6974 = vrot.lane.b32.xlu1 %v6484_v32, %s9652_s28 }
 0x8a9   : > { %v6207_v2 = vmax.f32 %v6117_v37, 0.0  ;;  %v6112_v62 = vadd.f32 %v14064_v34, %v6111_v47  ;;  %v7663_v5 = vsel %vm1747_vm6, %v7631_v14, %v6961_v11  ;;  %v6518_v11 = vld [vmem:[#allocation2 + $0x92] sm:$0xff] }
 0x8aa   : > { %v14508_v40 = vpop.permute.xlu1 %6706  ;;  %6848 = vrot.lane.b32.xlu0 %v14501_v27, %s9651_s27  ;;  %v14644_v14 = vld [vmem:[#allocation2 + $0xb0] sm:$0xff] }
 0x8ab   : > { %6239 = vst.msk [vmem:[#allocation2 + $0xe1] sm:$0xff] %vm225_vm0, %v6207_v2  ;;  %v6206_v23 = vmax.f32 %v6112_v62, 0.0  ;;  %v6487_v2 = vld [vmem:[#allocation2 + $0x99] sm:$0xff]  ;;  %v7600_v54 = vsel %vm1681_vm4, %v7568_v36, %v14508_v40 }
 0x8ac   : > { %v14513_v17 = vpop.permute.xlu0 %6580  ;;  %7482 = vrot.lane.b32.xlu1 %v6516_v3, %s9656_s17 }
 0x8ad   : > { %6238 = vst.msk [vmem:[#allocation2 + $0xd9] sm:$0xff] %vm225_vm0, %v6206_v23 }
 0x8ae   : > { %v7215_v28 = vpop.permute.xlu1 %7214  ;;  %7356 = vrot.lane.b32.xlu0 %v6485_v35, %s9655_s6 }
 0x8af   : > { %v7726_v4 = vsel %vm1813_vm8, %v7694_v21, %v7215_v28 }
 0x8b0   : > { %v7089_v10 = vpop.permute.xlu0 %7088  ;;  %6976 = vrot.lane.b32.xlu1 %v6485_v35, %s9652_s28 }
 0x8b1   : > { %v7695_v12 = vsel %vm1780_vm7, %v7663_v5, %v7089_v10 }
 0x8b2   : > { %v14519_v48 = vpop.permute.xlu1 %6834  ;;  %6594 = vrot.lane.b32.xlu0 %v6484_v32, %s9649_s25 }
 0x8b4   : > { %v14522_v55 = vpop.permute.xlu0 %6708  ;;  %7484 = vrot.lane.b32.xlu1 %v6517_v25, %s9656_s17 }
 0x8b6   : > { %v7343_v52 = vpop.permute.xlu1 %7342  ;;  %7102 = vrot.lane.b32.xlu0 %v6516_v3, %s9653_s29 }
 0x8b7   : > { %v7758_v58 = vsel %vm1846_vm9, %v7726_v4, %v7343_v52  ;;  %v7632_v52 = vsel %vm1714_vm5, %v7600_v54, %v14519_v48 }
 0x8b8   : > { %v7217_v18 = vpop.permute.xlu0 %7216  ;;  %6722 = vrot.lane.b32.xlu1 %v6516_v3, %s9650_s26 }
 0x8ba   : > { %v14531_v60 = vpop.permute.xlu1 %6962  ;;  %6596 = vrot.lane.b32.xlu0 %v6485_v35, %s9649_s25  ;;  %v6519_v35 = vld [vmem:[#allocation2 + $0x9a] sm:$0xff] }
 0x8bc   : > { %v14537_v39 = vpop.permute.xlu0 %6836  ;;  %7230 = vrot.lane.b32.xlu1 %v14534_v38, %s9654_s30 }
 0x8be   : > { %v7471_v20 = vpop.permute.xlu1 %7470  ;;  %v9464_v33 = vpop.f32.mrf.mxu0  ;;  %7104 = vrot.lane.b32.xlu0 %v6517_v25, %s9653_s29 }
 0x8bf   : > { %v7790_v43 = vsel %vm1879_vm10, %v7758_v58, %v7471_v20  ;;  %v6127_v44 = vadd.f32 %v9464_v33, %v14064_v34 }
 0x8c0   : > { %9493 = vmatprep.mubr.msk.f32.mxu1 %vm1924_vm11, %v7790_v43  ;;  %v7345_v50 = vpop.permute.xlu0 %7344  ;;  %v6121_v53 = vpop.f32.mrf.mxu0  ;;  %6850 = vrot.lane.b32.xlu1 %v14534_v38, %s9651_s27  ;;  %v7569_v43 = vsel %vm225_vm0, %v14206_v0, %v14513_v17  ;;  %v6488_v17 = vld [vmem:[#allocation2 + $0xa9] sm:$0xff] }
 0x8c1   : > { %v6209_v26 = vmax.f32 %v6127_v44, 0.0  ;;  %v6122_v15 = vadd.f32 %v14064_v34, %v6121_v53  ;;  %v7727_v34 = vsel %vm1813_vm8, %v7695_v12, %v7217_v18  ;;  %v7664_v18 = vsel %vm1747_vm6, %v7632_v52, %v14531_v60  ;;  %v6520_v12 = vld [vmem:[#allocation2 + $0xaa] sm:$0xff] }
 0x8c2   : > { %v14556_v30 = vpop.permute.xlu1 %6964  ;;  %6724 = vrot.lane.b32.xlu0 %v6517_v25, %s9650_s26  ;;  %v7759_v13 = vsel %vm1846_vm9, %v7727_v34, %v7345_v50  ;;  %v7601_v50 = vsel %vm1681_vm4, %v7569_v43, %v14522_v55 }
 0x8c3   : > { %6241 = vst.msk [vmem:[#allocation2 + $0xf9] sm:$0xff] %vm225_vm0, %v6209_v26  ;;  %v6208_v16 = vmax.f32 %v6122_v15, 0.0  ;;  %v7633_v53 = vsel %vm1714_vm5, %v7601_v50, %v14537_v39 }
 0x8c4   : > { %v14562_v32 = vpop.permute.xlu0 %6582  ;;  %7358 = vrot.lane.b32.xlu1 %v6486_v6, %s9655_s6  ;;  %v7665_v0 = vsel %vm1747_vm6, %v7633_v53, %v14556_v30 }
 0x8c5   : > { %6240 = vst.msk [vmem:[#allocation2 + $0xf1] sm:$0xff] %vm225_vm0, %v6208_v16 }
 0x8c6   : > { %v7473_v41 = vpop.permute.xlu1 %7472  ;;  %7232 = vrot.lane.b32.xlu0 %v14567_v42, %s9654_s30 }
 0x8c7   : > { %v7791_v29 = vsel %vm1879_vm10, %v7759_v13, %v7473_v41  ;;  %v6489_v13 = vld [vmem:[#allocation2 + $0xb1] sm:$0xff] }
 0x8c8   : > { %9494 = vmatmul.mubr.msk.f32.vlgmr.msra.gmra.mxu1 %vm1924_vm11, %v7791_v29  ;;  %v7091_v9 = vpop.permute.xlu0 %7090  ;;  %6978 = vrot.lane.b32.xlu1 %v6486_v6, %s9652_s28 }
 0x8c9   : > { %v7696_v40 = vsel %vm1780_vm7, %v7664_v18, %v7091_v9 }
 0x8ca   : > { %v14575_v37 = vpop.permute.xlu1 %6710  ;;  %6852 = vrot.lane.b32.xlu0 %v14567_v42, %s9651_s27 }
 0x8cc   : > { %v14579_v47 = vpop.permute.xlu0 %6584  ;;  %7486 = vrot.lane.b32.xlu1 %v6518_v11, %s9656_s17 }
 0x8ce   : > { %v7219_v62 = vpop.permute.xlu1 %7218  ;;  %7360 = vrot.lane.b32.xlu0 %v6487_v2, %s9655_s6 }
 0x8cf   : > { %v7728_v21 = vsel %vm1813_vm8, %v7696_v40, %v7219_v62  ;;  %v14684_v40 = vld [vmem:[#allocation2 + $0xc0] sm:$0xff] }
 0x8d0   : > { %v7093_v23 = vpop.permute.xlu0 %7092  ;;  %6980 = vrot.lane.b32.xlu1 %v6487_v2, %s9652_s28 }
 0x8d1   : > { %v7697_v26 = vsel %vm1780_vm7, %v7665_v0, %v7093_v23 }
 0x8d2   : > { %v14584_v3 = vpop.permute.xlu1 %6838  ;;  %6598 = vrot.lane.b32.xlu0 %v6486_v6, %s9649_s25 }
 0x8d4   : > { %v14587_v28 = vpop.permute.xlu0 %6712  ;;  %7488 = vrot.lane.b32.xlu1 %v6519_v35, %s9656_s17 }
 0x8d6   : > { %v7347_v10 = vpop.permute.xlu1 %7346  ;;  %7106 = vrot.lane.b32.xlu0 %v6518_v11, %s9653_s29 }
 0x8d7   : > { %v7760_v51 = vsel %vm1846_vm9, %v7728_v21, %v7347_v10  ;;  %v7570_v10 = vsel %vm225_vm0, %v14247_v1, %v14562_v32 }
 0x8d8   : > { %v7221_v25 = vpop.permute.xlu0 %7220  ;;  %6726 = vrot.lane.b32.xlu1 %v6518_v11, %s9650_s26  ;;  %v6521_v11 = vld [vmem:[#allocation2 + $0xb2] sm:$0xff]  ;;  %v7602_v54 = vsel %vm1681_vm4, %v7570_v10, %v14575_v37 }
 0x8d9   : > { %v7729_v55 = vsel %vm1813_vm8, %v7697_v26, %v7221_v25  ;;  %v7634_v18 = vsel %vm1714_vm5, %v7602_v54, %v14584_v3  ;;  %v6522_v26 = vld [vmem:[#allocation2 + $0xc2] sm:$0xff] }
 0x8da   : > { %v14599_v59 = vpop.permute.xlu1 %6966  ;;  %v9467_v19 = vpop.f32.mrf.mxu0  ;;  %6600 = vrot.lane.b32.xlu0 %v6487_v2, %s9649_s25 }
 0x8db   : > { %v6137_v31 = vadd.f32 %v14607_v24, %v9467_v19  ;;  %v7666_v1 = vsel %vm1747_vm6, %v7634_v18, %v14599_v59 }
 0x8dc   : > { %v14613_v48 = vpop.permute.xlu0 %6840  ;;  %v6131_v56 = vpop.f32.mrf.mxu0  ;;  %7234 = vrot.lane.b32.xlu1 %v14610_v49, %s9654_s30 }
 0x8dd   : > { %v6211_v60 = vmax.f32 %v6137_v31, 0.0  ;;  %v6132_v4 = vadd.f32 %v14607_v24, %v6131_v56 }
 0x8de   : > { %v7475_v58 = vpop.permute.xlu1 %7474  ;;  %7108 = vrot.lane.b32.xlu0 %v6519_v35, %s9653_s29 }
 0x8df   : > { %6243 = vst.msk [vmem:[#allocation2 + $0x111] sm:$0xff] %vm225_vm0, %v6211_v60  ;;  %v6210_v20 = vmax.f32 %v6132_v4, 0.0  ;;  %v7792_v33 = vsel %vm1879_vm10, %v7760_v51, %v7475_v58  ;;  %v7571_v4 = vsel %vm225_vm0, %v14284_v22, %v14579_v47  ;;  %v6490_v22 = vld [vmem:[#allocation2 + $0xc1] sm:$0xff] }
 0x8e0   : > { %v7349_v44 = vpop.permute.xlu0 %7348  ;;  %9496 = vmatprep.mubr.msk.f32.mxu1 %vm1924_vm11, %v7792_v33  ;;  %6854 = vrot.lane.b32.xlu1 %v14610_v49, %s9651_s27  ;;  %v7603_v58 = vsel %vm1681_vm4, %v7571_v4, %v14587_v28  ;;  %v14716_v28 = vld [vmem:[#allocation2 + $0xc8] sm:$0xff] }
 0x8e1   : > { %6242 = vst.msk [vmem:[#allocation2 + $0x109] sm:$0xff] %vm225_vm0, %v6210_v20  ;;  %v7761_v39 = vsel %vm1846_vm9, %v7729_v55, %v7349_v44  ;;  %v7635_v20 = vsel %vm1714_vm5, %v7603_v58, %v14613_v48 }
 0x8e2   : > { %v14634_v7 = vpop.permute.xlu1 %6968  ;;  %6728 = vrot.lane.b32.xlu0 %v6519_v35, %s9650_s26 }
 0x8e3   : > { %v7667_v43 = vsel %vm1747_vm6, %v7635_v20, %v14634_v7 }
 0x8e4   : > { %v14640_v15 = vpop.permute.xlu0 %6586  ;;  %7362 = vrot.lane.b32.xlu1 %v6488_v17, %s9655_s6 }
 0x8e6   : > { %v7477_v5 = vpop.permute.xlu1 %7476  ;;  %7236 = vrot.lane.b32.xlu0 %v14644_v14, %s9654_s30 }
 0x8e7   : > { %v7793_v16 = vsel %vm1879_vm10, %v7761_v39, %v7477_v5  ;;  %v6491_v39 = vld [vmem:[#allocation2 + $0xc9] sm:$0xff] }
 0x8e8   : > { %9497 = vmatmul.mubr.msk.f32.gmra.mxu1 %vm1924_vm11, %v7793_v16  ;;  %v7095_v30 = vpop.permute.xlu0 %7094  ;;  %6982 = vrot.lane.b32.xlu1 %v6488_v17, %s9652_s28 }
 0x8e9   : > { %v7698_v37 = vsel %vm1780_vm7, %v7666_v1, %v7095_v30  ;;  %v14757_v1 = vld [vmem:[#allocation2 + $0xd8] sm:$0xff] }
 0x8ea   : > { %v14652_v6 = vpop.permute.xlu1 %6714  ;;  %6856 = vrot.lane.b32.xlu0 %v14644_v14, %s9651_s27 }
 0x8ec   : > { %v14656_v34 = vpop.permute.xlu0 %6588  ;;  %7490 = vrot.lane.b32.xlu1 %v6520_v12, %s9656_s17 }
 0x8ee   : > { %v7223_v41 = vpop.permute.xlu1 %7222  ;;  %7364 = vrot.lane.b32.xlu0 %v6489_v13, %s9655_s6 }
 0x8ef   : > { %v7730_v3 = vsel %vm1813_vm8, %v7698_v37, %v7223_v41  ;;  %v6523_v41 = vld [vmem:[#allocation2 + $0xca] sm:$0xff] }
 0x8f0   : > { %v7097_v29 = vpop.permute.xlu0 %7096  ;;  %6984 = vrot.lane.b32.xlu1 %v6489_v13, %s9652_s28 }
 0x8f1   : > { %v7699_v47 = vsel %vm1780_vm7, %v7667_v43, %v7097_v29 }
 0x8f2   : > { %v14661_v9 = vpop.permute.xlu1 %6842  ;;  %6602 = vrot.lane.b32.xlu0 %v6488_v17, %s9649_s25 }
 0x8f4   : > { %v14664_v2 = vpop.permute.xlu0 %6716  ;;  %7492 = vrot.lane.b32.xlu1 %v6521_v11, %s9656_s17 }
 0x8f6   : > { %v9470_v62 = vpop.f32.mrf.mxu0  ;;  %v7351_v23 = vpop.permute.xlu1 %7350  ;;  %7110 = vrot.lane.b32.xlu0 %v6520_v12, %s9653_s29 }
 0x8f7   : > { %v6147_v35 = vadd.f32 %v14607_v24, %v9470_v62  ;;  %v7762_v21 = vsel %vm1846_vm9, %v7730_v3, %v7351_v23 }
 0x8f8   : > { %v6141_v36 = vpop.f32.mrf.mxu0  ;;  %v7225_v25 = vpop.permute.xlu0 %7224  ;;  %6730 = vrot.lane.b32.xlu1 %v6520_v12, %s9650_s26 }
 0x8f9   : > { %v6213_v52 = vmax.f32 %v6147_v35, 0.0  ;;  %v6142_v19 = vadd.f32 %v14607_v24, %v6141_v36  ;;  %v7731_v50 = vsel %vm1813_vm8, %v7699_v47, %v7225_v25  ;;  %v7572_v36 = vsel %vm225_vm0, %v14336_v61, %v14640_v15  ;;  %v6524_v47 = vld [vmem:[#allocation2 + $0xda] sm:$0xff] }
 0x8fa   : > { %v14678_v31 = vpop.permute.xlu1 %6970  ;;  %6604 = vrot.lane.b32.xlu0 %v6489_v13, %s9649_s25  ;;  %v7604_v54 = vsel %vm1681_vm4, %v7572_v36, %v14652_v6 }
 0x8fb   : > { %6245 = vst.msk [vmem:[#allocation2 + $0x129] sm:$0xff] %vm225_vm0, %v6213_v52  ;;  %v6212_v32 = vmax.f32 %v6142_v19, 0.0  ;;  %v7636_v52 = vsel %vm1714_vm5, %v7604_v54, %v14661_v9 }
 0x8fc   : > { %v14687_v56 = vpop.permute.xlu0 %6844  ;;  %7238 = vrot.lane.b32.xlu1 %v14684_v40, %s9654_s30  ;;  %v7668_v18 = vsel %vm1747_vm6, %v7636_v52, %v14678_v31  ;;  %v7573_v31 = vsel %vm225_vm0, %v14367_v63, %v14656_v34  ;;  %v6492_v63 = vld [vmem:[#allocation2 + $0xd9] sm:$0xff]  ;;  %v14829_v52 = vld [vmem:[#allocation2 + $0xf0] sm:$0xff] }
 0x8fd   : > { %6244 = vst.msk [vmem:[#allocation2 + $0x121] sm:$0xff] %vm225_vm0, %v6212_v32 }
 0x8fe   : > { %v7479_v60 = vpop.permute.xlu1 %7478  ;;  %7112 = vrot.lane.b32.xlu0 %v6521_v11, %s9653_s29 }
 0x8ff   : > { %v7794_v59 = vsel %vm1879_vm10, %v7762_v21, %v7479_v60  ;;  %v7605_v21 = vsel %vm1681_vm4, %v7573_v31, %v14664_v2  ;;  %v14788_v2 = vld [vmem:[#allocation2 + $0xe0] sm:$0xff] }
 0x900   : > { %v7353_v51 = vpop.permute.xlu0 %7352  ;;  %9499 = vmatprep.mubr.msk.f32.mxu1 %vm1924_vm11, %v7794_v59  ;;  %6858 = vrot.lane.b32.xlu1 %v14684_v40, %s9651_s27  ;;  %v7637_v60 = vsel %vm1714_vm5, %v7605_v21, %v14687_v56 }
 0x901   : > { %v7763_v48 = vsel %vm1846_vm9, %v7731_v50, %v7353_v51 }
 0x902   : > { %v14706_v33 = vpop.permute.xlu1 %6972  ;;  %6732 = vrot.lane.b32.xlu0 %v6521_v11, %s9650_s26 }
 0x903   : > { %v7669_v4 = vsel %vm1747_vm6, %v7637_v60, %v14706_v33 }
 0x904   : > { %7366 = vrot.lane.b32.xlu1 %v6490_v22, %s9655_s6  ;;  %v14713_v44 = vpop.permute.xlu0 %6590 }
 0x906   : > { %v7481_v53 = vpop.permute.xlu1 %7480  ;;  %7240 = vrot.lane.b32.xlu0 %v14716_v28, %s9654_s30 }
 0x907   : > { %v7795_v0 = vsel %vm1879_vm10, %v7763_v48, %v7481_v53  ;;  %v6493_v48 = vld [vmem:[#allocation2 + $0xe1] sm:$0xff] }
 0x908   : > { %9500 = vmatmul.mubr.msk.f32.gmra.mxu1 %vm1924_vm11, %v7795_v0  ;;  %6986 = vrot.lane.b32.xlu1 %v6490_v22, %s9652_s28  ;;  %v7099_v7 = vpop.permute.xlu0 %7098 }
 0x909   : > { %v7700_v61 = vsel %vm1780_vm7, %v7668_v18, %v7099_v7 }
 0x90a   : > { %v14724_v17 = vpop.permute.xlu1 %6718  ;;  %6860 = vrot.lane.b32.xlu0 %v14716_v28, %s9651_s27 }
 0x90c   : > { %7494 = vrot.lane.b32.xlu1 %v6522_v26, %s9656_s17  ;;  %v14729_v55 = vpop.permute.xlu0 %6592 }
 0x90e   : > { %v7227_v5 = vpop.permute.xlu1 %7226  ;;  %7368 = vrot.lane.b32.xlu0 %v6491_v39, %s9655_s6 }
 0x90f   : > { %v7732_v6 = vsel %vm1813_vm8, %v7700_v61, %v7227_v5 }
 0x910   : > { %6988 = vrot.lane.b32.xlu1 %v6491_v39, %s9652_s28  ;;  %v7101_v16 = vpop.permute.xlu0 %7100 }
 0x911   : > { %v7701_v34 = vsel %vm1780_vm7, %v7669_v4, %v7101_v16 }
 0x912   : > { %v9473_v30 = vpop.f32.mrf.mxu0  ;;  %v14733_v12 = vpop.permute.xlu1 %6846  ;;  %6606 = vrot.lane.b32.xlu0 %v6490_v22, %s9649_s25 }
 0x913   : > { %v6157_v13 = vadd.f32 %v14607_v24, %v9473_v30 }
 0x914   : > { %v6151_v29 = vpop.f32.mrf.mxu0  ;;  %7496 = vrot.lane.b32.xlu1 %v6523_v41, %s9656_s17  ;;  %v14738_v11 = vpop.permute.xlu0 %6720 }
 0x915   : > { %v6215_v62 = vmax.f32 %v6157_v13, 0.0  ;;  %v6152_v23 = vadd.f32 %v14607_v24, %v6151_v29 }
 0x916   : > { %v7355_v35 = vpop.permute.xlu1 %7354  ;;  %7114 = vrot.lane.b32.xlu0 %v6522_v26, %s9653_s29 }
 0x917   : > { %6247 = vst.msk [vmem:[#allocation2 + $0x141] sm:$0xff] %vm225_vm0, %v6215_v62  ;;  %v6214_v10 = vmax.f32 %v6152_v23, 0.0  ;;  %v7764_v9 = vsel %vm1846_vm9, %v7732_v6, %v7355_v35  ;;  %v7574_v23 = vsel %vm225_vm0, %v14414_v45, %v14713_v44 }
 0x918   : > { %6734 = vrot.lane.b32.xlu1 %v6522_v26, %s9650_s26  ;;  %v7229_v25 = vpop.permute.xlu0 %7228 }
 0x919   : > { %6246 = vst.msk [vmem:[#allocation2 + $0x139] sm:$0xff] %vm225_vm0, %v6214_v10  ;;  %v7733_v58 = vsel %vm1813_vm8, %v7701_v34, %v7229_v25  ;;  %v7606_v10 = vsel %vm1681_vm4, %v7574_v23, %v14724_v17 }
 0x91a   : > { %v14752_v19 = vpop.permute.xlu1 %6974  ;;  %6608 = vrot.lane.b32.xlu0 %v6491_v39, %s9649_s25  ;;  %v7638_v36 = vsel %vm1714_vm5, %v7606_v10, %v14733_v12 }
 0x91b   : > { %v7670_v54 = vsel %vm1747_vm6, %v7638_v36, %v14752_v19  ;;  %v7575_v19 = vsel %vm225_vm0, %v14437_v57, %v14729_v55  ;;  %v6494_v57 = vld [vmem:[#allocation2 + $0xf1] sm:$0xff] }
 0x91c   : > { %7242 = vrot.lane.b32.xlu1 %v14757_v1, %s9654_s30  ;;  %v14762_v15 = vpop.permute.xlu0 %6848 }
 0x91e   : > { %v7483_v32 = vpop.permute.xlu1 %7482  ;;  %7116 = vrot.lane.b32.xlu0 %v6523_v41, %s9653_s29 }
 0x91f   : > { %v7796_v37 = vsel %vm1879_vm10, %v7764_v9, %v7483_v32  ;;  %v7607_v9 = vsel %vm1681_vm4, %v7575_v19, %v14738_v11  ;;  %v14860_v11 = vld [vmem:[#allocation2 + $0xf8] sm:$0xff] }
 0x920   : > { %6862 = vrot.lane.b32.xlu1 %v14757_v1, %s9651_s27  ;;  %9502 = vmatprep.mubr.msk.f32.mxu1 %vm1924_vm11, %v7796_v37  ;;  %v7357_v3 = vpop.permute.xlu0 %7356  ;;  %v7639_v32 = vsel %vm1714_vm5, %v7607_v9, %v14762_v15 }
 0x921   : > { %v7765_v56 = vsel %vm1846_vm9, %v7733_v58, %v7357_v3 }
 0x922   : > { %v14778_v59 = vpop.permute.xlu1 %6976  ;;  %6736 = vrot.lane.b32.xlu0 %v6523_v41, %s9650_s26  ;;  %v6525_v41 = vld [vmem:[#allocation2 + $0xe2] sm:$0xff] }
 0x923   : > { %v7671_v31 = vsel %vm1747_vm6, %v7639_v32, %v14778_v59 }
 0x924   : > { %7370 = vrot.lane.b32.xlu1 %v6492_v63, %s9655_s6  ;;  %v14785_v51 = vpop.permute.xlu0 %6594 }
 0x926   : > { %v7485_v20 = vpop.permute.xlu1 %7484  ;;  %7244 = vrot.lane.b32.xlu0 %v14788_v2, %s9654_s30 }
 0x927   : > { %v7797_v43 = vsel %vm1879_vm10, %v7765_v56, %v7485_v20  ;;  %v6526_v56 = vld [vmem:[#allocation2 + $0xf2] sm:$0xff] }
 0x928   : > { %6990 = vrot.lane.b32.xlu1 %v6492_v63, %s9652_s28  ;;  %9503 = vmatmul.mubr.msk.f32.gmra.mxu1 %vm1924_vm11, %v7797_v43  ;;  %v7103_v33 = vpop.permute.xlu0 %7102 }
 0x929   : > { %v7702_v45 = vsel %vm1780_vm7, %v7670_v54, %v7103_v33 }
 0x92a   : > { %v14796_v22 = vpop.permute.xlu1 %6722  ;;  %6864 = vrot.lane.b32.xlu0 %v14788_v2, %s9651_s27 }
 0x92c   : > { %7498 = vrot.lane.b32.xlu1 %v6524_v47, %s9656_s17  ;;  %v14801_v50 = vpop.permute.xlu0 %6596 }
 0x92d   : > { %v7577_v19 = vsel %vm225_vm0, %v14501_v27, %v14801_v50 }
 0x92e   : > { %v9476_v53 = vpop.f32.mrf.mxu0  ;;  %v7231_v0 = vpop.permute.xlu1 %7230  ;;  %7372 = vrot.lane.b32.xlu0 %v6493_v48, %s9655_s6 }
 0x92f   : > { %v6167_v7 = vadd.f32 %v14607_v24, %v9476_v53  ;;  %v7734_v17 = vsel %vm1813_vm8, %v7702_v45, %v7231_v0 }
 0x930   : > { %v6161_v26 = vpop.f32.mrf.mxu0  ;;  %6992 = vrot.lane.b32.xlu1 %v6493_v48, %s9652_s28  ;;  %v7105_v39 = vpop.permute.xlu0 %7104 }
 0x931   : > { %v6217_v5 = vmax.f32 %v6167_v7, 0.0  ;;  %v6162_v16 = vadd.f32 %v14607_v24, %v6161_v26  ;;  %v7703_v55 = vsel %vm1780_vm7, %v7671_v31, %v7105_v39  ;;  %v6527_v39 = vld [vmem:[#allocation2 + $0xfa] sm:$0xff] }
 0x932   : > { %v14807_v30 = vpop.permute.xlu1 %6850  ;;  %6610 = vrot.lane.b32.xlu0 %v6492_v63, %s9649_s25 }
 0x933   : > { %6249 = vst.msk [vmem:[#allocation2 + $0x159] sm:$0xff] %vm225_vm0, %v6217_v5  ;;  %v6216_v13 = vmax.f32 %v6162_v16, 0.0 }
 0x934   : > { %7500 = vrot.lane.b32.xlu1 %v6525_v41, %s9656_s17  ;;  %v14812_v29 = vpop.permute.xlu0 %6724 }
 0x935   : > { %6248 = vst.msk [vmem:[#allocation2 + $0x151] sm:$0xff] %vm225_vm0, %v6216_v13  ;;  %v7609_v9 = vsel %vm1681_vm4, %v7577_v19, %v14812_v29  ;;  %v6530_v19 = vld [vmem:[#allocation2 + $0x122] sm:$0xff] }
 0x936   : > { %v7359_v62 = vpop.permute.xlu1 %7358  ;;  %7118 = vrot.lane.b32.xlu0 %v6524_v47, %s9653_s29 }
 0x937   : > { %v7766_v12 = vsel %vm1846_vm9, %v7734_v17, %v7359_v62 }
 0x938   : > { %6738 = vrot.lane.b32.xlu1 %v6524_v47, %s9650_s26  ;;  %v7233_v35 = vpop.permute.xlu0 %7232 }
 0x939   : > { %v7735_v21 = vsel %vm1813_vm8, %v7703_v55, %v7233_v35  ;;  %v6496_v55 = vld [vmem:[#allocation2 + $0x109] sm:$0xff] }
 0x93a   : > { %v14824_v25 = vpop.permute.xlu1 %6978  ;;  %6612 = vrot.lane.b32.xlu0 %v6493_v48, %s9649_s25  ;;  %v6495_v48 = vld [vmem:[#allocation2 + $0xf9] sm:$0xff] }
 0x93c   : > { %7246 = vrot.lane.b32.xlu1 %v14829_v52, %s9654_s30  ;;  %v14834_v44 = vpop.permute.xlu0 %6852 }
 0x93d   : > { %v7641_v32 = vsel %vm1714_vm5, %v7609_v9, %v14834_v44  ;;  %v6499_v9 = vld [vmem:[#allocation2 + $0x129] sm:$0xff] }
 0x93e   : > { %v7487_v18 = vpop.permute.xlu1 %7486  ;;  %7120 = vrot.lane.b32.xlu0 %v6525_v41, %s9653_s29 }
 0x93f   : > { %v7798_v61 = vsel %vm1879_vm10, %v7766_v12, %v7487_v18 }
 0x940   : > { %6866 = vrot.lane.b32.xlu1 %v14829_v52, %s9651_s27  ;;  %v7361_v6 = vpop.permute.xlu0 %7360  ;;  %9505 = vmatprep.mubr.msk.f32.mxu1 %vm1924_vm11, %v7798_v61 }
 0x941   : > { %v7767_v15 = vsel %vm1846_vm9, %v7735_v21, %v7361_v6 }
 0x942   : > { %v14850_v37 = vpop.permute.xlu1 %6980  ;;  %6740 = vrot.lane.b32.xlu0 %v6525_v41, %s9650_s26  ;;  %v7576_v41 = vsel %vm225_vm0, %v14488_v46, %v14785_v51  ;;  %v14901_v51 = vld [vmem:[#allocation2 + $0x108] sm:$0xff] }
 0x943   : > { %v7608_v35 = vsel %vm1681_vm4, %v7576_v41, %v14796_v22 }
 0x944   : > { %7374 = vrot.lane.b32.xlu1 %v6494_v57, %s9655_s6  ;;  %v14857_v3 = vpop.permute.xlu0 %6598  ;;  %v7640_v36 = vsel %vm1714_vm5, %v7608_v35, %v14807_v30 }
 0x945   : > { %v7672_v46 = vsel %vm1747_vm6, %v7640_v36, %v14824_v25 }
 0x946   : > { %v7489_v60 = vpop.permute.xlu1 %7488  ;;  %7248 = vrot.lane.b32.xlu0 %v14860_v11, %s9654_s30 }
 0x947   : > { %v7799_v4 = vsel %vm1879_vm10, %v7767_v15, %v7489_v60  ;;  %v14932_v15 = vld [vmem:[#allocation2 + $0x110] sm:$0xff] }
 0x948   : > { %6994 = vrot.lane.b32.xlu1 %v6494_v57, %s9652_s28  ;;  %v7107_v59 = vpop.permute.xlu0 %7106  ;;  %9506 = vmatmul.mubr.msk.f32.gmra.mxu1 %vm1924_vm11, %v7799_v4 }
 0x949   : > { %v7704_v12 = vsel %vm1780_vm7, %v7672_v46, %v7107_v59  ;;  %v6528_v59 = vld [vmem:[#allocation2 + $0x10a] sm:$0xff] }
 0x94a   : > { %v9479_v63 = vpop.f32.mrf.mxu0  ;;  %v14868_v34 = vpop.permute.xlu1 %6726  ;;  %6868 = vrot.lane.b32.xlu0 %v14860_v11, %s9651_s27 }
 0x94b   : > { %v6177_v58 = vadd.f32 %v14607_v24, %v9479_v63 }
 0x94c   : > { %v6171_v20 = vpop.f32.mrf.mxu0  ;;  %7502 = vrot.lane.b32.xlu1 %v6526_v56, %s9656_s17  ;;  %v14874_v43 = vpop.permute.xlu0 %6600 }
 0x94d   : > { %v6219_v33 = vmax.f32 %v6177_v58, 0.0  ;;  %v6172_v47 = vadd.f32 %v14607_v24, %v6171_v20  ;;  %v6497_v58 = vld [vmem:[#allocation2 + $0x111] sm:$0xff] }
 0x94e   : > { %v7235_v53 = vpop.permute.xlu1 %7234  ;;  %7376 = vrot.lane.b32.xlu0 %v6495_v48, %s9655_s6 }
 0x94f   : > { %6251 = vst.msk [vmem:[#allocation2 + $0x171] sm:$0xff] %vm225_vm0, %v6219_v33  ;;  %v6218_v0 = vmax.f32 %v6172_v47, 0.0  ;;  %v6529_v47 = vld [vmem:[#allocation2 + $0x112] sm:$0xff] }
 0x950   : > { %6996 = vrot.lane.b32.xlu1 %v6495_v48, %s9652_s28  ;;  %v7109_v7 = vpop.permute.xlu0 %7108 }
 0x951   : > { %6250 = vst.msk [vmem:[#allocation2 + $0x169] sm:$0xff] %vm225_vm0, %v6218_v0  ;;  %v7578_v0 = vsel %vm225_vm0, %v14534_v38, %v14857_v3 }
 0x952   : > { %v14881_v26 = vpop.permute.xlu1 %6854  ;;  %6614 = vrot.lane.b32.xlu0 %v6494_v57, %s9649_s25  ;;  %v7673_v57 = vsel %vm1747_vm6, %v7641_v32, %v14850_v37 }
 0x953   : > { %v7705_v27 = vsel %vm1780_vm7, %v7673_v57, %v7109_v7 }
 0x954   : > { %7504 = vrot.lane.b32.xlu1 %v6527_v39, %s9656_s17  ;;  %v14885_v5 = vpop.permute.xlu0 %6728 }
 0x956   : > { %v7363_v16 = vpop.permute.xlu1 %7362  ;;  %7122 = vrot.lane.b32.xlu0 %v6526_v56, %s9653_s29 }
 0x957   : > { %v9482_v13 = vpop.f32.mrf.mxu0 }
 0x958   : > { %v6187_v62 = vadd.f32 %v14607_v24, %v9482_v13  ;;  %6742 = vrot.lane.b32.xlu1 %v6526_v56, %s9650_s26  ;;  %v7237_v23 = vpop.permute.xlu0 %7236 }
 0x959   : > { %v6181_v10 = vpop.f32.mrf.mxu0  ;;  %v7737_v21 = vsel %vm1813_vm8, %v7705_v27, %v7237_v23 }
 0x95a   : > { %v6221_v54 = vmax.f32 %v6187_v62, 0.0  ;;  %v6182_v45 = vadd.f32 %v14607_v24, %v6181_v10  ;;  %v6983_v17 = vpop.permute.xlu1 %6982  ;;  %6616 = vrot.lane.b32.xlu0 %v6495_v48, %s9649_s25  ;;  %v7736_v24 = vsel %vm1813_vm8, %v7704_v12, %v7235_v53  ;;  %v14966_v62 = vld [vmem:[#allocation2 + $0x120] sm:$0xff]  ;;  %v7579_v10 = vsel %vm225_vm0, %v14567_v42, %v14874_v43 }
 0x95b   : > { %v7768_v18 = vsel %vm1846_vm9, %v7736_v24, %v7363_v16  ;;  %v6498_v12 = vld [vmem:[#allocation2 + $0x121] sm:$0xff] }
 0x95c   : > { %6253 = vst.msk [vmem:[#allocation2 + $0x189] sm:$0xff] %vm225_vm0, %v6221_v54  ;;  %v6220_v22 = vmax.f32 %v6182_v45, 0.0  ;;  %7250 = vrot.lane.b32.xlu1 %v14901_v51, %s9654_s30  ;;  %v14907_v30 = vpop.permute.xlu0 %6856  ;;  %v7611_v54 = vsel %vm1681_vm4, %v7579_v10, %v14885_v5  ;;  %v14994_v24 = vld [vmem:[#allocation2 + $0x128] sm:$0xff]  ;;  %v6532_v10 = vld [vmem:[#allocation2 + $0x13a] sm:$0xff] }
 0x95d   : > { %v7643_v45 = vsel %vm1714_vm5, %v7611_v54, %v14907_v30  ;;  %v6501_v54 = vld [vmem:[#allocation2 + $0x141] sm:$0xff] }
 0x95e   : > { %6252 = vst.msk [vmem:[#allocation2 + $0x181] sm:$0xff] %vm225_vm0, %v6220_v22  ;;  %v7491_v61 = vpop.permute.xlu1 %7490  ;;  %7124 = vrot.lane.b32.xlu0 %v6527_v39, %s9653_s29 }
 0x95f   : > { %v7800_v25 = vsel %vm1879_vm10, %v7768_v18, %v7491_v61 }
 0x960   : > { %6870 = vrot.lane.b32.xlu1 %v14901_v51, %s9651_s27  ;;  %v7365_v6 = vpop.permute.xlu0 %7364  ;;  %9508 = vmatprep.mubr.msk.f32.mxu1 %vm1924_vm11, %v7800_v25 }
 0x961   : > { %v7769_v29 = vsel %vm1846_vm9, %v7737_v21, %v7365_v6 }
 0x962   : > { %v6985_v31 = vpop.permute.xlu1 %6984  ;;  %6744 = vrot.lane.b32.xlu0 %v6527_v39, %s9650_s26  ;;  %v7610_v39 = vsel %vm1681_vm4, %v7578_v0, %v14868_v34 }
 0x963   : > { %v7642_v16 = vsel %vm1714_vm5, %v7610_v39, %v14881_v26  ;;  %v7675_v46 = vsel %vm1747_vm6, %v7643_v45, %v6985_v31 }
 0x964   : > { %7378 = vrot.lane.b32.xlu1 %v6496_v55, %s9655_s6  ;;  %v14929_v50 = vpop.permute.xlu0 %6602  ;;  %v7674_v41 = vsel %vm1747_vm6, %v7642_v16, %v6983_v17 }
 0x966   : > { %v7493_v44 = vpop.permute.xlu1 %7492  ;;  %7252 = vrot.lane.b32.xlu0 %v14932_v15, %s9654_s30 }
 0x967   : > { %v7801_v60 = vsel %vm1879_vm10, %v7769_v29, %v7493_v44  ;;  %v7580_v29 = vsel %vm225_vm0, %v14610_v49, %v14929_v50 }
 0x968   : > { %6998 = vrot.lane.b32.xlu1 %v6496_v55, %s9652_s28  ;;  %v7111_v37 = vpop.permute.xlu0 %7110  ;;  %9509 = vmatmul.mubr.msk.f32.gmra.mxu1 %vm1924_vm11, %v7801_v60 }
 0x969   : > { %v7706_v23 = vsel %vm1780_vm7, %v7674_v41, %v7111_v37  ;;  %v6500_v41 = vld [vmem:[#allocation2 + $0x139] sm:$0xff] }
 0x96a   : > { %v14940_v4 = vpop.permute.xlu1 %6730  ;;  %6872 = vrot.lane.b32.xlu0 %v14932_v15, %s9651_s27 }
 0x96b   : > { %v7612_v60 = vsel %vm1681_vm4, %v7580_v29, %v14940_v4 }
 0x96c   : > { %7506 = vrot.lane.b32.xlu1 %v6528_v59, %s9656_s17  ;;  %v14945_v63 = vpop.permute.xlu0 %6604 }
 0x96e   : > { %v7239_v56 = vpop.permute.xlu1 %7238  ;;  %7380 = vrot.lane.b32.xlu0 %v6497_v58, %s9655_s6 }
 0x96f   : > { %v7738_v3 = vsel %vm1813_vm8, %v7706_v23, %v7239_v56  ;;  %v15028_v56 = vld [vmem:[#allocation2 + $0x138] sm:$0xff] }
 0x970   : > { %7000 = vrot.lane.b32.xlu1 %v6497_v58, %s9652_s28  ;;  %v7113_v20 = vpop.permute.xlu0 %7112 }
 0x971   : > { %v7707_v42 = vsel %vm1780_vm7, %v7675_v46, %v7113_v20 }
 0x972   : > { %v14949_v33 = vpop.permute.xlu1 %6858  ;;  %6618 = vrot.lane.b32.xlu0 %v6496_v55, %s9649_s25  ;;  %v6531_v55 = vld [vmem:[#allocation2 + $0x12a] sm:$0xff] }
 0x973   : > { %v7644_v37 = vsel %vm1714_vm5, %v7612_v60, %v14949_v33 }
 0x974   : > { %7508 = vrot.lane.b32.xlu1 %v6529_v47, %s9656_s17  ;;  %v14953_v48 = vpop.permute.xlu0 %6732 }
 0x976   : > { %v7367_v53 = vpop.permute.xlu1 %7366  ;;  %7126 = vrot.lane.b32.xlu0 %v6528_v59, %s9653_s29 }
 0x977   : > { %v7770_v34 = vsel %vm1846_vm9, %v7738_v3, %v7367_v53  ;;  %v7581_v53 = vsel %vm225_vm0, %v14644_v14, %v14945_v63  ;;  %v15056_v3 = vld [vmem:[#allocation2 + $0x140] sm:$0xff] }
 0x978   : > { %6746 = vrot.lane.b32.xlu1 %v6528_v59, %s9650_s26  ;;  %v7241_v7 = vpop.permute.xlu0 %7240 }
 0x979   : > { %v7739_v22 = vsel %vm1813_vm8, %v7707_v42, %v7241_v7  ;;  %v7613_v7 = vsel %vm1681_vm4, %v7581_v53, %v14953_v48  ;;  %v6534_v53 = vld [vmem:[#allocation2 + $0x152] sm:$0xff] }
 0x97a   : > { %v6987_v13 = vpop.permute.xlu1 %6986  ;;  %6620 = vrot.lane.b32.xlu0 %v6497_v58, %s9649_s25 }
 0x97b   : > { %v7676_v58 = vsel %vm1747_vm6, %v7644_v37, %v6987_v13 }
 0x97c   : > { %7254 = vrot.lane.b32.xlu1 %v14966_v62, %s9654_s30  ;;  %v14971_v38 = vpop.permute.xlu0 %6860 }
 0x97d   : > { %v7645_v39 = vsel %vm1714_vm5, %v7613_v7, %v14971_v38  ;;  %v6503_v7 = vld [vmem:[#allocation2 + $0x159] sm:$0xff] }
 0x97e   : > { %v7495_v35 = vpop.permute.xlu1 %7494  ;;  %7128 = vrot.lane.b32.xlu0 %v6529_v47, %s9653_s29 }
 0x97f   : > { %v7802_v26 = vsel %vm1879_vm10, %v7770_v34, %v7495_v35 }
 0x980   : > { %6874 = vrot.lane.b32.xlu1 %v14966_v62, %s9651_s27  ;;  %v7369_v36 = vpop.permute.xlu0 %7368  ;;  %9511 = vmatprep.mubr.msk.f32.mxu1 %vm1924_vm11, %v7802_v26 }
 0x981   : > { %v7771_v5 = vsel %vm1846_vm9, %v7739_v22, %v7369_v36 }
 0x982   : > { %v6989_v17 = vpop.permute.xlu1 %6988  ;;  %6748 = vrot.lane.b32.xlu0 %v6529_v47, %s9650_s26 }
 0x983   : > { %v7677_v13 = vsel %vm1747_vm6, %v7645_v39, %v6989_v17 }
 0x984   : > { %7382 = vrot.lane.b32.xlu1 %v6498_v12, %s9655_s6  ;;  %v14991_v43 = vpop.permute.xlu0 %6606 }
 0x986   : > { %v7497_v18 = vpop.permute.xlu1 %7496  ;;  %7256 = vrot.lane.b32.xlu0 %v14994_v24, %s9654_s30 }
 0x987   : > { %v7803_v30 = vsel %vm1879_vm10, %v7771_v5, %v7497_v18  ;;  %v7582_v5 = vsel %vm225_vm0, %v14684_v40, %v14991_v43 }
 0x988   : > { %7002 = vrot.lane.b32.xlu1 %v6498_v12, %s9652_s28  ;;  %v7115_v61 = vpop.permute.xlu0 %7114  ;;  %9512 = vmatmul.mubr.msk.f32.gmra.mxu1 %vm1924_vm11, %v7803_v30 }
 0x989   : > { %v7708_v20 = vsel %vm1780_vm7, %v7676_v58, %v7115_v61  ;;  %v6502_v58 = vld [vmem:[#allocation2 + $0x151] sm:$0xff] }
 0x98a   : > { %v15002_v25 = vpop.permute.xlu1 %6734  ;;  %6876 = vrot.lane.b32.xlu0 %v14994_v24, %s9651_s27 }
 0x98b   : > { %v7614_v30 = vsel %vm1681_vm4, %v7582_v5, %v15002_v25 }
 0x98c   : > { %7510 = vrot.lane.b32.xlu1 %v6530_v19, %s9656_s17  ;;  %v15007_v6 = vpop.permute.xlu0 %6608 }
 0x98e   : > { %v7243_v32 = vpop.permute.xlu1 %7242  ;;  %7384 = vrot.lane.b32.xlu0 %v6499_v9, %s9655_s6 }
 0x98f   : > { %v7740_v50 = vsel %vm1813_vm8, %v7708_v20, %v7243_v32  ;;  %v15090_v32 = vld [vmem:[#allocation2 + $0x150] sm:$0xff] }
 0x990   : > { %7004 = vrot.lane.b32.xlu1 %v6499_v9, %s9652_s28  ;;  %v7117_v31 = vpop.permute.xlu0 %7116 }
 0x991   : > { %v7709_v14 = vsel %vm1780_vm7, %v7677_v13, %v7117_v31 }
 0x992   : > { %v15011_v57 = vpop.permute.xlu1 %6862  ;;  %6622 = vrot.lane.b32.xlu0 %v6498_v12, %s9649_s25  ;;  %v6533_v12 = vld [vmem:[#allocation2 + $0x142] sm:$0xff] }
 0x993   : > { %v7646_v61 = vsel %vm1714_vm5, %v7614_v30, %v15011_v57 }
 0x994   : > { %7512 = vrot.lane.b32.xlu1 %v6531_v55, %s9656_s17  ;;  %v15015_v27 = vpop.permute.xlu0 %6736 }
 0x996   : > { %v7371_v21 = vpop.permute.xlu1 %7370  ;;  %7130 = vrot.lane.b32.xlu0 %v6530_v19, %s9653_s29 }
 0x997   : > { %v7772_v4 = vsel %vm1846_vm9, %v7740_v50, %v7371_v21  ;;  %v7583_v21 = vsel %vm225_vm0, %v14716_v28, %v15007_v6  ;;  %v15118_v50 = vld [vmem:[#allocation2 + $0x158] sm:$0xff] }
 0x998   : > { %6750 = vrot.lane.b32.xlu1 %v6530_v19, %s9650_s26  ;;  %v7245_v44 = vpop.permute.xlu0 %7244 }
 0x999   : > { %v7741_v23 = vsel %vm1813_vm8, %v7709_v14, %v7245_v44  ;;  %v7615_v44 = vsel %vm1681_vm4, %v7583_v21, %v15015_v27  ;;  %v6536_v21 = vld [vmem:[#allocation2 + $0x16a] sm:$0xff] }
 0x99a   : > { %v6991_v59 = vpop.permute.xlu1 %6990  ;;  %6624 = vrot.lane.b32.xlu0 %v6499_v9, %s9649_s25 }
 0x99b   : > { %v7678_v9 = vsel %vm1747_vm6, %v7646_v61, %v6991_v59 }
 0x99c   : > { %7258 = vrot.lane.b32.xlu1 %v15028_v56, %s9654_s30  ;;  %v15033_v49 = vpop.permute.xlu0 %6864 }
 0x99d   : > { %v7647_v60 = vsel %vm1714_vm5, %v7615_v44, %v15033_v49  ;;  %v6505_v44 = vld [vmem:[#allocation2 + $0x171] sm:$0xff] }
 0x99e   : > { %v7499_v47 = vpop.permute.xlu1 %7498  ;;  %7132 = vrot.lane.b32.xlu0 %v6531_v55, %s9653_s29 }
 0x99f   : > { %v7804_v33 = vsel %vm1879_vm10, %v7772_v4, %v7499_v47 }
 0x9a0   : > { %6878 = vrot.lane.b32.xlu1 %v15028_v56, %s9651_s27  ;;  %v7373_v0 = vpop.permute.xlu0 %7372  ;;  %9514 = vmatprep.mubr.msk.f32.mxu1 %vm1924_vm11, %v7804_v33 }
 0x9a1   : > { %v7773_v48 = vsel %vm1846_vm9, %v7741_v23, %v7373_v0 }
 0x9a2   : > { %v6993_v16 = vpop.permute.xlu1 %6992  ;;  %6752 = vrot.lane.b32.xlu0 %v6531_v55, %s9650_s26 }
 0x9a3   : > { %v7679_v59 = vsel %vm1747_vm6, %v7647_v60, %v6993_v16 }
 0x9a4   : > { %7386 = vrot.lane.b32.xlu1 %v6500_v41, %s9655_s6  ;;  %v15053_v63 = vpop.permute.xlu0 %6610 }
 0x9a6   : > { %v7501_v34 = vpop.permute.xlu1 %7500  ;;  %7260 = vrot.lane.b32.xlu0 %v15056_v3, %s9654_s30 }
 0x9a7   : > { %v7805_v38 = vsel %vm1879_vm10, %v7773_v48, %v7501_v34  ;;  %v7584_v48 = vsel %vm225_vm0, %v14757_v1, %v15053_v63 }
 0x9a8   : > { %7006 = vrot.lane.b32.xlu1 %v6500_v41, %s9652_s28  ;;  %v7119_v35 = vpop.permute.xlu0 %7118  ;;  %9515 = vmatmul.mubr.msk.f32.gmra.mxu1 %vm1924_vm11, %v7805_v38 }
 0x9a9   : > { %v7710_v31 = vsel %vm1780_vm7, %v7678_v9, %v7119_v35  ;;  %v6504_v9 = vld [vmem:[#allocation2 + $0x169] sm:$0xff] }
 0x9aa   : > { %v15064_v26 = vpop.permute.xlu1 %6738  ;;  %6880 = vrot.lane.b32.xlu0 %v15056_v3, %s9651_s27 }
 0x9ab   : > { %v7616_v38 = vsel %vm1681_vm4, %v7584_v48, %v15064_v26 }
 0x9ac   : > { %7514 = vrot.lane.b32.xlu1 %v6532_v10, %s9656_s17  ;;  %v15069_v36 = vpop.permute.xlu0 %6612 }
 0x9ae   : > { %v7247_v45 = vpop.permute.xlu1 %7246  ;;  %7388 = vrot.lane.b32.xlu0 %v6501_v54, %s9655_s6 }
 0x9af   : > { %v7742_v43 = vsel %vm1813_vm8, %v7710_v31, %v7247_v45  ;;  %v15152_v45 = vld [vmem:[#allocation2 + $0x168] sm:$0xff] }
 0x9b0   : > { %7008 = vrot.lane.b32.xlu1 %v6501_v54, %s9652_s28  ;;  %v7121_v17 = vpop.permute.xlu0 %7120 }
 0x9b1   : > { %v7711_v28 = vsel %vm1780_vm7, %v7679_v59, %v7121_v17 }
 0x9b2   : > { %v15073_v46 = vpop.permute.xlu1 %6866  ;;  %6626 = vrot.lane.b32.xlu0 %v6500_v41, %s9649_s25  ;;  %v6535_v41 = vld [vmem:[#allocation2 + $0x15a] sm:$0xff] }
 0x9b3   : > { %v7648_v35 = vsel %vm1714_vm5, %v7616_v38, %v15073_v46 }
 0x9b4   : > { %7516 = vrot.lane.b32.xlu1 %v6533_v12, %s9656_s17  ;;  %v15077_v42 = vpop.permute.xlu0 %6740 }
 0x9b6   : > { %v7375_v22 = vpop.permute.xlu1 %7374  ;;  %7134 = vrot.lane.b32.xlu0 %v6532_v10, %s9653_s29 }
 0x9b7   : > { %v7774_v25 = vsel %vm1846_vm9, %v7742_v43, %v7375_v22  ;;  %v7585_v22 = vsel %vm225_vm0, %v14788_v2, %v15069_v36  ;;  %v15180_v43 = vld [vmem:[#allocation2 + $0x170] sm:$0xff] }
 0x9b8   : > { %6754 = vrot.lane.b32.xlu1 %v6532_v10, %s9650_s26  ;;  %v7249_v18 = vpop.permute.xlu0 %7248 }
 0x9b9   : > { %v7743_v20 = vsel %vm1813_vm8, %v7711_v28, %v7249_v18  ;;  %v7617_v18 = vsel %vm1681_vm4, %v7585_v22, %v15077_v42  ;;  %v6538_v22 = vld [vmem:[#allocation2 + $0x182] sm:$0xff] }
 0x9ba   : > { %v6995_v19 = vpop.permute.xlu1 %6994  ;;  %6628 = vrot.lane.b32.xlu0 %v6501_v54, %s9649_s25 }
 0x9bb   : > { %v7680_v54 = vsel %vm1747_vm6, %v7648_v35, %v6995_v19 }
 0x9bc   : > { %7262 = vrot.lane.b32.xlu1 %v15090_v32, %s9654_s30  ;;  %v15095_v40 = vpop.permute.xlu0 %6868 }
 0x9bd   : > { %v7649_v30 = vsel %vm1714_vm5, %v7617_v18, %v15095_v40  ;;  %v6507_v18 = vld [vmem:[#allocation2 + $0x189] sm:$0xff] }
 0x9be   : > { %v7503_v55 = vpop.permute.xlu1 %7502  ;;  %7136 = vrot.lane.b32.xlu0 %v6533_v12, %s9653_s29 }
 0x9bf   : > { %v7806_v57 = vsel %vm1879_vm10, %v7774_v25, %v7503_v55 }
 0x9c0   : > { %6882 = vrot.lane.b32.xlu1 %v15090_v32, %s9651_s27  ;;  %v7377_v29 = vpop.permute.xlu0 %7376  ;;  %9517 = vmatprep.mubr.msk.f32.mxu1 %vm1924_vm11, %v7806_v57 }
 0x9c1   : > { %v7775_v27 = vsel %vm1846_vm9, %v7743_v20, %v7377_v29 }
 0x9c2   : > { %v6997_v37 = vpop.permute.xlu1 %6996  ;;  %6756 = vrot.lane.b32.xlu0 %v6533_v12, %s9650_s26 }
 0x9c3   : > { %v7681_v19 = vsel %vm1747_vm6, %v7649_v30, %v6997_v37 }
 0x9c4   : > { %7390 = vrot.lane.b32.xlu1 %v6502_v58, %s9655_s6  ;;  %v15115_v6 = vpop.permute.xlu0 %6614 }
 0x9c6   : > { %v7505_v4 = vpop.permute.xlu1 %7504  ;;  %7264 = vrot.lane.b32.xlu0 %v15118_v50, %s9654_s30 }
 0x9c7   : > { %v7807_v49 = vsel %vm1879_vm10, %v7775_v27, %v7505_v4  ;;  %v7586_v27 = vsel %vm225_vm0, %v14829_v52, %v15115_v6 }
 0x9c8   : > { %7010 = vrot.lane.b32.xlu1 %v6502_v58, %s9652_s28  ;;  %v7123_v47 = vpop.permute.xlu0 %7122  ;;  %9518 = vmatmul.mubr.msk.f32.gmra.mxu1 %vm1924_vm11, %v7807_v49 }
 0x9c9   : > { %v7712_v17 = vsel %vm1780_vm7, %v7680_v54, %v7123_v47  ;;  %v6506_v54 = vld [vmem:[#allocation2 + $0x181] sm:$0xff] }
 0x9ca   : > { %v15126_v33 = vpop.permute.xlu1 %6742  ;;  %6884 = vrot.lane.b32.xlu0 %v15118_v50, %s9651_s27 }
 0x9cb   : > { %v7618_v49 = vsel %vm1681_vm4, %v7586_v27, %v15126_v33 }
 0x9cc   : > { %7518 = vrot.lane.b32.xlu1 %v6534_v53, %s9656_s17  ;;  %v15131_v0 = vpop.permute.xlu0 %6616 }
 0x9ce   : > { %v7251_v39 = vpop.permute.xlu1 %7250  ;;  %7392 = vrot.lane.b32.xlu0 %v6503_v7, %s9655_s6 }
 0x9cf   : > { %v7744_v63 = vsel %vm1813_vm8, %v7712_v17, %v7251_v39  ;;  %v6474_v39 = vld [vmem:[#allocation2 + $0x180] sm:$0xff] }
 0x9d0   : > { %7012 = vrot.lane.b32.xlu1 %v6503_v7, %s9652_s28  ;;  %v7125_v16 = vpop.permute.xlu0 %7124 }
 0x9d1   : > { %v7713_v2 = vsel %vm1780_vm7, %v7681_v19, %v7125_v16 }
 0x9d2   : > { %v15135_v13 = vpop.permute.xlu1 %6870  ;;  %6630 = vrot.lane.b32.xlu0 %v6502_v58, %s9649_s25  ;;  %v6537_v58 = vld [vmem:[#allocation2 + $0x172] sm:$0xff] }
 0x9d3   : > { %v7650_v47 = vsel %vm1714_vm5, %v7618_v49, %v15135_v13 }
 0x9d4   : > { %7520 = vrot.lane.b32.xlu1 %v6535_v41, %s9656_s17  ;;  %v15139_v14 = vpop.permute.xlu0 %6744 }
 0x9d6   : > { %v7379_v23 = vpop.permute.xlu1 %7378  ;;  %7138 = vrot.lane.b32.xlu0 %v6534_v53, %s9653_s29 }
 0x9d7   : > { %v7776_v26 = vsel %vm1846_vm9, %v7744_v63, %v7379_v23  ;;  %v7587_v23 = vsel %vm225_vm0, %v14860_v11, %v15131_v0  ;;  %v6475_v63 = vld [vmem:[#allocation2 + $0x188] sm:$0xff] }
 0x9d8   : > { %6758 = vrot.lane.b32.xlu1 %v6534_v53, %s9650_s26  ;;  %v7253_v34 = vpop.permute.xlu0 %7252 }
 0x9d9   : > { %v7745_v31 = vsel %vm1813_vm8, %v7713_v2, %v7253_v34  ;;  %v7619_v34 = vsel %vm1681_vm4, %v7587_v23, %v15139_v14  ;;  %v17221_v23 = vld [vmem:[#allocation158_spill] sm:$0xff] }
 0x9da   : > { %v6999_v10 = vpop.permute.xlu1 %6998  ;;  %6632 = vrot.lane.b32.xlu0 %v6503_v7, %s9649_s25 }
 0x9db   : > { %v7682_v7 = vsel %vm1747_vm6, %v7650_v47, %v6999_v10 }
 0x9dc   : > { %7266 = vrot.lane.b32.xlu1 %v15152_v45, %s9654_s30  ;;  %v15157_v1 = vpop.permute.xlu0 %6872 }
 0x9dd   : > { %v7651_v38 = vsel %vm1714_vm5, %v7619_v34, %v15157_v1 }
 0x9de   : > { %v7507_v12 = vpop.permute.xlu1 %7506  ;;  %7140 = vrot.lane.b32.xlu0 %v6535_v41, %s9653_s29 }
 0x9df   : > { %v7808_v46 = vsel %vm1879_vm10, %v7776_v26, %v7507_v12 }
 0x9e0   : > { %6886 = vrot.lane.b32.xlu1 %v15152_v45, %s9651_s27  ;;  %v7381_v5 = vpop.permute.xlu0 %7380  ;;  %9520 = vmatprep.mubr.msk.f32.mxu1 %vm1924_vm11, %v7808_v46 }
 0x9e1   : > { %v7777_v42 = vsel %vm1846_vm9, %v7745_v31, %v7381_v5  ;;  %v6477_v31 = vld [vmem:[#allocation2 + $0x1a0] sm:$0xff] }
 0x9e2   : > { %v7001_v61 = vpop.permute.xlu1 %7000  ;;  %6760 = vrot.lane.b32.xlu0 %v6535_v41, %s9650_s26 }
 0x9e3   : > { %v7683_v10 = vsel %vm1747_vm6, %v7651_v38, %v7001_v61 }
 0x9e4   : > { %7394 = vrot.lane.b32.xlu1 %v6504_v9, %s9655_s6  ;;  %v15177_v36 = vpop.permute.xlu0 %6618 }
 0x9e6   : > { %v7509_v25 = vpop.permute.xlu1 %7508  ;;  %7268 = vrot.lane.b32.xlu0 %v15180_v43, %s9654_s30 }
 0x9e7   : > { %v7809_v40 = vsel %vm1879_vm10, %v7777_v42, %v7509_v25  ;;  %v6476_v25 = vld [vmem:[#allocation2 + $0x198] sm:$0xff] }
 0x9e8   : > { %7014 = vrot.lane.b32.xlu1 %v6504_v9, %s9652_s28  ;;  %v7127_v55 = vpop.permute.xlu0 %7126  ;;  %9521 = vmatmul.mubr.msk.f32.gmra.mxu1 %vm1924_vm11, %v7809_v40  ;;  %v15265_v40 = vld [vmem:[%s16126_s3] sm:$0xf] }
 0x9e9   : > { %v7714_v16 = vsel %vm1780_vm7, %v7682_v7, %v7127_v55  ;;  %v7588_v55 = vsel %vm225_vm0, %v14901_v51, %v15177_v36  ;;  %9547 = vmatpush3.msk.msra.mxu1 %vm2021_vm3, %v15265_v40  ;;  %v6540_v7 = vld [vmem:[#allocation2 + $0x19a] sm:$0xff] }
 0x9ea   : > { %v15188_v57 = vpop.permute.xlu1 %6746  ;;  %6888 = vrot.lane.b32.xlu0 %v15180_v43, %s9651_s27  ;;  %9556 = vmatprep.subr.mxu1 %v17212_v8 }
 0x9ec   : > { %7522 = vrot.lane.b32.xlu1 %v6536_v21, %s9656_s17  ;;  %v15193_v29 = vpop.permute.xlu0 %6620 }
 0x9ee   : > { %v7255_v60 = vpop.permute.xlu1 %7254  ;;  %7396 = vrot.lane.b32.xlu0 %v6505_v44, %s9655_s6 }
 0x9ef   : > { %v7746_v6 = vsel %vm1813_vm8, %v7714_v16, %v7255_v60  ;;  %v6509_v60 = vld [vmem:[#allocation2 + $0x1a1] sm:$0xff]  ;;  %v7589_v16 = vsel %vm225_vm0, %v14932_v15, %v15193_v29 }
 0x9f0   : > { %7016 = vrot.lane.b32.xlu1 %v6505_v44, %s9652_s28  ;;  %v7129_v37 = vpop.permute.xlu0 %7128 }
 0x9f1   : > { %v7715_v11 = vsel %vm1780_vm7, %v7683_v10, %v7129_v37 }
 0x9f2   : > { %v15197_v59 = vpop.permute.xlu1 %6874  ;;  %6634 = vrot.lane.b32.xlu0 %v6504_v9, %s9649_s25  ;;  %v6445_v9 = vld [vmem:[#allocation2 + $0x18a] sm:$0xff] }
 0x9f4   : > { %7524 = vrot.lane.b32.xlu1 %v6537_v58, %s9656_s17  ;;  %v15201_v28 = vpop.permute.xlu0 %6748 }
 0x9f6   : > { %v7383_v20 = vpop.permute.xlu1 %7382  ;;  %7142 = vrot.lane.b32.xlu0 %v6536_v21, %s9653_s29 }
 0x9f7   : > { %v7778_v33 = vsel %vm1846_vm9, %v7746_v6, %v7383_v20 }
 0x9f8   : > { %6762 = vrot.lane.b32.xlu1 %v6536_v21, %s9650_s26  ;;  %v7257_v4 = vpop.permute.xlu0 %7256 }
 0x9f9   : > { %v7747_v17 = vsel %vm1813_vm8, %v7715_v11, %v7257_v4  ;;  %v6541_v4 = vld [vmem:[#allocation2 + $0x1a2] sm:$0xff] }
 0x9fa   : > { %v15212_v53 = vpop.permute.xlu1 %7002  ;;  %6636 = vrot.lane.b32.xlu0 %v6505_v44, %s9649_s25  ;;  %v7620_v44 = vsel %vm1681_vm4, %v7588_v55, %v15188_v57 }
 0x9fb   : > { %v7652_v37 = vsel %vm1714_vm5, %v7620_v44, %v15197_v59 }
 0x9fc   : > { %7270 = vrot.lane.b32.xlu1 %v6474_v39, %s9654_s30  ;;  %v15218_v52 = vpop.permute.xlu0 %6876  ;;  %v7684_v36 = vsel %vm1747_vm6, %v7652_v37, %v15212_v53 }
 0x9fe   : > { %v7511_v41 = vpop.permute.xlu1 %7510  ;;  %7144 = vrot.lane.b32.xlu0 %v6537_v58, %s9653_s29 }
 0x9ff   : > { %v7810_v13 = vsel %vm1879_vm10, %v7778_v33, %v7511_v41  ;;  %v7621_v33 = vsel %vm1681_vm4, %v7589_v16, %v15201_v28  ;;  %v17220_v41 = vld [vmem:[#allocation76_spill] sm:$0xff] }
 0xa00   : > { %6890 = vrot.lane.b32.xlu1 %v6474_v39, %s9651_s27  ;;  %v7385_v48 = vpop.permute.xlu0 %7384  ;;  %9523 = vmatprep.mubr.msk.f32.mxu1 %vm1924_vm11, %v7810_v13  ;;  %v17219_v39 = vld [vmem:[#allocation159_spill] sm:$0xff]  ;;  %v8161_v13 = vsel %vm225_vm0, %v17220_v41, 0.0  ;;  %v7653_v34 = vsel %vm1714_vm5, %v7621_v33, %v15218_v52  ;;  %v17222_v52 = vld [vmem:[#allocation125_spill] sm:$0xff] }
 0xa01   : > { %v7779_v14 = vsel %vm1846_vm9, %v7747_v17, %v7385_v48  ;;  %v8160_v53 = vsel %vm225_vm0, %v17219_v39, 0.0  ;;  %v8163_v48 = vsel %vm225_vm0, %v17221_v23, 0.0 }
 0xa02   : > { %v15233_v35 = vpop.permute.xlu1 %7004  ;;  %6764 = vrot.lane.b32.xlu0 %v6537_v58, %s9650_s26  ;;  %v6508_v58 = vld [vmem:[#allocation2 + $0x199] sm:$0xff]  ;;  %v8162_v15 = vadd.f32 %v8161_v13, %v8160_v53  ;;  %v17229_v13 = vld [vmem:[#allocation183_spill] sm:$0xff] }
 0xa03   : > { %v7685_v29 = vsel %vm1747_vm6, %v7653_v34, %v15233_v35 }
 0xa04   : > { %7398 = vrot.lane.b32.xlu1 %v6506_v54, %s9655_s6  ;;  %v15239_v0 = vpop.permute.xlu0 %6622  ;;  %v8164_v28 = vadd.f32 %v8163_v48, %v8162_v15  ;;  %v8179_v48 = vsel %vm225_vm0, %v17229_v13, 0.0 }
 0xa06   : > { %v7513_v26 = vpop.permute.xlu1 %7512  ;;  %7272 = vrot.lane.b32.xlu0 %v6475_v63, %s9654_s30 }
 0xa07   : > { %v7811_v1 = vsel %vm1879_vm10, %v7779_v14, %v7513_v26  ;;  %v8165_v26 = vsel %vm225_vm0, %v17222_v52, 0.0 }
 0xa08   : > { %7018 = vrot.lane.b32.xlu1 %v6506_v54, %s9652_s28  ;;  %v7131_v12 = vpop.permute.xlu0 %7130  ;;  %9524 = vmatmul.mubr.msk.f32.gmra.mxu1 %vm1924_vm11, %v7811_v1  ;;  %v17223_v1 = vld [vmem:[#allocation146_spill] sm:$0xff]  ;;  %v8166_v35 = vadd.f32 %v8165_v26, %v8164_v28  ;;  %v17231_v26 = vld [vmem:[#allocation97_spill] sm:$0xff] }
 0xa09   : > { %v7716_v57 = vsel %vm1780_vm7, %v7684_v36, %v7131_v12  ;;  %v8167_v12 = vsel %vm225_vm0, %v17223_v1, 0.0  ;;  %v17226_v36 = vld [vmem:[#allocation181_spill] sm:$0xff] }
 0xa0a   : > { %v15247_v46 = vpop.permute.xlu1 %6750  ;;  %6892 = vrot.lane.b32.xlu0 %v6475_v63, %s9651_s27 }
 0xa0c   : > { %7526 = vrot.lane.b32.xlu1 %v6538_v22, %s9656_s17  ;;  %v15251_v5 = vpop.permute.xlu0 %6624 }
 0xa0e   : > { %v7259_v30 = vpop.permute.xlu1 %7258  ;;  %7400 = vrot.lane.b32.xlu0 %v6507_v18, %s9655_s6 }
 0xa0f   : > { %v7748_v27 = vsel %vm1813_vm8, %v7716_v57, %v7259_v30  ;;  %v8168_v30 = vadd.f32 %v8167_v12, %v8166_v35  ;;  %v17227_v57 = vld [vmem:[#allocation93_spill] sm:$0xff]  ;;  %v8183_v12 = vsel %vm225_vm0, %v17231_v26, 0.0 }
 0xa10   : > { %7146 = vrot.lane.b32.xlu1 %v6538_v22, %s9653_s29  ;;  %v7133_v61 = vpop.permute.xlu0 %7132 }
 0xa11   : > { %v7717_v10 = vsel %vm1780_vm7, %v7685_v29, %v7133_v61 }
 0xa12   : > { %v15255_v19 = vpop.permute.xlu1 %6878  ;;  %7020 = vrot.lane.b32.xlu0 %v6507_v18, %s9652_s28 }
 0xa14   : > { %7148 = vrot.lane.b32.xlu1 %v6445_v9, %s9653_s29  ;;  %v15259_v2 = vpop.permute.xlu0 %6752 }
 0xa16   : > { %v7387_v42 = vpop.permute.xlu1 %7386  ;;  %7528 = vrot.lane.b32.xlu0 %v6445_v9, %s9656_s17  ;;  %v17224_v9 = vld [vmem:[#allocation182_spill] sm:$0xff] }
 0xa17   : > { %v7780_v49 = vsel %vm1846_vm9, %v7748_v27, %v7387_v42  ;;  %v17225_v42 = vld [vmem:[#allocation203_spill] sm:$0xff]  ;;  %v8175_v27 = vsel %vm225_vm0, %v17227_v57, 0.0 }
 0xa18   : > { %7276 = vrot.lane.b32.xlu1 %v6477_v31, %s9654_s30  ;;  %v7261_v21 = vpop.permute.xlu0 %7260  ;;  %v8169_v31 = vsel %vm225_vm0, %v17224_v9, 0.0 }
 0xa19   : > { %v7749_v11 = vsel %vm1813_vm8, %v7717_v10, %v7261_v21  ;;  %v8170_v21 = vadd.f32 %v8169_v31, %v8168_v30 }
 0xa1a   : > { %v15280_v51 = vpop.permute.xlu1 %7006  ;;  %7274 = vrot.lane.b32.xlu0 %v6476_v25, %s9654_s30  ;;  %v8171_v25 = vsel %vm225_vm0, %v17225_v42, 0.0 }
 0xa1c   : > { %7404 = vrot.lane.b32.xlu1 %v6509_v60, %s9655_s6  ;;  %v15287_v20 = vpop.permute.xlu0 %6880  ;;  %v8172_v60 = vadd.f32 %v8171_v25, %v8170_v21 }
 0xa1e   : > { %v7515_v59 = vpop.permute.xlu1 %7514  ;;  %7402 = vrot.lane.b32.xlu0 %v6508_v58, %s9655_s6  ;;  %v8173_v58 = vsel %vm225_vm0, %v17226_v36, 0.0 }
 0xa1f   : > { %v7812_v47 = vsel %vm1879_vm10, %v7780_v49, %v7515_v59  ;;  %v8174_v49 = vadd.f32 %v8173_v58, %v8172_v60 }
 0xa20   : > { %7532 = vrot.lane.b32.xlu1 %v6541_v4, %s9656_s17  ;;  %v7389_v6 = vpop.permute.xlu0 %7388  ;;  %9526 = vmatprep.mubr.msk.f32.mxu1 %vm1924_vm11, %v7812_v47 }
 0xa21   : > { %v7781_v17 = vsel %vm1846_vm9, %v7749_v11, %v7389_v6  ;;  %v8176_v47 = vadd.f32 %v8175_v27, %v8174_v49  ;;  %v17228_v6 = vld [vmem:[#allocation80_spill] sm:$0xff] }
 0xa22   : > { %v7009_v38 = vpop.permute.xlu1 %7008  ;;  %7530 = vrot.lane.b32.xlu0 %v6540_v7, %s9656_s17  ;;  %v7590_v7 = vsel %vm225_vm0, %v14966_v62, %v15239_v0  ;;  %v8177_v33 = vsel %vm225_vm0, %v17228_v6, 0.0  ;;  %v17233_v49 = vld [vmem:[#allocation100_spill] sm:$0xff] }
 0xa23   : > { %v7622_v16 = vsel %vm1681_vm4, %v7590_v7, %v15247_v46  ;;  %v8178_v29 = vadd.f32 %v8177_v33, %v8176_v47  ;;  %v17234_v33 = vld [vmem:[#allocation40_spill] sm:$0xff] }
 0xa24   : > { %v15312_v54 = vpop.permute.xlu0 %6626  ;;  %v7654_v34 = vsel %vm1714_vm5, %v7622_v16, %v15255_v19 }
 0xa25   : > { %v7686_v10 = vsel %vm1747_vm6, %v7654_v34, %v15280_v51  ;;  %v8180_v28 = vadd.f32 %v8179_v48, %v8178_v29  ;;  %v7591_v51 = vsel %vm225_vm0, %v14994_v24, %v15251_v5  ;;  %v17232_v5 = vld [vmem:[#allocation98_spill] sm:$0xff] }
 0xa26   : > { %v7517_v63 = vpop.permute.xlu1 %7516  ;;  %v7623_v30 = vsel %vm1681_vm4, %v7591_v51, %v15259_v2  ;;  %v8185_v27 = vsel %vm225_vm0, %v17232_v5, 0.0  ;;  %v17235_v48 = vld [vmem:[#allocation102_spill] sm:$0xff] }
 0xa27   : > { %v7813_v14 = vsel %vm1879_vm10, %v7781_v17, %v7517_v63  ;;  %v7655_v31 = vsel %vm1714_vm5, %v7623_v30, %v15287_v20  ;;  %v8191_v34 = vsel %vm225_vm0, %v17235_v48, 0.0 }
 0xa28   : > { %v7135_v22 = vpop.permute.xlu0 %7134  ;;  %9527 = vmatmul.mubr.msk.f32.gmra.mxu1 %vm1924_vm11, %v7813_v14  ;;  %v17230_v14 = vld [vmem:[#allocation160_spill] sm:$0xff]  ;;  %v7687_v21 = vsel %vm1747_vm6, %v7655_v31, %v7009_v38  ;;  %v17238_v31 = vld [vmem:[#allocation55_spill] sm:$0xff] }
 0xa29   : > { %v7718_v62 = vsel %vm1780_vm7, %v7686_v10, %v7135_v22  ;;  %v8181_v19 = vsel %vm225_vm0, %v17230_v14, 0.0 }
 0xa2a   : > { %v15322_v18 = vpop.permute.xlu1 %6754  ;;  %v8182_v35 = vadd.f32 %v8181_v19, %v8180_v28 }
 0xa2c   : > { %v15324_v61 = vpop.permute.xlu0 %6628 }
 0xa2e   : > { %v7263_v55 = vpop.permute.xlu1 %7262 }
 0xa2f   : > { %v7750_v46 = vsel %vm1813_vm8, %v7718_v62, %v7263_v55  ;;  %v8184_v55 = vadd.f32 %v8183_v12, %v8182_v35 }
 0xa30   : > { %v7137_v44 = vpop.permute.xlu0 %7136 }
 0xa31   : > { %v7719_v60 = vsel %vm1780_vm7, %v7687_v21, %v7137_v44  ;;  %v8186_v20 = vadd.f32 %v8185_v27, %v8184_v55  ;;  %v8197_v55 = vsel %vm225_vm0, %v17238_v31, 0.0  ;;  %v17239_v21 = vld [vmem:[#allocation105_spill] sm:$0xff] }
 0xa32   : > { %v15330_v37 = vpop.permute.xlu1 %6882 }
 0xa34   : > { %v15336_v4 = vpop.permute.xlu0 %6756 }
 0xa36   : > { %v7391_v59 = vpop.permute.xlu1 %7390 }
 0xa37   : > { %v7782_v11 = vsel %vm1846_vm9, %v7750_v46, %v7391_v59  ;;  %v8187_v59 = vsel %vm225_vm0, %v17233_v49, 0.0 }
 0xa38   : > { %v7265_v53 = vpop.permute.xlu0 %7264  ;;  %v8188_v38 = vadd.f32 %v8187_v59, %v8186_v20 }
 0xa39   : > { %v7751_v24 = vsel %vm1813_vm8, %v7719_v60, %v7265_v53  ;;  %v8189_v53 = vsel %vm225_vm0, %v17234_v33, 0.0  ;;  %v8199_v60 = vsel %vm225_vm0, %v17239_v21, 0.0 }
 0xa3a   : > { %v7011_v15 = vpop.permute.xlu1 %7010  ;;  %v8190_v10 = vadd.f32 %v8189_v53, %v8188_v38 }
 0xa3c   : > { %v15352_v0 = vpop.permute.xlu0 %6884  ;;  %v8192_v28 = vadd.f32 %v8191_v34, %v8190_v10 }
 0xa3e   : > { %v7519_v17 = vpop.permute.xlu1 %7518 }
 0xa3f   : > { %v7814_v63 = vsel %vm1879_vm10, %v7782_v11, %v7519_v17  ;;  %v17236_v11 = vld [vmem:[#allocation43_spill] sm:$0xff] }
 0xa40   : > { %v7393_v22 = vpop.permute.xlu0 %7392  ;;  %9529 = vmatprep.mubr.msk.f32.mxu1 %vm1924_vm11, %v7814_v63  ;;  %v8193_v17 = vsel %vm225_vm0, %v17236_v11, 0.0  ;;  %v17237_v63 = vld [vmem:[#allocation53_spill] sm:$0xff] }
 0xa41   : > { %v7783_v2 = vsel %vm1846_vm9, %v7751_v24, %v7393_v22  ;;  %v8195_v19 = vsel %vm225_vm0, %v17237_v63, 0.0  ;;  %v8194_v51 = vadd.f32 %v8193_v17, %v8192_v28  ;;  %v7592_v24 = vsel %vm225_vm0, %v15028_v56, %v15312_v54  ;;  %v17240_v56 = vld [vmem:[#allocation82_spill] sm:$0xff] }
 0xa42   : > { %v7013_v25 = vpop.permute.xlu1 %7012  ;;  %v8201_v54 = vsel %vm225_vm0, %v17240_v56, 0.0  ;;  %v17241_v28 = vld [vmem:[#allocation126_spill] sm:$0xff] }
 0xa43   : > { %v8196_v35 = vadd.f32 %v8195_v19, %v8194_v51 }
 0xa44   : > { %v15371_v58 = vpop.permute.xlu0 %6630 }
 0xa45   : > { %v8198_v59 = vadd.f32 %v8197_v55, %v8196_v35 }
 0xa46   : > { %v7521_v47 = vpop.permute.xlu1 %7520 }
 0xa47   : > { %v7815_v7 = vsel %vm1879_vm10, %v7783_v2, %v7521_v47  ;;  %v7624_v2 = vsel %vm1681_vm4, %v7592_v24, %v15322_v18  ;;  %v8203_v18 = vsel %vm225_vm0, %v17241_v28, 0.0  ;;  %v17242_v24 = vld [vmem:[#allocation161_spill] sm:$0xff] }
 0xa48   : > { %v7139_v16 = vpop.permute.xlu0 %7138  ;;  %9530 = vmatmul.mubr.msk.f32.gmra.mxu1 %vm1924_vm11, %v7815_v7  ;;  %v7656_v47 = vsel %vm1714_vm5, %v7624_v2, %v15330_v37  ;;  %v8200_v7 = vadd.f32 %v8199_v60, %v8198_v59  ;;  %v8205_v59 = vsel %vm225_vm0, %v17242_v24, 0.0  ;;  %v17243_v2 = vld [vmem:[#allocation37_spill] sm:$0xff] }
 0xa49   : > { %v7688_v38 = vsel %vm1747_vm6, %v7656_v47, %v7011_v15  ;;  %v7593_v15 = vsel %vm225_vm0, %v15056_v3, %v15324_v61  ;;  %v8207_v3 = vsel %vm225_vm0, %v17243_v2, 0.0 }
 0xa4a   : > { %v15381_v44 = vpop.permute.xlu1 %6758  ;;  %v7720_v53 = vsel %vm1780_vm7, %v7688_v38, %v7139_v16  ;;  %v8202_v19 = vadd.f32 %v8201_v54, %v8200_v7  ;;  %v7625_v35 = vsel %vm1681_vm4, %v7593_v15, %v15336_v4  ;;  %v17244_v54 = vld [vmem:[#allocation184_spill] sm:$0xff]  ;;  %v8301_v15 = vsel %vm225_vm0, %v17220_v41, -inf }
 0xa4b   : > { %v7657_v55 = vsel %vm1714_vm5, %v7625_v35, %v15352_v0 }
 0xa4c   : > { %v15387_v29 = vpop.permute.xlu0 %6632 }
 0xa4e   : > { %v7267_v62 = vpop.permute.xlu1 %7266 }
 0xa4f   : > { %v7752_v10 = vsel %vm1813_vm8, %v7720_v53, %v7267_v62  ;;  %v8204_v62 = vadd.f32 %v8203_v18, %v8202_v19  ;;  %v8209_v18 = vsel %vm225_vm0, %v17244_v54, 0.0  ;;  %v8304_v19 = vsel %vm225_vm0, %v17223_v1, -inf }
 0xa50   : > { %v7141_v46 = vpop.permute.xlu0 %7140 }
 0xa51   : > { %v8206_v7 = vadd.f32 %v8205_v59, %v8204_v62  ;;  %v8308_v62 = vsel %vm225_vm0, %v17225_v42, -inf  ;;  %v8302_v59 = vsel %vm225_vm0, %v17221_v23, -inf }
 0xa52   : > { %v15393_v12 = vpop.permute.xlu1 %6886 }
 0xa53   : > { %v8208_v53 = vadd.f32 %v8207_v3, %v8206_v7 }
 0xa54   : > { %v15395_v22 = vpop.permute.xlu0 %6760 }
 0xa56   : > { %v7395_v30 = vpop.permute.xlu1 %7394 }
 0xa57   : > { %v7784_v17 = vsel %vm1846_vm9, %v7752_v10, %v7395_v30  ;;  %v7689_v30 = vsel %vm1747_vm6, %v7657_v55, %v7013_v25  ;;  %v8300_v55 = vsel %vm225_vm0, %v17219_v39, -inf }
 0xa58   : > { %v7269_v27 = vpop.permute.xlu0 %7268  ;;  %v7721_v61 = vsel %vm1780_vm7, %v7689_v30, %v7141_v46  ;;  %v8303_v30 = vsel %vm225_vm0, %v17222_v52, -inf  ;;  %v8305_v7 = vmax.f32 %v8300_v55, %v8304_v19  ;;  %v17246_v19 = vld [vmem:[#allocation57_spill] sm:$0xff] }
 0xa59   : > { %v7753_v4 = vsel %vm1813_vm8, %v7721_v61, %v7269_v27  ;;  %v8306_v27 = vsel %vm225_vm0, %v17224_v9, -inf }
 0xa5a   : > { %v15408_v20 = vpop.permute.xlu1 %7014  ;;  %v8307_v61 = vmax.f32 %v8301_v15, %v8306_v27  ;;  %v8320_v27 = vsel %vm225_vm0, %v17231_v26, -inf  ;;  %v17247_v15 = vld [vmem:[#allocation163_spill] sm:$0xff]  ;;  %v8330_v26 = vsel %vm225_vm0, %v17236_v11, -inf }
 0xa5b   : > { %v8215_v55 = vsel %vm225_vm0, %v17247_v15, 0.0 }
 0xa5c   : > { %v15412_v34 = vpop.permute.xlu0 %6888 }
 0xa5e   : > { %v7523_v37 = vpop.permute.xlu1 %7522 }
 0xa5f   : > { %v7816_v51 = vsel %vm1879_vm10, %v7784_v17, %v7523_v37  ;;  %v17245_v17 = vld [vmem:[#allocation86_spill] sm:$0xff] }
 0xa60   : > { %v7397_v16 = vpop.permute.xlu0 %7396  ;;  %9532 = vmatprep.mubr.msk.f32.mxu1 %vm1924_vm11, %v7816_v51  ;;  %v8211_v46 = vsel %vm225_vm0, %v17245_v17, 0.0  ;;  %v8210_v51 = vadd.f32 %v8209_v18, %v8208_v53  ;;  %v8318_v18 = vsel %vm225_vm0, %v17230_v14, -inf }
 0xa61   : > { %v7785_v38 = vsel %vm1846_vm9, %v7753_v4, %v7397_v16  ;;  %v8310_v16 = vsel %vm225_vm0, %v17226_v36, -inf  ;;  %v8314_v4 = vsel %vm225_vm0, %v17228_v6, -inf  ;;  %v8316_v36 = vsel %vm225_vm0, %v17229_v13, -inf }
 0xa62   : > { %v15429_v60 = vpop.permute.xlu1 %7016  ;;  %v8212_v3 = vadd.f32 %v8211_v46, %v8210_v51  ;;  %v8311_v53 = vmax.f32 %v8303_v30, %v8310_v16  ;;  %v8322_v46 = vsel %vm225_vm0, %v17232_v5, -inf  ;;  %v8213_v51 = vsel %vm225_vm0, %v17246_v19, 0.0 }
 0xa63   : > { %v8324_v5 = vsel %vm225_vm0, %v17233_v49, -inf  ;;  %v8328_v6 = vsel %vm225_vm0, %v17235_v48, -inf  ;;  %v8338_v48 = vsel %vm225_vm0, %v17240_v56, -inf }
 0xa64   : > { %v15437_v47 = vpop.permute.xlu0 %6634  ;;  %v8214_v14 = vadd.f32 %v8213_v51, %v8212_v3  ;;  %v8319_v13 = vmax.f32 %v8311_v53, %v8318_v18  ;;  %v8334_v3 = vsel %vm225_vm0, %v17238_v31, -inf }
 0xa66   : > { %v7525_v0 = vpop.permute.xlu1 %7524 }
 0xa67   : > { %v7817_v10 = vsel %vm1879_vm10, %v7785_v38, %v7525_v0  ;;  %v8312_v38 = vsel %vm225_vm0, %v17227_v57, -inf }
 0xa68   : > { %v15442_v25 = vpop.permute.xlu0 %7142  ;;  %9533 = vmatmul.mubr.msk.f32.gmra.mxu1 %vm1924_vm11, %v7817_v10  ;;  %v8309_v10 = vmax.f32 %v8302_v59, %v8308_v62  ;;  %v8315_v62 = vmax.f32 %v8307_v61, %v8314_v4  ;;  %v8313_v30 = vmax.f32 %v8305_v7, %v8312_v38  ;;  %v8326_v59 = vsel %vm225_vm0, %v17234_v33, -inf }
 0xa69   : > { %v8216_v7 = vadd.f32 %v8215_v55, %v8214_v14  ;;  %v8327_v4 = vmax.f32 %v8319_v13, %v8326_v59  ;;  %v8332_v38 = vsel %vm225_vm0, %v17237_v63, -inf  ;;  %v8340_v13 = vsel %vm225_vm0, %v17241_v28, -inf  ;;  %v17248_v14 = vld [vmem:[#allocation107_spill] sm:$0xff] }
 0xa6a   : > { %v15449_v37 = vpop.permute.xlu1 %6762  ;;  %v8317_v42 = vmax.f32 %v8309_v10, %v8316_v36  ;;  %v8323_v9 = vmax.f32 %v8315_v62, %v8322_v46  ;;  %v8321_v61 = vmax.f32 %v8313_v30, %v8320_v27  ;;  %v8336_v36 = vsel %vm225_vm0, %v17239_v21, -inf  ;;  %v17249_v46 = vld [vmem:[#allocation186_spill] sm:$0xff] }
 0xa6b   : > { %v8217_v10 = vsel %vm225_vm0, %v17248_v14, 0.0  ;;  %v8219_v27 = vsel %vm225_vm0, %v17249_v46, 0.0  ;;  %v8335_v62 = vmax.f32 %v8327_v4, %v8334_v3  ;;  %v8348_v30 = vsel %vm225_vm0, %v17245_v17, -inf }
 0xa6c   : > { %v15461_v35 = vpop.permute.xlu0 %6636  ;;  %v8325_v18 = vmax.f32 %v8317_v42, %v8324_v5  ;;  %v8331_v51 = vmax.f32 %v8323_v9, %v8330_v26  ;;  %v8329_v11 = vmax.f32 %v8321_v61, %v8328_v6  ;;  %v8342_v9 = vsel %vm225_vm0, %v17242_v24, -inf }
 0xa6d   : > { %v8218_v6 = vadd.f32 %v8217_v10, %v8216_v7  ;;  %v8344_v5 = vsel %vm225_vm0, %v17243_v2, -inf  ;;  %v7594_v59 = vsel %vm225_vm0, %v15090_v32, %v15371_v58  ;;  %v8356_v7 = vsel %vm225_vm0, %v17249_v46, -inf }
 0xa6e   : > { %v15473_v0 = vpop.permute.xlu1 %7270  ;;  %v8333_v42 = vmax.f32 %v8325_v18, %v8332_v38  ;;  %v8339_v26 = vmax.f32 %v8331_v51, %v8338_v48  ;;  %v8337_v28 = vmax.f32 %v8329_v11, %v8336_v36  ;;  %v7626_v3 = vsel %vm1681_vm4, %v7594_v59, %v15381_v44 }
 0xa6f   : > { %v8220_v4 = vadd.f32 %v8219_v27, %v8218_v6  ;;  %v8343_v38 = vmax.f32 %v8335_v62, %v8342_v9  ;;  %v8350_v48 = vsel %vm225_vm0, %v17246_v19, -inf  ;;  %v7658_v18 = vsel %vm1714_vm5, %v7626_v3, %v15393_v12 }
 0xa70   : > { %v15487_v16 = vpop.permute.xlu0 %7144  ;;  %v8341_v56 = vmax.f32 %v8333_v42, %v8340_v13  ;;  %v8346_v32 = vsel %vm225_vm0, %v17244_v54, -inf  ;;  %v8345_v58 = vmax.f32 %v8337_v28, %v8344_v5  ;;  %v7690_v36 = vsel %vm1747_vm6, %v7658_v18, %v15408_v20  ;;  %v17250_v13 = vld [vmem:[#allocation128_spill] sm:$0xff] }
 0xa71   : > { %v8352_v44 = vsel %vm225_vm0, %v17247_v15, -inf  ;;  %v8221_v10 = vsel %vm225_vm0, %v17250_v13, 0.0  ;;  %v8358_v27 = vsel %vm225_vm0, %v17250_v13, -inf  ;;  %v7722_v12 = vsel %vm1780_vm7, %v7690_v36, %v15442_v25 }
 0xa72   : > { %v15497_v57 = vpop.permute.xlu1 %6890  ;;  %v8349_v11 = vmax.f32 %v8341_v56, %v8348_v30  ;;  %v8351_v42 = vmax.f32 %v8343_v38, %v8350_v48  ;;  %v8222_v9 = vadd.f32 %v8221_v10, %v8220_v4  ;;  %v7754_v56 = vsel %vm1813_vm8, %v7722_v12, %v15473_v0 }
 0xa73   : > { %v8354_v20 = vsel %vm225_vm0, %v17248_v14, -inf  ;;  %v8347_v30 = vmax.f32 %v8339_v26, %v8346_v32  ;;  %v8353_v59 = vmax.f32 %v8345_v58, %v8352_v44  ;;  %v7595_v0 = vsel %vm225_vm0, %v15118_v50, %v15387_v29 }
 0xa74   : > { %v15503_v53 = vpop.permute.xlu0 %6764  ;;  %v8357_v28 = vmax.f32 %v8349_v11, %v8356_v7  ;;  %v8359_v3 = vmax.f32 %v8351_v42, %v8358_v27  ;;  %v8223_v4 = vrot.slane %v8222_v9, 4 }
 0xa75   : > { %v8355_v25 = vmax.f32 %v8347_v30, %v8354_v20 }
 0xa76   : > { %v7399_v55 = vpop.permute.xlu1 %7398  ;;  %v8361_v38 = vmax.f32 %v8357_v28, %v8359_v3  ;;  %v8224_v58 = vadd.f32 %v8223_v4, %v8222_v9 }
 0xa77   : > { %v7786_v6 = vsel %vm1846_vm9, %v7754_v56, %v7399_v55  ;;  %v8360_v7 = vmax.f32 %v8353_v59, %v8355_v25  ;;  %v7627_v55 = vsel %vm1681_vm4, %v7595_v0, %v15395_v22 }
 0xa78   : > { %v7273_v61 = vpop.permute.xlu0 %7272  ;;  %v7659_v26 = vsel %vm1714_vm5, %v7627_v55, %v15412_v34  ;;  %v8225_v12 = vrot.slane %v8224_v58, 2 }
 0xa79   : > { %v8362_v11 = vmax.f32 %v8360_v7, %v8361_v38  ;;  %v7691_v36 = vsel %vm1747_vm6, %v7659_v26, %v15429_v60  ;;  %v7597_v60 = vsel %vm225_vm0, %v15180_v43, %v15461_v35  ;;  %v15602_v26 = vld [vmem:[%s16126_s3 + $0x4] sm:$0xf] }
 0xa7a   : > { %v7019_v51 = vpop.permute.xlu1 %7018  ;;  %v7723_v44 = vsel %vm1780_vm7, %v7691_v36, %v15487_v16  ;;  %v8226_v28 = vadd.f32 %v8225_v12, %v8224_v58  ;;  %v7596_v16 = vsel %vm225_vm0, %v15152_v45, %v15437_v47  ;;  %9542 = vmatpush3.msk.msra.mxu0 %vm2021_vm3, %v15602_v26 }
 0xa7b   : > { %v7755_v50 = vsel %vm1813_vm8, %v7723_v44, %v7273_v61  ;;  %v8363_v22 = vrot.slane %v8362_v11, 4  ;;  %v7629_v61 = vsel %vm1681_vm4, %v7597_v60, %v15503_v53  ;;  %v7628_v20 = vsel %vm1681_vm4, %v7596_v16, %v15449_v37  ;;  %9551 = vmatprep.subr.mxu0 %v17212_v8 }
 0xa7c   : > { %v6893_v62 = vpop.permute.xlu0 %6892  ;;  %v8227_v43 = vrot.slane %v8226_v28, 1 }
 0xa7d   : > { %v8364_v56 = vmax.f32 %v8362_v11, %v8363_v22 }
 0xa7e   : > { %v7527_v5 = vpop.permute.xlu1 %7526 }
 0xa7f   : > { %v7818_v18 = vsel %vm1879_vm10, %v7786_v6, %v7527_v5  ;;  %v7661_v6 = vsel %vm1714_vm5, %v7629_v61, %v6893_v62  ;;  %v7660_v5 = vsel %vm1714_vm5, %v7628_v20, %v15497_v57  ;;  %v8365_v3 = vrot.slane %v8364_v56, 2 }
 0xa80   : > { %v7401_v13 = vpop.permute.xlu0 %7400  ;;  %9535 = vmatprep.mubr.msk.f32.mxu1 %vm1924_vm11, %v7818_v18  ;;  %v7692_v35 = vsel %vm1747_vm6, %v7660_v5, %v7019_v51  ;;  %v8228_v57 = vadd.f32 %v8227_v43, %v8226_v28 }
 0xa81   : > { %v7787_v29 = vsel %vm1846_vm9, %v7755_v50, %v7401_v13  ;;  %v8366_v0 = vmax.f32 %v8364_v56, %v8365_v3 }
 0xa82   : > { %v7147_v48 = vpop.permute.xlu1 %7146 }
 0xa83   : > { %v7724_v45 = vsel %vm1780_vm7, %v7692_v35, %v7147_v48  ;;  %v8229_v48 = vmul.f32 0.00390625, %v8228_v57  ;;  %v8367_v7 = vrot.slane %v8366_v0, 1 }
 0xa84   : > { %v7021_v32 = vpop.permute.xlu0 %7020 }
 0xa85   : > { %v7693_v30 = vsel %vm1747_vm6, %v7661_v6, %v7021_v32  ;;  %v8368_v55 = vmax.f32 %v8366_v0, %v8367_v7  ;;  %v9495_v32 = vpop.f32.mrf.mxu1 }
 0xa86   : > { %v7149_v10 = vpop.permute.xlu1 %7148 }
 0xa87   : > { %v7725_v47 = vsel %vm1780_vm7, %v7693_v30, %v7149_v10  ;;  %v8001_v58 = vpop.f32.mrf.mxu1 }
 0xa88   : > { %v7529_v27 = vpop.permute.xlu0 %7528 }
 0xa89   : > { %v7819_v42 = vsel %vm1879_vm10, %v7787_v29, %v7529_v27  ;;  %v9498_v11 = vpop.f32.mrf.mxu1 }
 0xa8a   : > { %v7277_v34 = vpop.permute.xlu1 %7276  ;;  %9536 = vmatmul.mubr.msk.f32.gmra.mxu1 %vm1924_vm11, %v7819_v42 }
 0xa8b   : > { %v7757_v37 = vsel %vm1813_vm8, %v7725_v47, %v7277_v34  ;;  %v8011_v44 = vpop.f32.mrf.mxu1 }
 0xa8c   : > { %v7275_v9 = vpop.permute.xlu0 %7274 }
 0xa8d   : > { %v7756_v53 = vsel %vm1813_vm8, %v7724_v45, %v7275_v9  ;;  %v9501_v29 = vpop.f32.mrf.mxu1 }
 0xa8e   : > { %v7405_v13 = vpop.permute.xlu1 %7404 }
 0xa8f   : > { %v7789_v4 = vsel %vm1846_vm9, %v7757_v37, %v7405_v13  ;;  %v8021_v28 = vpop.f32.mrf.mxu1 }
 0xa90   : > { %v7403_v59 = vpop.permute.xlu0 %7402 }
 0xa91   : > { %v7788_v62 = vsel %vm1846_vm9, %v7756_v53, %v7403_v59  ;;  %v9504_v20 = vpop.f32.mrf.mxu1 }
 0xa92   : > { %v7533_v18 = vpop.permute.xlu1 %7532 }
 0xa93   : > { %v7821_v51 = vsel %vm1879_vm10, %v7789_v4, %v7533_v18  ;;  %v8031_v35 = vpop.f32.mrf.mxu1 }
 0xa94   : > { %v7531_v25 = vpop.permute.xlu0 %7530 }
 0xa95   : > { %v7820_v38 = vsel %vm1879_vm10, %v7788_v62, %v7531_v25  ;;  %v9507_v37 = vpop.f32.mrf.mxu1 }
 0xa96   : > { %9538 = vmatprep.mubr.msk.f32.mxu1 %vm1924_vm11, %v7820_v38 }
 0xa97   : > { %9539 = vmatmul.mubr.msk.f32.gmra.mxu1 %vm1924_vm11, %v7821_v51  ;;  %v8041_v0 = vpop.f32.mrf.mxu1 }
 0xa98   : > { %9548 = vmatprep.mubr.msk.f32.mxu1 %vm9657_vm12, %v17212_v8 }
 0xa9b   : > { %9549 = vmatmul.mubr.msk.f32.vlgmr.msra.gmra.mxu1 %vm225_vm0, %v8229_v48 }
 0xa9c   : > { %9557 = vmatpush3.msk.msra.mxu1 %vm2021_vm3, %v15265_v40  ;;  %9558 = vmatprep.mubr.msk.f32.mxu1 %vm9657_vm12, %v17212_v8  ;;  %v15610_v40 = vld [vmem:[%s16125_s2 + $0x3] ss:$0 sm:$0xff] }
 0xa9d   : > { %v15613_v36 = vadd.f32 %v15610_v40, %v8001_v58  ;;  %v15616_v10 = vadd.f32 %v9495_v32, %v15610_v40  ;;  %v15619_v50 = vadd.f32 %v9498_v11, %v15610_v40  ;;  %v15624_v12 = vadd.f32 %v15610_v40, %v8011_v44  ;;  %v9510_v58 = vpop.f32.mrf.mxu1 }
 0xa9e   : > { %v15637_v16 = vadd.f32 %v9501_v29, %v15610_v40  ;;  %v15642_v5 = vadd.f32 %v15610_v40, %v8021_v28  ;;  %v15651_v47 = vadd.f32 %v9504_v20, %v15610_v40  ;;  %v15656_v25 = vadd.f32 %v15610_v40, %v8031_v35 }
 0xa9f   : > { %9559 = vmatmul.mubr.msk.f32.vlgmr.msra.gmra.mxu1 %vm225_vm0, %v8368_v55  ;;  %v8369_v27 = vsel %vm225_vm0, %v15613_v36, -inf  ;;  %v8370_v22 = vsel %vm225_vm0, %v15616_v10, -inf  ;;  %v8230_v42 = vsel %vm225_vm0, %v15613_v36, 0.0  ;;  %v8372_v34 = vsel %vm225_vm0, %v15619_v50, -inf }
 0xaa0   : > { %v8376_v9 = vmax.f32 %v8370_v22, %v8369_v27  ;;  %v8231_v56 = vsel %vm225_vm0, %v15616_v10, 0.0  ;;  %v8233_v60 = vsel %vm225_vm0, %v15624_v12, 0.0  ;;  %v8371_v6 = vsel %vm225_vm0, %v15624_v12, -inf }
 0xaa1   : > { %v8232_v61 = vadd.f32 %v8231_v56, %v8230_v42  ;;  %v8375_v59 = vsel %vm225_vm0, %v15637_v16, -inf  ;;  %v8235_v3 = vsel %vm225_vm0, %v15619_v50, 0.0  ;;  %v8237_v45 = vsel %vm225_vm0, %v15642_v5, 0.0  ;;  %v8051_v42 = vpop.f32.mrf.mxu1 }
 0xaa2   : > { %v8374_v13 = vmax.f32 %v8372_v34, %v8376_v9  ;;  %v8373_v62 = vsel %vm225_vm0, %v15642_v5, -inf  ;;  %v8379_v4 = vsel %vm225_vm0, %v15651_v47, -inf  ;;  %v8239_v51 = vsel %vm225_vm0, %v15637_v16, 0.0 }
 0xaa3   : > { %v8234_v30 = vadd.f32 %v8233_v60, %v8232_v61  ;;  %v8241_v48 = vsel %vm225_vm0, %v15656_v25, 0.0  ;;  %v15665_v7 = vadd.f32 %v9507_v37, %v15610_v40  ;;  %v8377_v11 = vsel %vm225_vm0, %v15656_v25, -inf  ;;  %v9513_v61 = vpop.f32.mrf.mxu1 }
 0xaa4   : > { %v8380_v43 = vmax.f32 %v8371_v6, %v8374_v13  ;;  %v15670_v44 = vadd.f32 %v15610_v40, %v8041_v0  ;;  %v8243_v34 = vsel %vm225_vm0, %v15651_v47, 0.0  ;;  %v15679_v28 = vadd.f32 %v9510_v58, %v15610_v40 }
 0xaa5   : > { %v8236_v18 = vadd.f32 %v8235_v3, %v8234_v30  ;;  %v8383_v27 = vsel %vm225_vm0, %v15665_v7, -inf  ;;  %v15684_v20 = vadd.f32 %v15610_v40, %v8051_v42  ;;  %v8247_v35 = vsel %vm225_vm0, %v15665_v7, 0.0 }
 0xaa6   : > { %v8378_v53 = vmax.f32 %v8375_v59, %v8380_v43  ;;  %v8245_v9 = vsel %vm225_vm0, %v15670_v44, 0.0  ;;  %v8381_v13 = vsel %vm225_vm0, %v15670_v44, -inf  ;;  %v8387_v30 = vsel %vm225_vm0, %v15679_v28, -inf  ;;  %v8061_v43 = vpop.f32.mrf.mxu1 }
 0xaa7   : > { %v8238_v57 = vadd.f32 %v8237_v45, %v8236_v18  ;;  %v8249_v3 = vsel %vm225_vm0, %v15684_v20, 0.0  ;;  %v15693_v45 = vadd.f32 %v9513_v61, %v15610_v40 }
 0xaa8   : > { %v8384_v38 = vmax.f32 %v8373_v62, %v8378_v53  ;;  %v9516_v37 = vpop.f32.mrf.mxu1  ;;  %v8385_v62 = vsel %vm225_vm0, %v15684_v20, -inf }
 0xaa9   : > { %v8240_v32 = vadd.f32 %v8239_v51, %v8238_v57  ;;  %v15698_v57 = vadd.f32 %v15610_v40, %v8061_v43 }
 0xaaa   : > { %v8382_v55 = vmax.f32 %v8379_v4, %v8384_v38  ;;  %v8391_v38 = vsel %vm225_vm0, %v15693_v45, -inf  ;;  %v8071_v51 = vpop.f32.mrf.mxu1 }
 0xaab   : > { %v8242_v29 = vadd.f32 %v8241_v48, %v8240_v32  ;;  %v8251_v48 = vsel %vm225_vm0, %v15679_v28, 0.0  ;;  %v15707_v32 = vadd.f32 %v9516_v37, %v15610_v40 }
 0xaac   : > { %v8388_v22 = vmax.f32 %v8377_v11, %v8382_v55  ;;  %v8253_v55 = vsel %vm225_vm0, %v15698_v57, 0.0 }
 0xaad   : > { %v8244_v60 = vadd.f32 %v8243_v34, %v8242_v29  ;;  %17251 = vst [vmem:[#allocation77_spill] sm:$0xff] %v15707_v32  ;;  %v9519_v29 = vpop.f32.mrf.mxu1  ;;  %v8395_v34 = vsel %vm225_vm0, %v15707_v32, -inf }
 0xaae   : > { %v8386_v56 = vmax.f32 %v8383_v27, %v8388_v22  ;;  %v8389_v27 = vsel %vm225_vm0, %v15698_v57, -inf  ;;  %v15712_v22 = vadd.f32 %v15610_v40, %v8071_v51 }
 0xaaf   : > { %v8246_v6 = vadd.f32 %v8245_v9, %v8244_v60  ;;  %v8255_v60 = vsel %vm225_vm0, %v15693_v45, 0.0 }
 0xab0   : > { %v8392_v59 = vmax.f32 %v8381_v13, %v8386_v56  ;;  %v8081_v56 = vpop.f32.mrf.mxu1  ;;  %v8257_v61 = vsel %vm225_vm0, %v15712_v22, 0.0  ;;  %v15721_v13 = vadd.f32 %v9519_v29, %v15610_v40  ;;  %v8393_v43 = vsel %vm225_vm0, %v15712_v22, -inf }
 0xab1   : > { %v8248_v18 = vadd.f32 %v8247_v35, %v8246_v6  ;;  %v15726_v35 = vadd.f32 %v15610_v40, %v8081_v56 }
 0xab2   : > { %v8390_v53 = vmax.f32 %v8387_v30, %v8392_v59  ;;  %17252 = vst [vmem:[#allocation87_spill] sm:$0xff] %v15721_v13  ;;  %v9522_v59 = vpop.f32.mrf.mxu1 }
 0xab3   : > { %v8250_v4 = vadd.f32 %v8249_v3, %v8248_v18  ;;  %17253 = vst [vmem:[#allocation198_spill] sm:$0xff] %v15726_v35 }
 0xab4   : > { %v8396_v0 = vmax.f32 %v8385_v62, %v8390_v53  ;;  %v8399_v53 = vsel %vm225_vm0, %v15721_v13, -inf  ;;  %v8091_v37 = vpop.f32.mrf.mxu1  ;;  %v8259_v62 = vsel %vm225_vm0, %v15707_v32, 0.0 }
 0xab5   : > { %v8252_v11 = vadd.f32 %v8251_v48, %v8250_v4  ;;  %v8261_v4 = vsel %vm225_vm0, %v15726_v35, 0.0 }
 0xab6   : > { %v8394_v58 = vmax.f32 %v8391_v38, %v8396_v0  ;;  %v15735_v38 = vadd.f32 %v9522_v59, %v15610_v40 }
 0xab7   : > { %v8254_v42 = vadd.f32 %v8253_v55, %v8252_v11  ;;  %v8397_v55 = vsel %vm225_vm0, %v15726_v35, -inf }
 0xab8   : > { %v8400_v9 = vmax.f32 %v8389_v27, %v8394_v58  ;;  %17254 = vst [vmem:[#allocation35_spill] sm:$0xff] %v15735_v38  ;;  %v15740_v58 = vadd.f32 %v15610_v40, %v8091_v37  ;;  %v8403_v29 = vsel %vm225_vm0, %v15735_v38, -inf  ;;  %v8267_v37 = vsel %vm225_vm0, %v15735_v38, 0.0  ;;  %v17281_v38 = vld [vmem:[#allocation128_spill] sm:$0xff] }
 0xab9   : > { %v8256_v30 = vadd.f32 %v8255_v60, %v8254_v42 }
 0xaba   : > { %v8398_v6 = vmax.f32 %v8395_v34, %v8400_v9  ;;  %17255 = vst [vmem:[#allocation179_spill] sm:$0xff] %v15740_v58  ;;  %v8263_v34 = vsel %vm225_vm0, %v15721_v13, 0.0  ;;  %v8265_v9 = vsel %vm225_vm0, %v15740_v58, 0.0 }
 0xabb   : > { %v8258_v3 = vadd.f32 %v8257_v61, %v8256_v30  ;;  %v8401_v30 = vsel %vm225_vm0, %v15740_v58, -inf  ;;  %v17282_v58 = vld [vmem:[#allocation3_spill] sm:$0xff] }
 0xabc   : > { %v8404_v18 = vmax.f32 %v8393_v43, %v8398_v6 }
 0xabd   : > { %v8260_v51 = vadd.f32 %v8259_v62, %v8258_v3 }
 0xabe   : > { %v8402_v0 = vmax.f32 %v8399_v53, %v8404_v18 }
 0xabf   : > { %v8262_v11 = vadd.f32 %v8261_v4, %v8260_v51 }
 0xac0   : > { %v8408_v27 = vmax.f32 %v8397_v55, %v8402_v0 }
 0xac1   : > { %v8264_v61 = vadd.f32 %v8263_v34, %v8262_v11 }
 0xac2   : > { %v8406_v60 = vmax.f32 %v8403_v29, %v8408_v27 }
 0xac3   : > { %v8266_v43 = vadd.f32 %v8265_v9, %v8264_v61 }
 0xac4   : > { %v8412_v53 = vmax.f32 %v8401_v30, %v8406_v60 }
 0xac5   : > { %v8268_v51 = vadd.f32 %v8267_v37, %v8266_v43 }
 0xac8   : > { %v9525_v48 = vpop.f32.mrf.mxu1 }
 0xac9   : > { %v15749_v56 = vadd.f32 %v9525_v48, %v15610_v40 }
 0xaca   : > { %v8101_v42 = vpop.f32.mrf.mxu1 }
 0xacb   : > { %17256 = vst [vmem:[#allocation185_spill] sm:$0xff] %v15749_v56  ;;  %v15754_v59 = vadd.f32 %v15610_v40, %v8101_v42  ;;  %v8407_v3 = vsel %vm225_vm0, %v15749_v56, -inf  ;;  %v8271_v9 = vsel %vm225_vm0, %v15749_v56, 0.0 }
 0xacc   : > { %v8410_v0 = vmax.f32 %v8407_v3, %v8412_v53 }
 0xacd   : > { %17257 = vst [vmem:[#allocation127_spill] sm:$0xff] %v15754_v59  ;;  %v8269_v62 = vsel %vm225_vm0, %v15754_v59, 0.0  ;;  %v8405_v55 = vsel %vm225_vm0, %v15754_v59, -inf }
 0xace   : > { %v8270_v29 = vadd.f32 %v8269_v62, %v8268_v51  ;;  %v8416_v42 = vmax.f32 %v8405_v55, %v8410_v0 }
 0xad0   : > { %v8272_v30 = vadd.f32 %v8271_v9, %v8270_v29 }
 0xae8   : > { %v9528_v6 = vpop.f32.mrf.mxu1 }
 0xae9   : > { %v15763_v4 = vadd.f32 %v9528_v6, %v15610_v40 }
 0xaea   : > { %v8111_v18 = vpop.f32.mrf.mxu1 }
 0xaeb   : > { %17258 = vst [vmem:[#allocation65_spill] sm:$0xff] %v15763_v4  ;;  %v15768_v11 = vadd.f32 %v15610_v40, %v8111_v18  ;;  %v8411_v27 = vsel %vm225_vm0, %v15763_v4, -inf  ;;  %v8275_v51 = vsel %vm225_vm0, %v15763_v4, 0.0 }
 0xaec   : > { %v8414_v6 = vmax.f32 %v8411_v27, %v8416_v42 }
 0xaed   : > { %17259 = vst [vmem:[#allocation96_spill] sm:$0xff] %v15768_v11  ;;  %v8273_v60 = vsel %vm225_vm0, %v15768_v11, 0.0  ;;  %v8409_v3 = vsel %vm225_vm0, %v15768_v11, -inf }
 0xaee   : > { %v8274_v18 = vadd.f32 %v8273_v60, %v8272_v30  ;;  %v8420_v62 = vmax.f32 %v8409_v3, %v8414_v6 }
 0xaf0   : > { %v8276_v27 = vadd.f32 %v8275_v51, %v8274_v18 }
 0xb08   : > { %v9531_v48 = vpop.f32.mrf.mxu1 }
 0xb09   : > { %v15777_v61 = vadd.f32 %v9531_v48, %v15610_v40 }
 0xb0a   : > { %v8121_v34 = vpop.f32.mrf.mxu1 }
 0xb0b   : > { %17260 = vst [vmem:[#allocation134_spill] sm:$0xff] %v15777_v61  ;;  %v15782_v53 = vadd.f32 %v15610_v40, %v8121_v34  ;;  %v8415_v37 = vsel %vm225_vm0, %v15777_v61, -inf  ;;  %v8279_v4 = vsel %vm225_vm0, %v15777_v61, 0.0 }
 0xb0c   : > { %v8418_v29 = vmax.f32 %v8415_v37, %v8420_v62 }
 0xb0d   : > { %17261 = vst [vmem:[#allocation193_spill] sm:$0xff] %v15782_v53  ;;  %v8277_v48 = vsel %vm225_vm0, %v15782_v53, 0.0  ;;  %v8413_v42 = vsel %vm225_vm0, %v15782_v53, -inf }
 0xb0e   : > { %v8278_v60 = vadd.f32 %v8277_v48, %v8276_v27  ;;  %v8424_v30 = vmax.f32 %v8413_v42, %v8418_v29 }
 0xb10   : > { %v8280_v62 = vadd.f32 %v8279_v4, %v8278_v60 }
 0xb28   : > { %v9534_v43 = vpop.f32.mrf.mxu1 }
 0xb29   : > { %v15791_v55 = vadd.f32 %v9534_v43, %v15610_v40 }
 0xb2a   : > { %v8131_v0 = vpop.f32.mrf.mxu1 }
 0xb2b   : > { %17262 = vst [vmem:[#allocation174_spill] sm:$0xff] %v15791_v55  ;;  %v15796_v34 = vadd.f32 %v15610_v40, %v8131_v0  ;;  %v8419_v6 = vsel %vm225_vm0, %v15791_v55, -inf  ;;  %v8283_v42 = vsel %vm225_vm0, %v15791_v55, 0.0 }
 0xb2c   : > { %v8422_v37 = vmax.f32 %v8419_v6, %v8424_v30 }
 0xb2d   : > { %17263 = vst [vmem:[#allocation150_spill] sm:$0xff] %v15796_v34  ;;  %v8281_v43 = vsel %vm225_vm0, %v15796_v34, 0.0  ;;  %v8417_v0 = vsel %vm225_vm0, %v15796_v34, -inf }
 0xb2e   : > { %v8282_v48 = vadd.f32 %v8281_v43, %v8280_v62  ;;  %v8429_v27 = vmax.f32 %v8422_v37, %v8417_v0 }
 0xb30   : > { %v8284_v6 = vadd.f32 %v8283_v42, %v8282_v48 }
 0xb4a   : > { %v9537_v9 = vpop.f32.mrf.mxu1 }
 0xb4b   : > { %v15805_v18 = vadd.f32 %v9537_v9, %v15610_v40 }
 0xb4c   : > { %v8141_v3 = vpop.f32.mrf.mxu1 }
 0xb4d   : > { %17264 = vst [vmem:[#allocation155_spill] sm:$0xff] %v15805_v18  ;;  %v15810_v51 = vadd.f32 %v15610_v40, %v8141_v3  ;;  %v8423_v29 = vsel %vm225_vm0, %v15805_v18, -inf  ;;  %v8287_v37 = vsel %vm225_vm0, %v15805_v18, 0.0 }
 0xb4e   : > { %v8428_v61 = vmax.f32 %v8423_v29, %v8429_v27 }
 0xb4f   : > { %17265 = vst [vmem:[#allocation68_spill] sm:$0xff] %v15810_v51  ;;  %v8285_v9 = vsel %vm225_vm0, %v15810_v51, 0.0  ;;  %v8421_v4 = vsel %vm225_vm0, %v15810_v51, -inf }
 0xb50   : > { %v8286_v60 = vadd.f32 %v8285_v9, %v8284_v6  ;;  %v8426_v43 = vmax.f32 %v8421_v4, %v8428_v61 }
 0xb52   : > { %v8288_v29 = vadd.f32 %v8287_v37, %v8286_v60 }
 0xb57   : > { %v9540_v30 = vpop.f32.mrf.mxu1 }
 0xb58   : > { %v15821_v3 = vadd.f32 %v9540_v30, %v15610_v40 }
 0xb59   : > { %v8151_v62 = vpop.f32.mrf.mxu1 }
 0xb5a   : > { %17266 = vst [vmem:[#allocation78_spill] sm:$0xff] %v15821_v3  ;;  %v8427_v0 = vsel %vm225_vm0, %v15821_v3, -inf  ;;  %v15828_v55 = vadd.f32 %v15610_v40, %v8151_v62  ;;  %v8291_v30 = vsel %vm225_vm0, %v15821_v3, 0.0  ;;  %v17280_v3 = vld [vmem:[#allocation126_spill] sm:$0xff] }
 0xb5b   : > { %v8430_v48 = vmax.f32 %v8426_v43, %v8427_v0  ;;  %v8589_v27 = vpop.f32.mrf.mxu1 }
 0xb5c   : > { %17267 = vst [vmem:[#allocation144_spill] sm:$0xff] %v15828_v55  ;;  %v8289_v42 = vsel %vm225_vm0, %v15828_v55, 0.0  ;;  %v8425_v9 = vsel %vm225_vm0, %v15828_v55, -inf }
 0xb5d   : > { %v8290_v61 = vadd.f32 %v8289_v42, %v8288_v29  ;;  %v8431_v6 = vmax.f32 %v8425_v9, %v8430_v48  ;;  %v9550_v4 = vpop.f32.mrf.mxu1 }
 0xb5f   : > { %v8292_v18 = vadd.f32 %v8291_v30, %v8290_v61  ;;  %v8432_v51 = vrot.slane %v8431_v6, 4  ;;  %v8736_v34 = vpop.f32.mrf.mxu1 }
 0xb61   : > { %v8293_v40 = vrot.slane %v8292_v18, 4  ;;  %v8433_v62 = vmax.f32 %v8431_v6, %v8432_v51  ;;  %v9560_v43 = vpop.f32.mrf.mxu1 }
 0xb63   : > { %v8294_v60 = vadd.f32 %v8293_v40, %v8292_v18  ;;  %v8434_v0 = vrot.slane %v8433_v62, 2 }
 0xb65   : > { %v8295_v37 = vrot.slane %v8294_v60, 2  ;;  %v8435_v56 = vmax.f32 %v8433_v62, %v8434_v0 }
 0xb67   : > { %v8296_v53 = vadd.f32 %v8295_v37, %v8294_v60  ;;  %v8436_v29 = vrot.slane %v8435_v56, 1 }
 0xb69   : > { %v8297_v11 = vrot.slane %v8296_v53, 1  ;;  %v8437_v48 = vmax.f32 %v8435_v56, %v8436_v29 }
 0xb6b   : > { %v8298_v59 = vadd.f32 %v8297_v11, %v8296_v53  ;;  %v8742_v53 = vld [vmem:[%s16127_s4] sm:$0x1] }
 0xb6d   : > { %v8299_v55 = vmul.f32 0.00390625, %v8298_v59 }
 0xb6f   : > { %9544 = vmatmul.mubr.msk.f32.vlgmr.msra.gmra.mxu0 %vm225_vm0, %v8299_v55 }
 0xb70   : > { %9552 = vmatpush3.msk.msra.mxu0 %vm2021_vm3, %v15602_v26  ;;  %9553 = vmatprep.mubr.msk.f32.mxu0 %vm9657_vm12, %v17212_v8 }
 0xb73   : > { %9554 = vmatmul.mubr.msk.f32.vlgmr.msra.gmra.mxu0 %vm225_vm0, %v8437_v48 }
 0xc2f   : > { %v8513_v18 = vpop.f32.mrf.mxu0 }
 0xc30   : > { %v8590_v42 = vadd.f32 %v8589_v27, %v8513_v18 }
 0xc31   : > { %v9545_v51 = vpop.f32.mrf.mxu0 }
 0xc32   : > { %v8593_v11 = vmax.f32 %v8590_v42, 0.0 }
 0xc33   : > { %v8663_v9 = vpop.f32.mrf.mxu0 }
 0xc34   : > { %v8737_v61 = vadd.f32 %v8736_v34, %v8663_v9  ;;  %v8753_v34 = vlaneseq  ;;  %v17268_v9 = vld [vmem:[#allocation182_spill] sm:$0xff] }
 0xc35   : > { %v9555_v6 = vpop.f32.mrf.mxu0 }
 0xc36   : > { %v8740_v59 = vmax.f32 %v8737_v61, 0.0  ;;  %v15846_v62 = vshrl.u32 %v8753_v34, 7  ;;  %v17269_v6 = vld [vmem:[#allocation203_spill] sm:$0xff] }
 0xc38   : > { %v8741_v55 = vadd.f32 %v8740_v59, %v8593_v11  ;;  %v16341_v43 = vsub.s32 0, %v15846_v62  ;;  %v17270_v59 = vld [vmem:[#allocation181_spill] sm:$0xff] }
 0xc3a   : > { %v8743_v26 = vmul.f32 %v8742_v53, %v8741_v55  ;;  %v17271_v55 = vld [vmem:[#allocation93_spill] sm:$0xff] }
 0xc3c   : > { %v8744_v4 = vsel %vm234_vm2, %v8743_v26, 0.0 }
 0xc3d   : > { %8745 = vadd.xlane.f32.xlu0 %v8744_v4  ;;  %v17272_v4 = vld [vmem:[#allocation80_spill] sm:$0xff] }
 0xcc6   : > { %v8746_v8 = vpop.xlane.xlu0 %8745 }
 0xcc7   : > { %v8747_v56 = vsub.f32 0.0, %v8746_v8  ;;  %v17273_v8 = vld [vmem:[#allocation183_spill] sm:$0xff] }
 0xcc9   : > { %v8748_v30 = vmul.f32 1.442695, %v8747_v56 }
 0xccb   : > { %9579 = vpow2.f32 %v8748_v30  ;;  %v17274_v30 = vld [vmem:[#allocation160_spill] sm:$0xff] }
 0xcd8   : > { %v9580_v40 = vpop.eup %9579 }
 0xcd9   : > { %v8750_v27 = vadd.f32 1.0, %v9580_v40  ;;  %v17275_v40 = vld [vmem:[#allocation97_spill] sm:$0xff] }
 0xcdb   : > { %9581 = vrcp.f32 %v8750_v27  ;;  %v17276_v27 = vld [vmem:[#allocation98_spill] sm:$0xff] }
 0xce8   : > { %v15849_v60 = vpop.eup %9581 }
 0xce9   : > { %v8756_v37 = vrot.slane %v15849_v60, %v16341_v43  ;;  %v8821_v29 = vsub.f32 1.0, %v15849_v60  ;;  %v17277_v60 = vld [vmem:[#allocation102_spill] sm:$0xff] }
 0xcea   : > { %v17279_v43 = vld [vmem:[#allocation82_spill] sm:$0xff] }
 0xceb   : > { %v8757_v0 = vmul.f32 %v8756_v37, %v17219_v39  ;;  %v8758_v48 = vmul.f32 %v8756_v37, %v17220_v41  ;;  %v8759_v18 = vmul.f32 %v8756_v37, %v17221_v23  ;;  %v8760_v51 = vmul.f32 %v8756_v37, %v17222_v52 }
 0xcec   : > { %v8761_v42 = vmul.f32 %v8756_v37, %v17223_v1  ;;  %v8762_v61 = vmul.f32 %v8756_v37, %v17268_v9  ;;  %v8763_v11 = vmul.f32 %v8756_v37, %v17269_v6  ;;  %v8764_v53 = vmul.f32 %v8756_v37, %v17270_v59  ;;  %v17278_v6 = vld [vmem:[#allocation43_spill] sm:$0xff] }
 0xced   : > { %v8765_v26 = vmul.f32 %v8756_v37, %v17271_v55  ;;  %v8766_v39 = vmul.f32 %v8756_v37, %v17272_v4  ;;  %v8767_v56 = vmul.f32 %v8756_v37, %v17273_v8  ;;  %v8768_v41 = vmul.f32 %v8756_v37, %v17274_v30 }
 0xcee   : > { %v8769_v23 = vmul.f32 %v8756_v37, %v17275_v40  ;;  %v8770_v52 = vmul.f32 %v8756_v37, %v17276_v27  ;;  %v8771_v1 = vmul.f32 %v8756_v37, %v17233_v49  ;;  %v8772_v34 = vmul.f32 %v8756_v37, %v17234_v33 }
 0xcef   : > { %v8773_v9 = vmul.f32 %v8756_v37, %v17277_v60  ;;  %v8774_v59 = vmul.f32 %v8756_v37, %v17278_v6  ;;  %v8775_v55 = vmul.f32 %v8756_v37, %v17237_v63  ;;  %v8776_v4 = vmul.f32 %v8756_v37, %v17238_v31 }
 0xcf0   : > { %v8777_v8 = vmul.f32 %v8756_v37, %v17239_v21  ;;  %v8778_v30 = vmul.f32 %v8756_v37, %v17279_v43  ;;  %v8779_v40 = vmul.f32 %v8756_v37, %v17280_v3  ;;  %v8780_v27 = vmul.f32 %v8756_v37, %v17242_v24  ;;  %v17283_v24 = vld [vmem:[#allocation5_spill] sm:$0xff] }
 0xcf1   : > { %v8781_v49 = vmul.f32 %v8756_v37, %v17243_v2  ;;  %v8782_v33 = vmul.f32 %v8756_v37, %v17244_v54  ;;  %v8783_v60 = vmul.f32 %v8756_v37, %v17245_v17  ;;  %v8784_v6 = vmul.f32 %v8756_v37, %v17246_v19  ;;  %v17284_v2 = vld [vmem:[#allocation4_spill] sm:$0xff]  ;;  %v17285_v17 = vld [vmem:[#allocation7_spill] sm:$0xff]  ;;  %v17286_v19 = vld [vmem:[#allocation6_spill] sm:$0xff] }
 0xcf2   : > { %v8785_v63 = vmul.f32 %v8756_v37, %v17247_v15  ;;  %v8786_v31 = vmul.f32 %v8756_v37, %v17248_v14  ;;  %v8787_v21 = vmul.f32 %v8756_v37, %v17249_v46  ;;  %v8788_v43 = vmul.f32 %v8756_v37, %v17281_v38  ;;  %v17287_v14 = vld [vmem:[#allocation9_spill] sm:$0xff]  ;;  %v17288_v46 = vld [vmem:[#allocation8_spill] sm:$0xff] }
 0xcf3   : > { %v15888_v3 = vadd.f32 %v8757_v0, %v17282_v58  ;;  %v15891_v13 = vadd.f32 %v8758_v48, %v17283_v24  ;;  %v15894_v54 = vadd.f32 %v8759_v18, %v17284_v2  ;;  %v15897_v35 = vadd.f32 %v8760_v51, %v17285_v17  ;;  %v17289_v58 = vld [vmem:[#allocation11_spill] sm:$0xff]  ;;  %v17290_v0 = vld [vmem:[#allocation10_spill] sm:$0xff]  ;;  %v17291_v18 = vld [vmem:[#allocation13_spill] sm:$0xff] }
 0xcf4   : > { %v15900_v15 = vadd.f32 %v8761_v42, %v17286_v19  ;;  %v15903_v32 = vadd.f32 %v8762_v61, %v17287_v14  ;;  %v15906_v38 = vadd.f32 %v8763_v11, %v17288_v46  ;;  %v15909_v37 = vadd.f32 %v8764_v53, %v17289_v58  ;;  %v17292_v51 = vld [vmem:[#allocation12_spill] sm:$0xff]  ;;  %v17293_v42 = vld [vmem:[#allocation15_spill] sm:$0xff]  ;;  %v17294_v61 = vld [vmem:[#allocation14_spill] sm:$0xff] }
 0xcf5   : > { %v15912_v48 = vadd.f32 %v8765_v26, %v17290_v0  ;;  %v15915_v24 = vadd.f32 %v8766_v39, %v17291_v18  ;;  %v15918_v2 = vadd.f32 %v8767_v56, %v17292_v51  ;;  %v15921_v17 = vadd.f32 %v8768_v41, %v17293_v42  ;;  %v17295_v11 = vld [vmem:[#allocation17_spill] sm:$0xff]  ;;  %v17296_v53 = vld [vmem:[#allocation16_spill] sm:$0xff]  ;;  %v17297_v26 = vld [vmem:[#allocation19_spill] sm:$0xff] }
 0xcf6   : > { %v15924_v19 = vadd.f32 %v8769_v23, %v17294_v61  ;;  %v15927_v14 = vadd.f32 %v8770_v52, %v17295_v11  ;;  %v15930_v46 = vadd.f32 %v8771_v1, %v17296_v53  ;;  %v15933_v58 = vadd.f32 %v8772_v34, %v17297_v26  ;;  %v17298_v39 = vld [vmem:[#allocation18_spill] sm:$0xff]  ;;  %v17299_v56 = vld [vmem:[#allocation21_spill] sm:$0xff]  ;;  %v17300_v41 = vld [vmem:[#allocation20_spill] sm:$0xff] }
 0xcf7   : > { %v15936_v0 = vadd.f32 %v8773_v9, %v17298_v39  ;;  %v15939_v18 = vadd.f32 %v8774_v59, %v17299_v56  ;;  %v15942_v51 = vadd.f32 %v8775_v55, %v17300_v41  ;;  %v17301_v23 = vld [vmem:[#allocation23_spill] sm:$0xff]  ;;  %v17302_v52 = vld [vmem:[#allocation22_spill] sm:$0xff]  ;;  %v17303_v1 = vld [vmem:[#allocation25_spill] sm:$0xff] }
 0xcf8   : > { %v15945_v42 = vadd.f32 %v8776_v4, %v17301_v23  ;;  %v15948_v61 = vadd.f32 %v8777_v8, %v17302_v52  ;;  %v15951_v11 = vadd.f32 %v8778_v30, %v17303_v1  ;;  %v17304_v34 = vld [vmem:[#allocation24_spill] sm:$0xff]  ;;  %v17305_v9 = vld [vmem:[#allocation27_spill] sm:$0xff]  ;;  %v17307_v59 = vld [vmem:[#allocation26_spill] sm:$0xff]  ;;  %v17315_v30 = vsub.s32 0, %v15846_v62 }
 0xcf9   : > { %v15954_v53 = vadd.f32 %v8779_v40, %v17304_v34  ;;  %v15957_v26 = vadd.f32 %v8780_v27, %v17305_v9  ;;  %v15960_v39 = vadd.f32 %v8781_v49, %v17307_v59  ;;  %v17309_v55 = vld [vmem:[#allocation29_spill] sm:$0xff]  ;;  %v17311_v4 = vld [vmem:[#allocation28_spill] sm:$0xff]  ;;  %v17313_v8 = vld [vmem:[#allocation31_spill] sm:$0xff] }
 0xcfa   : > { %v15963_v56 = vadd.f32 %v8782_v33, %v17309_v55  ;;  %v15966_v41 = vadd.f32 %v8783_v60, %v17311_v4  ;;  %v15969_v23 = vadd.f32 %v8784_v6, %v17313_v8  ;;  %v8825_v52 = vrot.slane %v8821_v29, %v17315_v30  ;;  %v17316_v40 = vld [vmem:[#allocation30_spill] sm:$0xff]  ;;  %v17318_v27 = vld [vmem:[#allocation32_spill] sm:$0xff]  ;;  %v17320_v49 = vld [vmem:[#allocation33_spill] sm:$0xff] }
 0xcfb   : > { %17306 = vst [vmem:[#allocation59_spill] sm:$0xff] %v15957_v26  ;;  %17308 = vst [vmem:[#allocation39_spill] sm:$0xff] %v15960_v39  ;;  %v15974_v1 = vadd.f32 %v8785_v63, %v17316_v40  ;;  %v15977_v34 = vadd.f32 %v8786_v31, %v17318_v27  ;;  %v15980_v9 = vadd.f32 %v8787_v21, %v17320_v49  ;;  %v17322_v33 = vld [vmem:[#allocation34_spill] sm:$0xff] }
 0xcfc   : > { %17310 = vst [vmem:[#allocation94_spill] sm:$0xff] %v15963_v56  ;;  %17312 = vst [vmem:[#allocation112_spill] sm:$0xff] %v15966_v41  ;;  %v15983_v59 = vadd.f32 %v8788_v43, %v17322_v33  ;;  %v8826_v60 = vmul.f32 %v8825_v52, %v15613_v36  ;;  %v8827_v6 = vmul.f32 %v8825_v52, %v15616_v10  ;;  %v17335_v41 = vld [vmem:[#allocation150_spill] sm:$0xff] }
 0xcfd   : > { %17314 = vst [vmem:[#allocation192_spill] sm:$0xff] %v15969_v23  ;;  %17317 = vst [vmem:[#allocation58_spill] sm:$0xff] %v15974_v1  ;;  %v8828_v55 = vmul.f32 %v8825_v52, %v15624_v12  ;;  %v8829_v62 = vmul.f32 %v8825_v52, %v15619_v50  ;;  %v8830_v29 = vmul.f32 %v8825_v52, %v15642_v5  ;;  %v17333_v1 = vld [vmem:[#allocation193_spill] sm:$0xff]  ;;  %v17334_v23 = vld [vmem:[#allocation134_spill] sm:$0xff] }
 0xcfe   : > { %17319 = vst [vmem:[#allocation139_spill] sm:$0xff] %v15977_v34  ;;  %17321 = vst [vmem:[#allocation117_spill] sm:$0xff] %v15980_v9  ;;  %v8831_v63 = vmul.f32 %v8825_v52, %v15637_v16  ;;  %v8832_v31 = vmul.f32 %v8825_v52, %v15656_v25  ;;  %v8833_v21 = vmul.f32 %v8825_v52, %v15651_v47  ;;  %v17324_v16 = vld [vmem:[#allocation77_spill] sm:$0xff]  ;;  %v17325_v25 = vld [vmem:[#allocation198_spill] sm:$0xff] }
 0xcff   : > { %17323 = vst [vmem:[#allocation122_spill] sm:$0xff] %v15983_v59  ;;  %v8834_v4 = vmul.f32 %v8825_v52, %v15670_v44  ;;  %v8835_v43 = vmul.f32 %v8825_v52, %v15665_v7  ;;  %v8836_v36 = vmul.f32 %v8825_v52, %v15684_v20  ;;  %v8837_v10 = vmul.f32 %v8825_v52, %v15679_v28  ;;  %v17326_v47 = vld [vmem:[#allocation87_spill] sm:$0xff]  ;;  %v17330_v28 = vld [vmem:[#allocation185_spill] sm:$0xff]  ;;  %v17336_v56 = vld [vmem:[#allocation174_spill] sm:$0xff] }
 0xd00   : > { %v8838_v12 = vmul.f32 %v8825_v52, %v15698_v57  ;;  %v8839_v50 = vmul.f32 %v8825_v52, %v15693_v45  ;;  %v8840_v5 = vmul.f32 %v8825_v52, %v15712_v22  ;;  %v8841_v8 = vmul.f32 %v8825_v52, %v17324_v16  ;;  %v17327_v44 = vld [vmem:[#allocation179_spill] sm:$0xff]  ;;  %v17331_v57 = vld [vmem:[#allocation96_spill] sm:$0xff]  ;;  %v17332_v34 = vld [vmem:[#allocation65_spill] sm:$0xff] }
 0xd01   : > { %v8842_v30 = vmul.f32 %v8825_v52, %v17325_v25  ;;  %v8843_v40 = vmul.f32 %v8825_v52, %v17326_v47  ;;  %v8844_v27 = vmul.f32 %v8825_v52, %v17327_v44  ;;  %v17328_v7 = vld [vmem:[#allocation35_spill] sm:$0xff]  ;;  %v8847_v59 = vmul.f32 %v8825_v52, %v17330_v28  ;;  %v17337_v44 = vld [vmem:[#allocation68_spill] sm:$0xff] }
 0xd02   : > { %v8845_v49 = vmul.f32 %v8825_v52, %v17328_v7  ;;  %v17329_v20 = vld [vmem:[#allocation127_spill] sm:$0xff]  ;;  %v8848_v9 = vmul.f32 %v8825_v52, %v17331_v57  ;;  %v8849_v45 = vmul.f32 %v8825_v52, %v17332_v34  ;;  %v8850_v22 = vmul.f32 %v8825_v52, %v17333_v1  ;;  %v17339_v34 = vld [vmem:[#allocation144_spill] sm:$0xff]  ;;  %v17340_v57 = vld [vmem:[#allocation78_spill] sm:$0xff] }
 0xd03   : > { %v8846_v33 = vmul.f32 %v8825_v52, %v17329_v20  ;;  %v8851_v16 = vmul.f32 %v8825_v52, %v17334_v23  ;;  %v8852_v25 = vmul.f32 %v8825_v52, %v17335_v41  ;;  %v8853_v47 = vmul.f32 %v8825_v52, %v17336_v56  ;;  %v17338_v20 = vld [vmem:[#allocation155_spill] sm:$0xff] }
 0xd04   : > { %v8854_v7 = vmul.f32 %v8825_v52, %v17337_v44  ;;  %v8855_v28 = vmul.f32 %v8825_v52, %v17338_v20  ;;  %v8856_v1 = vmul.f32 %v8825_v52, %v17339_v34  ;;  %v8857_v23 = vmul.f32 %v8825_v52, %v17340_v57 }
 0xd05   : > { %v8858_v56 = vadd.f32 %v8826_v60, %v15888_v3  ;;  %v8859_v41 = vadd.f32 %v8827_v6, %v15891_v13  ;;  %v8860_v39 = vadd.f32 %v8828_v55, %v15894_v54  ;;  %v8861_v26 = vadd.f32 %v8829_v62, %v15897_v35  ;;  %v17347_v60 = vld [vmem:[#allocation139_spill] sm:$0xff]  ;;  %v17348_v55 = vld [vmem:[#allocation117_spill] sm:$0xff] }
 0xd06   : > { %v8862_v44 = vadd.f32 %v8830_v29, %v15900_v15  ;;  %v8863_v20 = vadd.f32 %v8831_v63, %v15903_v32  ;;  %v8864_v34 = vadd.f32 %v8832_v31, %v15906_v38  ;;  %v8865_v52 = vadd.f32 %v8833_v21, %v15909_v37  ;;  %v17349_v29 = vld [vmem:[#allocation122_spill] sm:$0xff] }
 0xd07   : > { %v8866_v3 = vadd.f32 %v8834_v4, %v15912_v48  ;;  %v8867_v13 = vadd.f32 %v8835_v43, %v15915_v24  ;;  %v8868_v54 = vadd.f32 %v8836_v36, %v15918_v2  ;;  %v8869_v35 = vadd.f32 %v8837_v10, %v15921_v17  ;;  %8890 = vst.msk [vmem:[%s16018_s15] sm:$0xff] %vm225_vm0, %v8858_v56 }
 0xd08   : > { %8891 = vst.msk [vmem:[%s16018_s15 + $0x8] sm:$0xff] %vm225_vm0, %v8859_v41  ;;  %8892 = vst.msk [vmem:[%s16018_s15 + $0x10] sm:$0xff] %vm225_vm0, %v8860_v39  ;;  %v8870_v32 = vadd.f32 %v8838_v12, %v15924_v19  ;;  %v8871_v15 = vadd.f32 %v8839_v50, %v15927_v14  ;;  %v8872_v38 = vadd.f32 %v8840_v5, %v15930_v46 }
 0xd09   : > { %8893 = vst.msk [vmem:[%s16018_s15 + $0x18] sm:$0xff] %vm225_vm0, %v8861_v26  ;;  %v8873_v37 = vadd.f32 %v8841_v8, %v15933_v58  ;;  %8894 = vst.msk [vmem:[%s16018_s15 + $0x20] sm:$0xff] %vm225_vm0, %v8862_v44  ;;  %v8874_v48 = vadd.f32 %v8842_v30, %v15936_v0  ;;  %v8875_v24 = vadd.f32 %v8843_v40, %v15939_v18  ;;  %v17341_v58 = vld [vmem:[#allocation59_spill] sm:$0xff]  ;;  %v17345_v26 = vld [vmem:[#allocation192_spill] sm:$0xff] }
 0xd0a   : > { %8895 = vst.msk [vmem:[%s16018_s15 + $0x28] sm:$0xff] %vm225_vm0, %v8863_v20  ;;  %8896 = vst.msk [vmem:[%s16018_s15 + $0x30] sm:$0xff] %vm225_vm0, %v8864_v34  ;;  %v8876_v2 = vadd.f32 %v8844_v27, %v15942_v51  ;;  %v8877_v17 = vadd.f32 %v8845_v49, %v15945_v42  ;;  %v8878_v19 = vadd.f32 %v8846_v33, %v15948_v61  ;;  %v17342_v18 = vld [vmem:[#allocation39_spill] sm:$0xff]  ;;  %v17343_v42 = vld [vmem:[#allocation94_spill] sm:$0xff] }
 0xd0b   : > { %8897 = vst.msk [vmem:[%s16018_s15 + $0x38] sm:$0xff] %vm225_vm0, %v8865_v52  ;;  %8898 = vst.msk [vmem:[%s16018_s15 + $0x40] sm:$0xff] %vm225_vm0, %v8866_v3  ;;  %v8879_v14 = vadd.f32 %v8847_v59, %v15951_v11  ;;  %v8880_v46 = vadd.f32 %v8848_v9, %v15954_v53  ;;  %v8881_v0 = vadd.f32 %v8849_v45, %v17341_v58  ;;  %v17344_v11 = vld [vmem:[#allocation112_spill] sm:$0xff]  ;;  %v17346_v9 = vld [vmem:[#allocation58_spill] sm:$0xff] }
 0xd0c   : > { %8899 = vst.msk [vmem:[%s16018_s15 + $0x48] sm:$0xff] %vm225_vm0, %v8867_v13  ;;  %8900 = vst.msk [vmem:[%s16018_s15 + $0x50] sm:$0xff] %vm225_vm0, %v8868_v54  ;;  %v8882_v51 = vadd.f32 %v8850_v22, %v17342_v18  ;;  %v8883_v61 = vadd.f32 %v8851_v16, %v17343_v42  ;;  %v8884_v53 = vadd.f32 %v8852_v25, %v17344_v11 }
 0xd0d   : > { %8901 = vst.msk [vmem:[%s16018_s15 + $0x58] sm:$0xff] %vm225_vm0, %v8869_v35  ;;  %8902 = vst.msk [vmem:[%s16018_s15 + $0x60] sm:$0xff] %vm225_vm0, %v8870_v32  ;;  %v8885_v39 = vadd.f32 %v8853_v47, %v17345_v26  ;;  %v8886_v59 = vadd.f32 %v8854_v7, %v17346_v9  ;;  %v8887_v6 = vadd.f32 %v8855_v28, %v17347_v60 }
 0xd0e   : > { %8903 = vst.msk [vmem:[%s16018_s15 + $0x68] sm:$0xff] %vm225_vm0, %v8871_v15  ;;  %8904 = vst.msk [vmem:[%s16018_s15 + $0x70] sm:$0xff] %vm225_vm0, %v8872_v38  ;;  %v8888_v62 = vadd.f32 %v8856_v1, %v17348_v55  ;;  %v8889_v63 = vadd.f32 %v8857_v23, %v17349_v29 }
 0xd0f   : > { %8905 = vst.msk [vmem:[%s16018_s15 + $0x78] sm:$0xff] %vm225_vm0, %v8873_v37  ;;  %8906 = vst.msk [vmem:[%s16018_s15 + $0x80] sm:$0xff] %vm225_vm0, %v8874_v48 }
 0xd10   : > { %8907 = vst.msk [vmem:[%s16018_s15 + $0x88] sm:$0xff] %vm225_vm0, %v8875_v24  ;;  %8908 = vst.msk [vmem:[%s16018_s15 + $0x90] sm:$0xff] %vm225_vm0, %v8876_v2 }
 0xd11   : > { %8909 = vst.msk [vmem:[%s16018_s15 + $0x98] sm:$0xff] %vm225_vm0, %v8877_v17  ;;  %8910 = vst.msk [vmem:[%s16018_s15 + $0xa0] sm:$0xff] %vm225_vm0, %v8878_v19 }
 0xd12   : > { %8911 = vst.msk [vmem:[%s16018_s15 + $0xa8] sm:$0xff] %vm225_vm0, %v8879_v14  ;;  %8912 = vst.msk [vmem:[%s16018_s15 + $0xb0] sm:$0xff] %vm225_vm0, %v8880_v46 }
 0xd13   : > { %8913 = vst.msk [vmem:[%s16018_s15 + $0xb8] sm:$0xff] %vm225_vm0, %v8881_v0  ;;  %8914 = vst.msk [vmem:[%s16018_s15 + $0xc0] sm:$0xff] %vm225_vm0, %v8882_v51 }
 0xd14   : > { %8915 = vst.msk [vmem:[%s16018_s15 + $0xc8] sm:$0xff] %vm225_vm0, %v8883_v61  ;;  %8916 = vst.msk [vmem:[%s16018_s15 + $0xd0] sm:$0xff] %vm225_vm0, %v8884_v53 }
 0xd15   : > { %8917 = vst.msk [vmem:[%s16018_s15 + $0xd8] sm:$0xff] %vm225_vm0, %v8885_v39  ;;  %8918 = vst.msk [vmem:[%s16018_s15 + $0xe0] sm:$0xff] %vm225_vm0, %v8886_v59 }
 0xd16   : > { %8919 = vst.msk [vmem:[%s16018_s15 + $0xe8] sm:$0xff] %vm225_vm0, %v8887_v6  ;;  %8920 = vst.msk [vmem:[%s16018_s15 + $0xf0] sm:$0xff] %vm225_vm0, %v8888_v62 }
 0xd17   : > { %8921 = vst.msk [vmem:[%s16018_s15 + $0xf8] sm:$0xff] %vm225_vm0, %v8889_v63 }
 0xd18 PF: > { %s15_s18 = sadd.s32 1, %s9646_s18  }
 0xd19   : > { %p12_p4 = scmp.ge.s32.totalorder %s15_s18, 4  }
 0xd1b   :  { %14 = sbr.rel (!%p12_p4) target bundleno = 1 (0x1), region = 80 }

</bundles_post_ra>
